<compile_context>
chip_gen: v7x
topology: tpu7x:2x2x1
jax: 0.10.0
libtpu: 0.0.40
codegen_flags: <defaults>
</compile_context>

<pallas_src>
import functools

import jax
import jax.numpy as jnp
from jax import lax
from jax.experimental import pallas as pl
from jax.experimental.pallas import tpu as pltpu

EPS = 1e-5       # InstanceNorm1d default eps
SLOPE = 0.01     # LeakyReLU default negative_slope
HEAD_W = 16      # fused head width: 9 (xyz) + 5 (l1) + 2 pad
TB_MAX = 512     # max batch-tile rows (fits 32 MiB scoped VMEM on v7x)


def _round_up(n, m):
    return (n + m - 1) // m * m


# ----------------------------- shared math -----------------------------------
def _mm(a, w):
    # MXU matmul: bf16 inputs, f32 accumulation (no-op cast if already bf16).
    return jnp.dot(a.astype(jnp.bfloat16), w, preferred_element_type=jnp.float32)


def _inorm(h):
    # InstanceNorm1d on 2-D input: per-row normalization over the last axis.
    # One-pass moment form: the two reductions are independent (not serialized
    # through the mean), shortening the XLU critical path.  Kept in f32.
    s1 = jnp.mean(h, axis=-1, keepdims=True)
    s2 = jnp.mean(h * h, axis=-1, keepdims=True)
    return (h - s1) * lax.rsqrt(s2 - s1 * s1 + EPS)


def _lrelu(h, dtype=jnp.bfloat16):
    # LeakyReLU with the f32->bf16 downcast fused into the same elementwise
    # pass (every _lrelu output here feeds an MXU matmul).
    return jnp.where(h >= 0, h, SLOPE * h).astype(dtype)


def _forward_math(x, pooled,
                  w_img, b_img,
                  w0a, b0a, w0b, b0b,
                  w1a, b1a, w1b, b1b, ws1, bs1,
                  w2a, b2a, w2b, b2b, ws2, bs2,
                  w3x, w3i, b3,
                  w_head, b_head, xyz_mask, w_tail, b_tail):
    # image branch (ResNet18 placeholder, part 2): Linear(C_img, 512)
    img_f = _mm(pooled, w_img) + b_img                   # (TB, 512) f32

    # layer_0: Linear -> InstanceNorm -> LeakyReLU -> Linear
    h = _mm(x, w0a) + b0a
    h = _lrelu(_inorm(h))
    x1 = _mm(h, w0b) + b0b                               # (TB, 128) f32

    # layer_1 + skip_1
    h = _lrelu(_inorm(x1))
    h = _mm(h, w1a) + b1a
    h = _lrelu(_inorm(h))
    x2 = _mm(h, w1b) + b1b + _inorm(_mm(x1, ws1) + bs1)  # (TB, 256) f32

    # layer_2 + skip_2
    h = _lrelu(_inorm(x2))
    h = _mm(h, w2a) + b2a
    h = _lrelu(_inorm(h))
    x3 = _mm(h, w2b) + b2b + _inorm(_mm(x2, ws2) + bs2)  # (TB, 512) f32

    # layer_3: Dropout(identity) + Linear(1024, 64) on cat([x3, img_f], -1)
    feature = _mm(x3, w3x) + _mm(img_f, w3i) + b3        # (TB, 64) f32

    # fused head: cols 0-8 = xyz (layer_out0/1/2), cols 9-13 = l1 pre-activation
    head = _mm(feature, w_head) + b_head                 # (TB, 16) f32
    # layer_out3 tail: LeakyReLU -> Linear(5,5), folded into a masked 16x16 matmul
    out = head * xyz_mask + _mm(_lrelu(head), w_tail) + b_tail
    return out                                           # (TB, 16) f32


# ------------------------------ Pallas kernel ---------------------------------
def feature_mlp_kernel(*refs):
    out_ref = refs[-1]
    vals = [r[...] for r in refs[:-1]]                   # per-tile + resident params
    out_ref[...] = _forward_math(*vals).astype(out_ref.dtype)


def prepare_params(p):
    """One-time (outside the jitted forward) weight prep:
    bf16 casts + fused lane-packed head matrices.  Call once at model setup."""
    bf = lambda w: w.astype(jnp.bfloat16)
    w3x, w3i = p["w3"][:512], p["w3"][512:]                        # cat-free split
    wxyz = jnp.concatenate([p["wx"], p["wy"], p["wz"]], axis=1)    # (64, 9)
    bxyz = jnp.concatenate([p["bx"], p["by"], p["bz"]], axis=1)    # (1, 9)

    w_head = jnp.zeros((64, HEAD_W), jnp.float32)
    w_head = w_head.at[:, 0:9].set(wxyz).at[:, 9:14].set(p["wl1a"])
    b_head = jnp.zeros((1, HEAD_W), jnp.float32)
    b_head = b_head.at[:, 0:9].set(bxyz).at[:, 9:14].set(p["bl1a"])
    xyz_mask = jnp.zeros((1, HEAD_W), jnp.float32).at[:, 0:9].set(1.0)
    w_tail = jnp.zeros((HEAD_W, HEAD_W), jnp.float32).at[9:14, 9:14].set(p["wl1b"])
    b_tail = jnp.zeros((1, HEAD_W), jnp.float32).at[:, 9:14].set(p["bl1b"])

    return (bf(p["w_img"]), p["b_img"],
            bf(p["w0a"]), p["b0a"], bf(p["w0b"]), p["b0b"],
            bf(p["w1a"]), p["b1a"], bf(p["w1b"]), p["b1b"],
            bf(p["ws1"]), p["bs1"],
            bf(p["w2a"]), p["b2a"], bf(p["w2b"]), p["b2b"],
            bf(p["ws2"]), p["bs2"],
            bf(w3x), bf(w3i), p["b3"],
            bf(w_head), b_head, xyz_mask, bf(w_tail), b_tail)


def _choose_tb(B):
    """Batch tile (multiple of 8 f32 sublanes).  For large B, force an even
    tile count >= 2 so the 'parallel' axis splits across both v7x TCs."""
    if B <= 16:
        return _round_up(max(B, 1), 8)
    tiles = max(2, pl.cdiv(B, TB_MAX))
    if tiles % 2:
        tiles += 1
    return min(TB_MAX, _round_up(pl.cdiv(B, tiles), 8))


def feature_mlp_forward(x, img, prep, single_buffer_weights=True):
    """x: (B, C_in) f32, img: (B, C_img, H, W) f32 (NCHW),
    prep: output of prepare_params (already bf16 / fused)."""
    B = x.shape[0]
    # ResNet18 placeholder, part 1: global average pool.  Pure HBM-bandwidth
    # reduce -> leave it to XLA; the big NCHW tensor never enters kernel VMEM.
    pooled = jnp.mean(img.reshape(B, img.shape[1], -1), axis=-1)   # (B, C_img)

    TB = _choose_tb(B)
    B_pad = _round_up(B, TB)
    if B_pad != B:
        x = jnp.pad(x, ((0, B_pad - B), (0, 0)))
        pooled = jnp.pad(pooled, ((0, B_pad - B), (0, 0)))

    row_spec = lambda n: pl.BlockSpec((TB, n), lambda i: (i, 0))
    if single_buffer_weights:
        # Constant-index-map weights are fetched once; single-buffer them so
        # VMEM isn't wasted on a never-used second copy.
        const_spec = lambda a: pl.BlockSpec(a.shape, lambda i: (0, 0),
                                            pipeline_mode=pl.Buffered(1))
    else:
        const_spec = lambda a: pl.BlockSpec(a.shape, lambda i: (0, 0))

    out = pl.pallas_call(
        feature_mlp_kernel,
        grid=(B_pad // TB,),
        in_specs=[row_spec(x.shape[1]), row_spec(pooled.shape[1])]
                 + [const_spec(a) for a in prep],
        out_specs=pl.BlockSpec((TB, HEAD_W), lambda i: (i, 0)),
        out_shape=jax.ShapeDtypeStruct((B_pad, HEAD_W), jnp.float32),
        compiler_params=pltpu.CompilerParams(
            dimension_semantics=("parallel",),          # shard batch tiles across TCs
            vmem_limit_bytes=32 * 1024 * 1024),
    )(x, pooled, *prep)

    # slice off padded rows / padded lanes
    return out[:B, 0:9], out[:B, 9:14]                  # cat([pred_x,y,z]), pred_l1


def feature_mlp_reference(x, img, prep):
    """Pure-JAX reference with identical math (for the correctness check)."""
    B = x.shape[0]
    pooled = jnp.mean(img.reshape(B, img.shape[1], -1), axis=-1)
    out = _forward_math(x, pooled, *prep)
    return out[:, 0:9], out[:, 9:14]


# ------------------------------ parameters ------------------------------------
def _init_linear(key, fan_in, fan_out):
    # PyTorch nn.Linear default init: U(-1/sqrt(fan_in), 1/sqrt(fan_in)).
    kw, kb = jax.random.split(key)
    bound = 1.0 / float(fan_in) ** 0.5
    w = jax.random.uniform(kw, (fan_in, fan_out), jnp.float32, -bound, bound)
    b = jax.random.uniform(kb, (1, fan_out), jnp.float32, -bound, bound)
    return w, b


def build_params(key, channel, c_img):
    keys = jax.random.split(key, 15)
    p = {}
    p["w_img"], p["b_img"] = _init_linear(keys[0], c_img, 512)   # ResNet18 placeholder proj
    p["w0a"], p["b0a"] = _init_linear(keys[1], channel, 64)
    p["w0b"], p["b0b"] = _init_linear(keys[2], 64, 128)
    p["w1a"], p["b1a"] = _init_linear(keys[3], 128, 256)
    p["w1b"], p["b1b"] = _init_linear(keys[4], 256, 256)
    p["ws1"], p["bs1"] = _init_linear(keys[5], 128, 256)
    p["w2a"], p["b2a"] = _init_linear(keys[6], 256, 512)
    p["w2b"], p["b2b"] = _init_linear(keys[7], 512, 512)
    p["ws2"], p["bs2"] = _init_linear(keys[8], 256, 512)
    p["w3"], p["b3"] = _init_linear(keys[9], 512 * 2, 64)
    p["wx"], p["bx"] = _init_linear(keys[10], 64, 3)
    p["wy"], p["by"] = _init_linear(keys[11], 64, 3)
    p["wz"], p["bz"] = _init_linear(keys[12], 64, 3)
    p["wl1a"], p["bl1a"] = _init_linear(keys[13], 64, 5)
    p["wl1b"], p["bl1b"] = _init_linear(keys[14], 5, 5)
    return p


# --------------------------------- main ----------------------------------------
if __name__ == "__main__":
    key = jax.random.PRNGKey(0)
    k_x, k_img, k_p = jax.random.split(key, 3)

    B, C_in, C_img, H, W = 2, 4, 4, 16, 16
    x = jax.random.normal(k_x, (B, C_in), jnp.float32)
    img = jax.random.normal(k_img, (B, C_img, H, W), jnp.float32)   # NCHW
    params = build_params(k_p, C_in, C_img)

    # One-time weight prep, hoisted out of the per-call jitted path.
    prep = jax.block_until_ready(prepare_params(params))

    try:
        fwd = jax.jit(functools.partial(feature_mlp_forward, single_buffer_weights=True))
        out_xyz, out_l1 = jax.block_until_ready(fwd(x, img, prep))
    except Exception:
        # Fallback if this jax build rejects pipeline_mode=pl.Buffered(1);
        # identical math, default double-buffered constant specs.
        fwd = jax.jit(functools.partial(feature_mlp_forward, single_buffer_weights=False))
        out_xyz, out_l1 = jax.block_until_ready(fwd(x, img, prep))

    ref_xyz, ref_l1 = feature_mlp_reference(x, img, prep)
    assert out_xyz.shape == (B, 9) and out_l1.shape == (B, 5)
    # bf16 weights/activations -> ~1e-2 agreement with an f32 PyTorch module.
    assert jnp.allclose(out_xyz, ref_xyz, rtol=2e-2, atol=2e-2)
    assert jnp.allclose(out_l1, ref_l1, rtol=2e-2, atol=2e-2)
    print("KERNEL_OK")
</pallas_src>

<mosaic_0001>
module attributes {stable_mosaic.version = 11 : i64} {
  func.func @feature_mlp_kernel(%arg0: i32, %arg1: memref<8x4xf32, #tpu.memory_space<vmem>>, %arg2: memref<8x4xf32, #tpu.memory_space<vmem>>, %arg3: memref<4x512xbf16, #tpu.memory_space<vmem>>, %arg4: memref<1x512xf32, #tpu.memory_space<vmem>>, %arg5: memref<4x64xbf16, #tpu.memory_space<vmem>>, %arg6: memref<1x64xf32, #tpu.memory_space<vmem>>, %arg7: memref<64x128xbf16, #tpu.memory_space<vmem>>, %arg8: memref<1x128xf32, #tpu.memory_space<vmem>>, %arg9: memref<128x256xbf16, #tpu.memory_space<vmem>>, %arg10: memref<1x256xf32, #tpu.memory_space<vmem>>, %arg11: memref<256x256xbf16, #tpu.memory_space<vmem>>, %arg12: memref<1x256xf32, #tpu.memory_space<vmem>>, %arg13: memref<128x256xbf16, #tpu.memory_space<vmem>>, %arg14: memref<1x256xf32, #tpu.memory_space<vmem>>, %arg15: memref<256x512xbf16, #tpu.memory_space<vmem>>, %arg16: memref<1x512xf32, #tpu.memory_space<vmem>>, %arg17: memref<512x512xbf16, #tpu.memory_space<vmem>>, %arg18: memref<1x512xf32, #tpu.memory_space<vmem>>, %arg19: memref<256x512xbf16, #tpu.memory_space<vmem>>, %arg20: memref<1x512xf32, #tpu.memory_space<vmem>>, %arg21: memref<512x64xbf16, #tpu.memory_space<vmem>>, %arg22: memref<512x64xbf16, #tpu.memory_space<vmem>>, %arg23: memref<1x64xf32, #tpu.memory_space<vmem>>, %arg24: memref<64x16xbf16, #tpu.memory_space<vmem>>, %arg25: memref<1x16xf32, #tpu.memory_space<vmem>>, %arg26: memref<1x16xf32, #tpu.memory_space<vmem>>, %arg27: memref<16x16xbf16, #tpu.memory_space<vmem>>, %arg28: memref<1x16xf32, #tpu.memory_space<vmem>>, %arg29: memref<8x16xf32, #tpu.memory_space<vmem>>) attributes {dimension_semantics = [#tpu.dimension_semantics<parallel>], iteration_bounds = array<i64: 1>, scalar_prefetch = 0 : i64, scratch_operands = 0 : i64, tpu.core_type = #tpu.core_type<tc>, window_params = [{transform_indices = @transform_0, window_bounds = array<i64: 8, 4>}, {transform_indices = @transform_1, window_bounds = array<i64: 8, 4>}, {pipeline_mode = #tpu.pipeline_mode<synchronous>, transform_indices = @transform_2, window_bounds = array<i64: 4, 512>}, {pipeline_mode = #tpu.pipeline_mode<synchronous>, transform_indices = @transform_3, window_bounds = array<i64: 1, 512>}, {pipeline_mode = #tpu.pipeline_mode<synchronous>, transform_indices = @transform_4, window_bounds = array<i64: 4, 64>}, {pipeline_mode = #tpu.pipeline_mode<synchronous>, transform_indices = @transform_5, window_bounds = array<i64: 1, 64>}, {pipeline_mode = #tpu.pipeline_mode<synchronous>, transform_indices = @transform_6, window_bounds = array<i64: 64, 128>}, {pipeline_mode = #tpu.pipeline_mode<synchronous>, transform_indices = @transform_7, window_bounds = array<i64: 1, 128>}, {pipeline_mode = #tpu.pipeline_mode<synchronous>, transform_indices = @transform_8, window_bounds = array<i64: 128, 256>}, {pipeline_mode = #tpu.pipeline_mode<synchronous>, transform_indices = @transform_9, window_bounds = array<i64: 1, 256>}, {pipeline_mode = #tpu.pipeline_mode<synchronous>, transform_indices = @transform_10, window_bounds = array<i64: 256, 256>}, {pipeline_mode = #tpu.pipeline_mode<synchronous>, transform_indices = @transform_11, window_bounds = array<i64: 1, 256>}, {pipeline_mode = #tpu.pipeline_mode<synchronous>, transform_indices = @transform_12, window_bounds = array<i64: 128, 256>}, {pipeline_mode = #tpu.pipeline_mode<synchronous>, transform_indices = @transform_13, window_bounds = array<i64: 1, 256>}, {pipeline_mode = #tpu.pipeline_mode<synchronous>, transform_indices = @transform_14, window_bounds = array<i64: 256, 512>}, {pipeline_mode = #tpu.pipeline_mode<synchronous>, transform_indices = @transform_15, window_bounds = array<i64: 1, 512>}, {pipeline_mode = #tpu.pipeline_mode<synchronous>, transform_indices = @transform_16, window_bounds = array<i64: 512, 512>}, {pipeline_mode = #tpu.pipeline_mode<synchronous>, transform_indices = @transform_17, window_bounds = array<i64: 1, 512>}, {pipeline_mode = #tpu.pipeline_mode<synchronous>, transform_indices = @transform_18, window_bounds = array<i64: 256, 512>}, {pipeline_mode = #tpu.pipeline_mode<synchronous>, transform_indices = @transform_19, window_bounds = array<i64: 1, 512>}, {pipeline_mode = #tpu.pipeline_mode<synchronous>, transform_indices = @transform_20, window_bounds = array<i64: 512, 64>}, {pipeline_mode = #tpu.pipeline_mode<synchronous>, transform_indices = @transform_21, window_bounds = array<i64: 512, 64>}, {pipeline_mode = #tpu.pipeline_mode<synchronous>, transform_indices = @transform_22, window_bounds = array<i64: 1, 64>}, {pipeline_mode = #tpu.pipeline_mode<synchronous>, transform_indices = @transform_23, window_bounds = array<i64: 64, 16>}, {pipeline_mode = #tpu.pipeline_mode<synchronous>, transform_indices = @transform_24, window_bounds = array<i64: 1, 16>}, {pipeline_mode = #tpu.pipeline_mode<synchronous>, transform_indices = @transform_25, window_bounds = array<i64: 1, 16>}, {pipeline_mode = #tpu.pipeline_mode<synchronous>, transform_indices = @transform_26, window_bounds = array<i64: 16, 16>}, {pipeline_mode = #tpu.pipeline_mode<synchronous>, transform_indices = @transform_27, window_bounds = array<i64: 1, 16>}, {transform_indices = @transform_28, window_bounds = array<i64: 8, 16>}]} {
    %c0 = arith.constant 0 : index
    %c0_0 = arith.constant 0 : index
    %0 = vector.load %arg1[%c0, %c0_0] : memref<8x4xf32, #tpu.memory_space<vmem>>, vector<8x4xf32>
    %c0_1 = arith.constant 0 : index
    %c0_2 = arith.constant 0 : index
    %1 = vector.load %arg2[%c0_1, %c0_2] : memref<8x4xf32, #tpu.memory_space<vmem>>, vector<8x4xf32>
    %c0_3 = arith.constant 0 : index
    %c0_4 = arith.constant 0 : index
    %2 = vector.load %arg3[%c0_3, %c0_4] : memref<4x512xbf16, #tpu.memory_space<vmem>>, vector<4x512xbf16>
    %c0_5 = arith.constant 0 : index
    %c0_6 = arith.constant 0 : index
    %3 = vector.load %arg4[%c0_5, %c0_6] : memref<1x512xf32, #tpu.memory_space<vmem>>, vector<1x512xf32>
    %c0_7 = arith.constant 0 : index
    %c0_8 = arith.constant 0 : index
    %4 = vector.load %arg5[%c0_7, %c0_8] : memref<4x64xbf16, #tpu.memory_space<vmem>>, vector<4x64xbf16>
    %c0_9 = arith.constant 0 : index
    %c0_10 = arith.constant 0 : index
    %5 = vector.load %arg6[%c0_9, %c0_10] : memref<1x64xf32, #tpu.memory_space<vmem>>, vector<1x64xf32>
    %c0_11 = arith.constant 0 : index
    %c0_12 = arith.constant 0 : index
    %6 = vector.load %arg7[%c0_11, %c0_12] : memref<64x128xbf16, #tpu.memory_space<vmem>>, vector<64x128xbf16>
    %c0_13 = arith.constant 0 : index
    %c0_14 = arith.constant 0 : index
    %7 = vector.load %arg8[%c0_13, %c0_14] : memref<1x128xf32, #tpu.memory_space<vmem>>, vector<1x128xf32>
    %c0_15 = arith.constant 0 : index
    %c0_16 = arith.constant 0 : index
    %8 = vector.load %arg9[%c0_15, %c0_16] : memref<128x256xbf16, #tpu.memory_space<vmem>>, vector<128x256xbf16>
    %c0_17 = arith.constant 0 : index
    %c0_18 = arith.constant 0 : index
    %9 = vector.load %arg10[%c0_17, %c0_18] : memref<1x256xf32, #tpu.memory_space<vmem>>, vector<1x256xf32>
    %c0_19 = arith.constant 0 : index
    %c0_20 = arith.constant 0 : index
    %10 = vector.load %arg11[%c0_19, %c0_20] : memref<256x256xbf16, #tpu.memory_space<vmem>>, vector<256x256xbf16>
    %c0_21 = arith.constant 0 : index
    %c0_22 = arith.constant 0 : index
    %11 = vector.load %arg12[%c0_21, %c0_22] : memref<1x256xf32, #tpu.memory_space<vmem>>, vector<1x256xf32>
    %c0_23 = arith.constant 0 : index
    %c0_24 = arith.constant 0 : index
    %12 = vector.load %arg13[%c0_23, %c0_24] : memref<128x256xbf16, #tpu.memory_space<vmem>>, vector<128x256xbf16>
    %c0_25 = arith.constant 0 : index
    %c0_26 = arith.constant 0 : index
    %13 = vector.load %arg14[%c0_25, %c0_26] : memref<1x256xf32, #tpu.memory_space<vmem>>, vector<1x256xf32>
    %c0_27 = arith.constant 0 : index
    %c0_28 = arith.constant 0 : index
    %14 = vector.load %arg15[%c0_27, %c0_28] : memref<256x512xbf16, #tpu.memory_space<vmem>>, vector<256x512xbf16>
    %c0_29 = arith.constant 0 : index
    %c0_30 = arith.constant 0 : index
    %15 = vector.load %arg16[%c0_29, %c0_30] : memref<1x512xf32, #tpu.memory_space<vmem>>, vector<1x512xf32>
    %c0_31 = arith.constant 0 : index
    %c0_32 = arith.constant 0 : index
    %16 = vector.load %arg17[%c0_31, %c0_32] : memref<512x512xbf16, #tpu.memory_space<vmem>>, vector<512x512xbf16>
    %c0_33 = arith.constant 0 : index
    %c0_34 = arith.constant 0 : index
    %17 = vector.load %arg18[%c0_33, %c0_34] : memref<1x512xf32, #tpu.memory_space<vmem>>, vector<1x512xf32>
    %c0_35 = arith.constant 0 : index
    %c0_36 = arith.constant 0 : index
    %18 = vector.load %arg19[%c0_35, %c0_36] : memref<256x512xbf16, #tpu.memory_space<vmem>>, vector<256x512xbf16>
    %c0_37 = arith.constant 0 : index
    %c0_38 = arith.constant 0 : index
    %19 = vector.load %arg20[%c0_37, %c0_38] : memref<1x512xf32, #tpu.memory_space<vmem>>, vector<1x512xf32>
    %c0_39 = arith.constant 0 : index
    %c0_40 = arith.constant 0 : index
    %20 = vector.load %arg21[%c0_39, %c0_40] : memref<512x64xbf16, #tpu.memory_space<vmem>>, vector<512x64xbf16>
    %c0_41 = arith.constant 0 : index
    %c0_42 = arith.constant 0 : index
    %21 = vector.load %arg22[%c0_41, %c0_42] : memref<512x64xbf16, #tpu.memory_space<vmem>>, vector<512x64xbf16>
    %c0_43 = arith.constant 0 : index
    %c0_44 = arith.constant 0 : index
    %22 = vector.load %arg23[%c0_43, %c0_44] : memref<1x64xf32, #tpu.memory_space<vmem>>, vector<1x64xf32>
    %c0_45 = arith.constant 0 : index
    %c0_46 = arith.constant 0 : index
    %23 = vector.load %arg24[%c0_45, %c0_46] : memref<64x16xbf16, #tpu.memory_space<vmem>>, vector<64x16xbf16>
    %c0_47 = arith.constant 0 : index
    %c0_48 = arith.constant 0 : index
    %24 = vector.load %arg25[%c0_47, %c0_48] : memref<1x16xf32, #tpu.memory_space<vmem>>, vector<1x16xf32>
    %c0_49 = arith.constant 0 : index
    %c0_50 = arith.constant 0 : index
    %25 = vector.load %arg26[%c0_49, %c0_50] : memref<1x16xf32, #tpu.memory_space<vmem>>, vector<1x16xf32>
    %c0_51 = arith.constant 0 : index
    %c0_52 = arith.constant 0 : index
    %26 = vector.load %arg27[%c0_51, %c0_52] : memref<16x16xbf16, #tpu.memory_space<vmem>>, vector<16x16xbf16>
    %c0_53 = arith.constant 0 : index
    %c0_54 = arith.constant 0 : index
    %27 = vector.load %arg28[%c0_53, %c0_54] : memref<1x16xf32, #tpu.memory_space<vmem>>, vector<1x16xf32>
    %28 = arith.truncf %1 : vector<8x4xf32> to vector<8x4xbf16>
    %cst = arith.constant dense<0.000000e+00> : vector<8x512xf32>
    %29 = tpu.matmul %28, %2, %cst {dimension_numbers = #tpu.dot_dimension_numbers<[1], [0], [0], [1], [0, 0, 1, 1], [], []>} : vector<8x4xbf16>, vector<4x512xbf16>, vector<8x512xf32> -> vector<8x512xf32>
    %30 = vector.broadcast %3 : vector<1x512xf32> to vector<8x512xf32>
    %31 = arith.addf %29, %30 : vector<8x512xf32>
    %32 = arith.truncf %0 : vector<8x4xf32> to vector<8x4xbf16>
    %cst_55 = arith.constant dense<0.000000e+00> : vector<8x64xf32>
    %33 = tpu.matmul %32, %4, %cst_55 {dimension_numbers = #tpu.dot_dimension_numbers<[1], [0], [0], [1], [0, 0, 1, 1], [], []>} : vector<8x4xbf16>, vector<4x64xbf16>, vector<8x64xf32> -> vector<8x64xf32>
    %34 = vector.broadcast %5 : vector<1x64xf32> to vector<8x64xf32>
    %35 = arith.addf %33, %34 : vector<8x64xf32>
    %cst_56 = arith.constant dense<0.000000e+00> : vector<8xf32>
    %36 = vector.multi_reduction <add>, %35, %cst_56 [1] : vector<8x64xf32> to vector<8xf32>
    %37 = vector.shape_cast %36 : vector<8xf32> to vector<8x1xf32>
    %cst_57 = arith.constant 6.400000e+01 : f32
    %38 = vector.broadcast %cst_57 : f32 to vector<8x1xf32>
    %39 = arith.divf %37, %38 : vector<8x1xf32>
    %40 = arith.mulf %35, %35 : vector<8x64xf32>
    %cst_58 = arith.constant dense<0.000000e+00> : vector<8xf32>
    %41 = vector.multi_reduction <add>, %40, %cst_58 [1] : vector<8x64xf32> to vector<8xf32>
    %42 = vector.shape_cast %41 : vector<8xf32> to vector<8x1xf32>
    %cst_59 = arith.constant 6.400000e+01 : f32
    %43 = vector.broadcast %cst_59 : f32 to vector<8x1xf32>
    %44 = arith.divf %42, %43 : vector<8x1xf32>
    %45 = vector.broadcast %39 : vector<8x1xf32> to vector<8x64xf32>
    %46 = arith.subf %35, %45 : vector<8x64xf32>
    %47 = arith.mulf %39, %39 : vector<8x1xf32>
    %48 = arith.subf %44, %47 : vector<8x1xf32>
    %cst_60 = arith.constant 9.99999974E-6 : f32
    %49 = vector.broadcast %cst_60 : f32 to vector<8x1xf32>
    %50 = arith.addf %48, %49 : vector<8x1xf32>
    %51 = math.rsqrt %50 : vector<8x1xf32>
    %52 = vector.broadcast %51 : vector<8x1xf32> to vector<8x64xf32>
    %53 = arith.mulf %46, %52 : vector<8x64xf32>
    %cst_61 = arith.constant 0.000000e+00 : f32
    %54 = vector.broadcast %cst_61 : f32 to vector<8x64xf32>
    %55 = arith.cmpf oge, %53, %54 : vector<8x64xf32>
    %cst_62 = arith.constant 0.00999999977 : f32
    %56 = vector.broadcast %cst_62 : f32 to vector<8x64xf32>
    %57 = arith.mulf %56, %53 : vector<8x64xf32>
    %58 = arith.select %55, %53, %57 : vector<8x64xi1>, vector<8x64xf32>
    %59 = arith.truncf %58 : vector<8x64xf32> to vector<8x64xbf16>
    %cst_63 = arith.constant dense<0.000000e+00> : vector<8x128xf32>
    %60 = tpu.matmul %59, %6, %cst_63 {dimension_numbers = #tpu.dot_dimension_numbers<[1], [0], [0], [1], [0, 0, 1, 1], [], []>} : vector<8x64xbf16>, vector<64x128xbf16>, vector<8x128xf32> -> vector<8x128xf32>
    %61 = vector.broadcast %7 : vector<1x128xf32> to vector<8x128xf32>
    %62 = arith.addf %60, %61 : vector<8x128xf32>
    %cst_64 = arith.constant dense<0.000000e+00> : vector<8xf32>
    %63 = vector.multi_reduction <add>, %62, %cst_64 [1] : vector<8x128xf32> to vector<8xf32>
    %64 = vector.shape_cast %63 : vector<8xf32> to vector<8x1xf32>
    %cst_65 = arith.constant 1.280000e+02 : f32
    %65 = vector.broadcast %cst_65 : f32 to vector<8x1xf32>
    %66 = arith.divf %64, %65 : vector<8x1xf32>
    %67 = arith.mulf %62, %62 : vector<8x128xf32>
    %cst_66 = arith.constant dense<0.000000e+00> : vector<8xf32>
    %68 = vector.multi_reduction <add>, %67, %cst_66 [1] : vector<8x128xf32> to vector<8xf32>
    %69 = vector.shape_cast %68 : vector<8xf32> to vector<8x1xf32>
    %cst_67 = arith.constant 1.280000e+02 : f32
    %70 = vector.broadcast %cst_67 : f32 to vector<8x1xf32>
    %71 = arith.divf %69, %70 : vector<8x1xf32>
    %72 = vector.broadcast %66 : vector<8x1xf32> to vector<8x128xf32>
    %73 = arith.subf %62, %72 : vector<8x128xf32>
    %74 = arith.mulf %66, %66 : vector<8x1xf32>
    %75 = arith.subf %71, %74 : vector<8x1xf32>
    %cst_68 = arith.constant 9.99999974E-6 : f32
    %76 = vector.broadcast %cst_68 : f32 to vector<8x1xf32>
    %77 = arith.addf %75, %76 : vector<8x1xf32>
    %78 = math.rsqrt %77 : vector<8x1xf32>
    %79 = vector.broadcast %78 : vector<8x1xf32> to vector<8x128xf32>
    %80 = arith.mulf %73, %79 : vector<8x128xf32>
    %cst_69 = arith.constant 0.000000e+00 : f32
    %81 = vector.broadcast %cst_69 : f32 to vector<8x128xf32>
    %82 = arith.cmpf oge, %80, %81 : vector<8x128xf32>
    %cst_70 = arith.constant 0.00999999977 : f32
    %83 = vector.broadcast %cst_70 : f32 to vector<8x128xf32>
    %84 = arith.mulf %83, %80 : vector<8x128xf32>
    %85 = arith.select %82, %80, %84 : vector<8x128xi1>, vector<8x128xf32>
    %86 = arith.truncf %85 : vector<8x128xf32> to vector<8x128xbf16>
    %cst_71 = arith.constant dense<0.000000e+00> : vector<8x256xf32>
    %87 = tpu.matmul %86, %8, %cst_71 {dimension_numbers = #tpu.dot_dimension_numbers<[1], [0], [0], [1], [0, 0, 1, 1], [], []>} : vector<8x128xbf16>, vector<128x256xbf16>, vector<8x256xf32> -> vector<8x256xf32>
    %88 = vector.broadcast %9 : vector<1x256xf32> to vector<8x256xf32>
    %89 = arith.addf %87, %88 : vector<8x256xf32>
    %cst_72 = arith.constant dense<0.000000e+00> : vector<8xf32>
    %90 = vector.multi_reduction <add>, %89, %cst_72 [1] : vector<8x256xf32> to vector<8xf32>
    %91 = vector.shape_cast %90 : vector<8xf32> to vector<8x1xf32>
    %cst_73 = arith.constant 2.560000e+02 : f32
    %92 = vector.broadcast %cst_73 : f32 to vector<8x1xf32>
    %93 = arith.divf %91, %92 : vector<8x1xf32>
    %94 = arith.mulf %89, %89 : vector<8x256xf32>
    %cst_74 = arith.constant dense<0.000000e+00> : vector<8xf32>
    %95 = vector.multi_reduction <add>, %94, %cst_74 [1] : vector<8x256xf32> to vector<8xf32>
    %96 = vector.shape_cast %95 : vector<8xf32> to vector<8x1xf32>
    %cst_75 = arith.constant 2.560000e+02 : f32
    %97 = vector.broadcast %cst_75 : f32 to vector<8x1xf32>
    %98 = arith.divf %96, %97 : vector<8x1xf32>
    %99 = vector.broadcast %93 : vector<8x1xf32> to vector<8x256xf32>
    %100 = arith.subf %89, %99 : vector<8x256xf32>
    %101 = arith.mulf %93, %93 : vector<8x1xf32>
    %102 = arith.subf %98, %101 : vector<8x1xf32>
    %cst_76 = arith.constant 9.99999974E-6 : f32
    %103 = vector.broadcast %cst_76 : f32 to vector<8x1xf32>
    %104 = arith.addf %102, %103 : vector<8x1xf32>
    %105 = math.rsqrt %104 : vector<8x1xf32>
    %106 = vector.broadcast %105 : vector<8x1xf32> to vector<8x256xf32>
    %107 = arith.mulf %100, %106 : vector<8x256xf32>
    %cst_77 = arith.constant 0.000000e+00 : f32
    %108 = vector.broadcast %cst_77 : f32 to vector<8x256xf32>
    %109 = arith.cmpf oge, %107, %108 : vector<8x256xf32>
    %cst_78 = arith.constant 0.00999999977 : f32
    %110 = vector.broadcast %cst_78 : f32 to vector<8x256xf32>
    %111 = arith.mulf %110, %107 : vector<8x256xf32>
    %112 = arith.select %109, %107, %111 : vector<8x256xi1>, vector<8x256xf32>
    %113 = arith.truncf %112 : vector<8x256xf32> to vector<8x256xbf16>
    %cst_79 = arith.constant dense<0.000000e+00> : vector<8x256xf32>
    %114 = tpu.matmul %113, %10, %cst_79 {dimension_numbers = #tpu.dot_dimension_numbers<[1], [0], [0], [1], [0, 0, 1, 1], [], []>} : vector<8x256xbf16>, vector<256x256xbf16>, vector<8x256xf32> -> vector<8x256xf32>
    %115 = vector.broadcast %11 : vector<1x256xf32> to vector<8x256xf32>
    %116 = arith.addf %114, %115 : vector<8x256xf32>
    %117 = arith.truncf %62 : vector<8x128xf32> to vector<8x128xbf16>
    %cst_80 = arith.constant dense<0.000000e+00> : vector<8x256xf32>
    %118 = tpu.matmul %117, %12, %cst_80 {dimension_numbers = #tpu.dot_dimension_numbers<[1], [0], [0], [1], [0, 0, 1, 1], [], []>} : vector<8x128xbf16>, vector<128x256xbf16>, vector<8x256xf32> -> vector<8x256xf32>
    %119 = vector.broadcast %13 : vector<1x256xf32> to vector<8x256xf32>
    %120 = arith.addf %118, %119 : vector<8x256xf32>
    %cst_81 = arith.constant dense<0.000000e+00> : vector<8xf32>
    %121 = vector.multi_reduction <add>, %120, %cst_81 [1] : vector<8x256xf32> to vector<8xf32>
    %122 = vector.shape_cast %121 : vector<8xf32> to vector<8x1xf32>
    %cst_82 = arith.constant 2.560000e+02 : f32
    %123 = vector.broadcast %cst_82 : f32 to vector<8x1xf32>
    %124 = arith.divf %122, %123 : vector<8x1xf32>
    %125 = arith.mulf %120, %120 : vector<8x256xf32>
    %cst_83 = arith.constant dense<0.000000e+00> : vector<8xf32>
    %126 = vector.multi_reduction <add>, %125, %cst_83 [1] : vector<8x256xf32> to vector<8xf32>
    %127 = vector.shape_cast %126 : vector<8xf32> to vector<8x1xf32>
    %cst_84 = arith.constant 2.560000e+02 : f32
    %128 = vector.broadcast %cst_84 : f32 to vector<8x1xf32>
    %129 = arith.divf %127, %128 : vector<8x1xf32>
    %130 = vector.broadcast %124 : vector<8x1xf32> to vector<8x256xf32>
    %131 = arith.subf %120, %130 : vector<8x256xf32>
    %132 = arith.mulf %124, %124 : vector<8x1xf32>
    %133 = arith.subf %129, %132 : vector<8x1xf32>
    %cst_85 = arith.constant 9.99999974E-6 : f32
    %134 = vector.broadcast %cst_85 : f32 to vector<8x1xf32>
    %135 = arith.addf %133, %134 : vector<8x1xf32>
    %136 = math.rsqrt %135 : vector<8x1xf32>
    %137 = vector.broadcast %136 : vector<8x1xf32> to vector<8x256xf32>
    %138 = arith.mulf %131, %137 : vector<8x256xf32>
    %139 = arith.addf %116, %138 : vector<8x256xf32>
    %cst_86 = arith.constant dense<0.000000e+00> : vector<8xf32>
    %140 = vector.multi_reduction <add>, %139, %cst_86 [1] : vector<8x256xf32> to vector<8xf32>
    %141 = vector.shape_cast %140 : vector<8xf32> to vector<8x1xf32>
    %cst_87 = arith.constant 2.560000e+02 : f32
    %142 = vector.broadcast %cst_87 : f32 to vector<8x1xf32>
    %143 = arith.divf %141, %142 : vector<8x1xf32>
    %144 = arith.mulf %139, %139 : vector<8x256xf32>
    %cst_88 = arith.constant dense<0.000000e+00> : vector<8xf32>
    %145 = vector.multi_reduction <add>, %144, %cst_88 [1] : vector<8x256xf32> to vector<8xf32>
    %146 = vector.shape_cast %145 : vector<8xf32> to vector<8x1xf32>
    %cst_89 = arith.constant 2.560000e+02 : f32
    %147 = vector.broadcast %cst_89 : f32 to vector<8x1xf32>
    %148 = arith.divf %146, %147 : vector<8x1xf32>
    %149 = vector.broadcast %143 : vector<8x1xf32> to vector<8x256xf32>
    %150 = arith.subf %139, %149 : vector<8x256xf32>
    %151 = arith.mulf %143, %143 : vector<8x1xf32>
    %152 = arith.subf %148, %151 : vector<8x1xf32>
    %cst_90 = arith.constant 9.99999974E-6 : f32
    %153 = vector.broadcast %cst_90 : f32 to vector<8x1xf32>
    %154 = arith.addf %152, %153 : vector<8x1xf32>
    %155 = math.rsqrt %154 : vector<8x1xf32>
    %156 = vector.broadcast %155 : vector<8x1xf32> to vector<8x256xf32>
    %157 = arith.mulf %150, %156 : vector<8x256xf32>
    %cst_91 = arith.constant 0.000000e+00 : f32
    %158 = vector.broadcast %cst_91 : f32 to vector<8x256xf32>
    %159 = arith.cmpf oge, %157, %158 : vector<8x256xf32>
    %cst_92 = arith.constant 0.00999999977 : f32
    %160 = vector.broadcast %cst_92 : f32 to vector<8x256xf32>
    %161 = arith.mulf %160, %157 : vector<8x256xf32>
    %162 = arith.select %159, %157, %161 : vector<8x256xi1>, vector<8x256xf32>
    %163 = arith.truncf %162 : vector<8x256xf32> to vector<8x256xbf16>
    %cst_93 = arith.constant dense<0.000000e+00> : vector<8x512xf32>
    %164 = tpu.matmul %163, %14, %cst_93 {dimension_numbers = #tpu.dot_dimension_numbers<[1], [0], [0], [1], [0, 0, 1, 1], [], []>} : vector<8x256xbf16>, vector<256x512xbf16>, vector<8x512xf32> -> vector<8x512xf32>
    %165 = vector.broadcast %15 : vector<1x512xf32> to vector<8x512xf32>
    %166 = arith.addf %164, %165 : vector<8x512xf32>
    %cst_94 = arith.constant dense<0.000000e+00> : vector<8xf32>
    %167 = vector.multi_reduction <add>, %166, %cst_94 [1] : vector<8x512xf32> to vector<8xf32>
    %168 = vector.shape_cast %167 : vector<8xf32> to vector<8x1xf32>
    %cst_95 = arith.constant 5.120000e+02 : f32
    %169 = vector.broadcast %cst_95 : f32 to vector<8x1xf32>
    %170 = arith.divf %168, %169 : vector<8x1xf32>
    %171 = arith.mulf %166, %166 : vector<8x512xf32>
    %cst_96 = arith.constant dense<0.000000e+00> : vector<8xf32>
    %172 = vector.multi_reduction <add>, %171, %cst_96 [1] : vector<8x512xf32> to vector<8xf32>
    %173 = vector.shape_cast %172 : vector<8xf32> to vector<8x1xf32>
    %cst_97 = arith.constant 5.120000e+02 : f32
    %174 = vector.broadcast %cst_97 : f32 to vector<8x1xf32>
    %175 = arith.divf %173, %174 : vector<8x1xf32>
    %176 = vector.broadcast %170 : vector<8x1xf32> to vector<8x512xf32>
    %177 = arith.subf %166, %176 : vector<8x512xf32>
    %178 = arith.mulf %170, %170 : vector<8x1xf32>
    %179 = arith.subf %175, %178 : vector<8x1xf32>
    %cst_98 = arith.constant 9.99999974E-6 : f32
    %180 = vector.broadcast %cst_98 : f32 to vector<8x1xf32>
    %181 = arith.addf %179, %180 : vector<8x1xf32>
    %182 = math.rsqrt %181 : vector<8x1xf32>
    %183 = vector.broadcast %182 : vector<8x1xf32> to vector<8x512xf32>
    %184 = arith.mulf %177, %183 : vector<8x512xf32>
    %cst_99 = arith.constant 0.000000e+00 : f32
    %185 = vector.broadcast %cst_99 : f32 to vector<8x512xf32>
    %186 = arith.cmpf oge, %184, %185 : vector<8x512xf32>
    %cst_100 = arith.constant 0.00999999977 : f32
    %187 = vector.broadcast %cst_100 : f32 to vector<8x512xf32>
    %188 = arith.mulf %187, %184 : vector<8x512xf32>
    %189 = arith.select %186, %184, %188 : vector<8x512xi1>, vector<8x512xf32>
    %190 = arith.truncf %189 : vector<8x512xf32> to vector<8x512xbf16>
    %cst_101 = arith.constant dense<0.000000e+00> : vector<8x512xf32>
    %191 = tpu.matmul %190, %16, %cst_101 {dimension_numbers = #tpu.dot_dimension_numbers<[1], [0], [0], [1], [0, 0, 1, 1], [], []>} : vector<8x512xbf16>, vector<512x512xbf16>, vector<8x512xf32> -> vector<8x512xf32>
    %192 = vector.broadcast %17 : vector<1x512xf32> to vector<8x512xf32>
    %193 = arith.addf %191, %192 : vector<8x512xf32>
    %194 = arith.truncf %139 : vector<8x256xf32> to vector<8x256xbf16>
    %cst_102 = arith.constant dense<0.000000e+00> : vector<8x512xf32>
    %195 = tpu.matmul %194, %18, %cst_102 {dimension_numbers = #tpu.dot_dimension_numbers<[1], [0], [0], [1], [0, 0, 1, 1], [], []>} : vector<8x256xbf16>, vector<256x512xbf16>, vector<8x512xf32> -> vector<8x512xf32>
    %196 = vector.broadcast %19 : vector<1x512xf32> to vector<8x512xf32>
    %197 = arith.addf %195, %196 : vector<8x512xf32>
    %cst_103 = arith.constant dense<0.000000e+00> : vector<8xf32>
    %198 = vector.multi_reduction <add>, %197, %cst_103 [1] : vector<8x512xf32> to vector<8xf32>
    %199 = vector.shape_cast %198 : vector<8xf32> to vector<8x1xf32>
    %cst_104 = arith.constant 5.120000e+02 : f32
    %200 = vector.broadcast %cst_104 : f32 to vector<8x1xf32>
    %201 = arith.divf %199, %200 : vector<8x1xf32>
    %202 = arith.mulf %197, %197 : vector<8x512xf32>
    %cst_105 = arith.constant dense<0.000000e+00> : vector<8xf32>
    %203 = vector.multi_reduction <add>, %202, %cst_105 [1] : vector<8x512xf32> to vector<8xf32>
    %204 = vector.shape_cast %203 : vector<8xf32> to vector<8x1xf32>
    %cst_106 = arith.constant 5.120000e+02 : f32
    %205 = vector.broadcast %cst_106 : f32 to vector<8x1xf32>
    %206 = arith.divf %204, %205 : vector<8x1xf32>
    %207 = vector.broadcast %201 : vector<8x1xf32> to vector<8x512xf32>
    %208 = arith.subf %197, %207 : vector<8x512xf32>
    %209 = arith.mulf %201, %201 : vector<8x1xf32>
    %210 = arith.subf %206, %209 : vector<8x1xf32>
    %cst_107 = arith.constant 9.99999974E-6 : f32
    %211 = vector.broadcast %cst_107 : f32 to vector<8x1xf32>
    %212 = arith.addf %210, %211 : vector<8x1xf32>
    %213 = math.rsqrt %212 : vector<8x1xf32>
    %214 = vector.broadcast %213 : vector<8x1xf32> to vector<8x512xf32>
    %215 = arith.mulf %208, %214 : vector<8x512xf32>
    %216 = arith.addf %193, %215 : vector<8x512xf32>
    %217 = arith.truncf %216 : vector<8x512xf32> to vector<8x512xbf16>
    %cst_108 = arith.constant dense<0.000000e+00> : vector<8x64xf32>
    %218 = tpu.matmul %217, %20, %cst_108 {dimension_numbers = #tpu.dot_dimension_numbers<[1], [0], [0], [1], [0, 0, 1, 1], [], []>} : vector<8x512xbf16>, vector<512x64xbf16>, vector<8x64xf32> -> vector<8x64xf32>
    %219 = arith.truncf %31 : vector<8x512xf32> to vector<8x512xbf16>
    %cst_109 = arith.constant dense<0.000000e+00> : vector<8x64xf32>
    %220 = tpu.matmul %219, %21, %cst_109 {dimension_numbers = #tpu.dot_dimension_numbers<[1], [0], [0], [1], [0, 0, 1, 1], [], []>} : vector<8x512xbf16>, vector<512x64xbf16>, vector<8x64xf32> -> vector<8x64xf32>
    %221 = arith.addf %218, %220 : vector<8x64xf32>
    %222 = vector.broadcast %22 : vector<1x64xf32> to vector<8x64xf32>
    %223 = arith.addf %221, %222 : vector<8x64xf32>
    %224 = arith.truncf %223 : vector<8x64xf32> to vector<8x64xbf16>
    %cst_110 = arith.constant dense<0.000000e+00> : vector<8x16xf32>
    %225 = tpu.matmul %224, %23, %cst_110 {dimension_numbers = #tpu.dot_dimension_numbers<[1], [0], [0], [1], [0, 0, 1, 1], [], []>} : vector<8x64xbf16>, vector<64x16xbf16>, vector<8x16xf32> -> vector<8x16xf32>
    %226 = vector.broadcast %24 : vector<1x16xf32> to vector<8x16xf32>
    %227 = arith.addf %225, %226 : vector<8x16xf32>
    %228 = vector.broadcast %25 : vector<1x16xf32> to vector<8x16xf32>
    %229 = arith.mulf %227, %228 : vector<8x16xf32>
    %cst_111 = arith.constant 0.000000e+00 : f32
    %230 = vector.broadcast %cst_111 : f32 to vector<8x16xf32>
    %231 = arith.cmpf oge, %227, %230 : vector<8x16xf32>
    %cst_112 = arith.constant 0.00999999977 : f32
    %232 = vector.broadcast %cst_112 : f32 to vector<8x16xf32>
    %233 = arith.mulf %232, %227 : vector<8x16xf32>
    %234 = arith.select %231, %227, %233 : vector<8x16xi1>, vector<8x16xf32>
    %235 = arith.truncf %234 : vector<8x16xf32> to vector<8x16xbf16>
    %cst_113 = arith.constant dense<0.000000e+00> : vector<8x16xf32>
    %236 = tpu.matmul %235, %26, %cst_113 {dimension_numbers = #tpu.dot_dimension_numbers<[1], [0], [0], [1], [0, 0, 1, 1], [], []>} : vector<8x16xbf16>, vector<16x16xbf16>, vector<8x16xf32> -> vector<8x16xf32>
    %237 = arith.addf %229, %236 : vector<8x16xf32>
    %238 = vector.broadcast %27 : vector<1x16xf32> to vector<8x16xf32>
    %239 = arith.addf %237, %238 : vector<8x16xf32>
    %c0_114 = arith.constant 0 : index
    %c0_115 = arith.constant 0 : index
    %240 = vector.load %arg29[%c0_114, %c0_115] : memref<8x16xf32, #tpu.memory_space<vmem>>, vector<8x16xf32>
    tpu.vector_store %arg29[%c0_114, %c0_115], %239 {strides = array<i32>} : memref<8x16xf32, #tpu.memory_space<vmem>>, vector<8x16xf32>,
    return
  }
  func.func @transform_0(%arg0: i32) -> (i32, i32) {
    %c0_i32 = arith.constant 0 : i32
    %c0_i32_0 = arith.constant 0 : i32
    return %arg0, %c0_i32 : i32, i32
  }
  func.func @transform_1(%arg0: i32) -> (i32, i32) {
    %c0_i32 = arith.constant 0 : i32
    %c0_i32_0 = arith.constant 0 : i32
    return %arg0, %c0_i32 : i32, i32
  }
  func.func @transform_2(%arg0: i32) -> (i32, i32) {
    %c0_i32 = arith.constant 0 : i32
    %c0_i32_0 = arith.constant 0 : i32
    %c0_i32_1 = arith.constant 0 : i32
    return %c0_i32, %c0_i32_0 : i32, i32
  }
  func.func @transform_3(%arg0: i32) -> (i32, i32) {
    %c0_i32 = arith.constant 0 : i32
    %c0_i32_0 = arith.constant 0 : i32
    %c0_i32_1 = arith.constant 0 : i32
    return %c0_i32, %c0_i32_0 : i32, i32
  }
  func.func @transform_4(%arg0: i32) -> (i32, i32) {
    %c0_i32 = arith.constant 0 : i32
    %c0_i32_0 = arith.constant 0 : i32
    %c0_i32_1 = arith.constant 0 : i32
    return %c0_i32, %c0_i32_0 : i32, i32
  }
  func.func @transform_5(%arg0: i32) -> (i32, i32) {
    %c0_i32 = arith.constant 0 : i32
    %c0_i32_0 = arith.constant 0 : i32
    %c0_i32_1 = arith.constant 0 : i32
    return %c0_i32, %c0_i32_0 : i32, i32
  }
  func.func @transform_6(%arg0: i32) -> (i32, i32) {
    %c0_i32 = arith.constant 0 : i32
    %c0_i32_0 = arith.constant 0 : i32
    %c0_i32_1 = arith.constant 0 : i32
    return %c0_i32, %c0_i32_0 : i32, i32
  }
  func.func @transform_7(%arg0: i32) -> (i32, i32) {
    %c0_i32 = arith.constant 0 : i32
    %c0_i32_0 = arith.constant 0 : i32
    %c0_i32_1 = arith.constant 0 : i32
    return %c0_i32, %c0_i32_0 : i32, i32
  }
  func.func @transform_8(%arg0: i32) -> (i32, i32) {
    %c0_i32 = arith.constant 0 : i32
    %c0_i32_0 = arith.constant 0 : i32
    %c0_i32_1 = arith.constant 0 : i32
    return %c0_i32, %c0_i32_0 : i32, i32
  }
  func.func @transform_9(%arg0: i32) -> (i32, i32) {
    %c0_i32 = arith.constant 0 : i32
    %c0_i32_0 = arith.constant 0 : i32
    %c0_i32_1 = arith.constant 0 : i32
    return %c0_i32, %c0_i32_0 : i32, i32
  }
  func.func @transform_10(%arg0: i32) -> (i32, i32) {
    %c0_i32 = arith.constant 0 : i32
    %c0_i32_0 = arith.constant 0 : i32
    %c0_i32_1 = arith.constant 0 : i32
    return %c0_i32, %c0_i32_0 : i32, i32
  }
  func.func @transform_11(%arg0: i32) -> (i32, i32) {
    %c0_i32 = arith.constant 0 : i32
    %c0_i32_0 = arith.constant 0 : i32
    %c0_i32_1 = arith.constant 0 : i32
    return %c0_i32, %c0_i32_0 : i32, i32
  }
  func.func @transform_12(%arg0: i32) -> (i32, i32) {
    %c0_i32 = arith.constant 0 : i32
    %c0_i32_0 = arith.constant 0 : i32
    %c0_i32_1 = arith.constant 0 : i32
    return %c0_i32, %c0_i32_0 : i32, i32
  }
  func.func @transform_13(%arg0: i32) -> (i32, i32) {
    %c0_i32 = arith.constant 0 : i32
    %c0_i32_0 = arith.constant 0 : i32
    %c0_i32_1 = arith.constant 0 : i32
    return %c0_i32, %c0_i32_0 : i32, i32
  }
  func.func @transform_14(%arg0: i32) -> (i32, i32) {
    %c0_i32 = arith.constant 0 : i32
    %c0_i32_0 = arith.constant 0 : i32
    %c0_i32_1 = arith.constant 0 : i32
    return %c0_i32, %c0_i32_0 : i32, i32
  }
  func.func @transform_15(%arg0: i32) -> (i32, i32) {
    %c0_i32 = arith.constant 0 : i32
    %c0_i32_0 = arith.constant 0 : i32
    %c0_i32_1 = arith.constant 0 : i32
    return %c0_i32, %c0_i32_0 : i32, i32
  }
  func.func @transform_16(%arg0: i32) -> (i32, i32) {
    %c0_i32 = arith.constant 0 : i32
    %c0_i32_0 = arith.constant 0 : i32
    %c0_i32_1 = arith.constant 0 : i32
    return %c0_i32, %c0_i32_0 : i32, i32
  }
  func.func @transform_17(%arg0: i32) -> (i32, i32) {
    %c0_i32 = arith.constant 0 : i32
    %c0_i32_0 = arith.constant 0 : i32
    %c0_i32_1 = arith.constant 0 : i32
    return %c0_i32, %c0_i32_0 : i32, i32
  }
  func.func @transform_18(%arg0: i32) -> (i32, i32) {
    %c0_i32 = arith.constant 0 : i32
    %c0_i32_0 = arith.constant 0 : i32
    %c0_i32_1 = arith.constant 0 : i32
    return %c0_i32, %c0_i32_0 : i32, i32
  }
  func.func @transform_19(%arg0: i32) -> (i32, i32) {
    %c0_i32 = arith.constant 0 : i32
    %c0_i32_0 = arith.constant 0 : i32
    %c0_i32_1 = arith.constant 0 : i32
    return %c0_i32, %c0_i32_0 : i32, i32
  }
  func.func @transform_20(%arg0: i32) -> (i32, i32) {
    %c0_i32 = arith.constant 0 : i32
    %c0_i32_0 = arith.constant 0 : i32
    %c0_i32_1 = arith.constant 0 : i32
    return %c0_i32, %c0_i32_0 : i32, i32
  }
  func.func @transform_21(%arg0: i32) -> (i32, i32) {
    %c0_i32 = arith.constant 0 : i32
    %c0_i32_0 = arith.constant 0 : i32
    %c0_i32_1 = arith.constant 0 : i32
    return %c0_i32, %c0_i32_0 : i32, i32
  }
  func.func @transform_22(%arg0: i32) -> (i32, i32) {
    %c0_i32 = arith.constant 0 : i32
    %c0_i32_0 = arith.constant 0 : i32
    %c0_i32_1 = arith.constant 0 : i32
    return %c0_i32, %c0_i32_0 : i32, i32
  }
  func.func @transform_23(%arg0: i32) -> (i32, i32) {
    %c0_i32 = arith.constant 0 : i32
    %c0_i32_0 = arith.constant 0 : i32
    %c0_i32_1 = arith.constant 0 : i32
    return %c0_i32, %c0_i32_0 : i32, i32
  }
  func.func @transform_24(%arg0: i32) -> (i32, i32) {
    %c0_i32 = arith.constant 0 : i32
    %c0_i32_0 = arith.constant 0 : i32
    %c0_i32_1 = arith.constant 0 : i32
    return %c0_i32, %c0_i32_0 : i32, i32
  }
  func.func @transform_25(%arg0: i32) -> (i32, i32) {
    %c0_i32 = arith.constant 0 : i32
    %c0_i32_0 = arith.constant 0 : i32
    %c0_i32_1 = arith.constant 0 : i32
    return %c0_i32, %c0_i32_0 : i32, i32
  }
  func.func @transform_26(%arg0: i32) -> (i32, i32) {
    %c0_i32 = arith.constant 0 : i32
    %c0_i32_0 = arith.constant 0 : i32
    %c0_i32_1 = arith.constant 0 : i32
    return %c0_i32, %c0_i32_0 : i32, i32
  }
  func.func @transform_27(%arg0: i32) -> (i32, i32) {
    %c0_i32 = arith.constant 0 : i32
    %c0_i32_0 = arith.constant 0 : i32
    %c0_i32_1 = arith.constant 0 : i32
    return %c0_i32, %c0_i32_0 : i32, i32
  }
  func.func @transform_28(%arg0: i32) -> (i32, i32) {
    %c0_i32 = arith.constant 0 : i32
    %c0_i32_0 = arith.constant 0 : i32
    return %arg0, %c0_i32 : i32, i32
  }
}

module attributes {stable_mosaic.version = 11 : i64} {
  func.func @feature_mlp_kernel(%arg0: i32, %arg1: memref<8x4xf32, #tpu.memory_space<vmem>>, %arg2: memref<8x4xf32, #tpu.memory_space<vmem>>, %arg3: memref<4x512xbf16, #tpu.memory_space<vmem>>, %arg4: memref<1x512xf32, #tpu.memory_space<vmem>>, %arg5: memref<4x64xbf16, #tpu.memory_space<vmem>>, %arg6: memref<1x64xf32, #tpu.memory_space<vmem>>, %arg7: memref<64x128xbf16, #tpu.memory_space<vmem>>, %arg8: memref<1x128xf32, #tpu.memory_space<vmem>>, %arg9: memref<128x256xbf16, #tpu.memory_space<vmem>>, %arg10: memref<1x256xf32, #tpu.memory_space<vmem>>, %arg11: memref<256x256xbf16, #tpu.memory_space<vmem>>, %arg12: memref<1x256xf32, #tpu.memory_space<vmem>>, %arg13: memref<128x256xbf16, #tpu.memory_space<vmem>>, %arg14: memref<1x256xf32, #tpu.memory_space<vmem>>, %arg15: memref<256x512xbf16, #tpu.memory_space<vmem>>, %arg16: memref<1x512xf32, #tpu.memory_space<vmem>>, %arg17: memref<512x512xbf16, #tpu.memory_space<vmem>>, %arg18: memref<1x512xf32, #tpu.memory_space<vmem>>, %arg19: memref<256x512xbf16, #tpu.memory_space<vmem>>, %arg20: memref<1x512xf32, #tpu.memory_space<vmem>>, %arg21: memref<512x64xbf16, #tpu.memory_space<vmem>>, %arg22: memref<512x64xbf16, #tpu.memory_space<vmem>>, %arg23: memref<1x64xf32, #tpu.memory_space<vmem>>, %arg24: memref<64x16xbf16, #tpu.memory_space<vmem>>, %arg25: memref<1x16xf32, #tpu.memory_space<vmem>>, %arg26: memref<1x16xf32, #tpu.memory_space<vmem>>, %arg27: memref<16x16xbf16, #tpu.memory_space<vmem>>, %arg28: memref<1x16xf32, #tpu.memory_space<vmem>>, %arg29: memref<8x16xf32, #tpu.memory_space<vmem>>) attributes {dimension_semantics = [#tpu.dimension_semantics<parallel>], iteration_bounds = array<i64: 1>, scalar_prefetch = 0 : i64, scratch_operands = 0 : i64, tpu.core_type = #tpu.core_type<tc>, window_params = [{transform_indices = @transform_0, window_bounds = array<i64: 8, 4>}, {transform_indices = @transform_1, window_bounds = array<i64: 8, 4>}, {pipeline_mode = #tpu.pipeline_mode<synchronous>, transform_indices = @transform_2, window_bounds = array<i64: 4, 512>}, {pipeline_mode = #tpu.pipeline_mode<synchronous>, transform_indices = @transform_3, window_bounds = array<i64: 1, 512>}, {pipeline_mode = #tpu.pipeline_mode<synchronous>, transform_indices = @transform_4, window_bounds = array<i64: 4, 64>}, {pipeline_mode = #tpu.pipeline_mode<synchronous>, transform_indices = @transform_5, window_bounds = array<i64: 1, 64>}, {pipeline_mode = #tpu.pipeline_mode<synchronous>, transform_indices = @transform_6, window_bounds = array<i64: 64, 128>}, {pipeline_mode = #tpu.pipeline_mode<synchronous>, transform_indices = @transform_7, window_bounds = array<i64: 1, 128>}, {pipeline_mode = #tpu.pipeline_mode<synchronous>, transform_indices = @transform_8, window_bounds = array<i64: 128, 256>}, {pipeline_mode = #tpu.pipeline_mode<synchronous>, transform_indices = @transform_9, window_bounds = array<i64: 1, 256>}, {pipeline_mode = #tpu.pipeline_mode<synchronous>, transform_indices = @transform_10, window_bounds = array<i64: 256, 256>}, {pipeline_mode = #tpu.pipeline_mode<synchronous>, transform_indices = @transform_11, window_bounds = array<i64: 1, 256>}, {pipeline_mode = #tpu.pipeline_mode<synchronous>, transform_indices = @transform_12, window_bounds = array<i64: 128, 256>}, {pipeline_mode = #tpu.pipeline_mode<synchronous>, transform_indices = @transform_13, window_bounds = array<i64: 1, 256>}, {pipeline_mode = #tpu.pipeline_mode<synchronous>, transform_indices = @transform_14, window_bounds = array<i64: 256, 512>}, {pipeline_mode = #tpu.pipeline_mode<synchronous>, transform_indices = @transform_15, window_bounds = array<i64: 1, 512>}, {pipeline_mode = #tpu.pipeline_mode<synchronous>, transform_indices = @transform_16, window_bounds = array<i64: 512, 512>}, {pipeline_mode = #tpu.pipeline_mode<synchronous>, transform_indices = @transform_17, window_bounds = array<i64: 1, 512>}, {pipeline_mode = #tpu.pipeline_mode<synchronous>, transform_indices = @transform_18, window_bounds = array<i64: 256, 512>}, {pipeline_mode = #tpu.pipeline_mode<synchronous>, transform_indices = @transform_19, window_bounds = array<i64: 1, 512>}, {pipeline_mode = #tpu.pipeline_mode<synchronous>, transform_indices = @transform_20, window_bounds = array<i64: 512, 64>}, {pipeline_mode = #tpu.pipeline_mode<synchronous>, transform_indices = @transform_21, window_bounds = array<i64: 512, 64>}, {pipeline_mode = #tpu.pipeline_mode<synchronous>, transform_indices = @transform_22, window_bounds = array<i64: 1, 64>}, {pipeline_mode = #tpu.pipeline_mode<synchronous>, transform_indices = @transform_23, window_bounds = array<i64: 64, 16>}, {pipeline_mode = #tpu.pipeline_mode<synchronous>, transform_indices = @transform_24, window_bounds = array<i64: 1, 16>}, {pipeline_mode = #tpu.pipeline_mode<synchronous>, transform_indices = @transform_25, window_bounds = array<i64: 1, 16>}, {pipeline_mode = #tpu.pipeline_mode<synchronous>, transform_indices = @transform_26, window_bounds = array<i64: 16, 16>}, {pipeline_mode = #tpu.pipeline_mode<synchronous>, transform_indices = @transform_27, window_bounds = array<i64: 1, 16>}, {transform_indices = @transform_28, window_bounds = array<i64: 8, 16>}]} {
    %c0 = arith.constant 0 : index
    %c0_0 = arith.constant 0 : index
    %0 = vector.load %arg1[%c0, %c0_0] : memref<8x4xf32, #tpu.memory_space<vmem>>, vector<8x4xf32>
    %c0_1 = arith.constant 0 : index
    %c0_2 = arith.constant 0 : index
    %1 = vector.load %arg2[%c0_1, %c0_2] : memref<8x4xf32, #tpu.memory_space<vmem>>, vector<8x4xf32>
    %c0_3 = arith.constant 0 : index
    %c0_4 = arith.constant 0 : index
    %2 = vector.load %arg3[%c0_3, %c0_4] : memref<4x512xbf16, #tpu.memory_space<vmem>>, vector<4x512xbf16>
    %c0_5 = arith.constant 0 : index
    %c0_6 = arith.constant 0 : index
    %3 = vector.load %arg4[%c0_5, %c0_6] : memref<1x512xf32, #tpu.memory_space<vmem>>, vector<1x512xf32>
    %c0_7 = arith.constant 0 : index
    %c0_8 = arith.constant 0 : index
    %4 = vector.load %arg5[%c0_7, %c0_8] : memref<4x64xbf16, #tpu.memory_space<vmem>>, vector<4x64xbf16>
    %c0_9 = arith.constant 0 : index
    %c0_10 = arith.constant 0 : index
    %5 = vector.load %arg6[%c0_9, %c0_10] : memref<1x64xf32, #tpu.memory_space<vmem>>, vector<1x64xf32>
    %c0_11 = arith.constant 0 : index
    %c0_12 = arith.constant 0 : index
    %6 = vector.load %arg7[%c0_11, %c0_12] : memref<64x128xbf16, #tpu.memory_space<vmem>>, vector<64x128xbf16>
    %c0_13 = arith.constant 0 : index
    %c0_14 = arith.constant 0 : index
    %7 = vector.load %arg8[%c0_13, %c0_14] : memref<1x128xf32, #tpu.memory_space<vmem>>, vector<1x128xf32>
    %c0_15 = arith.constant 0 : index
    %c0_16 = arith.constant 0 : index
    %8 = vector.load %arg9[%c0_15, %c0_16] : memref<128x256xbf16, #tpu.memory_space<vmem>>, vector<128x256xbf16>
    %c0_17 = arith.constant 0 : index
    %c0_18 = arith.constant 0 : index
    %9 = vector.load %arg10[%c0_17, %c0_18] : memref<1x256xf32, #tpu.memory_space<vmem>>, vector<1x256xf32>
    %c0_19 = arith.constant 0 : index
    %c0_20 = arith.constant 0 : index
    %10 = vector.load %arg11[%c0_19, %c0_20] : memref<256x256xbf16, #tpu.memory_space<vmem>>, vector<256x256xbf16>
    %c0_21 = arith.constant 0 : index
    %c0_22 = arith.constant 0 : index
    %11 = vector.load %arg12[%c0_21, %c0_22] : memref<1x256xf32, #tpu.memory_space<vmem>>, vector<1x256xf32>
    %c0_23 = arith.constant 0 : index
    %c0_24 = arith.constant 0 : index
    %12 = vector.load %arg13[%c0_23, %c0_24] : memref<128x256xbf16, #tpu.memory_space<vmem>>, vector<128x256xbf16>
    %c0_25 = arith.constant 0 : index
    %c0_26 = arith.constant 0 : index
    %13 = vector.load %arg14[%c0_25, %c0_26] : memref<1x256xf32, #tpu.memory_space<vmem>>, vector<1x256xf32>
    %c0_27 = arith.constant 0 : index
    %c0_28 = arith.constant 0 : index
    %14 = vector.load %arg15[%c0_27, %c0_28] : memref<256x512xbf16, #tpu.memory_space<vmem>>, vector<256x512xbf16>
    %c0_29 = arith.constant 0 : index
    %c0_30 = arith.constant 0 : index
    %15 = vector.load %arg16[%c0_29, %c0_30] : memref<1x512xf32, #tpu.memory_space<vmem>>, vector<1x512xf32>
    %c0_31 = arith.constant 0 : index
    %c0_32 = arith.constant 0 : index
    %16 = vector.load %arg17[%c0_31, %c0_32] : memref<512x512xbf16, #tpu.memory_space<vmem>>, vector<512x512xbf16>
    %c0_33 = arith.constant 0 : index
    %c0_34 = arith.constant 0 : index
    %17 = vector.load %arg18[%c0_33, %c0_34] : memref<1x512xf32, #tpu.memory_space<vmem>>, vector<1x512xf32>
    %c0_35 = arith.constant 0 : index
    %c0_36 = arith.constant 0 : index
    %18 = vector.load %arg19[%c0_35, %c0_36] : memref<256x512xbf16, #tpu.memory_space<vmem>>, vector<256x512xbf16>
    %c0_37 = arith.constant 0 : index
    %c0_38 = arith.constant 0 : index
    %19 = vector.load %arg20[%c0_37, %c0_38] : memref<1x512xf32, #tpu.memory_space<vmem>>, vector<1x512xf32>
    %c0_39 = arith.constant 0 : index
    %c0_40 = arith.constant 0 : index
    %20 = vector.load %arg21[%c0_39, %c0_40] : memref<512x64xbf16, #tpu.memory_space<vmem>>, vector<512x64xbf16>
    %c0_41 = arith.constant 0 : index
    %c0_42 = arith.constant 0 : index
    %21 = vector.load %arg22[%c0_41, %c0_42] : memref<512x64xbf16, #tpu.memory_space<vmem>>, vector<512x64xbf16>
    %c0_43 = arith.constant 0 : index
    %c0_44 = arith.constant 0 : index
    %22 = vector.load %arg23[%c0_43, %c0_44] : memref<1x64xf32, #tpu.memory_space<vmem>>, vector<1x64xf32>
    %c0_45 = arith.constant 0 : index
    %c0_46 = arith.constant 0 : index
    %23 = vector.load %arg24[%c0_45, %c0_46] : memref<64x16xbf16, #tpu.memory_space<vmem>>, vector<64x16xbf16>
    %c0_47 = arith.constant 0 : index
    %c0_48 = arith.constant 0 : index
    %24 = vector.load %arg25[%c0_47, %c0_48] : memref<1x16xf32, #tpu.memory_space<vmem>>, vector<1x16xf32>
    %c0_49 = arith.constant 0 : index
    %c0_50 = arith.constant 0 : index
    %25 = vector.load %arg26[%c0_49, %c0_50] : memref<1x16xf32, #tpu.memory_space<vmem>>, vector<1x16xf32>
    %c0_51 = arith.constant 0 : index
    %c0_52 = arith.constant 0 : index
    %26 = vector.load %arg27[%c0_51, %c0_52] : memref<16x16xbf16, #tpu.memory_space<vmem>>, vector<16x16xbf16>
    %c0_53 = arith.constant 0 : index
    %c0_54 = arith.constant 0 : index
    %27 = vector.load %arg28[%c0_53, %c0_54] : memref<1x16xf32, #tpu.memory_space<vmem>>, vector<1x16xf32>
    %28 = arith.truncf %1 : vector<8x4xf32> to vector<8x4xbf16>
    %cst = arith.constant dense<0.000000e+00> : vector<8x512xf32>
    %29 = tpu.matmul %28, %2, %cst {dimension_numbers = #tpu.dot_dimension_numbers<[1], [0], [0], [1], [0, 0, 1, 1], [], []>} : vector<8x4xbf16>, vector<4x512xbf16>, vector<8x512xf32> -> vector<8x512xf32>
    %30 = vector.broadcast %3 : vector<1x512xf32> to vector<8x512xf32>
    %31 = arith.addf %29, %30 : vector<8x512xf32>
    %32 = arith.truncf %0 : vector<8x4xf32> to vector<8x4xbf16>
    %cst_55 = arith.constant dense<0.000000e+00> : vector<8x64xf32>
    %33 = tpu.matmul %32, %4, %cst_55 {dimension_numbers = #tpu.dot_dimension_numbers<[1], [0], [0], [1], [0, 0, 1, 1], [], []>} : vector<8x4xbf16>, vector<4x64xbf16>, vector<8x64xf32> -> vector<8x64xf32>
    %34 = vector.broadcast %5 : vector<1x64xf32> to vector<8x64xf32>
    %35 = arith.addf %33, %34 : vector<8x64xf32>
    %cst_56 = arith.constant dense<0.000000e+00> : vector<8xf32>
    %36 = vector.multi_reduction <add>, %35, %cst_56 [1] : vector<8x64xf32> to vector<8xf32>
    %37 = vector.shape_cast %36 : vector<8xf32> to vector<8x1xf32>
    %cst_57 = arith.constant 6.400000e+01 : f32
    %38 = vector.broadcast %cst_57 : f32 to vector<8x1xf32>
    %39 = arith.divf %37, %38 : vector<8x1xf32>
    %40 = arith.mulf %35, %35 : vector<8x64xf32>
    %cst_58 = arith.constant dense<0.000000e+00> : vector<8xf32>
    %41 = vector.multi_reduction <add>, %40, %cst_58 [1] : vector<8x64xf32> to vector<8xf32>
    %42 = vector.shape_cast %41 : vector<8xf32> to vector<8x1xf32>
    %cst_59 = arith.constant 6.400000e+01 : f32
    %43 = vector.broadcast %cst_59 : f32 to vector<8x1xf32>
    %44 = arith.divf %42, %43 : vector<8x1xf32>
    %45 = vector.broadcast %39 : vector<8x1xf32> to vector<8x64xf32>
    %46 = arith.subf %35, %45 : vector<8x64xf32>
    %47 = arith.mulf %39, %39 : vector<8x1xf32>
    %48 = arith.subf %44, %47 : vector<8x1xf32>
    %cst_60 = arith.constant 9.99999974E-6 : f32
    %49 = vector.broadcast %cst_60 : f32 to vector<8x1xf32>
    %50 = arith.addf %48, %49 : vector<8x1xf32>
    %51 = math.rsqrt %50 : vector<8x1xf32>
    %52 = vector.broadcast %51 : vector<8x1xf32> to vector<8x64xf32>
    %53 = arith.mulf %46, %52 : vector<8x64xf32>
    %cst_61 = arith.constant 0.000000e+00 : f32
    %54 = vector.broadcast %cst_61 : f32 to vector<8x64xf32>
    %55 = arith.cmpf oge, %53, %54 : vector<8x64xf32>
    %cst_62 = arith.constant 0.00999999977 : f32
    %56 = vector.broadcast %cst_62 : f32 to vector<8x64xf32>
    %57 = arith.mulf %56, %53 : vector<8x64xf32>
    %58 = arith.select %55, %53, %57 : vector<8x64xi1>, vector<8x64xf32>
    %59 = arith.truncf %58 : vector<8x64xf32> to vector<8x64xbf16>
    %cst_63 = arith.constant dense<0.000000e+00> : vector<8x128xf32>
    %60 = tpu.matmul %59, %6, %cst_63 {dimension_numbers = #tpu.dot_dimension_numbers<[1], [0], [0], [1], [0, 0, 1, 1], [], []>} : vector<8x64xbf16>, vector<64x128xbf16>, vector<8x128xf32> -> vector<8x128xf32>
    %61 = vector.broadcast %7 : vector<1x128xf32> to vector<8x128xf32>
    %62 = arith.addf %60, %61 : vector<8x128xf32>
    %cst_64 = arith.constant dense<0.000000e+00> : vector<8xf32>
    %63 = vector.multi_reduction <add>, %62, %cst_64 [1] : vector<8x128xf32> to vector<8xf32>
    %64 = vector.shape_cast %63 : vector<8xf32> to vector<8x1xf32>
    %cst_65 = arith.constant 1.280000e+02 : f32
    %65 = vector.broadcast %cst_65 : f32 to vector<8x1xf32>
    %66 = arith.divf %64, %65 : vector<8x1xf32>
    %67 = arith.mulf %62, %62 : vector<8x128xf32>
    %cst_66 = arith.constant dense<0.000000e+00> : vector<8xf32>
    %68 = vector.multi_reduction <add>, %67, %cst_66 [1] : vector<8x128xf32> to vector<8xf32>
    %69 = vector.shape_cast %68 : vector<8xf32> to vector<8x1xf32>
    %cst_67 = arith.constant 1.280000e+02 : f32
    %70 = vector.broadcast %cst_67 : f32 to vector<8x1xf32>
    %71 = arith.divf %69, %70 : vector<8x1xf32>
    %72 = vector.broadcast %66 : vector<8x1xf32> to vector<8x128xf32>
    %73 = arith.subf %62, %72 : vector<8x128xf32>
    %74 = arith.mulf %66, %66 : vector<8x1xf32>
    %75 = arith.subf %71, %74 : vector<8x1xf32>
    %cst_68 = arith.constant 9.99999974E-6 : f32
    %76 = vector.broadcast %cst_68 : f32 to vector<8x1xf32>
    %77 = arith.addf %75, %76 : vector<8x1xf32>
    %78 = math.rsqrt %77 : vector<8x1xf32>
    %79 = vector.broadcast %78 : vector<8x1xf32> to vector<8x128xf32>
    %80 = arith.mulf %73, %79 : vector<8x128xf32>
    %cst_69 = arith.constant 0.000000e+00 : f32
    %81 = vector.broadcast %cst_69 : f32 to vector<8x128xf32>
    %82 = arith.cmpf oge, %80, %81 : vector<8x128xf32>
    %cst_70 = arith.constant 0.00999999977 : f32
    %83 = vector.broadcast %cst_70 : f32 to vector<8x128xf32>
    %84 = arith.mulf %83, %80 : vector<8x128xf32>
    %85 = arith.select %82, %80, %84 : vector<8x128xi1>, vector<8x128xf32>
    %86 = arith.truncf %85 : vector<8x128xf32> to vector<8x128xbf16>
    %cst_71 = arith.constant dense<0.000000e+00> : vector<8x256xf32>
    %87 = tpu.matmul %86, %8, %cst_71 {dimension_numbers = #tpu.dot_dimension_numbers<[1], [0], [0], [1], [0, 0, 1, 1], [], []>} : vector<8x128xbf16>, vector<128x256xbf16>, vector<8x256xf32> -> vector<8x256xf32>
    %88 = vector.broadcast %9 : vector<1x256xf32> to vector<8x256xf32>
    %89 = arith.addf %87, %88 : vector<8x256xf32>
    %cst_72 = arith.constant dense<0.000000e+00> : vector<8xf32>
    %90 = vector.multi_reduction <add>, %89, %cst_72 [1] : vector<8x256xf32> to vector<8xf32>
    %91 = vector.shape_cast %90 : vector<8xf32> to vector<8x1xf32>
    %cst_73 = arith.constant 2.560000e+02 : f32
    %92 = vector.broadcast %cst_73 : f32 to vector<8x1xf32>
    %93 = arith.divf %91, %92 : vector<8x1xf32>
    %94 = arith.mulf %89, %89 : vector<8x256xf32>
    %cst_74 = arith.constant dense<0.000000e+00> : vector<8xf32>
    %95 = vector.multi_reduction <add>, %94, %cst_74 [1] : vector<8x256xf32> to vector<8xf32>
    %96 = vector.shape_cast %95 : vector<8xf32> to vector<8x1xf32>
    %cst_75 = arith.constant 2.560000e+02 : f32
    %97 = vector.broadcast %cst_75 : f32 to vector<8x1xf32>
    %98 = arith.divf %96, %97 : vector<8x1xf32>
    %99 = vector.broadcast %93 : vector<8x1xf32> to vector<8x256xf32>
    %100 = arith.subf %89, %99 : vector<8x256xf32>
    %101 = arith.mulf %93, %93 : vector<8x1xf32>
    %102 = arith.subf %98, %101 : vector<8x1xf32>
    %cst_76 = arith.constant 9.99999974E-6 : f32
    %103 = vector.broadcast %cst_76 : f32 to vector<8x1xf32>
    %104 = arith.addf %102, %103 : vector<8x1xf32>
    %105 = math.rsqrt %104 : vector<8x1xf32>
    %106 = vector.broadcast %105 : vector<8x1xf32> to vector<8x256xf32>
    %107 = arith.mulf %100, %106 : vector<8x256xf32>
    %cst_77 = arith.constant 0.000000e+00 : f32
    %108 = vector.broadcast %cst_77 : f32 to vector<8x256xf32>
    %109 = arith.cmpf oge, %107, %108 : vector<8x256xf32>
    %cst_78 = arith.constant 0.00999999977 : f32
    %110 = vector.broadcast %cst_78 : f32 to vector<8x256xf32>
    %111 = arith.mulf %110, %107 : vector<8x256xf32>
    %112 = arith.select %109, %107, %111 : vector<8x256xi1>, vector<8x256xf32>
    %113 = arith.truncf %112 : vector<8x256xf32> to vector<8x256xbf16>
    %cst_79 = arith.constant dense<0.000000e+00> : vector<8x256xf32>
    %114 = tpu.matmul %113, %10, %cst_79 {dimension_numbers = #tpu.dot_dimension_numbers<[1], [0], [0], [1], [0, 0, 1, 1], [], []>} : vector<8x256xbf16>, vector<256x256xbf16>, vector<8x256xf32> -> vector<8x256xf32>
    %115 = vector.broadcast %11 : vector<1x256xf32> to vector<8x256xf32>
    %116 = arith.addf %114, %115 : vector<8x256xf32>
    %117 = arith.truncf %62 : vector<8x128xf32> to vector<8x128xbf16>
    %cst_80 = arith.constant dense<0.000000e+00> : vector<8x256xf32>
    %118 = tpu.matmul %117, %12, %cst_80 {dimension_numbers = #tpu.dot_dimension_numbers<[1], [0], [0], [1], [0, 0, 1, 1], [], []>} : vector<8x128xbf16>, vector<128x256xbf16>, vector<8x256xf32> -> vector<8x256xf32>
    %119 = vector.broadcast %13 : vector<1x256xf32> to vector<8x256xf32>
    %120 = arith.addf %118, %119 : vector<8x256xf32>
    %cst_81 = arith.constant dense<0.000000e+00> : vector<8xf32>
    %121 = vector.multi_reduction <add>, %120, %cst_81 [1] : vector<8x256xf32> to vector<8xf32>
    %122 = vector.shape_cast %121 : vector<8xf32> to vector<8x1xf32>
    %cst_82 = arith.constant 2.560000e+02 : f32
    %123 = vector.broadcast %cst_82 : f32 to vector<8x1xf32>
    %124 = arith.divf %122, %123 : vector<8x1xf32>
    %125 = arith.mulf %120, %120 : vector<8x256xf32>
    %cst_83 = arith.constant dense<0.000000e+00> : vector<8xf32>
    %126 = vector.multi_reduction <add>, %125, %cst_83 [1] : vector<8x256xf32> to vector<8xf32>
    %127 = vector.shape_cast %126 : vector<8xf32> to vector<8x1xf32>
    %cst_84 = arith.constant 2.560000e+02 : f32
    %128 = vector.broadcast %cst_84 : f32 to vector<8x1xf32>
    %129 = arith.divf %127, %128 : vector<8x1xf32>
    %130 = vector.broadcast %124 : vector<8x1xf32> to vector<8x256xf32>
    %131 = arith.subf %120, %130 : vector<8x256xf32>
    %132 = arith.mulf %124, %124 : vector<8x1xf32>
    %133 = arith.subf %129, %132 : vector<8x1xf32>
    %cst_85 = arith.constant 9.99999974E-6 : f32
    %134 = vector.broadcast %cst_85 : f32 to vector<8x1xf32>
    %135 = arith.addf %133, %134 : vector<8x1xf32>
    %136 = math.rsqrt %135 : vector<8x1xf32>
    %137 = vector.broadcast %136 : vector<8x1xf32> to vector<8x256xf32>
    %138 = arith.mulf %131, %137 : vector<8x256xf32>
    %139 = arith.addf %116, %138 : vector<8x256xf32>
    %cst_86 = arith.constant dense<0.000000e+00> : vector<8xf32>
    %140 = vector.multi_reduction <add>, %139, %cst_86 [1] : vector<8x256xf32> to vector<8xf32>
    %141 = vector.shape_cast %140 : vector<8xf32> to vector<8x1xf32>
    %cst_87 = arith.constant 2.560000e+02 : f32
    %142 = vector.broadcast %cst_87 : f32 to vector<8x1xf32>
    %143 = arith.divf %141, %142 : vector<8x1xf32>
    %144 = arith.mulf %139, %139 : vector<8x256xf32>
    %cst_88 = arith.constant dense<0.000000e+00> : vector<8xf32>
    %145 = vector.multi_reduction <add>, %144, %cst_88 [1] : vector<8x256xf32> to vector<8xf32>
    %146 = vector.shape_cast %145 : vector<8xf32> to vector<8x1xf32>
    %cst_89 = arith.constant 2.560000e+02 : f32
    %147 = vector.broadcast %cst_89 : f32 to vector<8x1xf32>
    %148 = arith.divf %146, %147 : vector<8x1xf32>
    %149 = vector.broadcast %143 : vector<8x1xf32> to vector<8x256xf32>
    %150 = arith.subf %139, %149 : vector<8x256xf32>
    %151 = arith.mulf %143, %143 : vector<8x1xf32>
    %152 = arith.subf %148, %151 : vector<8x1xf32>
    %cst_90 = arith.constant 9.99999974E-6 : f32
    %153 = vector.broadcast %cst_90 : f32 to vector<8x1xf32>
    %154 = arith.addf %152, %153 : vector<8x1xf32>
    %155 = math.rsqrt %154 : vector<8x1xf32>
    %156 = vector.broadcast %155 : vector<8x1xf32> to vector<8x256xf32>
    %157 = arith.mulf %150, %156 : vector<8x256xf32>
    %cst_91 = arith.constant 0.000000e+00 : f32
    %158 = vector.broadcast %cst_91 : f32 to vector<8x256xf32>
    %159 = arith.cmpf oge, %157, %158 : vector<8x256xf32>
    %cst_92 = arith.constant 0.00999999977 : f32
    %160 = vector.broadcast %cst_92 : f32 to vector<8x256xf32>
    %161 = arith.mulf %160, %157 : vector<8x256xf32>
    %162 = arith.select %159, %157, %161 : vector<8x256xi1>, vector<8x256xf32>
    %163 = arith.truncf %162 : vector<8x256xf32> to vector<8x256xbf16>
    %cst_93 = arith.constant dense<0.000000e+00> : vector<8x512xf32>
    %164 = tpu.matmul %163, %14, %cst_93 {dimension_numbers = #tpu.dot_dimension_numbers<[1], [0], [0], [1], [0, 0, 1, 1], [], []>} : vector<8x256xbf16>, vector<256x512xbf16>, vector<8x512xf32> -> vector<8x512xf32>
    %165 = vector.broadcast %15 : vector<1x512xf32> to vector<8x512xf32>
    %166 = arith.addf %164, %165 : vector<8x512xf32>
    %cst_94 = arith.constant dense<0.000000e+00> : vector<8xf32>
    %167 = vector.multi_reduction <add>, %166, %cst_94 [1] : vector<8x512xf32> to vector<8xf32>
    %168 = vector.shape_cast %167 : vector<8xf32> to vector<8x1xf32>
    %cst_95 = arith.constant 5.120000e+02 : f32
    %169 = vector.broadcast %cst_95 : f32 to vector<8x1xf32>
    %170 = arith.divf %168, %169 : vector<8x1xf32>
    %171 = arith.mulf %166, %166 : vector<8x512xf32>
    %cst_96 = arith.constant dense<0.000000e+00> : vector<8xf32>
    %172 = vector.multi_reduction <add>, %171, %cst_96 [1] : vector<8x512xf32> to vector<8xf32>
    %173 = vector.shape_cast %172 : vector<8xf32> to vector<8x1xf32>
    %cst_97 = arith.constant 5.120000e+02 : f32
    %174 = vector.broadcast %cst_97 : f32 to vector<8x1xf32>
    %175 = arith.divf %173, %174 : vector<8x1xf32>
    %176 = vector.broadcast %170 : vector<8x1xf32> to vector<8x512xf32>
    %177 = arith.subf %166, %176 : vector<8x512xf32>
    %178 = arith.mulf %170, %170 : vector<8x1xf32>
    %179 = arith.subf %175, %178 : vector<8x1xf32>
    %cst_98 = arith.constant 9.99999974E-6 : f32
    %180 = vector.broadcast %cst_98 : f32 to vector<8x1xf32>
    %181 = arith.addf %179, %180 : vector<8x1xf32>
    %182 = math.rsqrt %181 : vector<8x1xf32>
    %183 = vector.broadcast %182 : vector<8x1xf32> to vector<8x512xf32>
    %184 = arith.mulf %177, %183 : vector<8x512xf32>
    %cst_99 = arith.constant 0.000000e+00 : f32
    %185 = vector.broadcast %cst_99 : f32 to vector<8x512xf32>
    %186 = arith.cmpf oge, %184, %185 : vector<8x512xf32>
    %cst_100 = arith.constant 0.00999999977 : f32
    %187 = vector.broadcast %cst_100 : f32 to vector<8x512xf32>
    %188 = arith.mulf %187, %184 : vector<8x512xf32>
    %189 = arith.select %186, %184, %188 : vector<8x512xi1>, vector<8x512xf32>
    %190 = arith.truncf %189 : vector<8x512xf32> to vector<8x512xbf16>
    %cst_101 = arith.constant dense<0.000000e+00> : vector<8x512xf32>
    %191 = tpu.matmul %190, %16, %cst_101 {dimension_numbers = #tpu.dot_dimension_numbers<[1], [0], [0], [1], [0, 0, 1, 1], [], []>} : vector<8x512xbf16>, vector<512x512xbf16>, vector<8x512xf32> -> vector<8x512xf32>
    %192 = vector.broadcast %17 : vector<1x512xf32> to vector<8x512xf32>
    %193 = arith.addf %191, %192 : vector<8x512xf32>
    %194 = arith.truncf %139 : vector<8x256xf32> to vector<8x256xbf16>
    %cst_102 = arith.constant dense<0.000000e+00> : vector<8x512xf32>
    %195 = tpu.matmul %194, %18, %cst_102 {dimension_numbers = #tpu.dot_dimension_numbers<[1], [0], [0], [1], [0, 0, 1, 1], [], []>} : vector<8x256xbf16>, vector<256x512xbf16>, vector<8x512xf32> -> vector<8x512xf32>
    %196 = vector.broadcast %19 : vector<1x512xf32> to vector<8x512xf32>
    %197 = arith.addf %195, %196 : vector<8x512xf32>
    %cst_103 = arith.constant dense<0.000000e+00> : vector<8xf32>
    %198 = vector.multi_reduction <add>, %197, %cst_103 [1] : vector<8x512xf32> to vector<8xf32>
    %199 = vector.shape_cast %198 : vector<8xf32> to vector<8x1xf32>
    %cst_104 = arith.constant 5.120000e+02 : f32
    %200 = vector.broadcast %cst_104 : f32 to vector<8x1xf32>
    %201 = arith.divf %199, %200 : vector<8x1xf32>
    %202 = arith.mulf %197, %197 : vector<8x512xf32>
    %cst_105 = arith.constant dense<0.000000e+00> : vector<8xf32>
    %203 = vector.multi_reduction <add>, %202, %cst_105 [1] : vector<8x512xf32> to vector<8xf32>
    %204 = vector.shape_cast %203 : vector<8xf32> to vector<8x1xf32>
    %cst_106 = arith.constant 5.120000e+02 : f32
    %205 = vector.broadcast %cst_106 : f32 to vector<8x1xf32>
    %206 = arith.divf %204, %205 : vector<8x1xf32>
    %207 = vector.broadcast %201 : vector<8x1xf32> to vector<8x512xf32>
    %208 = arith.subf %197, %207 : vector<8x512xf32>
    %209 = arith.mulf %201, %201 : vector<8x1xf32>
    %210 = arith.subf %206, %209 : vector<8x1xf32>
    %cst_107 = arith.constant 9.99999974E-6 : f32
    %211 = vector.broadcast %cst_107 : f32 to vector<8x1xf32>
    %212 = arith.addf %210, %211 : vector<8x1xf32>
    %213 = math.rsqrt %212 : vector<8x1xf32>
    %214 = vector.broadcast %213 : vector<8x1xf32> to vector<8x512xf32>
    %215 = arith.mulf %208, %214 : vector<8x512xf32>
    %216 = arith.addf %193, %215 : vector<8x512xf32>
    %217 = arith.truncf %216 : vector<8x512xf32> to vector<8x512xbf16>
    %cst_108 = arith.constant dense<0.000000e+00> : vector<8x64xf32>
    %218 = tpu.matmul %217, %20, %cst_108 {dimension_numbers = #tpu.dot_dimension_numbers<[1], [0], [0], [1], [0, 0, 1, 1], [], []>} : vector<8x512xbf16>, vector<512x64xbf16>, vector<8x64xf32> -> vector<8x64xf32>
    %219 = arith.truncf %31 : vector<8x512xf32> to vector<8x512xbf16>
    %cst_109 = arith.constant dense<0.000000e+00> : vector<8x64xf32>
    %220 = tpu.matmul %219, %21, %cst_109 {dimension_numbers = #tpu.dot_dimension_numbers<[1], [0], [0], [1], [0, 0, 1, 1], [], []>} : vector<8x512xbf16>, vector<512x64xbf16>, vector<8x64xf32> -> vector<8x64xf32>
    %221 = arith.addf %218, %220 : vector<8x64xf32>
    %222 = vector.broadcast %22 : vector<1x64xf32> to vector<8x64xf32>
    %223 = arith.addf %221, %222 : vector<8x64xf32>
    %224 = arith.truncf %223 : vector<8x64xf32> to vector<8x64xbf16>
    %cst_110 = arith.constant dense<0.000000e+00> : vector<8x16xf32>
    %225 = tpu.matmul %224, %23, %cst_110 {dimension_numbers = #tpu.dot_dimension_numbers<[1], [0], [0], [1], [0, 0, 1, 1], [], []>} : vector<8x64xbf16>, vector<64x16xbf16>, vector<8x16xf32> -> vector<8x16xf32>
    %226 = vector.broadcast %24 : vector<1x16xf32> to vector<8x16xf32>
    %227 = arith.addf %225, %226 : vector<8x16xf32>
    %228 = vector.broadcast %25 : vector<1x16xf32> to vector<8x16xf32>
    %229 = arith.mulf %227, %228 : vector<8x16xf32>
    %cst_111 = arith.constant 0.000000e+00 : f32
    %230 = vector.broadcast %cst_111 : f32 to vector<8x16xf32>
    %231 = arith.cmpf oge, %227, %230 : vector<8x16xf32>
    %cst_112 = arith.constant 0.00999999977 : f32
    %232 = vector.broadcast %cst_112 : f32 to vector<8x16xf32>
    %233 = arith.mulf %232, %227 : vector<8x16xf32>
    %234 = arith.select %231, %227, %233 : vector<8x16xi1>, vector<8x16xf32>
    %235 = arith.truncf %234 : vector<8x16xf32> to vector<8x16xbf16>
    %cst_113 = arith.constant dense<0.000000e+00> : vector<8x16xf32>
    %236 = tpu.matmul %235, %26, %cst_113 {dimension_numbers = #tpu.dot_dimension_numbers<[1], [0], [0], [1], [0, 0, 1, 1], [], []>} : vector<8x16xbf16>, vector<16x16xbf16>, vector<8x16xf32> -> vector<8x16xf32>
    %237 = arith.addf %229, %236 : vector<8x16xf32>
    %238 = vector.broadcast %27 : vector<1x16xf32> to vector<8x16xf32>
    %239 = arith.addf %237, %238 : vector<8x16xf32>
    %c0_114 = arith.constant 0 : index
    %c0_115 = arith.constant 0 : index
    %240 = vector.load %arg29[%c0_114, %c0_115] : memref<8x16xf32, #tpu.memory_space<vmem>>, vector<8x16xf32>
    tpu.vector_store %arg29[%c0_114, %c0_115], %239 {strides = array<i32>} : memref<8x16xf32, #tpu.memory_space<vmem>>, vector<8x16xf32>,
    return
  }
  func.func @transform_0(%arg0: i32) -> (i32, i32) {
    %c0_i32 = arith.constant 0 : i32
    %c0_i32_0 = arith.constant 0 : i32
    return %arg0, %c0_i32 : i32, i32
  }
  func.func @transform_1(%arg0: i32) -> (i32, i32) {
    %c0_i32 = arith.constant 0 : i32
    %c0_i32_0 = arith.constant 0 : i32
    return %arg0, %c0_i32 : i32, i32
  }
  func.func @transform_2(%arg0: i32) -> (i32, i32) {
    %c0_i32 = arith.constant 0 : i32
    %c0_i32_0 = arith.constant 0 : i32
    %c0_i32_1 = arith.constant 0 : i32
    return %c0_i32, %c0_i32_0 : i32, i32
  }
  func.func @transform_3(%arg0: i32) -> (i32, i32) {
    %c0_i32 = arith.constant 0 : i32
    %c0_i32_0 = arith.constant 0 : i32
    %c0_i32_1 = arith.constant 0 : i32
    return %c0_i32, %c0_i32_0 : i32, i32
  }
  func.func @transform_4(%arg0: i32) -> (i32, i32) {
    %c0_i32 = arith.constant 0 : i32
    %c0_i32_0 = arith.constant 0 : i32
    %c0_i32_1 = arith.constant 0 : i32
    return %c0_i32, %c0_i32_0 : i32, i32
  }
  func.func @transform_5(%arg0: i32) -> (i32, i32) {
    %c0_i32 = arith.constant 0 : i32
    %c0_i32_0 = arith.constant 0 : i32
    %c0_i32_1 = arith.constant 0 : i32
    return %c0_i32, %c0_i32_0 : i32, i32
  }
  func.func @transform_6(%arg0: i32) -> (i32, i32) {
    %c0_i32 = arith.constant 0 : i32
    %c0_i32_0 = arith.constant 0 : i32
    %c0_i32_1 = arith.constant 0 : i32
    return %c0_i32, %c0_i32_0 : i32, i32
  }
  func.func @transform_7(%arg0: i32) -> (i32, i32) {
    %c0_i32 = arith.constant 0 : i32
    %c0_i32_0 = arith.constant 0 : i32
    %c0_i32_1 = arith.constant 0 : i32
    return %c0_i32, %c0_i32_0 : i32, i32
  }
  func.func @transform_8(%arg0: i32) -> (i32, i32) {
    %c0_i32 = arith.constant 0 : i32
    %c0_i32_0 = arith.constant 0 : i32
    %c0_i32_1 = arith.constant 0 : i32
    return %c0_i32, %c0_i32_0 : i32, i32
  }
  func.func @transform_9(%arg0: i32) -> (i32, i32) {
    %c0_i32 = arith.constant 0 : i32
    %c0_i32_0 = arith.constant 0 : i32
    %c0_i32_1 = arith.constant 0 : i32
    return %c0_i32, %c0_i32_0 : i32, i32
  }
  func.func @transform_10(%arg0: i32) -> (i32, i32) {
    %c0_i32 = arith.constant 0 : i32
    %c0_i32_0 = arith.constant 0 : i32
    %c0_i32_1 = arith.constant 0 : i32
    return %c0_i32, %c0_i32_0 : i32, i32
  }
  func.func @transform_11(%arg0: i32) -> (i32, i32) {
    %c0_i32 = arith.constant 0 : i32
    %c0_i32_0 = arith.constant 0 : i32
    %c0_i32_1 = arith.constant 0 : i32
    return %c0_i32, %c0_i32_0 : i32, i32
  }
  func.func @transform_12(%arg0: i32) -> (i32, i32) {
    %c0_i32 = arith.constant 0 : i32
    %c0_i32_0 = arith.constant 0 : i32
    %c0_i32_1 = arith.constant 0 : i32
    return %c0_i32, %c0_i32_0 : i32, i32
  }
  func.func @transform_13(%arg0: i32) -> (i32, i32) {
    %c0_i32 = arith.constant 0 : i32
    %c0_i32_0 = arith.constant 0 : i32
    %c0_i32_1 = arith.constant 0 : i32
    return %c0_i32, %c0_i32_0 : i32, i32
  }
  func.func @transform_14(%arg0: i32) -> (i32, i32) {
    %c0_i32 = arith.constant 0 : i32
    %c0_i32_0 = arith.constant 0 : i32
    %c0_i32_1 = arith.constant 0 : i32
    return %c0_i32, %c0_i32_0 : i32, i32
  }
  func.func @transform_15(%arg0: i32) -> (i32, i32) {
    %c0_i32 = arith.constant 0 : i32
    %c0_i32_0 = arith.constant 0 : i32
    %c0_i32_1 = arith.constant 0 : i32
    return %c0_i32, %c0_i32_0 : i32, i32
  }
  func.func @transform_16(%arg0: i32) -> (i32, i32) {
    %c0_i32 = arith.constant 0 : i32
    %c0_i32_0 = arith.constant 0 : i32
    %c0_i32_1 = arith.constant 0 : i32
    return %c0_i32, %c0_i32_0 : i32, i32
  }
  func.func @transform_17(%arg0: i32) -> (i32, i32) {
    %c0_i32 = arith.constant 0 : i32
    %c0_i32_0 = arith.constant 0 : i32
    %c0_i32_1 = arith.constant 0 : i32
    return %c0_i32, %c0_i32_0 : i32, i32
  }
  func.func @transform_18(%arg0: i32) -> (i32, i32) {
    %c0_i32 = arith.constant 0 : i32
    %c0_i32_0 = arith.constant 0 : i32
    %c0_i32_1 = arith.constant 0 : i32
    return %c0_i32, %c0_i32_0 : i32, i32
  }
  func.func @transform_19(%arg0: i32) -> (i32, i32) {
    %c0_i32 = arith.constant 0 : i32
    %c0_i32_0 = arith.constant 0 : i32
    %c0_i32_1 = arith.constant 0 : i32
    return %c0_i32, %c0_i32_0 : i32, i32
  }
  func.func @transform_20(%arg0: i32) -> (i32, i32) {
    %c0_i32 = arith.constant 0 : i32
    %c0_i32_0 = arith.constant 0 : i32
    %c0_i32_1 = arith.constant 0 : i32
    return %c0_i32, %c0_i32_0 : i32, i32
  }
  func.func @transform_21(%arg0: i32) -> (i32, i32) {
    %c0_i32 = arith.constant 0 : i32
    %c0_i32_0 = arith.constant 0 : i32
    %c0_i32_1 = arith.constant 0 : i32
    return %c0_i32, %c0_i32_0 : i32, i32
  }
  func.func @transform_22(%arg0: i32) -> (i32, i32) {
    %c0_i32 = arith.constant 0 : i32
    %c0_i32_0 = arith.constant 0 : i32
    %c0_i32_1 = arith.constant 0 : i32
    return %c0_i32, %c0_i32_0 : i32, i32
  }
  func.func @transform_23(%arg0: i32) -> (i32, i32) {
    %c0_i32 = arith.constant 0 : i32
    %c0_i32_0 = arith.constant 0 : i32
    %c0_i32_1 = arith.constant 0 : i32
    return %c0_i32, %c0_i32_0 : i32, i32
  }
  func.func @transform_24(%arg0: i32) -> (i32, i32) {
    %c0_i32 = arith.constant 0 : i32
    %c0_i32_0 = arith.constant 0 : i32
    %c0_i32_1 = arith.constant 0 : i32
    return %c0_i32, %c0_i32_0 : i32, i32
  }
  func.func @transform_25(%arg0: i32) -> (i32, i32) {
    %c0_i32 = arith.constant 0 : i32
    %c0_i32_0 = arith.constant 0 : i32
    %c0_i32_1 = arith.constant 0 : i32
    return %c0_i32, %c0_i32_0 : i32, i32
  }
  func.func @transform_26(%arg0: i32) -> (i32, i32) {
    %c0_i32 = arith.constant 0 : i32
    %c0_i32_0 = arith.constant 0 : i32
    %c0_i32_1 = arith.constant 0 : i32
    return %c0_i32, %c0_i32_0 : i32, i32
  }
  func.func @transform_27(%arg0: i32) -> (i32, i32) {
    %c0_i32 = arith.constant 0 : i32
    %c0_i32_0 = arith.constant 0 : i32
    %c0_i32_1 = arith.constant 0 : i32
    return %c0_i32, %c0_i32_0 : i32, i32
  }
  func.func @transform_28(%arg0: i32) -> (i32, i32) {
    %c0_i32 = arith.constant 0 : i32
    %c0_i32_0 = arith.constant 0 : i32
    return %arg0, %c0_i32 : i32, i32
  }
}

</mosaic_0001>

<bundles_post_ra>
// kernel: feature_mlp_forward.1
= control target key start
LH: loop header
LB: loop body
LE: loop exit
PB: predicated region body
PF: predicated region fallthrough
CT: control target
= control target key end

     0   :  { %s6845_s0 = inlined_call_operand.vmem [shape: f32[8,4], index: 0, kind: input, shape index: {}]   ;;  %s6846_s1 = inlined_call_operand.vmem [shape: f32[8,4], index: 1, kind: input, shape index: {}]   ;;  %s6847_s2 = inlined_call_operand.hbm [shape: bf16[4,512], index: 2, kind: input, shape index: {}]   ;;  %s6848_s3 = inlined_call_operand.hbm [shape: f32[1,512], index: 3, kind: input, shape index: {}]   ;;  %s6849_s4 = inlined_call_operand.hbm [shape: bf16[4,64], index: 4, kind: input, shape index: {}]   ;;  %s6850_s5 = inlined_call_operand.hbm [shape: f32[1,64], index: 5, kind: input, shape index: {}]   ;;  %s6851_s6 = inlined_call_operand.hbm [shape: bf16[64,128], index: 6, kind: input, shape index: {}]   ;;  %s6852_s7 = inlined_call_operand.hbm [shape: f32[1,128], index: 7, kind: input, shape index: {}]   ;;  %s6853_s8 = inlined_call_operand.hbm [shape: bf16[128,256], index: 8, kind: input, shape index: {}]   ;;  %s6854_s9 = inlined_call_operand.hbm [shape: f32[1,256], index: 9, kind: input, shape index: {}]   ;;  %s6855_s10 = inlined_call_operand.hbm [shape: bf16[256,256], index: 10, kind: input, shape index: {}]   ;;  %s6856_s11 = inlined_call_operand.hbm [shape: f32[1,256], index: 11, kind: input, shape index: {}]   ;;  %s6857_s12 = inlined_call_operand.hbm [shape: bf16[128,256], index: 12, kind: input, shape index: {}]   ;;  %s6858_s13 = inlined_call_operand.hbm [shape: f32[1,256], index: 13, kind: input, shape index: {}]   ;;  %s6859_s14 = inlined_call_operand.hbm [shape: bf16[256,512], index: 14, kind: input, shape index: {}]   ;;  %s6860_s15 = inlined_call_operand.hbm [shape: f32[1,512], index: 15, kind: input, shape index: {}]   ;;  %s6861_s16 = inlined_call_operand.vmem [shape: bf16[512,512], index: 16, kind: input, shape index: {}]   ;;  %s6862_s17 = inlined_call_operand.hbm [shape: f32[1,512], index: 17, kind: input, shape index: {}]   ;;  %s6863_s18 = inlined_call_operand.hbm [shape: bf16[256,512], index: 18, kind: input, shape index: {}]   ;;  %s6864_s19 = inlined_call_operand.hbm [shape: f32[1,512], index: 19, kind: input, shape index: {}]   ;;  %s6865_s20 = inlined_call_operand.vmem [shape: bf16[512,64], index: 20, kind: input, shape index: {}]   ;;  %s6866_s21 = inlined_call_operand.vmem [shape: bf16[512,64], index: 21, kind: input, shape index: {}]   ;;  %s6867_s22 = inlined_call_operand.vmem [shape: f32[1,64], index: 22, kind: input, shape index: {}]   ;;  %s6868_s23 = inlined_call_operand.vmem [shape: bf16[64,16], index: 23, kind: input, shape index: {}]   ;;  %s6869_s24 = inlined_call_operand.vmem [shape: f32[1,16], index: 24, kind: input, shape index: {}]   ;;  %s6870_s25 = inlined_call_operand.vmem [shape: f32[1,16], index: 25, kind: input, shape index: {}]   ;;  %s6871_s26 = inlined_call_operand.vmem [shape: bf16[16,16], index: 26, kind: input, shape index: {}]   ;;  %s6872_s27 = inlined_call_operand.vmem [shape: f32[1,16], index: 27, kind: input, shape index: {}]   ;;  %s6873_s28 = inlined_call_operand.vmem [shape: f32[8,16], index: 28, kind: output, shape index: {}]  }
   0x1   :  { %6886 = sst [smem:[#allocation37_spill]] %s6845_s0 }
   0x2   :  { %6887 = sst [smem:[#allocation38_spill]] %s6846_s1 }
   0x3   :  { %6888 = sst [smem:[#allocation39_spill]] %s6847_s2 }
   0x4   :  { %6889 = sst [smem:[#allocation40_spill]] %s6848_s3 }
   0x5   :  { %6890 = sst [smem:[#allocation41_spill]] %s6849_s4 }
   0x6   :  { %6891 = sst [smem:[#allocation42_spill]] %s6850_s5 }
   0x7   :  { %6892 = sst [smem:[#allocation43_spill]] %s6851_s6 }
   0x8   :  { %6893 = sst [smem:[#allocation44_spill]] %s6852_s7 }
   0x9   :  { %6894 = sst [smem:[#allocation45_spill]] %s6853_s8 }
   0xa   :  { %6895 = sst [smem:[#allocation46_spill]] %s6854_s9 }
   0xb   :  { %6896 = sst [smem:[#allocation47_spill]] %s6855_s10 }
   0xc   :  { %6897 = sst [smem:[#allocation48_spill]] %s6856_s11 }
   0xd   :  { %6898 = sst [smem:[#allocation49_spill]] %s6857_s12 }
   0xe   :  { %6899 = sst [smem:[#allocation50_spill]] %s6873_s28 }
   0xf   :  { %33 = vsyncpa [#allocation3], 0 }
  0x10   :  { %34 = vsyncpa [#allocation5], 0 }
  0x11   :  { %35 = vsyncpa [#allocation8], 0 }
  0x12   :  { %36 = vsyncpa [#allocation11], 0 }
  0x13   :  { %37 = vsyncpa [#allocation14], 0 }
  0x14   :  { %38 = vsyncpa [#allocation17], 0 }
  0x15   :  { %39 = vsyncpa [#allocation20], 0 }
  0x16   :  { %40 = vsyncpa [#allocation23], 0 }
  0x17   :  { %41 = vsyncpa [#allocation26], 0  ;;  %s5633_s8 = smov [#allocation4]   ;;  %s5634_s9 = smov [#allocation7]  }
  0x18   :  { %s62_s5 = sshll.u32 %s5633_s8, 4  ;;  %s82_s30 = sshll.u32 %s5634_s9, 4  ;;  %s63_s5 = int_to_ptr.vmem [resolvable:$true] %s62_s5  ;;  %s83_s30 = int_to_ptr.vmem [resolvable:$true] %s82_s30 }
  0x19   :  { %s6900_s10 = sld [smem:[#allocation40_spill]] }
  0x1f   :  { %s5241_s0 = scalar_lea.hbm %s6900_s10, 64 }
  0x20   :  { %p5242_p0 = scmp.ne.s32.totalorder %s6900_s10, %s5241_s0  ;;  %p5245_p1 = scmp.lt.u32.totalorder %s5241_s0, %s6900_s10 }
  0x22   :  { %p5247_p2 = pnand %p5245_p1, %p5242_p0 }
  0x24   :  { %5250 = shalt.err (!%p5247_p2)
}
  0x25   :  { %s5251_s12 = scalar_lea.vmem %s63_s5, 64  ;;  %p5256_p4 = scmp.lt.s32.totalorder %s63_s5, %s63_s5 }
  0x26   :  { %p5252_p3 = scmp.ne.s32.totalorder %s63_s5, %s5251_s12  ;;  %p5257_p5 = scmp.lt.s32.totalorder %s5251_s12, %s5251_s12 }
  0x28   :  { %p5258_p6 = por %p5257_p5, %p5256_p4 }
  0x2a   :  { %p5259_p7 = pnand %p5258_p6, %p5252_p3 }
  0x2c   :  { %5262 = shalt.err (!%p5259_p7)
}
  0x2d   :  { %65 = dma.hbm_to_vmem [thread:$0]  %s6900_s10, 64, %s63_s5, [#allocation5]  }
  0x2e   :  { %s6901_s3 = sld [smem:[#allocation42_spill]] }
  0x34   :  { %s5263_s6 = scalar_lea.hbm %s6901_s3, 16 }
  0x35   :  { %p5264_p8 = scmp.ne.s32.totalorder %s6901_s3, %s5263_s6  ;;  %p5267_p9 = scmp.lt.u32.totalorder %s5263_s6, %s6901_s3 }
  0x37   :  { %p5269_p10 = pnand %p5267_p9, %p5264_p8 }
  0x39   :  { %5272 = shalt.err (!%p5269_p10)
}
  0x3a   :  { %s5273_s7 = scalar_lea.vmem %s83_s30, 16  ;;  %s5277_s12 = scalar_lea.vmem %s83_s30, 32 }
  0x3b   :  { %p5274_p11 = scmp.ne.s32.totalorder %s83_s30, %s5273_s7  ;;  %p5278_p12 = scmp.lt.s32.totalorder %s83_s30, %s83_s30 }
  0x3c   :  { %p5279_p13 = scmp.lt.s32.totalorder %s5277_s12, %s5273_s7 }
  0x3e   :  { %p5280_p0 = por %p5279_p13, %p5278_p12 }
  0x40   :  { %p5281_p1 = pnand %p5280_p0, %p5274_p11 }
  0x42   :  { %5284 = shalt.err (!%p5281_p1)
}
  0x43   :  { %85 = dma.hbm_to_vmem [thread:$0]  %s6901_s3, 16, %s83_s30, [#allocation8]  }
  0x44   :  { %s5635_s1 = smov [#allocation10]   ;;  %s5636_s8 = smov [#allocation13]  }
  0x45   :  { %s104_s4 = sshll.u32 %s5635_s1, 4  ;;  %s126_s9 = sshll.u32 %s5636_s8, 4  ;;  %s105_s4 = int_to_ptr.vmem [resolvable:$true] %s104_s4  ;;  %s127_s9 = int_to_ptr.vmem [resolvable:$true] %s126_s9 }
  0x46   :  { %s6902_s29 = sld [smem:[#allocation44_spill]] }
  0x4c   :  { %s5285_s0 = scalar_lea.hbm %s6902_s29, 16 }
  0x4d   :  { %p5286_p2 = scmp.ne.s32.totalorder %s6902_s29, %s5285_s0  ;;  %p5289_p3 = scmp.lt.u32.totalorder %s5285_s0, %s6902_s29 }
  0x4f   :  { %p5291_p4 = pnand %p5289_p3, %p5286_p2 }
  0x51   :  { %5294 = shalt.err (!%p5291_p4)
}
  0x52   :  { %s5295_s30 = scalar_lea.vmem %s105_s4, 16  ;;  %s5299_s3 = scalar_lea.vmem %s105_s4, 32 }
  0x53   :  { %p5296_p5 = scmp.ne.s32.totalorder %s105_s4, %s5295_s30  ;;  %p5300_p6 = scmp.lt.s32.totalorder %s105_s4, %s105_s4 }
  0x54   :  { %p5301_p7 = scmp.lt.s32.totalorder %s5299_s3, %s5295_s30 }
  0x56   :  { %p5302_p8 = por %p5301_p7, %p5300_p6 }
  0x58   :  { %p5303_p9 = pnand %p5302_p8, %p5296_p5 }
  0x5a   :  { %5306 = shalt.err (!%p5303_p9)
}
  0x5b   :  { %107 = dma.hbm_to_vmem [thread:$0]  %s6902_s29, 16, %s105_s4, [#allocation11]  }
  0x5c   :  { %s6903_s8 = sld [smem:[#allocation46_spill]] }
  0x62   :  { %s5307_s6 = scalar_lea.hbm %s6903_s8, 32 }
  0x63   :  { %p5308_p10 = scmp.ne.s32.totalorder %s6903_s8, %s5307_s6  ;;  %p5311_p11 = scmp.lt.u32.totalorder %s5307_s6, %s6903_s8 }
  0x65   :  { %p5313_p12 = pnand %p5311_p11, %p5308_p10 }
  0x67   :  { %5316 = shalt.err (!%p5313_p12)
}
  0x68   :  { %s5317_s12 = scalar_lea.vmem %s127_s9, 32  ;;  %p5322_p0 = scmp.lt.s32.totalorder %s127_s9, %s127_s9 }
  0x69   :  { %p5318_p13 = scmp.ne.s32.totalorder %s127_s9, %s5317_s12  ;;  %p5323_p1 = scmp.lt.s32.totalorder %s5317_s12, %s5317_s12 }
  0x6b   :  { %p5324_p2 = por %p5323_p1, %p5322_p0 }
  0x6d   :  { %p5325_p3 = pnand %p5324_p2, %p5318_p13 }
  0x6f   :  { %5328 = shalt.err (!%p5325_p3)
}
  0x70   :  { %129 = dma.hbm_to_vmem [thread:$0]  %s6903_s8, 32, %s127_s9, [#allocation14]  }
  0x71   :  { %s5637_s30 = smov [#allocation16]   ;;  %s5638_s5 = smov [#allocation19]  }
  0x72   :  { %s148_s3 = sshll.u32 %s5637_s30, 4  ;;  %s170_s10 = sshll.u32 %s5638_s5, 4  ;;  %s149_s3 = int_to_ptr.vmem [resolvable:$true] %s148_s3  ;;  %s171_s10 = int_to_ptr.vmem [resolvable:$true] %s170_s10 }
  0x73   :  { %s6904_s6 = sld [smem:[#allocation48_spill]] }
  0x79   :  { %s5329_s11 = scalar_lea.hbm %s6904_s6, 32 }
  0x7a   :  { %p5330_p4 = scmp.ne.s32.totalorder %s6904_s6, %s5329_s11  ;;  %p5333_p5 = scmp.lt.u32.totalorder %s5329_s11, %s6904_s6 }
  0x7c   :  { %p5335_p6 = pnand %p5333_p5, %p5330_p4 }
  0x7e   :  { %5338 = shalt.err (!%p5335_p6)
}
  0x7f   :  { %s5339_s9 = scalar_lea.vmem %s149_s3, 32  ;;  %p5344_p8 = scmp.lt.s32.totalorder %s149_s3, %s149_s3 }
  0x80   :  { %p5340_p7 = scmp.ne.s32.totalorder %s149_s3, %s5339_s9  ;;  %p5345_p9 = scmp.lt.s32.totalorder %s5339_s9, %s5339_s9 }
  0x82   :  { %p5346_p10 = por %p5345_p9, %p5344_p8 }
  0x84   :  { %p5347_p11 = pnand %p5346_p10, %p5340_p7 }
  0x86   :  { %5350 = shalt.err (!%p5347_p11)
}
  0x87   :  { %151 = dma.hbm_to_vmem [thread:$0]  %s6904_s6, 32, %s149_s3, [#allocation17]  }
  0x88   :  { %s5351_s5 = scalar_lea.hbm %s6858_s13, 32 }
  0x89   :  { %p5352_p12 = scmp.ne.s32.totalorder %s6858_s13, %s5351_s5  ;;  %p5355_p13 = scmp.lt.u32.totalorder %s5351_s5, %s6858_s13 }
  0x8b   :  { %p5357_p0 = pnand %p5355_p13, %p5352_p12 }
  0x8d   :  { %5360 = shalt.err (!%p5357_p0)
}
  0x8e   :  { %s5361_s2 = scalar_lea.vmem %s171_s10, 32  ;;  %p5366_p2 = scmp.lt.s32.totalorder %s171_s10, %s171_s10 }
  0x8f   :  { %p5362_p1 = scmp.ne.s32.totalorder %s171_s10, %s5361_s2  ;;  %p5367_p3 = scmp.lt.s32.totalorder %s5361_s2, %s5361_s2 }
  0x91   :  { %p5368_p4 = por %p5367_p3, %p5366_p2 }
  0x93   :  { %p5369_p5 = pnand %p5368_p4, %p5362_p1 }
  0x95   :  { %5372 = shalt.err (!%p5369_p5)
}
  0x96   :  { %173 = dma.hbm_to_vmem [thread:$0]  %s6858_s13, 32, %s171_s10, [#allocation20]  }
  0x97   :  { %s5639_s7 = smov [#allocation22]   ;;  %s5373_s4 = scalar_lea.hbm %s6860_s15, 64 }
  0x98   :  { %s192_s12 = sshll.u32 %s5639_s7, 4  ;;  %p5374_p6 = scmp.ne.s32.totalorder %s6860_s15, %s5373_s4  ;;  %s193_s12 = int_to_ptr.vmem [resolvable:$true] %s192_s12 }
  0x99   :  { %p5377_p7 = scmp.lt.u32.totalorder %s5373_s4, %s6860_s15 }
  0x9b   :  { %p5379_p8 = pnand %p5377_p7, %p5374_p6 }
  0x9d   :  { %5382 = shalt.err (!%p5379_p8)
}
  0x9e   :  { %s5383_s1 = scalar_lea.vmem %s193_s12, 64  ;;  %p5388_p10 = scmp.lt.s32.totalorder %s193_s12, %s193_s12 }
  0x9f   :  { %p5384_p9 = scmp.ne.s32.totalorder %s193_s12, %s5383_s1  ;;  %p5389_p11 = scmp.lt.s32.totalorder %s5383_s1, %s5383_s1 }
  0xa1   :  { %p5390_p12 = por %p5389_p11, %p5388_p10 }
  0xa3   :  { %p5391_p13 = pnand %p5390_p12, %p5384_p9 }
  0xa5   :  { %5394 = shalt.err (!%p5391_p13)
}
  0xa6   :  { %195 = dma.hbm_to_vmem [thread:$0]  %s6860_s15, 64, %s193_s12, [#allocation23]  }
  0xa7   :  { %s5640_s11 = smov [#allocation25]   ;;  %s5641_s2 = smov [#allocation2]  }
  0xa8   :  { %s213_s0 = sshll.u32 %s5640_s11, 4  ;;  %s52_s3 = sshll.u32 %s5641_s2, 4  ;;  %s214_s0 = int_to_ptr.vmem [resolvable:$true] %s213_s0  ;;  %s53_s3 = int_to_ptr.vmem [resolvable:$true] %s52_s3 }
  0xa9   :  { %s5395_s9 = scalar_lea.hbm %s6863_s18, 8192 }
  0xaa   :  { %p5396_p0 = scmp.ne.s32.totalorder %s6863_s18, %s5395_s9  ;;  %p5399_p1 = scmp.lt.u32.totalorder %s5395_s9, %s6863_s18 }
  0xac   :  { %p5401_p2 = pnand %p5399_p1, %p5396_p0 }
  0xae   :  { %5404 = shalt.err (!%p5401_p2)
}
  0xaf   :  { %s5405_s15 = scalar_lea.vmem %s214_s0, 8192  ;;  %p5410_p4 = scmp.lt.s32.totalorder %s214_s0, %s214_s0 }
  0xb0   :  { %p5406_p3 = scmp.ne.s32.totalorder %s214_s0, %s5405_s15  ;;  %p5411_p5 = scmp.lt.s32.totalorder %s5405_s15, %s5405_s15 }
  0xb2   :  { %p5412_p6 = por %p5411_p5, %p5410_p4 }
  0xb4   :  { %p5413_p7 = pnand %p5412_p6, %p5406_p3 }
  0xb6   :  { %5416 = shalt.err (!%p5413_p7)
}
  0xb7   :  { %s6885_s12 = smov 256   ;;  %s5643_s5 = smov 16  }
  0xb8   :  { %219 = dma.hbm_to_vmem [thread:$0]  %s6863_s18, 8192, %s214_s0, [#allocation26], %s6885_s12, %s6885_s12, %s5643_s5  }
  0xb9   :  { %s6905_s11 = sld [smem:[#allocation39_spill]] }
  0xbf   :  { %s5417_s2 = scalar_lea.hbm %s6905_s11, 128 }
  0xc0   :  { %p5418_p8 = scmp.ne.s32.totalorder %s6905_s11, %s5417_s2  ;;  %p5421_p9 = scmp.lt.u32.totalorder %s5417_s2, %s6905_s11 }
  0xc2   :  { %p5423_p10 = pnand %p5421_p9, %p5418_p8 }
  0xc4   :  { %5426 = shalt.err (!%p5423_p10)
}
  0xc5   :  { %s5427_s4 = scalar_lea.vmem %s53_s3, 128  ;;  %p5432_p12 = scmp.lt.s32.totalorder %s53_s3, %s53_s3 }
  0xc6   :  { %p5428_p11 = scmp.ne.s32.totalorder %s53_s3, %s5427_s4  ;;  %p5433_p13 = scmp.lt.s32.totalorder %s5427_s4, %s5427_s4 }
  0xc8   :  { %p5434_p0 = por %p5433_p13, %p5432_p12 }
  0xca   :  { %p5435_p1 = pnand %p5434_p0, %p5428_p11 }
  0xcc   :  { %5438 = shalt.err (!%p5435_p1)
}
  0xcd   :  { %55 = dma.hbm_to_vmem [thread:$0]  %s6905_s11, 128, %s53_s3, [#allocation3]  }
  0xce   :  { %s5644_s29 = smov [#allocation6]   ;;  %s5645_s15 = smov [#allocation9]  }
  0xcf   :  { %s72_s30 = sshll.u32 %s5644_s29, 4  ;;  %s91_s28 = sshll.u32 %s5645_s15, 4  ;;  %s73_s30 = int_to_ptr.vmem [resolvable:$true] %s72_s30  ;;  %s92_s28 = int_to_ptr.vmem [resolvable:$true] %s91_s28 }
  0xd0   :  { %s6906_s10 = sld [smem:[#allocation41_spill]] }
  0xd6   :  { %s5439_s2 = scalar_lea.hbm %s6906_s10, 32 }
  0xd7   :  { %p5440_p2 = scmp.ne.s32.totalorder %s6906_s10, %s5439_s2  ;;  %p5443_p3 = scmp.lt.u32.totalorder %s5439_s2, %s6906_s10 }
  0xd9   :  { %p5445_p4 = pnand %p5443_p3, %p5440_p2 }
  0xdb   :  { %5448 = shalt.err (!%p5445_p4)
}
  0xdc   :  { %s5449_s3 = scalar_lea.vmem %s73_s30, 32  ;;  %p5454_p6 = scmp.lt.s32.totalorder %s73_s30, %s73_s30 }
  0xdd   :  { %p5450_p5 = scmp.ne.s32.totalorder %s73_s30, %s5449_s3  ;;  %p5455_p7 = scmp.lt.s32.totalorder %s5449_s3, %s5449_s3 }
  0xdf   :  { %p5456_p8 = por %p5455_p7, %p5454_p6 }
  0xe1   :  { %p5457_p9 = pnand %p5456_p8, %p5450_p5 }
  0xe3   :  { %5460 = shalt.err (!%p5457_p9)
}
  0xe4   :  { %75 = dma.hbm_to_vmem [thread:$0]  %s6906_s10, 32, %s73_s30, [#allocation5]  }
  0xe5   :  { %s6907_s29 = sld [smem:[#allocation43_spill]] }
  0xeb   :  { %s5461_s15 = scalar_lea.hbm %s6907_s29, 512 }
  0xec   :  { %p5462_p10 = scmp.ne.s32.totalorder %s6907_s29, %s5461_s15  ;;  %p5465_p11 = scmp.lt.u32.totalorder %s5461_s15, %s6907_s29 }
  0xee   :  { %p5467_p12 = pnand %p5465_p11, %p5462_p10 }
  0xf0   :  { %5470 = shalt.err (!%p5467_p12)
}
  0xf1   :  { %s5471_s7 = scalar_lea.vmem %s92_s28, 512  ;;  %p5476_p0 = scmp.lt.s32.totalorder %s92_s28, %s92_s28 }
  0xf2   :  { %p5472_p13 = scmp.ne.s32.totalorder %s92_s28, %s5471_s7  ;;  %p5477_p1 = scmp.lt.s32.totalorder %s5471_s7, %s5471_s7 }
  0xf4   :  { %p5478_p2 = por %p5477_p1, %p5476_p0 }
  0xf6   :  { %p5479_p3 = pnand %p5478_p2, %p5472_p13 }
  0xf8   :  { %5482 = shalt.err (!%p5479_p3)
}
  0xf9   :  { %s5646_s30 = smov 64   ;;  %s5647_s10 = smov 4  }
  0xfa   :  { %97 = dma.hbm_to_vmem [thread:$0]  %s6907_s29, 512, %s92_s28, [#allocation8], %s5646_s30, %s5646_s30, %s5647_s10  }
  0xfb   :  { %s5648_s3 = smov [#allocation12]   ;;  %s6908_s0 = sld [smem:[#allocation45_spill]] }
  0xfc   :  { %s113_s11 = sshll.u32 %s5648_s3, 4  ;;  %s114_s11 = int_to_ptr.vmem [resolvable:$true] %s113_s11 }
 0x101   :  { %s5483_s15 = scalar_lea.hbm %s6908_s0, 2048 }
 0x102   :  { %p5484_p4 = scmp.ne.s32.totalorder %s6908_s0, %s5483_s15  ;;  %p5487_p5 = scmp.lt.u32.totalorder %s5483_s15, %s6908_s0 }
 0x104   :  { %p5489_p6 = pnand %p5487_p5, %p5484_p4 }
 0x106   :  { %5492 = shalt.err (!%p5489_p6)
}
 0x107   :  { %s5493_s7 = scalar_lea.vmem %s114_s11, 2048  ;;  %p5498_p8 = scmp.lt.s32.totalorder %s114_s11, %s114_s11 }
 0x108   :  { %p5494_p7 = scmp.ne.s32.totalorder %s114_s11, %s5493_s7  ;;  %p5499_p9 = scmp.lt.s32.totalorder %s5493_s7, %s5493_s7 }
 0x10a   :  { %p5500_p10 = por %p5499_p9, %p5498_p8 }
 0x10c   :  { %p5501_p11 = pnand %p5500_p10, %p5494_p7 }
 0x10e   :  { %5504 = shalt.err (!%p5501_p11)
}
 0x10f   :  { %s5649_s28 = smov 128   ;;  %s5650_s29 = smov 8  }
 0x110   :  { %119 = dma.hbm_to_vmem [thread:$0]  %s6908_s0, 2048, %s114_s11, [#allocation11], %s5649_s28, %s5649_s28, %s5650_s29  }
 0x111   :  { %s5651_s9 = smov [#allocation15]   ;;  %s5652_s3 = smov [#allocation18]  }
 0x112   :  { %s135_s8 = sshll.u32 %s5651_s9, 4  ;;  %s157_s4 = sshll.u32 %s5652_s3, 4  ;;  %s136_s8 = int_to_ptr.vmem [resolvable:$true] %s135_s8  ;;  %s5955_s4 = int_to_ptr.vmem [resolvable:$true] %s157_s4 }
 0x113   :  { %s6909_s1 = sld [smem:[#allocation47_spill]] }
 0x119   :  { %s5505_s13 = scalar_lea.hbm %s6909_s1, 4096 }
 0x11a   :  { %p5506_p12 = scmp.ne.s32.totalorder %s6909_s1, %s5505_s13  ;;  %p5509_p13 = scmp.lt.u32.totalorder %s5505_s13, %s6909_s1 }
 0x11c   :  { %p5511_p0 = pnand %p5509_p13, %p5506_p12 }
 0x11e   :  { %5514 = shalt.err (!%p5511_p0)
}
 0x11f   :  { %s5515_s11 = scalar_lea.vmem %s136_s8, 4096  ;;  %p5520_p2 = scmp.lt.s32.totalorder %s136_s8, %s136_s8 }
 0x120   :  { %p5516_p1 = scmp.ne.s32.totalorder %s136_s8, %s5515_s11  ;;  %p5521_p3 = scmp.lt.s32.totalorder %s5515_s11, %s5515_s11 }
 0x122   :  { %p5522_p4 = por %p5521_p3, %p5520_p2 }
 0x124   :  { %p5523_p5 = pnand %p5522_p4, %p5516_p1 }
 0x126   :  { %5526 = shalt.err (!%p5523_p5)
}
 0x127   :  { %141 = dma.hbm_to_vmem [thread:$0]  %s6909_s1, 4096, %s136_s8, [#allocation14], %s5649_s28, %s5649_s28, %s5650_s29  }
 0x128   :  { %s6910_s12 = sld [smem:[#allocation49_spill]] }
 0x12e   :  { %s5527_s3 = scalar_lea.hbm %s6910_s12, 2048 }
 0x12f   :  { %p5528_p6 = scmp.ne.s32.totalorder %s6910_s12, %s5527_s3  ;;  %p5531_p7 = scmp.lt.u32.totalorder %s5527_s3, %s6910_s12 }
 0x131   :  { %p5533_p8 = pnand %p5531_p7, %p5528_p6 }
 0x133   :  { %5536 = shalt.err (!%p5533_p8)
}
 0x134   :  { %s5537_s6 = scalar_lea.vmem %s5955_s4, 2048  ;;  %p5542_p10 = scmp.lt.s32.totalorder %s5955_s4, %s5955_s4 }
 0x135   :  { %p5538_p9 = scmp.ne.s32.totalorder %s5955_s4, %s5537_s6  ;;  %p5543_p11 = scmp.lt.s32.totalorder %s5537_s6, %s5537_s6 }
 0x137   :  { %p5544_p12 = por %p5543_p11, %p5542_p10 }
 0x139   :  { %p5545_p13 = pnand %p5544_p12, %p5538_p9 }
 0x13b   :  { %5548 = shalt.err (!%p5545_p13)
}
 0x13c   :  { %163 = dma.hbm_to_vmem [thread:$0]  %s6910_s12, 2048, %s5955_s4, [#allocation17], %s5649_s28, %s5649_s28, %s5650_s29  }
 0x13d   :  { %s5653_s7 = smov [#allocation21]   ;;  %s5654_s0 = smov [#allocation24]  }
 0x13e   :  { %s179_s11 = sshll.u32 %s5653_s7, 4  ;;  %s204_s30 = sshll.u32 %s5654_s0, 4  ;;  %s180_s11 = int_to_ptr.vmem [resolvable:$true] %s179_s11  ;;  %s205_s30 = int_to_ptr.vmem [resolvable:$true] %s204_s30 }
 0x13f   :  { %s5549_s3 = scalar_lea.hbm %s6859_s14, 8192 }
 0x140   :  { %p5550_p0 = scmp.ne.s32.totalorder %s6859_s14, %s5549_s3  ;;  %p5553_p1 = scmp.lt.u32.totalorder %s5549_s3, %s6859_s14 }
 0x142   :  { %p5555_p2 = pnand %p5553_p1, %p5550_p0 }
 0x144   :  { %5558 = shalt.err (!%p5555_p2)
}
 0x145   :  { %s5559_s28 = scalar_lea.vmem %s180_s11, 8192  ;;  %p5564_p4 = scmp.lt.s32.totalorder %s180_s11, %s180_s11 }
 0x146   :  { %p5560_p3 = scmp.ne.s32.totalorder %s180_s11, %s5559_s28  ;;  %p5565_p5 = scmp.lt.s32.totalorder %s5559_s28, %s5559_s28 }
 0x148   :  { %p5566_p6 = por %p5565_p5, %p5564_p4 }
 0x14a   :  { %p5567_p7 = pnand %p5566_p6, %p5560_p3 }
 0x14c   :  { %5570 = shalt.err (!%p5567_p7)
}
 0x14d   :  { %s6911_s29 = smov 256   ;;  %s5571_s1 = scalar_lea.hbm %s6862_s17, 64 }
 0x14e   :  { %185 = dma.hbm_to_vmem [thread:$0]  %s6859_s14, 8192, %s180_s11, [#allocation20], %s6911_s29, %s6911_s29, %s5643_s5  }
 0x14f   :  { %p5572_p8 = scmp.ne.s32.totalorder %s6862_s17, %s5571_s1  ;;  %p5575_p9 = scmp.lt.u32.totalorder %s5571_s1, %s6862_s17 }
 0x151   :  { %p5577_p10 = pnand %p5575_p9, %p5572_p8 }
 0x153   :  { %5580 = shalt.err (!%p5577_p10)
}
 0x154   :  { %s5581_s3 = scalar_lea.vmem %s205_s30, 64  ;;  %p5586_p12 = scmp.lt.s32.totalorder %s205_s30, %s205_s30 }
 0x155   :  { %p5582_p11 = scmp.ne.s32.totalorder %s205_s30, %s5581_s3  ;;  %p5587_p13 = scmp.lt.s32.totalorder %s5581_s3, %s5581_s3 }
 0x157   :  { %p5588_p0 = por %p5587_p13, %p5586_p12 }
 0x159   :  { %p5589_p1 = pnand %p5588_p0, %p5582_p11 }
 0x15b   :  { %5592 = shalt.err (!%p5589_p1)
}
 0x15c   :  { %207 = dma.hbm_to_vmem [thread:$0]  %s6862_s17, 64, %s205_s30, [#allocation23]  }
 0x15d   :  { %s5655_s11 = smov [#allocation27]   ;;  %s5593_s2 = scalar_lea.hbm %s6864_s19, 64 }
 0x15e   :  { %s226_s18 = sshll.u32 %s5655_s11, 4  ;;  %p5594_p2 = scmp.ne.s32.totalorder %s6864_s19, %s5593_s2  ;;  %s227_s18 = int_to_ptr.vmem [resolvable:$true] %s226_s18 }
 0x15f   :  { %p5597_p3 = scmp.lt.u32.totalorder %s5593_s2, %s6864_s19 }
 0x161   :  { %p5599_p4 = pnand %p5597_p3, %p5594_p2 }
 0x163   :  { %5602 = shalt.err (!%p5599_p4)
}
 0x164   :  { %s5603_s6 = scalar_lea.vmem %s227_s18, 64  ;;  %p5608_p6 = scmp.lt.s32.totalorder %s227_s18, %s227_s18 }
 0x165   :  { %p5604_p5 = scmp.ne.s32.totalorder %s227_s18, %s5603_s6  ;;  %p5609_p7 = scmp.lt.s32.totalorder %s5603_s6, %s5603_s6 }
 0x167   :  { %p5610_p8 = por %p5609_p7, %p5608_p6 }
 0x169   :  { %p5611_p9 = pnand %p5610_p8, %p5604_p5 }
 0x16b   :  { %5614 = shalt.err (!%p5611_p9)
}
 0x16c   :  { %229 = dma.hbm_to_vmem [thread:$0]  %s6864_s19, 64, %s227_s18, [#allocation26]  }
 0x16d   :  { %5615 = dma.done.wait [#allocation3], 128  }
 0x16e   :  { %5616 = vsyncadd [#allocation3], 4294967168 }
 0x16f   :  { %5617 = dma.done.wait [#allocation5], 96  }
 0x170   :  { %5618 = vsyncadd [#allocation5], 4294967200 }
 0x171   :  { %5619 = dma.done.wait [#allocation8], 528  }
 0x172   :  { %5620 = vsyncadd [#allocation8], 4294966768 }
 0x173   :  { %5621 = dma.done.wait [#allocation11], 2064  }
 0x174   :  { %5622 = vsyncadd [#allocation11], 4294965232 }
 0x175   :  { %5623 = dma.done.wait [#allocation14], 4128  }
 0x176   :  { %5624 = vsyncadd [#allocation14], 4294963168 }
 0x177   :  { %5625 = dma.done.wait [#allocation17], 2080  }
 0x178   :  { %5626 = vsyncadd [#allocation17], 4294965216 }
 0x179   :  { %5627 = dma.done.wait [#allocation20], 8224  }
 0x17a   :  { %5628 = vsyncadd [#allocation20], 4294959072 }
 0x17b   :  { %5629 = dma.done.wait [#allocation23], 128  }
 0x17c   :  { %5630 = vsyncadd [#allocation23], 4294967168 }
 0x17d   :  { %5631 = dma.done.wait [#allocation26], 8256  }
 0x17e   :  { %5632 = vsyncadd [#allocation26], 4294959040  ;;  %v783_v0 = vlaneseq  ;;  %v5656_v1 = vmov 1983009808   ;;  %v5657_v3 = vmov 0   ;;  %v300_v7 = vld [vmem:[#allocation2] sm:$0xff] }
 0x17f   :  { %v806_v2 = vunpack.c.l.s4 %v5656_v1  ;;  %870 = vmatprep.mubr.bf16.mxu0 %v5657_v3  ;;  %911 = vmatprep.mubr.bf16.mxu1 %v5657_v3  ;;  %vm825_vm0 = vcmask 1041408   ;;  %s6912_s1 = sld [smem:[#allocation38_spill]]  ;;  %v302_v10 = vld [vmem:[#allocation6] sm:$0x3]  ;;  %vm821_vm1 = vcmask 31744   ;;  %v5658_v14 = vmov 0.0  }
 0x180   :  { %v6033_v4 = vshrl.u32 %v783_v0, 7  ;;  %v931_v15 = vsel %vm825_vm0, %v302_v10, 0  ;;  %s6913_s10 = sld [smem:[#allocation37_spill]]  ;;  %vm5659_vm2 = vmmov 0   ;;  %v4105_v22 = vld [vmem:[#allocation7] ss:$0 sm:$0xff]  ;;  %v804_v31 = vcombine.high %v300_v7, %v300_v7 }
 0x181   :  { %v807_v5 = vunpack.c.0.s8 %v806_v2  ;;  %vm973_vm3 = vcmask 523264   ;;  %v4674_v35 = vld [vmem:[#allocation9] sm:$0xff]   ;;  %v4675_v36 = vld [vmem:[#allocation9 + $0x8] sm:$0xff]   ;;  %v4676_v37 = vld [vmem:[#allocation9 + $0x10] sm:$0xff]   ;;  %vm4035_vm15 = vcmask 130048   ;;  %s6914_s17 = sld [smem:[#allocation50_spill]] }
 0x182   :  { %v4677_v38 = vld [vmem:[#allocation9 + $0x18] sm:$0xff]   ;;  %v4678_v56 = vld [vmem:[#allocation12] ss:$8 sps:$4 sm:$0xff]   ;;  %v4680_v57 = vld [vmem:[#allocation12 + $0x4] ss:$8 sps:$4 sm:$0xff]  }
 0x183   :  { %v810_v6 = vsub.s32 %v807_v5, %v6033_v4  ;;  %v4683_v58 = vld [vmem:[#allocation12 + $0x14] ss:$8 sps:$4 sm:$0xff]   ;;  %v4681_v59 = vld [vmem:[#allocation12 + $0x10] ss:$8 sps:$4 sm:$0xff]   ;;  %v4686_v5 = vld [vmem:[#allocation12 + $0x24] ss:$8 sps:$4 sm:$0xff]  }
 0x184   :  { %v4107_v60 = vld [vmem:[#allocation10] ss:$0 sm:$0xff]  ;;  %v4690_v10 = vld [vmem:[#allocation12 + $0x40] ss:$8 sps:$4 sm:$0xff]  }
 0x185   :  { %v811_v8 = vrot.slane %v300_v7, %v810_v6  ;;  %v299_v9 = vld [vmem:[%s6912_s1] sm:$0xff]  ;;  %v818_v32 = vrot.slane %v804_v31, %v810_v6  ;;  %v4684_v6 = vld [vmem:[#allocation12 + $0x20] ss:$8 sps:$4 sm:$0xff]  }
 0x186   :  { %v781_v13 = vpack.c.bf16 %v299_v9, %v299_v9  ;;  %v298_v16 = vld [vmem:[%s6913_s10] sm:$0xff] }
 0x187   :  { %v819_v11 = vcombine.high %v811_v8, %v811_v8  ;;  %v827_v12 = vsel %vm825_vm0, %v811_v8, 0  ;;  %v920_v17 = vpack.c.bf16 %v298_v16, %v298_v16  ;;  %v820_v33 = vcombine.high %v818_v32, %v818_v32  ;;  %v4689_v7 = vld [vmem:[#allocation12 + $0x34] ss:$8 sps:$4 sm:$0xff]   ;;  %v4687_v8 = vld [vmem:[#allocation12 + $0x30] ss:$8 sps:$4 sm:$0xff]  }
 0x188   :  { %v833_v34 = vsel %vm825_vm0, %v818_v32, 0  ;;  %v4692_v9 = vld [vmem:[#allocation12 + $0x44] ss:$8 sps:$4 sm:$0xff]   ;;  %v4701_v16 = vld [vmem:[#allocation12 + $0x74] ss:$8 sps:$4 sm:$0xff]  }
 0x189   :  { %4101 = vmatprep.subr.msk.bf16.mxu0 %vm825_vm0, %v819_v11  ;;  %4103 = vmatprep.subr.msk.bf16.mxu1 %vm825_vm0, %v820_v33  ;;  %v4695_v11 = vld [vmem:[#allocation12 + $0x54] ss:$8 sps:$4 sm:$0xff]   ;;  %v4702_v32 = vld [vmem:[#allocation18] ss:$8 sps:$4 sm:$0xff]  }
 0x18a   :  { %839 = vmatpush1.bf16.msra.mxu0 %v827_v12  ;;  %880 = vmatpush1.bf16.msra.mxu1 %v833_v34  ;;  %v4693_v12 = vld [vmem:[#allocation12 + $0x50] ss:$8 sps:$4 sm:$0xff]  }
 0x18b   :  { %4610 = vmatprep.subr.bf16.mxu0 %v5658_v14  ;;  %4616 = vmatprep.subr.bf16.mxu1 %v5658_v14 }
 0x18d   :  { %4102 = vmatmul.mubr.msk.bf16.vlgmr.msra.gmra.mrb[0].mxu0 %vm821_vm1, %v781_v13  ;;  %4104 = vmatmul.mubr.msk.bf16.vlgmr.msra.gmra.mrb[0].mxu1 %vm821_vm1, %v781_v13  ;;  %v4698_v13 = vld [vmem:[#allocation12 + $0x64] ss:$8 sps:$4 sm:$0xff]  }
 0x18e   :  { %4611 = vmatpush3.bf16.msra.mxu0 %v931_v15  ;;  %4612 = vmatprep.mubr.msk.bf16.mxu0 %vm5659_vm2, %v5658_v14  ;;  %v4696_v15 = vld [vmem:[#allocation12 + $0x60] ss:$8 sps:$4 sm:$0xff]  }
 0x18f   :  { %4624 = vmatprep.mubr.msk.bf16.mxu1 %vm5659_vm2, %v5658_v14  ;;  %4617 = vmatpush3.bf16.msra.mxu1 %v4674_v35  ;;  %v4707_v35 = vld [vmem:[#allocation18 + $0x14] ss:$8 sps:$4 sm:$0xff]  }
 0x190   :  { %4618 = vmatprep.subr.bf16.mxu1 %v5658_v14  ;;  %1176 = vmatprep.subr.bf16.mxu0 %v4680_v57  ;;  %v4737_v57 = vld [vmem:[#allocation15 + $0x34] ss:$8 sps:$4 sm:$0xff]  }
 0x193   :  { %4619 = vmatpush3.bf16.msra.mxu1 %v4675_v36  ;;  %v4705_v36 = vld [vmem:[#allocation18 + $0x10] ss:$8 sps:$4 sm:$0xff]  }
 0x194   :  { %4620 = vmatprep.subr.bf16.mxu1 %v5658_v14 }
 0x195   :  { %4613 = vmatmul.mubr.msk.bf16.vlgmr.msra.gmra.mrb[4].mxu0 %vm821_vm1, %v920_v17  ;;  %v4699_v17 = vld [vmem:[#allocation12 + $0x70] ss:$8 sps:$4 sm:$0xff]  }
 0x196   :  { %1208 = vmatprep.mubr.bf16.mxu0 %v5657_v3  ;;  %1177 = vmatpush1.bf16.msra.mxu0 %v4678_v56  ;;  %v4732_v56 = vld [vmem:[#allocation15 + $0x20] ss:$8 sps:$4 sm:$0xff]  }
 0x197   :  { %4621 = vmatpush3.bf16.msra.mxu1 %v4676_v37  ;;  %1178 = vmatprep.subr.bf16.mxu0 %v4683_v58  ;;  %v4710_v37 = vld [vmem:[#allocation18 + $0x24] ss:$8 sps:$4 sm:$0xff]  }
 0x198   :  { %4622 = vmatprep.subr.bf16.mxu1 %v5658_v14  ;;  %v4735_v58 = vld [vmem:[#allocation15 + $0x30] ss:$8 sps:$4 sm:$0xff]  }
 0x19a   :  { %1179 = vmatpush1.bf16.msra.mxu0 %v4681_v59  ;;  %v4740_v59 = vld [vmem:[#allocation15 + $0x44] ss:$8 sps:$4 sm:$0xff]  }
 0x19b   :  { %4623 = vmatpush3.bf16.msra.mxu1 %v4677_v38  ;;  %1180 = vmatprep.subr.bf16.mxu0 %v4686_v5  ;;  %v4708_v38 = vld [vmem:[#allocation18 + $0x20] ss:$8 sps:$4 sm:$0xff]  }
 0x19c   :  { %v4752_v5 = vld [vmem:[#allocation15 + $0x84] ss:$8 sps:$4 sm:$0xff]  }
 0x19e   :  { %1181 = vmatpush1.bf16.msra.mxu0 %v4684_v6  ;;  %v4750_v6 = vld [vmem:[#allocation15 + $0x80] ss:$8 sps:$4 sm:$0xff]  }
 0x19f   :  { %1182 = vmatprep.subr.bf16.mxu0 %v4689_v7  ;;  %v4755_v7 = vld [vmem:[#allocation15 + $0x94] ss:$8 sps:$4 sm:$0xff]  }
 0x1a2   :  { %1183 = vmatpush1.bf16.msra.mxu0 %v4687_v8  ;;  %v4753_v8 = vld [vmem:[#allocation15 + $0x90] ss:$8 sps:$4 sm:$0xff]  }
 0x1a3   :  { %1184 = vmatprep.subr.bf16.mxu0 %v4692_v9  ;;  %v329_v9 = vld [vmem:[#allocation13] sm:$0x3] }
 0x1a6   :  { %1185 = vmatpush1.bf16.msra.mxu0 %v4690_v10  ;;  %v6081_v10 = vsub.s32 0, %v6033_v4 }
 0x1a7   :  { %1186 = vmatprep.subr.bf16.mxu0 %v4695_v11  ;;  %v6084_v11 = vsub.s32 1, %v6033_v4 }
 0x1aa   :  { %1187 = vmatpush1.bf16.msra.mxu0 %v4693_v12  ;;  %v1089_v12 = vrot.slane %v329_v9, %v6081_v10 }
 0x1ab   :  { %1188 = vmatprep.subr.bf16.mxu0 %v4698_v13  ;;  %v1093_v13 = vrot.slane %v329_v9, %v6084_v11  ;;  %v4774_v9 = vld [vmem:[#allocation21] ss:$16 sps:$4 sm:$0xff]  }
 0x1ae   :  { %1189 = vmatpush1.bf16.msra.mxu0 %v4696_v15 }
 0x1af   :  { %1190 = vmatprep.subr.bf16.mxu0 %v4701_v16 }
 0x1b2   :  { %1191 = vmatpush1.bf16.msra.mxu0 %v4699_v17 }
 0x260   :  { %v6051_v18 = vpop.f32.mrb[0].mxu0  ;;  %v6067_v52 = vpop.f32.mrb[0].mxu1 }
 0x261   :  { %v6053_v19 = vpop.f32.mrb[1].mxu0  ;;  %v6069_v53 = vpop.f32.mrb[1].mxu1 }
 0x262   :  { %v876_v20 = vpop.f32.mrb[2].mxu0  ;;  %v917_v54 = vpop.f32.mrb[2].mxu1 }
 0x263   :  { %v877_v21 = vpop.f32.mrb[3].mxu0  ;;  %v918_v55 = vpop.f32.mrb[3].mxu1  ;;  %v4704_v20 = vld [vmem:[#allocation18 + $0x4] ss:$8 sps:$4 sm:$0xff]  }
 0x264   :  { %1548 = vmatprep.subr.bf16.mxu0 %v4704_v20  ;;  %v4729_v54 = vld [vmem:[#allocation15 + $0x10] ss:$8 sps:$4 sm:$0xff]   ;;  %v4734_v55 = vld [vmem:[#allocation15 + $0x24] ss:$8 sps:$4 sm:$0xff]  }
 0x268   :  { %v967_v23 = vpop.f32.mrb[4].mxu0 }
 0x269   :  { %v968_v24 = vadd.f32 %v4105_v22, %v967_v23  ;;  %v4614_v25 = vpop.f32.mrb[5].mxu0 }
 0x26a   :  { %v970_v26 = vpop.f32.mrb[6].mxu0 }
 0x26b   :  { %v4615_v27 = vpop.f32.mrb[7].mxu0  ;;  %v974_v28 = vsel %vm973_vm3, %v968_v24, 0.0  ;;  %v979_v29 = vmul.f32 %v968_v24, %v968_v24 }
 0x26c   :  { %975 = vadd.xlane.f32.xlu0 %v974_v28 }
 0x26d   :  { %v980_v30 = vsel %vm973_vm3, %v979_v29, 0.0 }
 0x270   :  { %981 = vadd.xlane.f32.xlu0 %v980_v30 }
 0x2f9   :  { %v976_v39 = vpop.xlane.xlu0 %975 }
 0x2fa   :  { %v978_v40 = vmul.f32 0.015625, %v976_v39  ;;  %v4713_v39 = vld [vmem:[#allocation18 + $0x34] ss:$8 sps:$4 sm:$0xff]  }
 0x2fc   :  { %v985_v42 = vmul.f32 %v978_v40, %v978_v40  ;;  %v984_v46 = vsub.f32 %v968_v24, %v978_v40  ;;  %v4711_v40 = vld [vmem:[#allocation18 + $0x30] ss:$8 sps:$4 sm:$0xff]  }
 0x2fd   :  { %v982_v41 = vpop.xlane.xlu0 %981 }
 0x2fe   :  { %v983_v43 = vmul.f32 0.015625, %v982_v41  ;;  %v4716_v41 = vld [vmem:[#allocation18 + $0x44] ss:$8 sps:$4 sm:$0xff]  }
 0x300   :  { %v986_v44 = vsub.f32 %v983_v43, %v985_v42  ;;  %v4714_v42 = vld [vmem:[#allocation18 + $0x40] ss:$8 sps:$4 sm:$0xff]   ;;  %v4719_v43 = vld [vmem:[#allocation18 + $0x54] ss:$8 sps:$4 sm:$0xff]  }
 0x302   :  { %v987_v45 = vadd.f32 1e-05, %v986_v44  ;;  %v4717_v44 = vld [vmem:[#allocation18 + $0x50] ss:$8 sps:$4 sm:$0xff]  }
 0x304   :  { %5227 = vrsqrt.f32 %v987_v45  ;;  %v4722_v45 = vld [vmem:[#allocation18 + $0x64] ss:$8 sps:$4 sm:$0xff]  }
 0x30e   :  { %v5228_v47 = vpop.eup %5227 }
 0x30f   :  { %v989_v48 = vmul.f32 %v5228_v47, %v984_v46  ;;  %v4725_v46 = vld [vmem:[#allocation18 + $0x74] ss:$8 sps:$4 sm:$0xff]   ;;  %v4723_v47 = vld [vmem:[#allocation18 + $0x70] ss:$8 sps:$4 sm:$0xff]  }
 0x311   :  { %vm990_vm4 = vcmp.ge.f32.partialorder %v989_v48, 0.0  ;;  %v991_v49 = vmul.f32 0.01, %v989_v48 }
 0x313   :  { %v992_v50 = vsel %vm990_vm4, %v989_v48, %v991_v49  ;;  %v4726_v49 = vld [vmem:[#allocation15] ss:$8 sps:$4 sm:$0xff]  }
 0x314   :  { %v993_v51 = vpack.c.bf16 %v992_v50, %v992_v50  ;;  %v4728_v50 = vld [vmem:[#allocation15 + $0x4] ss:$8 sps:$4 sm:$0xff]  }
 0x315   :  { %1415 = vmatprep.subr.bf16.mxu1 %v4728_v50  ;;  %v4771_v50 = vld [vmem:[#allocation15 + $0xf0] ss:$8 sps:$4 sm:$0xff]  }
 0x316   :  { %4625 = vmatmul.mubr.msk.bf16.vlgmr.msra.gmra.mrb[4].mxu1 %vm973_vm3, %v993_v51  ;;  %v4731_v51 = vld [vmem:[#allocation15 + $0x14] ss:$8 sps:$4 sm:$0xff]  }
 0x317   :  { %1416 = vmatpush1.bf16.msra.mxu1 %v4726_v49  ;;  %v4773_v49 = vld [vmem:[#allocation15 + $0xf4] ss:$8 sps:$4 sm:$0xff]  }
 0x318   :  { %1417 = vmatprep.subr.bf16.mxu1 %v4731_v51 }
 0x31b   :  { %1418 = vmatpush1.bf16.msra.mxu1 %v4729_v54 }
 0x31c   :  { %1419 = vmatprep.subr.bf16.mxu1 %v4734_v55 }
 0x31f   :  { %1420 = vmatpush1.bf16.msra.mxu1 %v4732_v56 }
 0x320   :  { %1421 = vmatprep.subr.bf16.mxu1 %v4737_v57 }
 0x323   :  { %1422 = vmatpush1.bf16.msra.mxu1 %v4735_v58 }
 0x324   :  { %1423 = vmatprep.subr.bf16.mxu1 %v4740_v59 }
 0x3e9   :  { %v1061_v61 = vpop.f32.mrb[4].mxu1 }
 0x3ea   :  { %v6071_v62 = vadd.f32 %v4107_v60, %v1061_v61  ;;  %v4626_v63 = vpop.f32.mrb[5].mxu1  ;;  %v4738_v60 = vld [vmem:[#allocation15 + $0x40] ss:$8 sps:$4 sm:$0xff]   ;;  %v4743_v61 = vld [vmem:[#allocation15 + $0x54] ss:$8 sps:$4 sm:$0xff]  }
 0x3eb   :  { %v1064_v0 = vpop.f32.mrb[6].mxu1  ;;  %1424 = vmatpush1.bf16.msra.mxu1 %v4738_v60  ;;  %v4746_v63 = vld [vmem:[#allocation15 + $0x64] ss:$8 sps:$4 sm:$0xff]  }
 0x3ec   :  { %1067 = vadd.xlane.f32.xlu1 %v6071_v62  ;;  %v4627_v1 = vpop.f32.mrb[7].mxu1  ;;  %v1071_v2 = vmul.f32 %v6071_v62, %v6071_v62  ;;  %v1456_v48 = vpack.c.bf16 %v6071_v62, %v6071_v62  ;;  %1425 = vmatprep.subr.bf16.mxu1 %v4743_v61  ;;  %v4744_v0 = vld [vmem:[#allocation15 + $0x60] ss:$8 sps:$4 sm:$0xff]  }
 0x3ed   :  { %v4749_v1 = vld [vmem:[#allocation15 + $0x74] ss:$8 sps:$4 sm:$0xff]  }
 0x3f0   :  { %1072 = vadd.xlane.f32.xlu1 %v1071_v2  ;;  %v4747_v2 = vld [vmem:[#allocation15 + $0x70] ss:$8 sps:$4 sm:$0xff]  }
 0x479   :  { %v1068_v21 = vpop.xlane.xlu1 %1067 }
 0x47a   :  { %v1070_v22 = vmul.f32 0.0078125, %v1068_v21 }
 0x47c   :  { %v1076_v24 = vmul.f32 %v1070_v22, %v1070_v22  ;;  %v1075_v28 = vsub.f32 %v6071_v62, %v1070_v22  ;;  %v4741_v62 = vld [vmem:[#allocation15 + $0x50] ss:$8 sps:$4 sm:$0xff]  }
 0x47d   :  { %v1073_v23 = vpop.xlane.xlu1 %1072  ;;  %1426 = vmatpush1.bf16.msra.mxu1 %v4741_v62 }
 0x47e   :  { %v1074_v25 = vmul.f32 0.0078125, %v1073_v23  ;;  %1427 = vmatprep.subr.bf16.mxu1 %v4746_v63 }
 0x480   :  { %v1077_v26 = vsub.f32 %v1074_v25, %v1076_v24 }
 0x481   :  { %1428 = vmatpush1.bf16.msra.mxu1 %v4744_v0 }
 0x482   :  { %v1078_v27 = vadd.f32 1e-05, %v1077_v26  ;;  %1429 = vmatprep.subr.bf16.mxu1 %v4749_v1 }
 0x484   :  { %5229 = vrsqrt.f32 %v1078_v27  ;;  %v4758_v27 = vld [vmem:[#allocation15 + $0xa4] ss:$8 sps:$4 sm:$0xff]  }
 0x485   :  { %1430 = vmatpush1.bf16.msra.mxu1 %v4747_v2 }
 0x486   :  { %1431 = vmatprep.subr.bf16.mxu1 %v4752_v5 }
 0x489   :  { %1432 = vmatpush1.bf16.msra.mxu1 %v4750_v6 }
 0x48a   :  { %1433 = vmatprep.subr.bf16.mxu1 %v4755_v7 }
 0x48d   :  { %1434 = vmatpush1.bf16.msra.mxu1 %v4753_v8 }
 0x48e   :  { %v5230_v29 = vpop.eup %5229  ;;  %1435 = vmatprep.subr.bf16.mxu1 %v4758_v27  ;;  %v4797_v27 = vld [vmem:[#allocation21 + $0x6c] ss:$16 sps:$4 sm:$0xff]  }
 0x48f   :  { %v1080_v30 = vmul.f32 %v5230_v29, %v1075_v28  ;;  %v4756_v28 = vld [vmem:[#allocation15 + $0xa0] ss:$8 sps:$4 sm:$0xff]  }
 0x490   :  { %v379_v29 = vld [vmem:[#allocation19] sm:$0x3] }
 0x491   :  { %vm1081_vm5 = vcmp.ge.f32.partialorder %v1080_v30, 0.0  ;;  %v1082_v31 = vmul.f32 0.01, %v1080_v30  ;;  %1436 = vmatpush1.bf16.msra.mxu1 %v4756_v28  ;;  %v4792_v28 = vld [vmem:[#allocation21 + $0x60] ss:$16 sps:$4 sm:$0xff]  }
 0x493   :  { %v1083_v33 = vsel %vm1081_vm5, %v1080_v30, %v1082_v31  ;;  %v4761_v30 = vld [vmem:[#allocation15 + $0xb4] ss:$8 sps:$4 sm:$0xff]   ;;  %v4759_v31 = vld [vmem:[#allocation15 + $0xb0] ss:$8 sps:$4 sm:$0xff]  }
 0x494   :  { %v1084_v34 = vpack.c.bf16 %v1083_v33, %v1083_v33  ;;  %1437 = vmatprep.subr.bf16.mxu1 %v4761_v30  ;;  %v1461_v33 = vrot.slane %v379_v29, %v6081_v10  ;;  %v4800_v30 = vld [vmem:[#allocation21 + $0x84] ss:$16 sps:$4 sm:$0xff]  }
 0x495   :  { %1438 = vmatpush1.bf16.msra.mxu1 %v4759_v31  ;;  %v4803_v31 = vld [vmem:[#allocation21 + $0x8c] ss:$16 sps:$4 sm:$0xff]  }
 0x496   :  { %1209 = vmatmul.mubr.bf16.vlgmr.msra.gmra.mrb[8].mxu0 %v1084_v34  ;;  %v4762_v34 = vld [vmem:[#allocation15 + $0xc0] ss:$8 sps:$4 sm:$0xff]  }
 0x497   :  { %1549 = vmatpush1.bf16.msra.mxu0 %v4702_v32  ;;  %1580 = vmatprep.mubr.bf16.mxu0 %v5657_v3  ;;  %v4720_v3 = vld [vmem:[#allocation18 + $0x60] ss:$8 sps:$4 sm:$0xff]  }
 0x498   :  { %1550 = vmatprep.subr.bf16.mxu0 %v4707_v35  ;;  %v4764_v32 = vld [vmem:[#allocation15 + $0xc4] ss:$8 sps:$4 sm:$0xff]   ;;  %v1465_v35 = vrot.slane %v379_v29, %v6084_v11 }
 0x499   :  { %1439 = vmatprep.subr.bf16.mxu1 %v4764_v32  ;;  %v4795_v29 = vld [vmem:[#allocation21 + $0x68] ss:$16 sps:$4 sm:$0xff]   ;;  %v4798_v32 = vld [vmem:[#allocation21 + $0x80] ss:$16 sps:$4 sm:$0xff]  }
 0x49a   :  { %1440 = vmatpush1.bf16.msra.mxu1 %v4762_v34  ;;  %v4806_v34 = vld [vmem:[#allocation21 + $0xa4] ss:$16 sps:$4 sm:$0xff]  }
 0x49b   :  { %1551 = vmatpush1.bf16.msra.mxu0 %v4705_v36  ;;  %v4767_v36 = vld [vmem:[#allocation15 + $0xd4] ss:$8 sps:$4 sm:$0xff]  }
 0x49c   :  { %1552 = vmatprep.subr.bf16.mxu0 %v4710_v37  ;;  %1441 = vmatprep.subr.bf16.mxu1 %v4767_v36  ;;  %v4804_v36 = vld [vmem:[#allocation21 + $0xa0] ss:$16 sps:$4 sm:$0xff]  }
 0x49f   :  { %1553 = vmatpush1.bf16.msra.mxu0 %v4708_v38 }
 0x4a0   :  { %1554 = vmatprep.subr.bf16.mxu0 %v4713_v39 }
 0x4a3   :  { %1555 = vmatpush1.bf16.msra.mxu0 %v4711_v40  ;;  %v4765_v40 = vld [vmem:[#allocation15 + $0xd0] ss:$8 sps:$4 sm:$0xff]  }
 0x4a4   :  { %1556 = vmatprep.subr.bf16.mxu0 %v4716_v41  ;;  %1442 = vmatpush1.bf16.msra.mxu1 %v4765_v40  ;;  %v4815_v40 = vld [vmem:[#allocation21 + $0xcc] ss:$16 sps:$4 sm:$0xff]  }
 0x4a7   :  { %1557 = vmatpush1.bf16.msra.mxu0 %v4714_v42 }
 0x4a8   :  { %1558 = vmatprep.subr.bf16.mxu0 %v4719_v43  ;;  %v4770_v43 = vld [vmem:[#allocation15 + $0xe4] ss:$8 sps:$4 sm:$0xff]  }
 0x4a9   :  { %1443 = vmatprep.subr.bf16.mxu1 %v4770_v43  ;;  %v4813_v43 = vld [vmem:[#allocation21 + $0xc8] ss:$16 sps:$4 sm:$0xff]  }
 0x4ab   :  { %1559 = vmatpush1.bf16.msra.mxu0 %v4717_v44 }
 0x4ac   :  { %1560 = vmatprep.subr.bf16.mxu0 %v4722_v45 }
 0x4af   :  { %1561 = vmatpush1.bf16.msra.mxu0 %v4720_v3 }
 0x4b0   :  { %1562 = vmatprep.subr.bf16.mxu0 %v4725_v46 }
 0x4b3   :  { %1563 = vmatpush1.bf16.msra.mxu0 %v4723_v47  ;;  %v4768_v47 = vld [vmem:[#allocation15 + $0xe0] ss:$8 sps:$4 sm:$0xff]  }
 0x4b4   :  { %1444 = vmatpush1.bf16.msra.mxu1 %v4768_v47  ;;  %v4824_v47 = vld [vmem:[#allocation21 + $0x104] ss:$16 sps:$4 sm:$0xff]  }
 0x4b5   :  { %1445 = vmatprep.subr.bf16.mxu1 %v4773_v49  ;;  %v4822_v49 = vld [vmem:[#allocation21 + $0x100] ss:$16 sps:$4 sm:$0xff]  }
 0x4b6   :  { %1581 = vmatmul.mubr.bf16.vlgmr.msra.gmra.mrb[12].mxu0 %v1456_v48 }
 0x4b8   :  { %1446 = vmatpush1.bf16.msra.mxu1 %v4771_v50  ;;  %v4825_v50 = vld [vmem:[#allocation21 + $0x108] ss:$16 sps:$4 sm:$0xff]  }
 0x569   :  { %v1210_v15 = vpop.f32.mrb[8].mxu0 }
 0x56a   :  { %v6088_v16 = vadd.f32 %v1210_v15, %v1089_v12  ;;  %v1212_v17 = vpop.f32.mrb[9].mxu0  ;;  %v4776_v12 = vld [vmem:[#allocation21 + $0x4] ss:$16 sps:$4 sm:$0xff]   ;;  %v4779_v15 = vld [vmem:[#allocation21 + $0xc] ss:$16 sps:$4 sm:$0xff]  }
 0x56b   :  { %v1213_v20 = vadd.f32 %v1212_v17, %v1093_v13  ;;  %v1214_v21 = vpop.f32.mrb[10].mxu0  ;;  %v4777_v13 = vld [vmem:[#allocation21 + $0x8] ss:$16 sps:$4 sm:$0xff]   ;;  %v4782_v17 = vld [vmem:[#allocation21 + $0x24] ss:$16 sps:$4 sm:$0xff]   ;;  %1976 = vmatprep.subr.bf16.mxu0 %v4776_v12  ;;  %2017 = vmatprep.subr.bf16.mxu1 %v4779_v15 }
 0x56c   :  { %v1215_v22 = vpop.f32.mrb[11].mxu0  ;;  %v1222_v23 = vmul.f32 %v6088_v16, %v6088_v16  ;;  %1977 = vmatpush1.bf16.msra.mxu0 %v4774_v9  ;;  %v4783_v21 = vld [vmem:[#allocation21 + $0x28] ss:$16 sps:$4 sm:$0xff]  }
 0x56d   :  { %v1217_v24 = vadd.f32 %v1213_v20, %v6088_v16  ;;  %v1223_v25 = vmul.f32 %v1213_v20, %v1213_v20  ;;  %1978 = vmatprep.subr.bf16.mxu0 %v4782_v17  ;;  %v4788_v22 = vld [vmem:[#allocation21 + $0x44] ss:$16 sps:$4 sm:$0xff]  }
 0x56f   :  { %1218 = vadd.xlane.f32.xlu0 %v1217_v24  ;;  %v1224_v26 = vadd.f32 %v1223_v25, %v1222_v23  ;;  %v4791_v23 = vld [vmem:[#allocation21 + $0x4c] ss:$16 sps:$4 sm:$0xff]   ;;  %v4786_v24 = vld [vmem:[#allocation21 + $0x40] ss:$16 sps:$4 sm:$0xff]   ;;  %v4789_v25 = vld [vmem:[#allocation21 + $0x48] ss:$16 sps:$4 sm:$0xff]  }
 0x571   :  { %1225 = vadd.xlane.f32.xlu1 %v1224_v26  ;;  %v4794_v26 = vld [vmem:[#allocation21 + $0x64] ss:$16 sps:$4 sm:$0xff]  }
 0x589   :  { %v1582_v37 = vpop.f32.mrb[12].mxu0 }
 0x58a   :  { %v6095_v38 = vadd.f32 %v1582_v37, %v1461_v33  ;;  %v1584_v39 = vpop.f32.mrb[13].mxu0  ;;  %v4801_v33 = vld [vmem:[#allocation21 + $0x88] ss:$16 sps:$4 sm:$0xff]  }
 0x58b   :  { %v6097_v41 = vadd.f32 %v1584_v39, %v1465_v35  ;;  %v1586_v42 = vpop.f32.mrb[14].mxu0  ;;  %v4809_v35 = vld [vmem:[#allocation21 + $0xac] ss:$16 sps:$4 sm:$0xff]   ;;  %v4807_v37 = vld [vmem:[#allocation21 + $0xa8] ss:$16 sps:$4 sm:$0xff]  }
 0x58c   :  { %v1587_v44 = vpop.f32.mrb[15].mxu0  ;;  %v1593_v45 = vmul.f32 %v6095_v38, %v6095_v38  ;;  %v4812_v39 = vld [vmem:[#allocation21 + $0xc4] ss:$16 sps:$4 sm:$0xff]   ;;  %v4810_v42 = vld [vmem:[#allocation21 + $0xc0] ss:$16 sps:$4 sm:$0xff]  }
 0x58d   :  { %v1589_v3 = vadd.f32 %v6097_v41, %v6095_v38  ;;  %v1594_v46 = vmul.f32 %v6097_v41, %v6097_v41  ;;  %v4818_v44 = vld [vmem:[#allocation21 + $0xe4] ss:$16 sps:$4 sm:$0xff]  }
 0x58f   :  { %1590 = vadd.xlane.f32.xlu0 %v1589_v3  ;;  %v1595_v48 = vadd.f32 %v1594_v46, %v1593_v45  ;;  %v4821_v45 = vld [vmem:[#allocation21 + $0xec] ss:$16 sps:$4 sm:$0xff]   ;;  %v4816_v3 = vld [vmem:[#allocation21 + $0xe0] ss:$16 sps:$4 sm:$0xff]   ;;  %v4819_v46 = vld [vmem:[#allocation21 + $0xe8] ss:$16 sps:$4 sm:$0xff]  }
 0x591   :  { %1596 = vadd.xlane.f32.xlu1 %v1595_v48  ;;  %v4827_v48 = vld [vmem:[#allocation21 + $0x10c] ss:$16 sps:$4 sm:$0xff]  }
 0x5fc   :  { %v1219_v51 = vpop.xlane.xlu0 %1218 }
 0x5fd   :  { %v1221_v54 = vmul.f32 0.00390625, %v1219_v51  ;;  %v4830_v51 = vld [vmem:[#allocation21 + $0x124] ss:$16 sps:$4 sm:$0xff]  }
 0x5fe   :  { %v1226_v55 = vpop.xlane.xlu1 %1225 }
 0x5ff   :  { %v1227_v56 = vmul.f32 0.00390625, %v1226_v55  ;;  %v1230_v57 = vmul.f32 %v1221_v54, %v1221_v54  ;;  %v1228_v60 = vsub.f32 %v6088_v16, %v1221_v54  ;;  %v1229_v61 = vsub.f32 %v1213_v20, %v1221_v54  ;;  %v4785_v16 = vld [vmem:[#allocation21 + $0x2c] ss:$16 sps:$4 sm:$0xff]   ;;  %v4780_v20 = vld [vmem:[#allocation21 + $0x20] ss:$16 sps:$4 sm:$0xff]  }
 0x600   :  { %1979 = vmatpush1.bf16.msra.mxu0 %v4780_v20  ;;  %v4833_v54 = vld [vmem:[#allocation21 + $0x12c] ss:$16 sps:$4 sm:$0xff]   ;;  %v4828_v55 = vld [vmem:[#allocation21 + $0x120] ss:$16 sps:$4 sm:$0xff]  }
 0x601   :  { %v1231_v58 = vsub.f32 %v1227_v56, %v1230_v57  ;;  %1980 = vmatprep.subr.bf16.mxu0 %v4788_v22  ;;  %v4831_v56 = vld [vmem:[#allocation21 + $0x128] ss:$16 sps:$4 sm:$0xff]  }
 0x603   :  { %v1232_v59 = vadd.f32 1e-05, %v1231_v58 }
 0x604   :  { %1981 = vmatpush1.bf16.msra.mxu0 %v4786_v24 }
 0x605   :  { %5231 = vrsqrt.f32 %v1232_v59  ;;  %1982 = vmatprep.subr.bf16.mxu0 %v4794_v26  ;;  %v4839_v26 = vld [vmem:[#allocation21 + $0x14c] ss:$16 sps:$4 sm:$0xff]  }
 0x608   :  { %1983 = vmatpush1.bf16.msra.mxu0 %v4792_v28  ;;  %v4837_v28 = vld [vmem:[#allocation21 + $0x148] ss:$16 sps:$4 sm:$0xff]  }
 0x609   :  { %1984 = vmatprep.subr.bf16.mxu0 %v4800_v30  ;;  %v4845_v30 = vld [vmem:[#allocation21 + $0x16c] ss:$16 sps:$4 sm:$0xff]  }
 0x60c   :  { %1985 = vmatpush1.bf16.msra.mxu0 %v4798_v32  ;;  %v4843_v32 = vld [vmem:[#allocation21 + $0x168] ss:$16 sps:$4 sm:$0xff]  }
 0x60d   :  { %1986 = vmatprep.subr.bf16.mxu0 %v4806_v34  ;;  %v4846_v34 = vld [vmem:[#allocation21 + $0x180] ss:$16 sps:$4 sm:$0xff]  }
 0x60f   :  { %v5232_v62 = vpop.eup %5231 }
 0x610   :  { %v1235_v63 = vmul.f32 %v5232_v62, %v1229_v61  ;;  %v1234_v0 = vmul.f32 %v5232_v62, %v1228_v60  ;;  %1987 = vmatpush1.bf16.msra.mxu0 %v4804_v36  ;;  %v4851_v36 = vld [vmem:[#allocation21 + $0x18c] ss:$16 sps:$4 sm:$0xff]  }
 0x611   :  { %1988 = vmatprep.subr.bf16.mxu0 %v4812_v39  ;;  %v4857_v39 = vld [vmem:[#allocation21 + $0x1ac] ss:$16 sps:$4 sm:$0xff]  }
 0x612   :  { %vm1237_vm6 = vcmp.ge.f32.partialorder %v1235_v63, 0.0  ;;  %v1239_v1 = vmul.f32 0.01, %v1235_v63  ;;  %vm1236_vm7 = vcmp.ge.f32.partialorder %v1234_v0, 0.0  ;;  %v1238_v2 = vmul.f32 0.01, %v1234_v0 }
 0x614   :  { %v1241_v5 = vsel %vm1237_vm6, %v1235_v63, %v1239_v1  ;;  %v1240_v6 = vsel %vm1236_vm7, %v1234_v0, %v1238_v2  ;;  %1989 = vmatpush1.bf16.msra.mxu0 %v4810_v42  ;;  %v362_v0 = vld [vmem:[#allocation16] sm:$0x3]  ;;  %v4855_v42 = vld [vmem:[#allocation21 + $0x1a8] ss:$16 sps:$4 sm:$0xff]  }
 0x615   :  { %v1243_v7 = vpack.c.bf16 %v1241_v5, %v1241_v5  ;;  %v1242_v8 = vpack.c.bf16 %v1240_v6, %v1240_v6  ;;  %1990 = vmatprep.subr.bf16.mxu0 %v4818_v44  ;;  %v1248_v1 = vrot.slane %v362_v0, %v6081_v10  ;;  %v1252_v5 = vrot.slane %v362_v0, %v6084_v11  ;;  %v4863_v44 = vld [vmem:[#allocation21 + $0x1cc] ss:$16 sps:$4 sm:$0xff]  }
 0x617   :  { %1447 = vmatprep.mubr.bf16.mxu1 %v1243_v7 }
 0x618   :  { %1448 = vmatmul.mubr.bf16.vlgmr.msra.gmra.mrb[8].mxu1 %v1242_v8  ;;  %1991 = vmatpush1.bf16.msra.mxu0 %v4816_v3  ;;  %v4861_v3 = vld [vmem:[#allocation21 + $0x1c8] ss:$16 sps:$4 sm:$0xff]  }
 0x619   :  { %2018 = vmatpush1.bf16.msra.mxu1 %v4777_v13  ;;  %1992 = vmatprep.subr.bf16.mxu0 %v4824_v47  ;;  %v4869_v47 = vld [vmem:[#allocation21 + $0x1ec] ss:$16 sps:$4 sm:$0xff]  }
 0x61a   :  { %2019 = vmatprep.subr.bf16.mxu1 %v4785_v16 }
 0x61c   :  { %1993 = vmatpush1.bf16.msra.mxu0 %v4822_v49  ;;  %v1591_v57 = vpop.xlane.xlu0 %1590  ;;  %v4867_v49 = vld [vmem:[#allocation21 + $0x1e8] ss:$16 sps:$4 sm:$0xff]  }
 0x61d   :  { %2020 = vmatpush1.bf16.msra.mxu1 %v4783_v21  ;;  %1994 = vmatprep.subr.bf16.mxu0 %v4830_v51  ;;  %v1592_v58 = vmul.f32 0.00390625, %v1591_v57 }
 0x61e   :  { %2021 = vmatprep.subr.bf16.mxu1 %v4791_v23  ;;  %v1597_v59 = vpop.xlane.xlu1 %1596 }
 0x61f   :  { %v1598_v60 = vmul.f32 0.00390625, %v1597_v59  ;;  %v1601_v61 = vmul.f32 %v1592_v58, %v1592_v58  ;;  %v1599_v6 = vsub.f32 %v6095_v38, %v1592_v58  ;;  %v1600_v7 = vsub.f32 %v6097_v41, %v1592_v58 }
 0x620   :  { %1995 = vmatpush1.bf16.msra.mxu0 %v4828_v55 }
 0x621   :  { %2022 = vmatpush1.bf16.msra.mxu1 %v4789_v25  ;;  %v1602_v62 = vsub.f32 %v1598_v60, %v1601_v61  ;;  %v4836_v25 = vld [vmem:[#allocation21 + $0x144] ss:$16 sps:$4 sm:$0xff]  }
 0x622   :  { %2023 = vmatprep.subr.bf16.mxu1 %v4797_v27  ;;  %v4834_v27 = vld [vmem:[#allocation21 + $0x140] ss:$16 sps:$4 sm:$0xff]   ;;  %1996 = vmatprep.subr.bf16.mxu0 %v4836_v25  ;;  %v4890_v25 = vld [vmem:[%s6861_s16 + $0x64] ss:$16 sps:$4 sm:$0xff]  }
 0x623   :  { %v1603_v63 = vadd.f32 1e-05, %v1602_v62 }
 0x624   :  { %1997 = vmatpush1.bf16.msra.mxu0 %v4834_v27  ;;  %v4888_v27 = vld [vmem:[%s6861_s16 + $0x60] ss:$16 sps:$4 sm:$0xff]  }
 0x625   :  { %2024 = vmatpush1.bf16.msra.mxu1 %v4795_v29  ;;  %5233 = vrsqrt.f32 %v1603_v63  ;;  %v4842_v29 = vld [vmem:[#allocation21 + $0x164] ss:$16 sps:$4 sm:$0xff]  }
 0x626   :  { %2025 = vmatprep.subr.bf16.mxu1 %v4803_v31  ;;  %v4840_v31 = vld [vmem:[#allocation21 + $0x160] ss:$16 sps:$4 sm:$0xff]   ;;  %1998 = vmatprep.subr.bf16.mxu0 %v4842_v29  ;;  %v4896_v29 = vld [vmem:[%s6861_s16 + $0x84] ss:$16 sps:$4 sm:$0xff]  }
 0x628   :  { %1999 = vmatpush1.bf16.msra.mxu0 %v4840_v31  ;;  %v4894_v31 = vld [vmem:[%s6861_s16 + $0x80] ss:$16 sps:$4 sm:$0xff]  }
 0x629   :  { %2026 = vmatpush1.bf16.msra.mxu1 %v4801_v33  ;;  %v4848_v33 = vld [vmem:[#allocation21 + $0x184] ss:$16 sps:$4 sm:$0xff]  }
 0x62a   :  { %2027 = vmatprep.subr.bf16.mxu1 %v4809_v35  ;;  %v4849_v35 = vld [vmem:[#allocation21 + $0x188] ss:$16 sps:$4 sm:$0xff]   ;;  %2000 = vmatprep.subr.bf16.mxu0 %v4848_v33  ;;  %v4902_v33 = vld [vmem:[%s6861_s16 + $0xa4] ss:$16 sps:$4 sm:$0xff]  }
 0x62c   :  { %2001 = vmatpush1.bf16.msra.mxu0 %v4846_v34  ;;  %v4905_v34 = vld [vmem:[%s6861_s16 + $0x2a4] ss:$16 sps:$4 sm:$0xff]  }
 0x62d   :  { %2028 = vmatpush1.bf16.msra.mxu1 %v4807_v37  ;;  %v4854_v37 = vld [vmem:[#allocation21 + $0x1a4] ss:$16 sps:$4 sm:$0xff]  }
 0x62e   :  { %2029 = vmatprep.subr.bf16.mxu1 %v4815_v40  ;;  %v4852_v40 = vld [vmem:[#allocation21 + $0x1a0] ss:$16 sps:$4 sm:$0xff]   ;;  %2002 = vmatprep.subr.bf16.mxu0 %v4854_v37  ;;  %v4908_v37 = vld [vmem:[%s6861_s16 + $0xc4] ss:$16 sps:$4 sm:$0xff]  }
 0x62f   :  { %v5234_v2 = vpop.eup %5233 }
 0x630   :  { %v1605_v12 = vmul.f32 %v5234_v2, %v1599_v6  ;;  %v1606_v17 = vmul.f32 %v5234_v2, %v1600_v7  ;;  %2003 = vmatpush1.bf16.msra.mxu0 %v4852_v40  ;;  %v4906_v40 = vld [vmem:[%s6861_s16 + $0xc0] ss:$16 sps:$4 sm:$0xff]  }
 0x631   :  { %2030 = vmatpush1.bf16.msra.mxu1 %v4813_v43  ;;  %v4860_v43 = vld [vmem:[#allocation21 + $0x1c4] ss:$16 sps:$4 sm:$0xff]  }
 0x632   :  { %2031 = vmatprep.subr.bf16.mxu1 %v4821_v45  ;;  %v4858_v45 = vld [vmem:[#allocation21 + $0x1c0] ss:$16 sps:$4 sm:$0xff]   ;;  %2004 = vmatprep.subr.bf16.mxu0 %v4860_v43  ;;  %v4914_v43 = vld [vmem:[%s6861_s16 + $0xe4] ss:$16 sps:$4 sm:$0xff]  }
 0x634   :  { %2005 = vmatpush1.bf16.msra.mxu0 %v4858_v45  ;;  %v4912_v45 = vld [vmem:[%s6861_s16 + $0xe0] ss:$16 sps:$4 sm:$0xff]  }
 0x635   :  { %2032 = vmatpush1.bf16.msra.mxu1 %v4819_v46  ;;  %v4866_v46 = vld [vmem:[#allocation21 + $0x1e4] ss:$16 sps:$4 sm:$0xff]  }
 0x636   :  { %2033 = vmatprep.subr.bf16.mxu1 %v4827_v48  ;;  %v4864_v48 = vld [vmem:[#allocation21 + $0x1e0] ss:$16 sps:$4 sm:$0xff]   ;;  %2006 = vmatprep.subr.bf16.mxu0 %v4866_v46  ;;  %v4920_v46 = vld [vmem:[%s6861_s16 + $0x104] ss:$16 sps:$4 sm:$0xff]  }
 0x638   :  { %2007 = vmatpush1.bf16.msra.mxu0 %v4864_v48  ;;  %v4918_v48 = vld [vmem:[%s6861_s16 + $0x100] ss:$16 sps:$4 sm:$0xff]  }
 0x639   :  { %2034 = vmatpush1.bf16.msra.mxu1 %v4825_v50 }
 0x63a   :  { %2035 = vmatprep.subr.bf16.mxu1 %v4833_v54 }
 0x63d   :  { %2036 = vmatpush1.bf16.msra.mxu1 %v4831_v56 }
 0x63e   :  { %2037 = vmatprep.subr.bf16.mxu1 %v4839_v26  ;;  %v4893_v26 = vld [vmem:[%s6861_s16 + $0x264] ss:$16 sps:$4 sm:$0xff]  }
 0x641   :  { %2038 = vmatpush1.bf16.msra.mxu1 %v4837_v28  ;;  %v4891_v28 = vld [vmem:[%s6861_s16 + $0x260] ss:$16 sps:$4 sm:$0xff]  }
 0x642   :  { %2039 = vmatprep.subr.bf16.mxu1 %v4845_v30  ;;  %v4899_v30 = vld [vmem:[%s6861_s16 + $0x284] ss:$16 sps:$4 sm:$0xff]  }
 0x645   :  { %2040 = vmatpush1.bf16.msra.mxu1 %v4843_v32  ;;  %v4897_v32 = vld [vmem:[%s6861_s16 + $0x280] ss:$16 sps:$4 sm:$0xff]  }
 0x646   :  { %2041 = vmatprep.subr.bf16.mxu1 %v4851_v36  ;;  %v4903_v36 = vld [vmem:[%s6861_s16 + $0x2a0] ss:$16 sps:$4 sm:$0xff]  }
 0x649   :  { %2042 = vmatpush1.bf16.msra.mxu1 %v4849_v35  ;;  %v4900_v35 = vld [vmem:[%s6861_s16 + $0xa0] ss:$16 sps:$4 sm:$0xff]  }
 0x64a   :  { %2043 = vmatprep.subr.bf16.mxu1 %v4857_v39  ;;  %v4911_v39 = vld [vmem:[%s6861_s16 + $0x2c4] ss:$16 sps:$4 sm:$0xff]  }
 0x64d   :  { %2044 = vmatpush1.bf16.msra.mxu1 %v4855_v42  ;;  %v4909_v42 = vld [vmem:[%s6861_s16 + $0x2c0] ss:$16 sps:$4 sm:$0xff]  }
 0x64e   :  { %2045 = vmatprep.subr.bf16.mxu1 %v4863_v44  ;;  %v4917_v44 = vld [vmem:[%s6861_s16 + $0x2e4] ss:$16 sps:$4 sm:$0xff]  }
 0x651   :  { %2046 = vmatpush1.bf16.msra.mxu1 %v4861_v3  ;;  %v4915_v3 = vld [vmem:[%s6861_s16 + $0x2e0] ss:$16 sps:$4 sm:$0xff]  }
 0x652   :  { %2047 = vmatprep.subr.bf16.mxu1 %v4869_v47  ;;  %v4923_v47 = vld [vmem:[%s6861_s16 + $0x304] ss:$16 sps:$4 sm:$0xff]  }
 0x655   :  { %2048 = vmatpush1.bf16.msra.mxu1 %v4867_v49  ;;  %v4921_v49 = vld [vmem:[%s6861_s16 + $0x300] ss:$16 sps:$4 sm:$0xff]  }
 0x6eb   :  { %v1449_v8 = vpop.f32.mrb[8].mxu1 }
 0x6ec   :  { %v1450_v9 = vadd.f32 %v1449_v8, %v1248_v1  ;;  %v1451_v13 = vpop.f32.mrb[9].mxu1  ;;  %v4870_v8 = vld [vmem:[%s6861_s16] ss:$16 sps:$4 sm:$0xff]  }
 0x6ed   :  { %v1452_v15 = vadd.f32 %v1451_v13, %v1252_v5  ;;  %v1453_v16 = vpop.f32.mrb[10].mxu1  ;;  %v4875_v13 = vld [vmem:[%s6861_s16 + $0x204] ss:$16 sps:$4 sm:$0xff]  }
 0x6ee   :  { %v6110_v20 = vadd.f32 %v1605_v12, %v1450_v9  ;;  %v1454_v21 = vpop.f32.mrb[11].mxu1  ;;  %v4872_v9 = vld [vmem:[%s6861_s16 + $0x4] ss:$16 sps:$4 sm:$0xff]   ;;  %v4873_v12 = vld [vmem:[%s6861_s16 + $0x200] ss:$16 sps:$4 sm:$0xff]   ;;  %2805 = vmatprep.subr.bf16.mxu1 %v4875_v13 }
 0x6ef   :  { %v6112_v22 = vadd.f32 %v1606_v17, %v1452_v15  ;;  %v4878_v15 = vld [vmem:[%s6861_s16 + $0x24] ss:$16 sps:$4 sm:$0xff]   ;;  %2764 = vmatprep.subr.bf16.mxu0 %v4872_v9  ;;  %v4876_v16 = vld [vmem:[%s6861_s16 + $0x20] ss:$16 sps:$4 sm:$0xff]  }
 0x6f0   :  { %v1613_v23 = vmul.f32 %v6110_v20, %v6110_v20  ;;  %v4881_v17 = vld [vmem:[%s6861_s16 + $0x224] ss:$16 sps:$4 sm:$0xff]   ;;  %v4879_v21 = vld [vmem:[%s6861_s16 + $0x220] ss:$16 sps:$4 sm:$0xff]  }
 0x6f1   :  { %v1609_v38 = vadd.f32 %v6112_v22, %v6110_v20  ;;  %v1614_v41 = vmul.f32 %v6112_v22, %v6112_v22 }
 0x6f3   :  { %1610 = vadd.xlane.f32.xlu0 %v1609_v38  ;;  %v1615_v24 = vadd.f32 %v1614_v41, %v1613_v23  ;;  %v4884_v23 = vld [vmem:[%s6861_s16 + $0x44] ss:$16 sps:$4 sm:$0xff]   ;;  %v4882_v41 = vld [vmem:[%s6861_s16 + $0x40] ss:$16 sps:$4 sm:$0xff]  }
 0x6f4   :  { %v4887_v38 = vld [vmem:[%s6861_s16 + $0x244] ss:$16 sps:$4 sm:$0xff]  }
 0x6f5   :  { %1616 = vadd.xlane.f32.xlu1 %v1615_v24  ;;  %v4885_v24 = vld [vmem:[%s6861_s16 + $0x240] ss:$16 sps:$4 sm:$0xff]  }
 0x780   :  { %v1611_v50 = vpop.xlane.xlu0 %1610 }
 0x781   :  { %v1612_v51 = vmul.f32 0.00390625, %v1611_v50  ;;  %v4926_v50 = vld [vmem:[%s6861_s16 + $0x124] ss:$16 sps:$4 sm:$0xff]  }
 0x782   :  { %v1617_v54 = vpop.xlane.xlu1 %1616 }
 0x783   :  { %v1618_v55 = vmul.f32 0.00390625, %v1617_v54  ;;  %v1621_v56 = vmul.f32 %v1612_v51, %v1612_v51  ;;  %v1619_v59 = vsub.f32 %v6110_v20, %v1612_v51  ;;  %v1620_v60 = vsub.f32 %v6112_v22, %v1612_v51  ;;  %v4929_v51 = vld [vmem:[%s6861_s16 + $0x324] ss:$16 sps:$4 sm:$0xff]   ;;  %v4924_v54 = vld [vmem:[%s6861_s16 + $0x120] ss:$16 sps:$4 sm:$0xff]  }
 0x785   :  { %v1622_v57 = vsub.f32 %v1618_v55, %v1621_v56  ;;  %v4927_v55 = vld [vmem:[%s6861_s16 + $0x320] ss:$16 sps:$4 sm:$0xff]   ;;  %v444_v56 = vld [vmem:[#allocation22] sm:$0xf] }
 0x787   :  { %v1623_v58 = vadd.f32 1e-05, %v1622_v57  ;;  %v6243_v57 = vsub.s32 2, %v6033_v4 }
 0x789   :  { %5235 = vrsqrt.f32 %v1623_v58  ;;  %v1639_v58 = vrot.slane %v444_v56, %v6081_v10 }
 0x793   :  { %v5236_v61 = vpop.eup %5235 }
 0x794   :  { %v1626_v62 = vmul.f32 %v5236_v61, %v1620_v60  ;;  %v1625_v63 = vmul.f32 %v5236_v61, %v1619_v59  ;;  %v6247_v59 = vsub.s32 3, %v6033_v4  ;;  %v1647_v60 = vrot.slane %v444_v56, %v6243_v57 }
 0x795   :  { %v1643_v61 = vrot.slane %v444_v56, %v6084_v11 }
 0x796   :  { %vm1628_vm8 = vcmp.ge.f32.partialorder %v1626_v62, 0.0  ;;  %v1630_v0 = vmul.f32 0.01, %v1626_v62  ;;  %vm1627_vm9 = vcmp.ge.f32.partialorder %v1625_v63, 0.0  ;;  %v1629_v1 = vmul.f32 0.01, %v1625_v63 }
 0x798   :  { %v1632_v2 = vsel %vm1628_vm8, %v1626_v62, %v1630_v0  ;;  %v1631_v5 = vsel %vm1627_vm9, %v1625_v63, %v1629_v1  ;;  %v1651_v0 = vrot.slane %v444_v56, %v6247_v59 }
 0x799   :  { %v1634_v6 = vpack.c.bf16 %v1632_v2, %v1632_v2  ;;  %v1633_v7 = vpack.c.bf16 %v1631_v5, %v1631_v5 }
 0x79b   :  { %2008 = vmatprep.mubr.bf16.mxu0 %v1634_v6  ;;  %2049 = vmatprep.mubr.bf16.mxu1 %v1634_v6 }
 0x79c   :  { %2009 = vmatmul.mubr.bf16.vlgmr.msra.gmra.mrb[16].mxu0 %v1633_v7  ;;  %2050 = vmatmul.mubr.bf16.vlgmr.msra.gmra.mrb[12].mxu1 %v1633_v7 }
 0x79d   :  { %2765 = vmatpush1.bf16.msra.mxu0 %v4870_v8  ;;  %2806 = vmatpush1.bf16.msra.mxu1 %v4873_v12 }
 0x79e   :  { %2766 = vmatprep.subr.bf16.mxu0 %v4878_v15  ;;  %2807 = vmatprep.subr.bf16.mxu1 %v4881_v17 }
 0x7a1   :  { %2767 = vmatpush1.bf16.msra.mxu0 %v4876_v16  ;;  %2808 = vmatpush1.bf16.msra.mxu1 %v4879_v21 }
 0x7a2   :  { %2768 = vmatprep.subr.bf16.mxu0 %v4884_v23  ;;  %2809 = vmatprep.subr.bf16.mxu1 %v4887_v38 }
 0x7a5   :  { %2769 = vmatpush1.bf16.msra.mxu0 %v4882_v41  ;;  %2810 = vmatpush1.bf16.msra.mxu1 %v4885_v24 }
 0x7a6   :  { %2770 = vmatprep.subr.bf16.mxu0 %v4890_v25  ;;  %2811 = vmatprep.subr.bf16.mxu1 %v4893_v26 }
 0x7a9   :  { %2771 = vmatpush1.bf16.msra.mxu0 %v4888_v27  ;;  %2812 = vmatpush1.bf16.msra.mxu1 %v4891_v28  ;;  %v4932_v27 = vld [vmem:[%s6861_s16 + $0x144] ss:$16 sps:$4 sm:$0xff]  }
 0x7aa   :  { %2772 = vmatprep.subr.bf16.mxu0 %v4896_v29  ;;  %2813 = vmatprep.subr.bf16.mxu1 %v4899_v30  ;;  %v4935_v28 = vld [vmem:[%s6861_s16 + $0x344] ss:$16 sps:$4 sm:$0xff]   ;;  %v4930_v29 = vld [vmem:[%s6861_s16 + $0x140] ss:$16 sps:$4 sm:$0xff]  }
 0x7ab   :  { %v4933_v30 = vld [vmem:[%s6861_s16 + $0x340] ss:$16 sps:$4 sm:$0xff]  }
 0x7ad   :  { %2773 = vmatpush1.bf16.msra.mxu0 %v4894_v31  ;;  %2814 = vmatpush1.bf16.msra.mxu1 %v4897_v32  ;;  %v4938_v31 = vld [vmem:[%s6861_s16 + $0x164] ss:$16 sps:$4 sm:$0xff]  }
 0x7ae   :  { %2774 = vmatprep.subr.bf16.mxu0 %v4902_v33  ;;  %2815 = vmatprep.subr.bf16.mxu1 %v4905_v34  ;;  %v4941_v32 = vld [vmem:[%s6861_s16 + $0x364] ss:$16 sps:$4 sm:$0xff]   ;;  %v4936_v33 = vld [vmem:[%s6861_s16 + $0x160] ss:$16 sps:$4 sm:$0xff]  }
 0x7af   :  { %v4939_v34 = vld [vmem:[%s6861_s16 + $0x360] ss:$16 sps:$4 sm:$0xff]  }
 0x7b1   :  { %2775 = vmatpush1.bf16.msra.mxu0 %v4900_v35  ;;  %2816 = vmatpush1.bf16.msra.mxu1 %v4903_v36  ;;  %v4942_v35 = vld [vmem:[%s6861_s16 + $0x180] ss:$16 sps:$4 sm:$0xff]   ;;  %v4944_v36 = vld [vmem:[%s6861_s16 + $0x184] ss:$16 sps:$4 sm:$0xff]  }
 0x7b2   :  { %2776 = vmatprep.subr.bf16.mxu0 %v4908_v37  ;;  %2817 = vmatprep.subr.bf16.mxu1 %v4911_v39  ;;  %v4945_v37 = vld [vmem:[%s6861_s16 + $0x380] ss:$16 sps:$4 sm:$0xff]   ;;  %v4947_v39 = vld [vmem:[%s6861_s16 + $0x384] ss:$16 sps:$4 sm:$0xff]  }
 0x7b5   :  { %2777 = vmatpush1.bf16.msra.mxu0 %v4906_v40  ;;  %2818 = vmatpush1.bf16.msra.mxu1 %v4909_v42  ;;  %v4950_v40 = vld [vmem:[%s6861_s16 + $0x1a4] ss:$16 sps:$4 sm:$0xff]  }
 0x7b6   :  { %2778 = vmatprep.subr.bf16.mxu0 %v4914_v43  ;;  %2819 = vmatprep.subr.bf16.mxu1 %v4917_v44  ;;  %v4953_v42 = vld [vmem:[%s6861_s16 + $0x3a4] ss:$16 sps:$4 sm:$0xff]   ;;  %v4948_v43 = vld [vmem:[%s6861_s16 + $0x1a0] ss:$16 sps:$4 sm:$0xff]  }
 0x7b7   :  { %v4951_v44 = vld [vmem:[%s6861_s16 + $0x3a0] ss:$16 sps:$4 sm:$0xff]  }
 0x7b9   :  { %2779 = vmatpush1.bf16.msra.mxu0 %v4912_v45  ;;  %2820 = vmatpush1.bf16.msra.mxu1 %v4915_v3  ;;  %v4956_v45 = vld [vmem:[%s6861_s16 + $0x1c4] ss:$16 sps:$4 sm:$0xff]  }
 0x7ba   :  { %2780 = vmatprep.subr.bf16.mxu0 %v4920_v46  ;;  %2821 = vmatprep.subr.bf16.mxu1 %v4923_v47  ;;  %v4959_v3 = vld [vmem:[%s6861_s16 + $0x3c4] ss:$16 sps:$4 sm:$0xff]   ;;  %v4954_v46 = vld [vmem:[%s6861_s16 + $0x1c0] ss:$16 sps:$4 sm:$0xff]  }
 0x7bb   :  { %v4957_v47 = vld [vmem:[%s6861_s16 + $0x3c0] ss:$16 sps:$4 sm:$0xff]  }
 0x7bd   :  { %2781 = vmatpush1.bf16.msra.mxu0 %v4918_v48  ;;  %2822 = vmatpush1.bf16.msra.mxu1 %v4921_v49  ;;  %v4962_v48 = vld [vmem:[%s6861_s16 + $0x1e4] ss:$16 sps:$4 sm:$0xff]  }
 0x7be   :  { %2782 = vmatprep.subr.bf16.mxu0 %v4926_v50  ;;  %2823 = vmatprep.subr.bf16.mxu1 %v4929_v51  ;;  %v4965_v49 = vld [vmem:[%s6861_s16 + $0x3e4] ss:$16 sps:$4 sm:$0xff]   ;;  %v4960_v50 = vld [vmem:[%s6861_s16 + $0x1e0] ss:$16 sps:$4 sm:$0xff]  }
 0x7bf   :  { %v4963_v51 = vld [vmem:[%s6861_s16 + $0x3e0] ss:$16 sps:$4 sm:$0xff]  }
 0x7c1   :  { %2783 = vmatpush1.bf16.msra.mxu0 %v4924_v54  ;;  %2824 = vmatpush1.bf16.msra.mxu1 %v4927_v55  ;;  %v4968_v54 = vld [vmem:[%s6861_s16 + $0xc] ss:$16 sps:$4 sm:$0xff]  }
 0x7c2   :  { %2784 = vmatprep.subr.bf16.mxu0 %v4932_v27  ;;  %2825 = vmatprep.subr.bf16.mxu1 %v4935_v28  ;;  %v4971_v55 = vld [vmem:[%s6861_s16 + $0x20c] ss:$16 sps:$4 sm:$0xff]  }
 0x7c5   :  { %2785 = vmatpush1.bf16.msra.mxu0 %v4930_v29  ;;  %2826 = vmatpush1.bf16.msra.mxu1 %v4933_v30  ;;  %v4974_v30 = vld [vmem:[%s6861_s16 + $0x2c] ss:$16 sps:$4 sm:$0xff]  }
 0x7c6   :  { %2786 = vmatprep.subr.bf16.mxu0 %v4938_v31  ;;  %2827 = vmatprep.subr.bf16.mxu1 %v4941_v32  ;;  %v4977_v31 = vld [vmem:[%s6861_s16 + $0x22c] ss:$16 sps:$4 sm:$0xff]   ;;  %v4972_v32 = vld [vmem:[%s6861_s16 + $0x28] ss:$16 sps:$4 sm:$0xff]  }
 0x7c9   :  { %2787 = vmatpush1.bf16.msra.mxu0 %v4936_v33  ;;  %2828 = vmatpush1.bf16.msra.mxu1 %v4939_v34  ;;  %v4975_v33 = vld [vmem:[%s6861_s16 + $0x228] ss:$16 sps:$4 sm:$0xff]   ;;  %v4980_v34 = vld [vmem:[%s6861_s16 + $0x4c] ss:$16 sps:$4 sm:$0xff]  }
 0x7ca   :  { %2788 = vmatprep.subr.bf16.mxu0 %v4944_v36  ;;  %2829 = vmatprep.subr.bf16.mxu1 %v4947_v39  ;;  %v4978_v36 = vld [vmem:[%s6861_s16 + $0x48] ss:$16 sps:$4 sm:$0xff]   ;;  %v4986_v39 = vld [vmem:[%s6861_s16 + $0x6c] ss:$16 sps:$4 sm:$0xff]  }
 0x7cd   :  { %2789 = vmatpush1.bf16.msra.mxu0 %v4942_v35  ;;  %2830 = vmatpush1.bf16.msra.mxu1 %v4945_v37  ;;  %v4983_v35 = vld [vmem:[%s6861_s16 + $0x24c] ss:$16 sps:$4 sm:$0xff]   ;;  %v4981_v37 = vld [vmem:[%s6861_s16 + $0x248] ss:$16 sps:$4 sm:$0xff]  }
 0x7ce   :  { %2790 = vmatprep.subr.bf16.mxu0 %v4950_v40  ;;  %2831 = vmatprep.subr.bf16.mxu1 %v4953_v42  ;;  %v4989_v40 = vld [vmem:[%s6861_s16 + $0x26c] ss:$16 sps:$4 sm:$0xff]   ;;  %v4984_v42 = vld [vmem:[%s6861_s16 + $0x68] ss:$16 sps:$4 sm:$0xff]  }
 0x7d1   :  { %2791 = vmatpush1.bf16.msra.mxu0 %v4948_v43  ;;  %2832 = vmatpush1.bf16.msra.mxu1 %v4951_v44  ;;  %v4987_v43 = vld [vmem:[%s6861_s16 + $0x268] ss:$16 sps:$4 sm:$0xff]   ;;  %v4992_v44 = vld [vmem:[%s6861_s16 + $0x8c] ss:$16 sps:$4 sm:$0xff]  }
 0x7d2   :  { %2792 = vmatprep.subr.bf16.mxu0 %v4956_v45  ;;  %2833 = vmatprep.subr.bf16.mxu1 %v4959_v3  ;;  %v4995_v45 = vld [vmem:[%s6861_s16 + $0x28c] ss:$16 sps:$4 sm:$0xff]   ;;  %v4990_v3 = vld [vmem:[%s6861_s16 + $0x88] ss:$16 sps:$4 sm:$0xff]  }
 0x7d5   :  { %2793 = vmatpush1.bf16.msra.mxu0 %v4954_v46  ;;  %2834 = vmatpush1.bf16.msra.mxu1 %v4957_v47  ;;  %v4993_v46 = vld [vmem:[%s6861_s16 + $0x288] ss:$16 sps:$4 sm:$0xff]   ;;  %v4998_v47 = vld [vmem:[%s6861_s16 + $0xac] ss:$16 sps:$4 sm:$0xff]  }
 0x7d6   :  { %2794 = vmatprep.subr.bf16.mxu0 %v4962_v48  ;;  %2835 = vmatprep.subr.bf16.mxu1 %v4965_v49  ;;  %v5001_v48 = vld [vmem:[%s6861_s16 + $0x2ac] ss:$16 sps:$4 sm:$0xff]   ;;  %v4996_v49 = vld [vmem:[%s6861_s16 + $0xa8] ss:$16 sps:$4 sm:$0xff]  }
 0x7d9   :  { %2795 = vmatpush1.bf16.msra.mxu0 %v4960_v50  ;;  %2836 = vmatpush1.bf16.msra.mxu1 %v4963_v51  ;;  %v4999_v50 = vld [vmem:[%s6861_s16 + $0x2a8] ss:$16 sps:$4 sm:$0xff]   ;;  %v5004_v51 = vld [vmem:[%s6861_s16 + $0xcc] ss:$16 sps:$4 sm:$0xff]  }
 0x7da   :  { %2846 = vmatprep.subr.bf16.mxu0 %v4968_v54  ;;  %2887 = vmatprep.subr.bf16.mxu1 %v4971_v55  ;;  %v5007_v54 = vld [vmem:[%s6861_s16 + $0x2cc] ss:$16 sps:$4 sm:$0xff]   ;;  %v5002_v55 = vld [vmem:[%s6861_s16 + $0xc8] ss:$16 sps:$4 sm:$0xff]  }
 0x86f   :  { %v2010_v62 = vpop.f32.mrb[16].mxu0  ;;  %v2051_v63 = vpop.f32.mrb[12].mxu1 }
 0x870   :  { %v6252_v1 = vadd.f32 %v2010_v62, %v1639_v58  ;;  %v2012_v2 = vpop.f32.mrb[17].mxu0  ;;  %v2053_v5 = vpop.f32.mrb[13].mxu1  ;;  %v6254_v6 = vadd.f32 %v2051_v63, %v1647_v60 }
 0x871   :  { %v6256_v7 = vadd.f32 %v2012_v2, %v1643_v61  ;;  %v2014_v8 = vpop.f32.mrb[18].mxu0  ;;  %v2055_v9 = vpop.f32.mrb[14].mxu1  ;;  %v6264_v16 = vadd.f32 %v2053_v5, %v1651_v0 }
 0x872   :  { %v2065_v4 = vmul.f32 %v6252_v1, %v6252_v1  ;;  %v2015_v12 = vpop.f32.mrb[19].mxu0  ;;  %v2056_v13 = vpop.f32.mrb[15].mxu1  ;;  %v2067_v21 = vmul.f32 %v6254_v6, %v6254_v6 }
 0x873   :  { %v2058_v15 = vadd.f32 %v6256_v7, %v6252_v1  ;;  %v2066_v17 = vmul.f32 %v6256_v7, %v6256_v7  ;;  %v2068_v24 = vmul.f32 %v6264_v16, %v6264_v16 }
 0x875   :  { %v2059_v23 = vadd.f32 %v2058_v15, %v6254_v6  ;;  %v2069_v38 = vadd.f32 %v2066_v17, %v2065_v4 }
 0x877   :  { %v2060_v41 = vadd.f32 %v2059_v23, %v6264_v16  ;;  %v2070_v25 = vadd.f32 %v2069_v38, %v2067_v21 }
 0x879   :  { %2061 = vadd.xlane.f32.xlu0 %v2060_v41  ;;  %v2071_v26 = vadd.f32 %v2070_v25, %v2068_v24 }
 0x87b   :  { %2072 = vadd.xlane.f32.xlu1 %v2071_v26 }
 0x906   :  { %v2062_v56 = vpop.xlane.xlu0 %2061 }
 0x907   :  { %v2064_v58 = vmul.f32 0.001953125, %v2062_v56  ;;  %v5005_v56 = vld [vmem:[%s6861_s16 + $0x2c8] ss:$16 sps:$4 sm:$0xff]  }
 0x908   :  { %v2073_v60 = vpop.xlane.xlu1 %2072 }
 0x909   :  { %v2074_v61 = vmul.f32 0.001953125, %v2073_v60  ;;  %v2079_v62 = vmul.f32 %v2064_v58, %v2064_v58  ;;  %v2075_v2 = vsub.f32 %v6252_v1, %v2064_v58  ;;  %v2077_v5 = vsub.f32 %v6254_v6, %v2064_v58  ;;  %v5013_v60 = vld [vmem:[%s6861_s16 + $0x2ec] ss:$16 sps:$4 sm:$0xff]  }
 0x90a   :  { %v2076_v8 = vsub.f32 %v6256_v7, %v2064_v58  ;;  %v2078_v9 = vsub.f32 %v6264_v16, %v2064_v58  ;;  %v4966_v7 = vld [vmem:[%s6861_s16 + $0x8] ss:$16 sps:$4 sm:$0xff]   ;;  %v5010_v58 = vld [vmem:[%s6861_s16 + $0xec] ss:$16 sps:$4 sm:$0xff]  }
 0x90b   :  { %v2080_v63 = vsub.f32 %v2074_v61, %v2079_v62  ;;  %v4969_v16 = vld [vmem:[%s6861_s16 + $0x208] ss:$16 sps:$4 sm:$0xff]  }
 0x90c   :  { %v5008_v61 = vld [vmem:[%s6861_s16 + $0xe8] ss:$16 sps:$4 sm:$0xff]  }
 0x90d   :  { %v2081_v0 = vadd.f32 1e-05, %v2080_v63  ;;  %v5011_v62 = vld [vmem:[%s6861_s16 + $0x2e8] ss:$16 sps:$4 sm:$0xff]   ;;  %v5016_v63 = vld [vmem:[%s6861_s16 + $0x10c] ss:$16 sps:$4 sm:$0xff]  }
 0x90f   :  { %5237 = vrsqrt.f32 %v2081_v0  ;;  %v5019_v0 = vld [vmem:[%s6861_s16 + $0x30c] ss:$16 sps:$4 sm:$0xff]  }
 0x919   :  { %v5238_v4 = vpop.eup %5237 }
 0x91a   :  { %v2084_v12 = vmul.f32 %v5238_v4, %v2076_v8  ;;  %v2086_v13 = vmul.f32 %v5238_v4, %v2078_v9  ;;  %v2083_v15 = vmul.f32 %v5238_v4, %v2075_v2  ;;  %v2085_v17 = vmul.f32 %v5238_v4, %v2077_v5  ;;  %v5014_v2 = vld [vmem:[%s6861_s16 + $0x108] ss:$16 sps:$4 sm:$0xff]   ;;  %v5022_v8 = vld [vmem:[%s6861_s16 + $0x12c] ss:$16 sps:$4 sm:$0xff]  }
 0x91b   :  { %v5017_v5 = vld [vmem:[%s6861_s16 + $0x308] ss:$16 sps:$4 sm:$0xff]   ;;  %v5025_v9 = vld [vmem:[%s6861_s16 + $0x32c] ss:$16 sps:$4 sm:$0xff]  }
 0x91c   :  { %vm2088_vm10 = vcmp.ge.f32.partialorder %v2084_v12, 0.0  ;;  %v2092_v21 = vmul.f32 0.01, %v2084_v12  ;;  %vm2090_vm11 = vcmp.ge.f32.partialorder %v2086_v13, 0.0  ;;  %v2094_v23 = vmul.f32 0.01, %v2086_v13 }
 0x91d   :  { %vm2087_vm12 = vcmp.ge.f32.partialorder %v2083_v15, 0.0  ;;  %v2091_v38 = vmul.f32 0.01, %v2083_v15  ;;  %vm2089_vm13 = vcmp.ge.f32.partialorder %v2085_v17, 0.0  ;;  %v2093_v41 = vmul.f32 0.01, %v2085_v17 }
 0x91e   :  { %v2096_v1 = vsel %vm2088_vm10, %v2084_v12, %v2092_v21  ;;  %v2098_v24 = vsel %vm2090_vm11, %v2086_v13, %v2094_v23  ;;  %v5020_v4 = vld [vmem:[%s6861_s16 + $0x128] ss:$16 sps:$4 sm:$0xff]   ;;  %v5028_v13 = vld [vmem:[%s6861_s16 + $0x14c] ss:$16 sps:$4 sm:$0xff]  }
 0x91f   :  { %v2100_v6 = vpack.c.bf16 %v2096_v1, %v2096_v1  ;;  %v2102_v25 = vpack.c.bf16 %v2098_v24, %v2098_v24  ;;  %v2095_v26 = vsel %vm2087_vm12, %v2083_v15, %v2091_v38  ;;  %v2097_v27 = vsel %vm2089_vm13, %v2085_v17, %v2093_v41  ;;  %v5023_v12 = vld [vmem:[%s6861_s16 + $0x328] ss:$16 sps:$4 sm:$0xff]   ;;  %v5031_v15 = vld [vmem:[%s6861_s16 + $0x34c] ss:$16 sps:$4 sm:$0xff]  }
 0x920   :  { %v6360_v28 = vpack.c.bf16 %v2095_v26, %v2095_v26  ;;  %v6362_v29 = vpack.c.bf16 %v2097_v27, %v2097_v27  ;;  %v5026_v17 = vld [vmem:[%s6861_s16 + $0x148] ss:$16 sps:$4 sm:$0xff]   ;;  %v5034_v23 = vld [vmem:[%s6861_s16 + $0x16c] ss:$16 sps:$4 sm:$0xff]  }
 0x921   :  { %2796 = vmatprep.mubr.bf16.mxu0 %v2100_v6  ;;  %2837 = vmatprep.mubr.bf16.mxu1 %v2102_v25  ;;  %v5029_v21 = vld [vmem:[%s6861_s16 + $0x348] ss:$16 sps:$4 sm:$0xff]   ;;  %v5037_v38 = vld [vmem:[%s6861_s16 + $0x36c] ss:$16 sps:$4 sm:$0xff]  }
 0x922   :  { %2797 = vmatmul.mubr.bf16.vlgmr.msra.gmra.mrb[20].mxu0 %v6360_v28  ;;  %2838 = vmatmul.mubr.bf16.vlgmr.msra.gmra.mrb[16].mxu1 %v6362_v29  ;;  %v5032_v41 = vld [vmem:[%s6861_s16 + $0x168] ss:$16 sps:$4 sm:$0xff]   ;;  %v5040_v24 = vld [vmem:[%s6861_s16 + $0x18c] ss:$16 sps:$4 sm:$0xff]  }
 0x923   :  { %2847 = vmatpush1.bf16.msra.mxu0 %v4966_v7  ;;  %2888 = vmatpush1.bf16.msra.mxu1 %v4969_v16  ;;  %v5035_v1 = vld [vmem:[%s6861_s16 + $0x368] ss:$16 sps:$4 sm:$0xff]   ;;  %v5046_v16 = vld [vmem:[%s6861_s16 + $0x1ac] ss:$16 sps:$4 sm:$0xff]  }
 0x924   :  { %2878 = vmatprep.mubr.bf16.mxu0 %v2100_v6  ;;  %2919 = vmatprep.mubr.bf16.mxu1 %v2102_v25  ;;  %v5043_v6 = vld [vmem:[%s6861_s16 + $0x38c] ss:$16 sps:$4 sm:$0xff]   ;;  %v5038_v25 = vld [vmem:[%s6861_s16 + $0x188] ss:$16 sps:$4 sm:$0xff]  }
 0x925   :  { %2848 = vmatprep.subr.bf16.mxu0 %v4974_v30  ;;  %2889 = vmatprep.subr.bf16.mxu1 %v4977_v31  ;;  %v5041_v7 = vld [vmem:[%s6861_s16 + $0x388] ss:$16 sps:$4 sm:$0xff]   ;;  %v5049_v26 = vld [vmem:[%s6861_s16 + $0x3ac] ss:$16 sps:$4 sm:$0xff]  }
 0x926   :  { %v5044_v27 = vld [vmem:[%s6861_s16 + $0x1a8] ss:$16 sps:$4 sm:$0xff]   ;;  %v5052_v31 = vld [vmem:[%s6861_s16 + $0x1cc] ss:$16 sps:$4 sm:$0xff]  }
 0x927   :  { %2849 = vmatpush1.bf16.msra.mxu0 %v4972_v32  ;;  %2890 = vmatpush1.bf16.msra.mxu1 %v4975_v33  ;;  %v5047_v30 = vld [vmem:[%s6861_s16 + $0x3a8] ss:$16 sps:$4 sm:$0xff]   ;;  %v5055_v32 = vld [vmem:[%s6861_s16 + $0x3cc] ss:$16 sps:$4 sm:$0xff]  }
 0x928   :  { %2850 = vmatprep.subr.bf16.mxu0 %v4980_v34  ;;  %2891 = vmatprep.subr.bf16.mxu1 %v4983_v35  ;;  %v5050_v33 = vld [vmem:[%s6861_s16 + $0x1c8] ss:$16 sps:$4 sm:$0xff]   ;;  %v5058_v35 = vld [vmem:[%s6861_s16 + $0x1ec] ss:$16 sps:$4 sm:$0xff]  }
 0x929   :  { %v5053_v34 = vld [vmem:[%s6861_s16 + $0x3c8] ss:$16 sps:$4 sm:$0xff]  }
 0x92b   :  { %2851 = vmatpush1.bf16.msra.mxu0 %v4978_v36  ;;  %2892 = vmatpush1.bf16.msra.mxu1 %v4981_v37  ;;  %v5061_v36 = vld [vmem:[%s6861_s16 + $0x3ec] ss:$16 sps:$4 sm:$0xff]   ;;  %v5056_v37 = vld [vmem:[%s6861_s16 + $0x1e8] ss:$16 sps:$4 sm:$0xff]  }
 0x92c   :  { %2852 = vmatprep.subr.bf16.mxu0 %v4986_v39  ;;  %2893 = vmatprep.subr.bf16.mxu1 %v4989_v40  ;;  %v5059_v39 = vld [vmem:[%s6861_s16 + $0x3e8] ss:$16 sps:$4 sm:$0xff]   ;;  %v5064_v40 = vld [vmem:[#allocation25 + $0x4] ss:$16 sps:$4 sm:$0xff]  }
 0x92f   :  { %2853 = vmatpush1.bf16.msra.mxu0 %v4984_v42  ;;  %2894 = vmatpush1.bf16.msra.mxu1 %v4987_v43  ;;  %v5067_v42 = vld [vmem:[#allocation25 + $0xc] ss:$16 sps:$4 sm:$0xff]   ;;  %v5062_v43 = vld [vmem:[#allocation25] ss:$16 sps:$4 sm:$0xff]  }
 0x930   :  { %2854 = vmatprep.subr.bf16.mxu0 %v4992_v44  ;;  %2895 = vmatprep.subr.bf16.mxu1 %v4995_v45  ;;  %v5065_v44 = vld [vmem:[#allocation25 + $0x8] ss:$16 sps:$4 sm:$0xff]   ;;  %v2929_v45 = vpack.c.bf16 %v6112_v22, %v6112_v22 }
 0x931   :  { %v5077_v22 = vld [vmem:[#allocation25 + $0x48] ss:$16 sps:$4 sm:$0xff]  }
 0x933   :  { %2855 = vmatpush1.bf16.msra.mxu0 %v4990_v3  ;;  %2896 = vmatpush1.bf16.msra.mxu1 %v4993_v46  ;;  %v5070_v3 = vld [vmem:[#allocation25 + $0x24] ss:$16 sps:$4 sm:$0xff]   ;;  %v5073_v46 = vld [vmem:[#allocation25 + $0x2c] ss:$16 sps:$4 sm:$0xff]  }
 0x934   :  { %2856 = vmatprep.subr.bf16.mxu0 %v4998_v47  ;;  %2897 = vmatprep.subr.bf16.mxu1 %v5001_v48  ;;  %v5068_v47 = vld [vmem:[#allocation25 + $0x20] ss:$16 sps:$4 sm:$0xff]   ;;  %v5071_v48 = vld [vmem:[#allocation25 + $0x28] ss:$16 sps:$4 sm:$0xff]  }
 0x937   :  { %2857 = vmatpush1.bf16.msra.mxu0 %v4996_v49  ;;  %2898 = vmatpush1.bf16.msra.mxu1 %v4999_v50  ;;  %v5076_v49 = vld [vmem:[#allocation25 + $0x44] ss:$16 sps:$4 sm:$0xff]   ;;  %v5079_v50 = vld [vmem:[#allocation25 + $0x4c] ss:$16 sps:$4 sm:$0xff]  }
 0x938   :  { %2858 = vmatprep.subr.bf16.mxu0 %v5004_v51  ;;  %2899 = vmatprep.subr.bf16.mxu1 %v5007_v54  ;;  %v5074_v51 = vld [vmem:[#allocation25 + $0x40] ss:$16 sps:$4 sm:$0xff]   ;;  %v5082_v54 = vld [vmem:[#allocation25 + $0x64] ss:$16 sps:$4 sm:$0xff]  }
 0x93b   :  { %2859 = vmatpush1.bf16.msra.mxu0 %v5002_v55  ;;  %2900 = vmatpush1.bf16.msra.mxu1 %v5005_v56  ;;  %v5083_v55 = vld [vmem:[#allocation25 + $0x68] ss:$16 sps:$4 sm:$0xff]   ;;  %v5088_v56 = vld [vmem:[#allocation25 + $0x84] ss:$16 sps:$4 sm:$0xff]  }
 0x93c   :  { %2860 = vmatprep.subr.bf16.mxu0 %v5010_v58  ;;  %2901 = vmatprep.subr.bf16.mxu1 %v5013_v60  ;;  %v5091_v58 = vld [vmem:[#allocation25 + $0x8c] ss:$16 sps:$4 sm:$0xff]   ;;  %v5086_v60 = vld [vmem:[#allocation25 + $0x80] ss:$16 sps:$4 sm:$0xff]  }
 0x93f   :  { %2861 = vmatpush1.bf16.msra.mxu0 %v5008_v61  ;;  %2902 = vmatpush1.bf16.msra.mxu1 %v5011_v62  ;;  %v5089_v61 = vld [vmem:[#allocation25 + $0x88] ss:$16 sps:$4 sm:$0xff]   ;;  %v5094_v62 = vld [vmem:[#allocation25 + $0xa4] ss:$16 sps:$4 sm:$0xff]  }
 0x940   :  { %2862 = vmatprep.subr.bf16.mxu0 %v5016_v63  ;;  %2903 = vmatprep.subr.bf16.mxu1 %v5019_v0  ;;  %v5097_v63 = vld [vmem:[#allocation25 + $0xac] ss:$16 sps:$4 sm:$0xff]   ;;  %v5092_v0 = vld [vmem:[#allocation25 + $0xa0] ss:$16 sps:$4 sm:$0xff]  }
 0x943   :  { %2863 = vmatpush1.bf16.msra.mxu0 %v5014_v2  ;;  %2904 = vmatpush1.bf16.msra.mxu1 %v5017_v5  ;;  %v5095_v2 = vld [vmem:[#allocation25 + $0xa8] ss:$16 sps:$4 sm:$0xff]   ;;  %v5100_v5 = vld [vmem:[#allocation25 + $0xc4] ss:$16 sps:$4 sm:$0xff]  }
 0x944   :  { %2864 = vmatprep.subr.bf16.mxu0 %v5022_v8  ;;  %2905 = vmatprep.subr.bf16.mxu1 %v5025_v9  ;;  %v5103_v8 = vld [vmem:[#allocation25 + $0xcc] ss:$16 sps:$4 sm:$0xff]   ;;  %v5098_v9 = vld [vmem:[#allocation25 + $0xc0] ss:$16 sps:$4 sm:$0xff]  }
 0x947   :  { %2865 = vmatpush1.bf16.msra.mxu0 %v5020_v4  ;;  %2906 = vmatpush1.bf16.msra.mxu1 %v5023_v12  ;;  %v5101_v4 = vld [vmem:[#allocation25 + $0xc8] ss:$16 sps:$4 sm:$0xff]   ;;  %v5106_v12 = vld [vmem:[#allocation25 + $0xe4] ss:$16 sps:$4 sm:$0xff]  }
 0x948   :  { %2866 = vmatprep.subr.bf16.mxu0 %v5028_v13  ;;  %2907 = vmatprep.subr.bf16.mxu1 %v5031_v15  ;;  %v5109_v13 = vld [vmem:[#allocation25 + $0xec] ss:$16 sps:$4 sm:$0xff]   ;;  %v5104_v15 = vld [vmem:[#allocation25 + $0xe0] ss:$16 sps:$4 sm:$0xff]  }
 0x94b   :  { %2867 = vmatpush1.bf16.msra.mxu0 %v5026_v17  ;;  %2908 = vmatpush1.bf16.msra.mxu1 %v5029_v21  ;;  %v5107_v17 = vld [vmem:[#allocation25 + $0xe8] ss:$16 sps:$4 sm:$0xff]   ;;  %v5112_v21 = vld [vmem:[#allocation25 + $0x104] ss:$16 sps:$4 sm:$0xff]  }
 0x94c   :  { %2868 = vmatprep.subr.bf16.mxu0 %v5034_v23  ;;  %2909 = vmatprep.subr.bf16.mxu1 %v5037_v38  ;;  %v5115_v23 = vld [vmem:[#allocation25 + $0x10c] ss:$16 sps:$4 sm:$0xff]   ;;  %v5110_v38 = vld [vmem:[#allocation25 + $0x100] ss:$16 sps:$4 sm:$0xff]  }
 0x94f   :  { %2869 = vmatpush1.bf16.msra.mxu0 %v5032_v41  ;;  %2910 = vmatpush1.bf16.msra.mxu1 %v5035_v1  ;;  %v5113_v41 = vld [vmem:[#allocation25 + $0x108] ss:$16 sps:$4 sm:$0xff]   ;;  %v5118_v1 = vld [vmem:[#allocation25 + $0x124] ss:$16 sps:$4 sm:$0xff]  }
 0x950   :  { %2870 = vmatprep.subr.bf16.mxu0 %v5040_v24  ;;  %2911 = vmatprep.subr.bf16.mxu1 %v5043_v6  ;;  %v5121_v24 = vld [vmem:[#allocation25 + $0x12c] ss:$16 sps:$4 sm:$0xff]   ;;  %v5116_v6 = vld [vmem:[#allocation25 + $0x120] ss:$16 sps:$4 sm:$0xff]  }
 0x953   :  { %2871 = vmatpush1.bf16.msra.mxu0 %v5038_v25  ;;  %2912 = vmatpush1.bf16.msra.mxu1 %v5041_v7  ;;  %v5119_v25 = vld [vmem:[#allocation25 + $0x128] ss:$16 sps:$4 sm:$0xff]   ;;  %v5124_v7 = vld [vmem:[#allocation25 + $0x144] ss:$16 sps:$4 sm:$0xff]  }
 0x954   :  { %2872 = vmatprep.subr.bf16.mxu0 %v5046_v16  ;;  %2913 = vmatprep.subr.bf16.mxu1 %v5049_v26  ;;  %v5127_v16 = vld [vmem:[#allocation25 + $0x14c] ss:$16 sps:$4 sm:$0xff]   ;;  %v5122_v26 = vld [vmem:[#allocation25 + $0x140] ss:$16 sps:$4 sm:$0xff]  }
 0x957   :  { %2873 = vmatpush1.bf16.msra.mxu0 %v5044_v27  ;;  %2914 = vmatpush1.bf16.msra.mxu1 %v5047_v30  ;;  %v5125_v27 = vld [vmem:[#allocation25 + $0x148] ss:$16 sps:$4 sm:$0xff]   ;;  %v5130_v30 = vld [vmem:[#allocation25 + $0x164] ss:$16 sps:$4 sm:$0xff]  }
 0x958   :  { %2874 = vmatprep.subr.bf16.mxu0 %v5052_v31  ;;  %2915 = vmatprep.subr.bf16.mxu1 %v5055_v32  ;;  %v5133_v31 = vld [vmem:[#allocation25 + $0x16c] ss:$16 sps:$4 sm:$0xff]   ;;  %v5128_v32 = vld [vmem:[#allocation25 + $0x160] ss:$16 sps:$4 sm:$0xff]  }
 0x95b   :  { %2875 = vmatpush1.bf16.msra.mxu0 %v5050_v33  ;;  %2916 = vmatpush1.bf16.msra.mxu1 %v5053_v34  ;;  %v5131_v33 = vld [vmem:[#allocation25 + $0x168] ss:$16 sps:$4 sm:$0xff]   ;;  %v5136_v34 = vld [vmem:[#allocation25 + $0x184] ss:$16 sps:$4 sm:$0xff]  }
 0x95c   :  { %2876 = vmatprep.subr.bf16.mxu0 %v5058_v35  ;;  %2917 = vmatprep.subr.bf16.mxu1 %v5061_v36  ;;  %v5139_v35 = vld [vmem:[#allocation25 + $0x18c] ss:$16 sps:$4 sm:$0xff]   ;;  %v5134_v36 = vld [vmem:[#allocation25 + $0x180] ss:$16 sps:$4 sm:$0xff]  }
 0x95f   :  { %2877 = vmatpush1.bf16.msra.mxu0 %v5056_v37  ;;  %2918 = vmatpush1.bf16.msra.mxu1 %v5059_v39  ;;  %v5137_v37 = vld [vmem:[#allocation25 + $0x188] ss:$16 sps:$4 sm:$0xff]   ;;  %v5142_v39 = vld [vmem:[#allocation25 + $0x1a4] ss:$16 sps:$4 sm:$0xff]  }
 0x960   :  { %3271 = vmatprep.subr.bf16.mxu0 %v5064_v40  ;;  %3312 = vmatprep.subr.bf16.mxu1 %v5067_v42  ;;  %v5145_v40 = vld [vmem:[#allocation25 + $0x1ac] ss:$16 sps:$4 sm:$0xff]   ;;  %v5140_v42 = vld [vmem:[#allocation25 + $0x1a0] ss:$16 sps:$4 sm:$0xff]  }
 0x962   :  { %2879 = vmatmul.mubr.bf16.vlgmr.msra.gmra.mrb[24].mxu0 %v6360_v28  ;;  %2920 = vmatmul.mubr.bf16.vlgmr.msra.gmra.mrb[20].mxu1 %v6362_v29  ;;  %v5085_v28 = vld [vmem:[#allocation25 + $0x6c] ss:$16 sps:$4 sm:$0xff]   ;;  %v5080_v29 = vld [vmem:[#allocation25 + $0x60] ss:$16 sps:$4 sm:$0xff]  }
 0x963   :  { %3272 = vmatpush1.bf16.msra.mxu0 %v5062_v43  ;;  %3303 = vmatprep.mubr.bf16.mxu0 %v2929_v45  ;;  %v5143_v43 = vld [vmem:[#allocation25 + $0x1a8] ss:$16 sps:$4 sm:$0xff]  }
 0x964   :  { %3313 = vmatpush1.bf16.msra.mxu1 %v5065_v44  ;;  %3344 = vmatprep.mubr.bf16.mxu1 %v2929_v45  ;;  %v5148_v44 = vld [vmem:[#allocation25 + $0x1c4] ss:$16 sps:$4 sm:$0xff]   ;;  %v5151_v45 = vld [vmem:[#allocation25 + $0x1cc] ss:$16 sps:$4 sm:$0xff]  }
 0x965   :  { %3273 = vmatprep.subr.bf16.mxu0 %v5070_v3  ;;  %3314 = vmatprep.subr.bf16.mxu1 %v5073_v46  ;;  %v6550_v3 = vld [vmem:[#allocation4] sm:$0xf]  ;;  %v5146_v46 = vld [vmem:[#allocation25 + $0x1c0] ss:$16 sps:$4 sm:$0xff]  }
 0x967   :  { %3274 = vmatpush1.bf16.msra.mxu0 %v5068_v47  ;;  %v5149_v47 = vld [vmem:[#allocation25 + $0x1c8] ss:$16 sps:$4 sm:$0xff]  }
 0x968   :  { %3315 = vmatpush1.bf16.msra.mxu1 %v5071_v48  ;;  %3275 = vmatprep.subr.bf16.mxu0 %v5076_v49  ;;  %v5154_v48 = vld [vmem:[#allocation25 + $0x1e4] ss:$16 sps:$4 sm:$0xff]   ;;  %v5157_v49 = vld [vmem:[#allocation25 + $0x1ec] ss:$16 sps:$4 sm:$0xff]  }
 0x969   :  { %3316 = vmatprep.subr.bf16.mxu1 %v5079_v50  ;;  %v790_v50 = vrot.slane %v6550_v3, %v6084_v11 }
 0x96b   :  { %3276 = vmatpush1.bf16.msra.mxu0 %v5074_v51  ;;  %v798_v51 = vrot.slane %v6550_v3, %v6247_v59 }
 0x96c   :  { %3317 = vmatpush1.bf16.msra.mxu1 %v5077_v22  ;;  %3277 = vmatprep.subr.bf16.mxu0 %v5082_v54  ;;  %v5152_v22 = vld [vmem:[#allocation25 + $0x1e0] ss:$16 sps:$4 sm:$0xff]   ;;  %v5155_v54 = vld [vmem:[#allocation25 + $0x1e8] ss:$16 sps:$4 sm:$0xff]  }
 0x96d   :  { %3318 = vmatprep.subr.bf16.mxu1 %v5085_v28  ;;  %v5158_v28 = vld [vmem:[%s6866_s21 + $0x40] sm:$0xff]  }
 0x96f   :  { %3278 = vmatpush1.bf16.msra.mxu0 %v5080_v29  ;;  %v5159_v29 = vld [vmem:[%s6866_s21 + $0xc0] sm:$0xff]  }
 0x970   :  { %3319 = vmatpush1.bf16.msra.mxu1 %v5083_v55  ;;  %3279 = vmatprep.subr.bf16.mxu0 %v5088_v56  ;;  %v875_v55 = vadd.f32 %v6053_v19, %v790_v50  ;;  %v916_v56 = vadd.f32 %v6069_v53, %v798_v51  ;;  %v5162_v19 = vld [vmem:[%s6866_s21 + $0x48] sm:$0xff]  }
 0x971   :  { %3320 = vmatprep.subr.bf16.mxu1 %v5091_v58  ;;  %v5160_v58 = vld [vmem:[%s6866_s21] sm:$0xff]  }
 0x972   :  { %v3390_v53 = vpack.c.bf16 %v875_v55, %v875_v55  ;;  %v5193_v55 = vld [vmem:[%s6865_s20 + $0x80] sm:$0xff]  }
 0x973   :  { %3280 = vmatpush1.bf16.msra.mxu0 %v5086_v60  ;;  %v2928_v60 = vpack.c.bf16 %v6110_v20, %v6110_v20  ;;  %v5164_v20 = vld [vmem:[%s6866_s21 + $0x8] sm:$0xff]  }
 0x974   :  { %3321 = vmatpush1.bf16.msra.mxu1 %v5089_v61  ;;  %3281 = vmatprep.subr.bf16.mxu0 %v5094_v62  ;;  %v5161_v61 = vld [vmem:[%s6866_s21 + $0x80] sm:$0xff]   ;;  %v5163_v62 = vld [vmem:[%s6866_s21 + $0xc8] sm:$0xff]  }
 0x975   :  { %3322 = vmatprep.subr.bf16.mxu1 %v5097_v63  ;;  %v3392_v63 = vpack.c.bf16 %v916_v56, %v916_v56  ;;  %v5194_v56 = vld [vmem:[%s6865_s20 + $0x48] sm:$0xff]  }
 0x977   :  { %3282 = vmatpush1.bf16.msra.mxu0 %v5092_v0  ;;  %v5165_v0 = vld [vmem:[%s6866_s21 + $0x88] sm:$0xff]  }
 0x978   :  { %3323 = vmatpush1.bf16.msra.mxu1 %v5095_v2  ;;  %3283 = vmatprep.subr.bf16.mxu0 %v5100_v5  ;;  %v5166_v2 = vld [vmem:[%s6866_s21 + $0x50] sm:$0xff]  }
 0x979   :  { %3324 = vmatprep.subr.bf16.mxu1 %v5103_v8  ;;  %v5167_v5 = vld [vmem:[%s6866_s21 + $0xd0] sm:$0xff]  }
 0x97a   :  { %v5168_v8 = vld [vmem:[%s6866_s21 + $0x10] sm:$0xff]  }
 0x97b   :  { %3284 = vmatpush1.bf16.msra.mxu0 %v5098_v9  ;;  %v5169_v9 = vld [vmem:[%s6866_s21 + $0x90] sm:$0xff]  }
 0x97c   :  { %3325 = vmatpush1.bf16.msra.mxu1 %v5101_v4  ;;  %3285 = vmatprep.subr.bf16.mxu0 %v5106_v12  ;;  %v5170_v4 = vld [vmem:[%s6866_s21 + $0x58] sm:$0xff]  }
 0x97d   :  { %3326 = vmatprep.subr.bf16.mxu1 %v5109_v13  ;;  %v5171_v12 = vld [vmem:[%s6866_s21 + $0xd8] sm:$0xff]  }
 0x97e   :  { %v5172_v13 = vld [vmem:[%s6866_s21 + $0x18] sm:$0xff]  }
 0x97f   :  { %3286 = vmatpush1.bf16.msra.mxu0 %v5104_v15  ;;  %v5173_v15 = vld [vmem:[%s6866_s21 + $0x98] sm:$0xff]  }
 0x980   :  { %3327 = vmatpush1.bf16.msra.mxu1 %v5107_v17  ;;  %3287 = vmatprep.subr.bf16.mxu0 %v5112_v21  ;;  %v5174_v17 = vld [vmem:[%s6866_s21 + $0x60] sm:$0xff]  }
 0x981   :  { %3328 = vmatprep.subr.bf16.mxu1 %v5115_v23  ;;  %v5175_v21 = vld [vmem:[%s6866_s21 + $0xe0] sm:$0xff]  }
 0x982   :  { %v5176_v23 = vld [vmem:[%s6866_s21 + $0x20] sm:$0xff]  }
 0x983   :  { %3288 = vmatpush1.bf16.msra.mxu0 %v5110_v38  ;;  %v5177_v38 = vld [vmem:[%s6866_s21 + $0xa0] sm:$0xff]  }
 0x984   :  { %3329 = vmatpush1.bf16.msra.mxu1 %v5113_v41  ;;  %3289 = vmatprep.subr.bf16.mxu0 %v5118_v1  ;;  %v5178_v41 = vld [vmem:[%s6866_s21 + $0x68] sm:$0xff]  }
 0x985   :  { %3330 = vmatprep.subr.bf16.mxu1 %v5121_v24  ;;  %v5179_v1 = vld [vmem:[%s6866_s21 + $0xe8] sm:$0xff]  }
 0x986   :  { %v5180_v24 = vld [vmem:[%s6866_s21 + $0x28] sm:$0xff]  }
 0x987   :  { %3290 = vmatpush1.bf16.msra.mxu0 %v5116_v6  ;;  %v5181_v6 = vld [vmem:[%s6866_s21 + $0xa8] sm:$0xff]  }
 0x988   :  { %3331 = vmatpush1.bf16.msra.mxu1 %v5119_v25  ;;  %3291 = vmatprep.subr.bf16.mxu0 %v5124_v7  ;;  %v5182_v25 = vld [vmem:[%s6866_s21 + $0x70] sm:$0xff]  }
 0x989   :  { %3332 = vmatprep.subr.bf16.mxu1 %v5127_v16  ;;  %v5183_v7 = vld [vmem:[%s6866_s21 + $0xf0] sm:$0xff]  }
 0x98a   :  { %v5184_v16 = vld [vmem:[%s6866_s21 + $0x30] sm:$0xff]  }
 0x98b   :  { %3292 = vmatpush1.bf16.msra.mxu0 %v5122_v26  ;;  %v786_v26 = vrot.slane %v6550_v3, %v6081_v10 }
 0x98c   :  { %3333 = vmatpush1.bf16.msra.mxu1 %v5125_v27  ;;  %3293 = vmatprep.subr.bf16.mxu0 %v5130_v30  ;;  %v5185_v27 = vld [vmem:[%s6866_s21 + $0xb0] sm:$0xff]   ;;  %v5186_v30 = vld [vmem:[%s6866_s21 + $0x78] sm:$0xff]  }
 0x98d   :  { %3334 = vmatprep.subr.bf16.mxu1 %v5133_v31  ;;  %v794_v31 = vrot.slane %v6550_v3, %v6243_v57 }
 0x98f   :  { %3294 = vmatpush1.bf16.msra.mxu0 %v5128_v32  ;;  %v5187_v32 = vld [vmem:[%s6866_s21 + $0xf8] sm:$0xff]  }
 0x990   :  { %3335 = vmatpush1.bf16.msra.mxu1 %v5131_v33  ;;  %3295 = vmatprep.subr.bf16.mxu0 %v5136_v34  ;;  %v5188_v33 = vld [vmem:[%s6866_s21 + $0x38] sm:$0xff]   ;;  %v873_v34 = vadd.f32 %v6051_v18, %v786_v26 }
 0x991   :  { %3336 = vmatprep.subr.bf16.mxu1 %v5139_v35  ;;  %v5189_v35 = vld [vmem:[%s6866_s21 + $0xb8] sm:$0xff]  }
 0x993   :  { %3296 = vmatpush1.bf16.msra.mxu0 %v5134_v36  ;;  %v914_v36 = vadd.f32 %v6067_v52, %v794_v31 }
 0x994   :  { %3337 = vmatpush1.bf16.msra.mxu1 %v5137_v37  ;;  %3297 = vmatprep.subr.bf16.mxu0 %v5142_v39  ;;  %v3389_v37 = vpack.c.bf16 %v873_v34, %v873_v34 }
 0x995   :  { %3338 = vmatprep.subr.bf16.mxu1 %v5145_v40  ;;  %v3391_v39 = vpack.c.bf16 %v914_v36, %v914_v36  ;;  %v573_v40 = vld [vmem:[#allocation24] sm:$0xf] }
 0x996   :  { %v2111_v18 = vrot.slane %v573_v40, %v6084_v11 }
 0x997   :  { %3298 = vmatpush1.bf16.msra.mxu0 %v5140_v42  ;;  %v2107_v42 = vrot.slane %v573_v40, %v6081_v10 }
 0x998   :  { %3339 = vmatpush1.bf16.msra.mxu1 %v5143_v43  ;;  %3299 = vmatprep.subr.bf16.mxu0 %v5148_v44 }
 0x999   :  { %3340 = vmatprep.subr.bf16.mxu1 %v5151_v45 }
 0x99b   :  { %3300 = vmatpush1.bf16.msra.mxu0 %v5146_v46 }
 0x99c   :  { %3341 = vmatpush1.bf16.msra.mxu1 %v5149_v47  ;;  %3301 = vmatprep.subr.bf16.mxu0 %v5154_v48 }
 0x99d   :  { %3342 = vmatprep.subr.bf16.mxu1 %v5157_v49 }
 0x99f   :  { %3302 = vmatpush1.bf16.msra.mxu0 %v5152_v22 }
 0x9a0   :  { %3343 = vmatpush1.bf16.msra.mxu1 %v5155_v54  ;;  %4515 = vmatprep.subr.bf16.mxu0 %v5158_v28  ;;  %v5190_v54 = vld [vmem:[%s6865_s20 + $0x40] sm:$0xff]  }
 0x9a1   :  { %4537 = vmatprep.subr.bf16.mxu1 %v5159_v29  ;;  %v5191_v28 = vld [vmem:[%s6865_s20 + $0xc0] sm:$0xff]  }
 0x9a2   :  { %3304 = vmatmul.mubr.bf16.vlgmr.msra.gmra.mrb[28].mxu0 %v2928_v60  ;;  %v5192_v29 = vld [vmem:[%s6865_s20] sm:$0xff]  }
 0x9a3   :  { %3345 = vmatmul.mubr.bf16.vlgmr.msra.gmra.mrb[24].mxu1 %v2928_v60  ;;  %4516 = vmatpush3.bf16.msra.mxu0 %v5160_v58  ;;  %v5195_v58 = vld [vmem:[%s6865_s20 + $0xc8] sm:$0xff]  }
 0x9a4   :  { %3617 = vmatprep.mubr.bf16.mxu0 %v3390_v53  ;;  %4538 = vmatpush3.bf16.msra.mxu1 %v5161_v61  ;;  %v5196_v60 = vld [vmem:[%s6865_s20 + $0x8] sm:$0xff]   ;;  %v2119_v53 = vrot.slane %v573_v40, %v6247_v59 }
 0x9a5   :  { %3657 = vmatprep.mubr.bf16.mxu1 %v3392_v63  ;;  %4517 = vmatprep.subr.bf16.mxu0 %v5162_v19  ;;  %v5197_v61 = vld [vmem:[%s6865_s20 + $0x88] sm:$0xff]   ;;  %v2115_v19 = vrot.slane %v573_v40, %v6243_v57 }
 0x9a6   :  { %4539 = vmatprep.subr.bf16.mxu1 %v5163_v62 }
 0x9a7   :  { %4518 = vmatpush3.bf16.msra.mxu0 %v5164_v20 }
 0x9a8   :  { %4540 = vmatpush3.bf16.msra.mxu1 %v5165_v0  ;;  %4519 = vmatprep.subr.bf16.mxu0 %v5166_v2 }
 0x9a9   :  { %4541 = vmatprep.subr.bf16.mxu1 %v5167_v5 }
 0x9ab   :  { %4520 = vmatpush3.bf16.msra.mxu0 %v5168_v8 }
 0x9ac   :  { %4542 = vmatpush3.bf16.msra.mxu1 %v5169_v9  ;;  %4521 = vmatprep.subr.bf16.mxu0 %v5170_v4 }
 0x9ad   :  { %4543 = vmatprep.subr.bf16.mxu1 %v5171_v12 }
 0x9af   :  { %4522 = vmatpush3.bf16.msra.mxu0 %v5172_v13 }
 0x9b0   :  { %4544 = vmatpush3.bf16.msra.mxu1 %v5173_v15  ;;  %4523 = vmatprep.subr.bf16.mxu0 %v5174_v17  ;;  %v638_v17 = vld [vmem:[#allocation27] sm:$0xf] }
 0x9b1   :  { %4545 = vmatprep.subr.bf16.mxu1 %v5175_v21  ;;  %v2934_v21 = vrot.slane %v638_v17, %v6081_v10 }
 0x9b3   :  { %4524 = vmatpush3.bf16.msra.mxu0 %v5176_v23  ;;  %v2942_v23 = vrot.slane %v638_v17, %v6243_v57 }
 0x9b4   :  { %4546 = vmatpush3.bf16.msra.mxu1 %v5177_v38  ;;  %4525 = vmatprep.subr.bf16.mxu0 %v5178_v41  ;;  %v2938_v38 = vrot.slane %v638_v17, %v6084_v11 }
 0x9b5   :  { %4547 = vmatprep.subr.bf16.mxu1 %v5179_v1  ;;  %v2946_v1 = vrot.slane %v638_v17, %v6247_v59  ;;  %v5219_v17 = vld [vmem:[%s6865_s20 + $0xf8] sm:$0xff]  }
 0x9b7   :  { %4526 = vmatpush3.bf16.msra.mxu0 %v5180_v24 }
 0x9b8   :  { %4548 = vmatpush3.bf16.msra.mxu1 %v5181_v6  ;;  %4527 = vmatprep.subr.bf16.mxu0 %v5182_v25 }
 0x9b9   :  { %4549 = vmatprep.subr.bf16.mxu1 %v5183_v7 }
 0x9bb   :  { %4528 = vmatpush3.bf16.msra.mxu0 %v5184_v16 }
 0x9bc   :  { %4550 = vmatpush3.bf16.msra.mxu1 %v5185_v27  ;;  %4529 = vmatprep.subr.bf16.mxu0 %v5186_v30 }
 0x9bd   :  { %4551 = vmatprep.subr.bf16.mxu1 %v5187_v32 }
 0x9bf   :  { %4530 = vmatpush3.bf16.msra.mxu0 %v5188_v33 }
 0x9c0   :  { %4552 = vmatpush3.bf16.msra.mxu1 %v5189_v35  ;;  %4559 = vmatprep.subr.bf16.mxu0 %v5190_v54 }
 0x9c1   :  { %4581 = vmatprep.subr.bf16.mxu1 %v5191_v28  ;;  %v5208_v28 = vld [vmem:[%s6865_s20 + $0x20] sm:$0xff]  }
 0x9c2   :  { %3618 = vmatmul.mubr.bf16.vlgmr.msra.gmra.mrb[32].mxu0 %v3389_v37 }
 0x9c3   :  { %3658 = vmatmul.mubr.bf16.vlgmr.msra.gmra.mrb[28].mxu1 %v3391_v39  ;;  %4560 = vmatpush3.bf16.msra.mxu0 %v5192_v29  ;;  %v5209_v29 = vld [vmem:[%s6865_s20 + $0xa0] sm:$0xff]  }
 0x9c4   :  { %4582 = vmatpush3.bf16.msra.mxu1 %v5193_v55  ;;  %4561 = vmatprep.subr.bf16.mxu0 %v5194_v56 }
 0x9c5   :  { %4583 = vmatprep.subr.bf16.mxu1 %v5195_v58 }
 0x9c7   :  { %4562 = vmatpush3.bf16.msra.mxu0 %v5196_v60  ;;  %v5210_v60 = vld [vmem:[%s6865_s20 + $0x68] sm:$0xff]  }
 0x9c8   :  { %4584 = vmatpush3.bf16.msra.mxu1 %v5197_v61  ;;  %v5211_v61 = vld [vmem:[%s6865_s20 + $0xe8] sm:$0xff]  }
 0x9f5   :  { %v2798_v43 = vpop.f32.mrb[20].mxu0  ;;  %v2839_v44 = vpop.f32.mrb[16].mxu1 }
 0x9f6   :  { %v2799_v45 = vadd.f32 %v2798_v43, %v2107_v42  ;;  %v2800_v3 = vpop.f32.mrb[21].mxu0  ;;  %v2841_v46 = vpop.f32.mrb[17].mxu1  ;;  %v5198_v42 = vld [vmem:[%s6865_s20 + $0x50] sm:$0xff]  }
 0x9f7   :  { %v2801_v47 = vadd.f32 %v2800_v3, %v2111_v18  ;;  %v2802_v48 = vpop.f32.mrb[22].mxu0  ;;  %v2843_v52 = vpop.f32.mrb[18].mxu1  ;;  %v5199_v18 = vld [vmem:[%s6865_s20 + $0xd0] sm:$0xff]   ;;  %4563 = vmatprep.subr.bf16.mxu0 %v5198_v42  ;;  %v5203_v3 = vld [vmem:[%s6865_s20 + $0xd8] sm:$0xff]  }
 0x9f8   :  { %v6664_v49 = vadd.f32 %v2839_v44, %v2799_v45  ;;  %v2803_v50 = vpop.f32.mrb[23].mxu0  ;;  %v2844_v51 = vpop.f32.mrb[19].mxu1  ;;  %v5200_v43 = vld [vmem:[%s6865_s20 + $0x10] sm:$0xff]   ;;  %4585 = vmatprep.subr.bf16.mxu1 %v5199_v18  ;;  %v5202_v45 = vld [vmem:[%s6865_s20 + $0x58] sm:$0xff]   ;;  %v5206_v52 = vld [vmem:[%s6865_s20 + $0x60] sm:$0xff]  }
 0x9f9   :  { %v6666_v22 = vadd.f32 %v2841_v46, %v2801_v47  ;;  %v5201_v44 = vld [vmem:[%s6865_s20 + $0x90] sm:$0xff]   ;;  %4564 = vmatpush3.bf16.msra.mxu0 %v5200_v43  ;;  %v5204_v46 = vld [vmem:[%s6865_s20 + $0x18] sm:$0xff]   ;;  %v5207_v50 = vld [vmem:[%s6865_s20 + $0xe0] sm:$0xff]  }
 0x9fa   :  { %4586 = vmatpush3.bf16.msra.mxu1 %v5201_v44  ;;  %v5205_v47 = vld [vmem:[%s6865_s20 + $0x98] sm:$0xff]   ;;  %4565 = vmatprep.subr.bf16.mxu0 %v5202_v45 }
 0x9fb   :  { %4587 = vmatprep.subr.bf16.mxu1 %v5203_v3 }
 0x9fd   :  { %4566 = vmatpush3.bf16.msra.mxu0 %v5204_v46 }
 0x9fe   :  { %4588 = vmatpush3.bf16.msra.mxu1 %v5205_v47  ;;  %4567 = vmatprep.subr.bf16.mxu0 %v5206_v52 }
 0x9ff   :  { %4589 = vmatprep.subr.bf16.mxu1 %v5207_v50 }
 0xa01   :  { %4568 = vmatpush3.bf16.msra.mxu0 %v5208_v28 }
 0xa02   :  { %4590 = vmatpush3.bf16.msra.mxu1 %v5209_v29  ;;  %4569 = vmatprep.subr.bf16.mxu0 %v5210_v60  ;;  %v5226_v29 = vld [vmem:[%s6871_s26] sm:$0xff]  }
 0xa03   :  { %4591 = vmatprep.subr.bf16.mxu1 %v5211_v61 }
 0xa35   :  { %v2880_v62 = vpop.f32.mrb[24].mxu0  ;;  %v2921_v63 = vpop.f32.mrb[20].mxu1 }
 0xa36   :  { %v2881_v20 = vadd.f32 %v2880_v62, %v2115_v19  ;;  %v2882_v0 = vpop.f32.mrb[25].mxu0  ;;  %v2923_v2 = vpop.f32.mrb[21].mxu1 }
 0xa37   :  { %v2883_v5 = vadd.f32 %v2882_v0, %v2119_v53  ;;  %v2884_v8 = vpop.f32.mrb[26].mxu0  ;;  %v2925_v9 = vpop.f32.mrb[22].mxu1  ;;  %v5212_v0 = vld [vmem:[%s6865_s20 + $0x28] sm:$0xff]  }
 0xa38   :  { %v6694_v4 = vadd.f32 %v2921_v63, %v2881_v20  ;;  %v2885_v12 = vpop.f32.mrb[27].mxu0  ;;  %v2926_v13 = vpop.f32.mrb[23].mxu1  ;;  %v5215_v8 = vld [vmem:[%s6865_s20 + $0xf0] sm:$0xff]   ;;  %4570 = vmatpush3.bf16.msra.mxu0 %v5212_v0 }
 0xa39   :  { %v6696_v15 = vadd.f32 %v2923_v2, %v2883_v5  ;;  %v5213_v2 = vld [vmem:[%s6865_s20 + $0xa8] sm:$0xff]   ;;  %v5214_v5 = vld [vmem:[%s6865_s20 + $0x70] sm:$0xff]   ;;  %v5218_v13 = vld [vmem:[%s6865_s20 + $0x78] sm:$0xff]  }
 0xa3a   :  { %4592 = vmatpush3.bf16.msra.mxu1 %v5213_v2  ;;  %v5216_v9 = vld [vmem:[%s6865_s20 + $0x30] sm:$0xff]   ;;  %4571 = vmatprep.subr.bf16.mxu0 %v5214_v5  ;;  %v4507_v2 = vld [vmem:[%s6872_s27] ss:$0 sm:$0xff] }
 0xa3b   :  { %v5217_v12 = vld [vmem:[%s6865_s20 + $0xb0] sm:$0xff]   ;;  %4593 = vmatprep.subr.bf16.mxu1 %v5215_v8 }
 0xa3c   :  { %4572 = vmatpush3.bf16.msra.mxu0 %v5216_v9 }
 0xa3d   :  { %4573 = vmatprep.subr.bf16.mxu0 %v5218_v13 }
 0xa3e   :  { %4594 = vmatpush3.bf16.msra.mxu1 %v5217_v12 }
 0xa3f   :  { %4595 = vmatprep.subr.bf16.mxu1 %v5219_v17 }
 0xa75   :  { %v3305_v41 = vpop.f32.mrb[28].mxu0 }
 0xa76   :  { %v6702_v24 = vadd.f32 %v3305_v41, %v2934_v21  ;;  %v3346_v6 = vpop.f32.mrb[24].mxu1  ;;  %v3307_v25 = vpop.f32.mrb[29].mxu0  ;;  %v5220_v21 = vld [vmem:[%s6865_s20 + $0x38] sm:$0xff]  }
 0xa77   :  { %v6704_v7 = vadd.f32 %v3346_v6, %v2942_v23  ;;  %v6706_v16 = vadd.f32 %v3307_v25, %v2938_v38  ;;  %v3348_v26 = vpop.f32.mrb[25].mxu1  ;;  %v3309_v27 = vpop.f32.mrb[30].mxu0  ;;  %v5221_v23 = vld [vmem:[%s6865_s20 + $0xb8] sm:$0xff]   ;;  %4574 = vmatpush3.bf16.msra.mxu0 %v5220_v21 }
 0xa78   :  { %v3359_v10 = vmul.f32 %v6702_v24, %v6702_v24  ;;  %v3350_v30 = vpop.f32.mrb[26].mxu1  ;;  %v3310_v57 = vpop.f32.mrb[31].mxu0  ;;  %v6714_v31 = vadd.f32 %v3348_v26, %v2946_v1  ;;  %4596 = vmatpush3.bf16.msra.mxu1 %v5221_v23  ;;  %4628 = vmatprep.subr.bf16.mxu0 %v5658_v14 }
 0xa79   :  { %v3353_v11 = vadd.f32 %v6706_v16, %v6702_v24  ;;  %v3360_v59 = vmul.f32 %v6706_v16, %v6706_v16  ;;  %v3351_v32 = vpop.f32.mrb[27].mxu1  ;;  %v3361_v33 = vmul.f32 %v6704_v7, %v6704_v7  ;;  %4640 = vmatprep.subr.bf16.mxu1 %v5658_v14 }
 0xa7a   :  { %v3362_v37 = vmul.f32 %v6714_v31, %v6714_v31 }
 0xa7b   :  { %v3354_v34 = vadd.f32 %v3353_v11, %v6704_v7  ;;  %v3363_v35 = vadd.f32 %v3360_v59, %v3359_v10 }
 0xa7d   :  { %v3355_v36 = vadd.f32 %v3354_v34, %v6714_v31  ;;  %v3364_v39 = vadd.f32 %v3363_v35, %v3361_v33 }
 0xa7f   :  { %3356 = vadd.xlane.f32.xlu0 %v3355_v36  ;;  %v3365_v40 = vadd.f32 %v3364_v39, %v3362_v37 }
 0xa81   :  { %3366 = vadd.xlane.f32.xlu1 %v3365_v40 }
 0xa95   :  { %v4531_v48 = vpop.f32.mrb[32].mxu0 }
 0xa96   :  { %v4553_v51 = vpop.f32.mrb[28].mxu1  ;;  %v4532_v54 = vpop.f32.mrb[33].mxu0 }
 0xa97   :  { %v4533_v55 = vadd.f32 %v4532_v54, %v4531_v48  ;;  %v4554_v56 = vpop.f32.mrb[29].mxu1  ;;  %v4534_v58 = vpop.f32.mrb[34].mxu0 }
 0xa98   :  { %v4555_v19 = vadd.f32 %v4554_v56, %v4553_v51  ;;  %v4556_v53 = vpop.f32.mrb[30].mxu1  ;;  %v4535_v62 = vpop.f32.mrb[35].mxu0 }
 0xa99   :  { %v4557_v63 = vpop.f32.mrb[31].mxu1 }
 0xa9a   :  { %v6764_v20 = vadd.f32 %v4555_v19, %v4533_v55  ;;  %v4498_v55 = vld [vmem:[%s6869_s24] ss:$0 sm:$0xff] }
 0xb0c   :  { %v3357_v38 = vpop.xlane.xlu0 %3356 }
 0xb0d   :  { %v3358_v41 = vmul.f32 0.001953125, %v3357_v38 }
 0xb0e   :  { %v3367_v1 = vpop.xlane.xlu1 %3366 }
 0xb0f   :  { %v3368_v6 = vmul.f32 0.001953125, %v3367_v1  ;;  %v3373_v25 = vmul.f32 %v3358_v41, %v3358_v41  ;;  %v3370_v10 = vsub.f32 %v6706_v16, %v3358_v41  ;;  %v3372_v30 = vsub.f32 %v6714_v31, %v3358_v41 }
 0xb10   :  { %v3369_v57 = vsub.f32 %v6702_v24, %v3358_v41  ;;  %v3371_v11 = vsub.f32 %v6704_v7, %v3358_v41  ;;  %v5222_v24 = vld [vmem:[%s6868_s23] sm:$0xff]  }
 0xb11   :  { %v3374_v26 = vsub.f32 %v3368_v6, %v3373_v25 }
 0xb13   :  { %v3375_v27 = vadd.f32 1e-05, %v3374_v26 }
 0xb15   :  { %5239 = vrsqrt.f32 %v3375_v27 }
 0xb1f   :  { %v5240_v59 = vpop.eup %5239 }
 0xb20   :  { %v3378_v32 = vmul.f32 %v5240_v59, %v3370_v10  ;;  %v3380_v33 = vmul.f32 %v5240_v59, %v3372_v30  ;;  %v3377_v34 = vmul.f32 %v5240_v59, %v3369_v57  ;;  %v3379_v35 = vmul.f32 %v5240_v59, %v3371_v11 }
 0xb22   :  { %v3382_v36 = vadd.f32 %v3378_v32, %v6666_v22  ;;  %v3384_v37 = vadd.f32 %v3380_v33, %v6696_v15  ;;  %v3381_v39 = vadd.f32 %v3377_v34, %v6664_v49  ;;  %v3383_v40 = vadd.f32 %v3379_v35, %v6694_v4  ;;  %v5223_v49 = vld [vmem:[%s6868_s23 + $0x8] sm:$0xff]   ;;  %v5224_v22 = vld [vmem:[%s6868_s23 + $0x10] sm:$0xff]   ;;  %v5225_v4 = vld [vmem:[%s6868_s23 + $0x18] sm:$0xff]  }
 0xb24   :  { %v3386_v16 = vpack.c.bf16 %v3382_v36, %v3382_v36  ;;  %v3388_v42 = vpack.c.bf16 %v3384_v37, %v3384_v37  ;;  %v3385_v31 = vpack.c.bf16 %v3381_v39, %v3381_v39  ;;  %v3387_v18 = vpack.c.bf16 %v3383_v40, %v3383_v40 }
 0xb26   :  { %3889 = vmatprep.mubr.bf16.mxu0 %v3386_v16  ;;  %3929 = vmatprep.mubr.bf16.mxu1 %v3388_v42 }
 0xb27   :  { %3890 = vmatmul.mubr.bf16.vlgmr.msra.gmra.mrb[36].mxu0 %v3385_v31  ;;  %3930 = vmatmul.mubr.bf16.vlgmr.msra.gmra.mrb[32].mxu1 %v3387_v18 }
 0xb28   :  { %4629 = vmatpush3.bf16.msra.mxu0 %v5222_v24  ;;  %4636 = vmatprep.mubr.msk.bf16.mxu0 %vm5659_vm2, %v5658_v14 }
 0xb29   :  { %4630 = vmatprep.subr.bf16.mxu0 %v5658_v14  ;;  %4642 = vmatprep.mubr.msk.bf16.mxu1 %vm5659_vm2, %v5658_v14 }
 0xb2a   :  { %4641 = vmatpush3.bf16.msra.mxu1 %v5226_v29 }
 0xb2c   :  { %4631 = vmatpush3.bf16.msra.mxu0 %v5223_v49 }
 0xb2d   :  { %4632 = vmatprep.subr.bf16.mxu0 %v5658_v14 }
 0xb30   :  { %4633 = vmatpush3.bf16.msra.mxu0 %v5224_v22 }
 0xb31   :  { %4634 = vmatprep.subr.bf16.mxu0 %v5658_v14  ;;  %v4497_v14 = vld [vmem:[%s6867_s22] ss:$0 sm:$0xff] }
 0xb34   :  { %4635 = vmatpush3.bf16.msra.mxu0 %v5225_v4 }
 0xbfa   :  { %v4575_v15 = vpop.f32.mrb[36].mxu0  ;;  %v4597_v7 = vpop.f32.mrb[32].mxu1 }
 0xbfb   :  { %v4576_v43 = vpop.f32.mrb[37].mxu0  ;;  %v4598_v44 = vpop.f32.mrb[33].mxu1 }
 0xbfc   :  { %v4577_v45 = vadd.f32 %v4576_v43, %v4575_v15  ;;  %v4599_v3 = vadd.f32 %v4598_v44, %v4597_v7  ;;  %v4578_v46 = vpop.f32.mrb[38].mxu0  ;;  %v4600_v47 = vpop.f32.mrb[34].mxu1 }
 0xbfd   :  { %v4579_v48 = vpop.f32.mrb[39].mxu0  ;;  %v4601_v52 = vpop.f32.mrb[35].mxu1 }
 0xbfe   :  { %v3892_v50 = vadd.f32 %v4577_v45, %v6764_v20  ;;  %v4504_v20 = vld [vmem:[%s6870_s25] ss:$0 sm:$0xff] }
 0xc00   :  { %v3932_v51 = vadd.f32 %v4599_v3, %v3892_v50 }
 0xc02   :  { %v3943_v54 = vadd.f32 %v4497_v14, %v3932_v51 }
 0xc04   :  { %v3944_v28 = vpack.c.bf16 %v3943_v54, %v3943_v54 }
 0xc06   :  { %4637 = vmatmul.mubr.msk.bf16.vlgmr.msra.gmra.mrb[40].mxu0 %vm973_vm3, %v3944_v28 }
 0xcd9   :  { %v4012_v56 = vpop.f32.mrb[40].mxu0 }
 0xcda   :  { %v4013_v58 = vadd.f32 %v4498_v55, %v4012_v56  ;;  %v4638_v60 = vpop.f32.mrb[41].mxu0 }
 0xcdb   :  { %v4015_v61 = vpop.f32.mrb[42].mxu0 }
 0xcdc   :  { %vm4025_vm14 = vcmp.ge.f32.partialorder %v4013_v58, 0.0  ;;  %v4026_v19 = vmul.f32 0.01, %v4013_v58  ;;  %v4639_v53 = vpop.f32.mrb[43].mxu0  ;;  %v4024_v0 = vmul.f32 %v4504_v20, %v4013_v58 }
 0xcde   :  { %v4027_v62 = vsel %vm4025_vm14, %v4013_v58, %v4026_v19 }
 0xcdf   :  { %v4028_v63 = vpack.c.bf16 %v4027_v62, %v4027_v62 }
 0xce1   :  { %4643 = vmatmul.mubr.msk.bf16.vlgmr.msra.gmra.mrb[36].mxu1 %vm4035_vm15, %v4028_v63 }
 0xdb4   :  { %v4073_v5 = vpop.f32.mrb[36].mxu1 }
 0xdb5   :  { %v4079_v8 = vadd.f32 %v4073_v5, %v4024_v0  ;;  %v4644_v9 = vpop.f32.mrb[37].mxu1 }
 0xdb6   :  { %v4076_v12 = vpop.f32.mrb[38].mxu1 }
 0xdb7   :  { %v4086_v13 = vadd.f32 %v4507_v2, %v4079_v8  ;;  %v4645_v17 = vpop.f32.mrb[39].mxu1 }
 0xdb9   :  { %4087 = vst.msk [vmem:[%s6914_s17] sm:$0xff] %vm4035_vm15, %v4086_v13 }
 0xdba   :  { %4092 = vsyncpa [#allocation3], 1 }
 0xdbb   :  { %4093 = vsyncpa [#allocation5], 1 }
 0xdbc   :  { %4094 = vsyncpa [#allocation8], 1 }
 0xdbd   :  { %4095 = vsyncpa [#allocation11], 1 }
 0xdbe   :  { %4096 = vsyncpa [#allocation14], 1 }
 0xdbf   :  { %4097 = vsyncpa [#allocation17], 1 }
 0xdc0   :  { %4098 = vsyncpa [#allocation20], 1 }
 0xdc1   :  { %4099 = vsyncpa [#allocation23], 1 }
 0xdc2   :  { %4100 = vsyncpa [#allocation26], 1 }

// kernel: feature_mlp_forward.1
= control target key start
LH: loop header
LB: loop body
LE: loop exit
PB: predicated region body
PF: predicated region fallthrough
CT: control target
= control target key end

     0   :  { %s6845_s0 = inlined_call_operand.vmem [shape: f32[8,4], index: 0, kind: input, shape index: {}]   ;;  %s6846_s1 = inlined_call_operand.vmem [shape: f32[8,4], index: 1, kind: input, shape index: {}]   ;;  %s6847_s2 = inlined_call_operand.hbm [shape: bf16[4,512], index: 2, kind: input, shape index: {}]   ;;  %s6848_s3 = inlined_call_operand.hbm [shape: f32[1,512], index: 3, kind: input, shape index: {}]   ;;  %s6849_s4 = inlined_call_operand.hbm [shape: bf16[4,64], index: 4, kind: input, shape index: {}]   ;;  %s6850_s5 = inlined_call_operand.hbm [shape: f32[1,64], index: 5, kind: input, shape index: {}]   ;;  %s6851_s6 = inlined_call_operand.hbm [shape: bf16[64,128], index: 6, kind: input, shape index: {}]   ;;  %s6852_s7 = inlined_call_operand.hbm [shape: f32[1,128], index: 7, kind: input, shape index: {}]   ;;  %s6853_s8 = inlined_call_operand.hbm [shape: bf16[128,256], index: 8, kind: input, shape index: {}]   ;;  %s6854_s9 = inlined_call_operand.hbm [shape: f32[1,256], index: 9, kind: input, shape index: {}]   ;;  %s6855_s10 = inlined_call_operand.hbm [shape: bf16[256,256], index: 10, kind: input, shape index: {}]   ;;  %s6856_s11 = inlined_call_operand.hbm [shape: f32[1,256], index: 11, kind: input, shape index: {}]   ;;  %s6857_s12 = inlined_call_operand.hbm [shape: bf16[128,256], index: 12, kind: input, shape index: {}]   ;;  %s6858_s13 = inlined_call_operand.hbm [shape: f32[1,256], index: 13, kind: input, shape index: {}]   ;;  %s6859_s14 = inlined_call_operand.hbm [shape: bf16[256,512], index: 14, kind: input, shape index: {}]   ;;  %s6860_s15 = inlined_call_operand.hbm [shape: f32[1,512], index: 15, kind: input, shape index: {}]   ;;  %s6861_s16 = inlined_call_operand.vmem [shape: bf16[512,512], index: 16, kind: input, shape index: {}]   ;;  %s6862_s17 = inlined_call_operand.hbm [shape: f32[1,512], index: 17, kind: input, shape index: {}]   ;;  %s6863_s18 = inlined_call_operand.hbm [shape: bf16[256,512], index: 18, kind: input, shape index: {}]   ;;  %s6864_s19 = inlined_call_operand.hbm [shape: f32[1,512], index: 19, kind: input, shape index: {}]   ;;  %s6865_s20 = inlined_call_operand.vmem [shape: bf16[512,64], index: 20, kind: input, shape index: {}]   ;;  %s6866_s21 = inlined_call_operand.vmem [shape: bf16[512,64], index: 21, kind: input, shape index: {}]   ;;  %s6867_s22 = inlined_call_operand.vmem [shape: f32[1,64], index: 22, kind: input, shape index: {}]   ;;  %s6868_s23 = inlined_call_operand.vmem [shape: bf16[64,16], index: 23, kind: input, shape index: {}]   ;;  %s6869_s24 = inlined_call_operand.vmem [shape: f32[1,16], index: 24, kind: input, shape index: {}]   ;;  %s6870_s25 = inlined_call_operand.vmem [shape: f32[1,16], index: 25, kind: input, shape index: {}]   ;;  %s6871_s26 = inlined_call_operand.vmem [shape: bf16[16,16], index: 26, kind: input, shape index: {}]   ;;  %s6872_s27 = inlined_call_operand.vmem [shape: f32[1,16], index: 27, kind: input, shape index: {}]   ;;  %s6873_s28 = inlined_call_operand.vmem [shape: f32[8,16], index: 28, kind: output, shape index: {}]  }
   0x1   :  { %6886 = sst [smem:[#allocation37_spill]] %s6845_s0 }
   0x2   :  { %6887 = sst [smem:[#allocation38_spill]] %s6846_s1 }
   0x3   :  { %6888 = sst [smem:[#allocation39_spill]] %s6847_s2 }
   0x4   :  { %6889 = sst [smem:[#allocation40_spill]] %s6848_s3 }
   0x5   :  { %6890 = sst [smem:[#allocation41_spill]] %s6849_s4 }
   0x6   :  { %6891 = sst [smem:[#allocation42_spill]] %s6850_s5 }
   0x7   :  { %6892 = sst [smem:[#allocation43_spill]] %s6851_s6 }
   0x8   :  { %6893 = sst [smem:[#allocation44_spill]] %s6852_s7 }
   0x9   :  { %6894 = sst [smem:[#allocation45_spill]] %s6853_s8 }
   0xa   :  { %6895 = sst [smem:[#allocation46_spill]] %s6854_s9 }
   0xb   :  { %6896 = sst [smem:[#allocation47_spill]] %s6855_s10 }
   0xc   :  { %6897 = sst [smem:[#allocation48_spill]] %s6856_s11 }
   0xd   :  { %6898 = sst [smem:[#allocation49_spill]] %s6857_s12 }
   0xe   :  { %6899 = sst [smem:[#allocation50_spill]] %s6873_s28 }
   0xf   :  { %33 = vsyncpa [#allocation3], 0 }
  0x10   :  { %34 = vsyncpa [#allocation5], 0 }
  0x11   :  { %35 = vsyncpa [#allocation8], 0 }
  0x12   :  { %36 = vsyncpa [#allocation11], 0 }
  0x13   :  { %37 = vsyncpa [#allocation14], 0 }
  0x14   :  { %38 = vsyncpa [#allocation17], 0 }
  0x15   :  { %39 = vsyncpa [#allocation20], 0 }
  0x16   :  { %40 = vsyncpa [#allocation23], 0 }
  0x17   :  { %41 = vsyncpa [#allocation26], 0  ;;  %s5633_s8 = smov [#allocation4]   ;;  %s5634_s9 = smov [#allocation7]  }
  0x18   :  { %s62_s5 = sshll.u32 %s5633_s8, 4  ;;  %s82_s30 = sshll.u32 %s5634_s9, 4  ;;  %s63_s5 = int_to_ptr.vmem [resolvable:$true] %s62_s5  ;;  %s83_s30 = int_to_ptr.vmem [resolvable:$true] %s82_s30 }
  0x19   :  { %s6900_s10 = sld [smem:[#allocation40_spill]] }
  0x1f   :  { %s5241_s0 = scalar_lea.hbm %s6900_s10, 64 }
  0x20   :  { %p5242_p0 = scmp.ne.s32.totalorder %s6900_s10, %s5241_s0  ;;  %p5245_p1 = scmp.lt.u32.totalorder %s5241_s0, %s6900_s10 }
  0x22   :  { %p5247_p2 = pnand %p5245_p1, %p5242_p0 }
  0x24   :  { %5250 = shalt.err (!%p5247_p2)
}
  0x25   :  { %s5251_s12 = scalar_lea.vmem %s63_s5, 64  ;;  %p5256_p4 = scmp.lt.s32.totalorder %s63_s5, %s63_s5 }
  0x26   :  { %p5252_p3 = scmp.ne.s32.totalorder %s63_s5, %s5251_s12  ;;  %p5257_p5 = scmp.lt.s32.totalorder %s5251_s12, %s5251_s12 }
  0x28   :  { %p5258_p6 = por %p5257_p5, %p5256_p4 }
  0x2a   :  { %p5259_p7 = pnand %p5258_p6, %p5252_p3 }
  0x2c   :  { %5262 = shalt.err (!%p5259_p7)
}
  0x2d   :  { %65 = dma.hbm_to_vmem [thread:$0]  %s6900_s10, 64, %s63_s5, [#allocation5]  }
  0x2e   :  { %s6901_s3 = sld [smem:[#allocation42_spill]] }
  0x34   :  { %s5263_s6 = scalar_lea.hbm %s6901_s3, 16 }
  0x35   :  { %p5264_p8 = scmp.ne.s32.totalorder %s6901_s3, %s5263_s6  ;;  %p5267_p9 = scmp.lt.u32.totalorder %s5263_s6, %s6901_s3 }
  0x37   :  { %p5269_p10 = pnand %p5267_p9, %p5264_p8 }
  0x39   :  { %5272 = shalt.err (!%p5269_p10)
}
  0x3a   :  { %s5273_s7 = scalar_lea.vmem %s83_s30, 16  ;;  %s5277_s12 = scalar_lea.vmem %s83_s30, 32 }
  0x3b   :  { %p5274_p11 = scmp.ne.s32.totalorder %s83_s30, %s5273_s7  ;;  %p5278_p12 = scmp.lt.s32.totalorder %s83_s30, %s83_s30 }
  0x3c   :  { %p5279_p13 = scmp.lt.s32.totalorder %s5277_s12, %s5273_s7 }
  0x3e   :  { %p5280_p0 = por %p5279_p13, %p5278_p12 }
  0x40   :  { %p5281_p1 = pnand %p5280_p0, %p5274_p11 }
  0x42   :  { %5284 = shalt.err (!%p5281_p1)
}
  0x43   :  { %85 = dma.hbm_to_vmem [thread:$0]  %s6901_s3, 16, %s83_s30, [#allocation8]  }
  0x44   :  { %s5635_s1 = smov [#allocation10]   ;;  %s5636_s8 = smov [#allocation13]  }
  0x45   :  { %s104_s4 = sshll.u32 %s5635_s1, 4  ;;  %s126_s9 = sshll.u32 %s5636_s8, 4  ;;  %s105_s4 = int_to_ptr.vmem [resolvable:$true] %s104_s4  ;;  %s127_s9 = int_to_ptr.vmem [resolvable:$true] %s126_s9 }
  0x46   :  { %s6902_s29 = sld [smem:[#allocation44_spill]] }
  0x4c   :  { %s5285_s0 = scalar_lea.hbm %s6902_s29, 16 }
  0x4d   :  { %p5286_p2 = scmp.ne.s32.totalorder %s6902_s29, %s5285_s0  ;;  %p5289_p3 = scmp.lt.u32.totalorder %s5285_s0, %s6902_s29 }
  0x4f   :  { %p5291_p4 = pnand %p5289_p3, %p5286_p2 }
  0x51   :  { %5294 = shalt.err (!%p5291_p4)
}
  0x52   :  { %s5295_s30 = scalar_lea.vmem %s105_s4, 16  ;;  %s5299_s3 = scalar_lea.vmem %s105_s4, 32 }
  0x53   :  { %p5296_p5 = scmp.ne.s32.totalorder %s105_s4, %s5295_s30  ;;  %p5300_p6 = scmp.lt.s32.totalorder %s105_s4, %s105_s4 }
  0x54   :  { %p5301_p7 = scmp.lt.s32.totalorder %s5299_s3, %s5295_s30 }
  0x56   :  { %p5302_p8 = por %p5301_p7, %p5300_p6 }
  0x58   :  { %p5303_p9 = pnand %p5302_p8, %p5296_p5 }
  0x5a   :  { %5306 = shalt.err (!%p5303_p9)
}
  0x5b   :  { %107 = dma.hbm_to_vmem [thread:$0]  %s6902_s29, 16, %s105_s4, [#allocation11]  }
  0x5c   :  { %s6903_s8 = sld [smem:[#allocation46_spill]] }
  0x62   :  { %s5307_s6 = scalar_lea.hbm %s6903_s8, 32 }
  0x63   :  { %p5308_p10 = scmp.ne.s32.totalorder %s6903_s8, %s5307_s6  ;;  %p5311_p11 = scmp.lt.u32.totalorder %s5307_s6, %s6903_s8 }
  0x65   :  { %p5313_p12 = pnand %p5311_p11, %p5308_p10 }
  0x67   :  { %5316 = shalt.err (!%p5313_p12)
}
  0x68   :  { %s5317_s12 = scalar_lea.vmem %s127_s9, 32  ;;  %p5322_p0 = scmp.lt.s32.totalorder %s127_s9, %s127_s9 }
  0x69   :  { %p5318_p13 = scmp.ne.s32.totalorder %s127_s9, %s5317_s12  ;;  %p5323_p1 = scmp.lt.s32.totalorder %s5317_s12, %s5317_s12 }
  0x6b   :  { %p5324_p2 = por %p5323_p1, %p5322_p0 }
  0x6d   :  { %p5325_p3 = pnand %p5324_p2, %p5318_p13 }
  0x6f   :  { %5328 = shalt.err (!%p5325_p3)
}
  0x70   :  { %129 = dma.hbm_to_vmem [thread:$0]  %s6903_s8, 32, %s127_s9, [#allocation14]  }
  0x71   :  { %s5637_s30 = smov [#allocation16]   ;;  %s5638_s5 = smov [#allocation19]  }
  0x72   :  { %s148_s3 = sshll.u32 %s5637_s30, 4  ;;  %s170_s10 = sshll.u32 %s5638_s5, 4  ;;  %s149_s3 = int_to_ptr.vmem [resolvable:$true] %s148_s3  ;;  %s171_s10 = int_to_ptr.vmem [resolvable:$true] %s170_s10 }
  0x73   :  { %s6904_s6 = sld [smem:[#allocation48_spill]] }
  0x79   :  { %s5329_s11 = scalar_lea.hbm %s6904_s6, 32 }
  0x7a   :  { %p5330_p4 = scmp.ne.s32.totalorder %s6904_s6, %s5329_s11  ;;  %p5333_p5 = scmp.lt.u32.totalorder %s5329_s11, %s6904_s6 }
  0x7c   :  { %p5335_p6 = pnand %p5333_p5, %p5330_p4 }
  0x7e   :  { %5338 = shalt.err (!%p5335_p6)
}
  0x7f   :  { %s5339_s9 = scalar_lea.vmem %s149_s3, 32  ;;  %p5344_p8 = scmp.lt.s32.totalorder %s149_s3, %s149_s3 }
  0x80   :  { %p5340_p7 = scmp.ne.s32.totalorder %s149_s3, %s5339_s9  ;;  %p5345_p9 = scmp.lt.s32.totalorder %s5339_s9, %s5339_s9 }
  0x82   :  { %p5346_p10 = por %p5345_p9, %p5344_p8 }
  0x84   :  { %p5347_p11 = pnand %p5346_p10, %p5340_p7 }
  0x86   :  { %5350 = shalt.err (!%p5347_p11)
}
  0x87   :  { %151 = dma.hbm_to_vmem [thread:$0]  %s6904_s6, 32, %s149_s3, [#allocation17]  }
  0x88   :  { %s5351_s5 = scalar_lea.hbm %s6858_s13, 32 }
  0x89   :  { %p5352_p12 = scmp.ne.s32.totalorder %s6858_s13, %s5351_s5  ;;  %p5355_p13 = scmp.lt.u32.totalorder %s5351_s5, %s6858_s13 }
  0x8b   :  { %p5357_p0 = pnand %p5355_p13, %p5352_p12 }
  0x8d   :  { %5360 = shalt.err (!%p5357_p0)
}
  0x8e   :  { %s5361_s2 = scalar_lea.vmem %s171_s10, 32  ;;  %p5366_p2 = scmp.lt.s32.totalorder %s171_s10, %s171_s10 }
  0x8f   :  { %p5362_p1 = scmp.ne.s32.totalorder %s171_s10, %s5361_s2  ;;  %p5367_p3 = scmp.lt.s32.totalorder %s5361_s2, %s5361_s2 }
  0x91   :  { %p5368_p4 = por %p5367_p3, %p5366_p2 }
  0x93   :  { %p5369_p5 = pnand %p5368_p4, %p5362_p1 }
  0x95   :  { %5372 = shalt.err (!%p5369_p5)
}
  0x96   :  { %173 = dma.hbm_to_vmem [thread:$0]  %s6858_s13, 32, %s171_s10, [#allocation20]  }
  0x97   :  { %s5639_s7 = smov [#allocation22]   ;;  %s5373_s4 = scalar_lea.hbm %s6860_s15, 64 }
  0x98   :  { %s192_s12 = sshll.u32 %s5639_s7, 4  ;;  %p5374_p6 = scmp.ne.s32.totalorder %s6860_s15, %s5373_s4  ;;  %s193_s12 = int_to_ptr.vmem [resolvable:$true] %s192_s12 }
  0x99   :  { %p5377_p7 = scmp.lt.u32.totalorder %s5373_s4, %s6860_s15 }
  0x9b   :  { %p5379_p8 = pnand %p5377_p7, %p5374_p6 }
  0x9d   :  { %5382 = shalt.err (!%p5379_p8)
}
  0x9e   :  { %s5383_s1 = scalar_lea.vmem %s193_s12, 64  ;;  %p5388_p10 = scmp.lt.s32.totalorder %s193_s12, %s193_s12 }
  0x9f   :  { %p5384_p9 = scmp.ne.s32.totalorder %s193_s12, %s5383_s1  ;;  %p5389_p11 = scmp.lt.s32.totalorder %s5383_s1, %s5383_s1 }
  0xa1   :  { %p5390_p12 = por %p5389_p11, %p5388_p10 }
  0xa3   :  { %p5391_p13 = pnand %p5390_p12, %p5384_p9 }
  0xa5   :  { %5394 = shalt.err (!%p5391_p13)
}
  0xa6   :  { %195 = dma.hbm_to_vmem [thread:$0]  %s6860_s15, 64, %s193_s12, [#allocation23]  }
  0xa7   :  { %s5640_s11 = smov [#allocation25]   ;;  %s5641_s2 = smov [#allocation2]  }
  0xa8   :  { %s213_s0 = sshll.u32 %s5640_s11, 4  ;;  %s52_s3 = sshll.u32 %s5641_s2, 4  ;;  %s214_s0 = int_to_ptr.vmem [resolvable:$true] %s213_s0  ;;  %s53_s3 = int_to_ptr.vmem [resolvable:$true] %s52_s3 }
  0xa9   :  { %s5395_s9 = scalar_lea.hbm %s6863_s18, 8192 }
  0xaa   :  { %p5396_p0 = scmp.ne.s32.totalorder %s6863_s18, %s5395_s9  ;;  %p5399_p1 = scmp.lt.u32.totalorder %s5395_s9, %s6863_s18 }
  0xac   :  { %p5401_p2 = pnand %p5399_p1, %p5396_p0 }
  0xae   :  { %5404 = shalt.err (!%p5401_p2)
}
  0xaf   :  { %s5405_s15 = scalar_lea.vmem %s214_s0, 8192  ;;  %p5410_p4 = scmp.lt.s32.totalorder %s214_s0, %s214_s0 }
  0xb0   :  { %p5406_p3 = scmp.ne.s32.totalorder %s214_s0, %s5405_s15  ;;  %p5411_p5 = scmp.lt.s32.totalorder %s5405_s15, %s5405_s15 }
  0xb2   :  { %p5412_p6 = por %p5411_p5, %p5410_p4 }
  0xb4   :  { %p5413_p7 = pnand %p5412_p6, %p5406_p3 }
  0xb6   :  { %5416 = shalt.err (!%p5413_p7)
}
  0xb7   :  { %s6885_s12 = smov 256   ;;  %s5643_s5 = smov 16  }
  0xb8   :  { %219 = dma.hbm_to_vmem [thread:$0]  %s6863_s18, 8192, %s214_s0, [#allocation26], %s6885_s12, %s6885_s12, %s5643_s5  }
  0xb9   :  { %s6905_s11 = sld [smem:[#allocation39_spill]] }
  0xbf   :  { %s5417_s2 = scalar_lea.hbm %s6905_s11, 128 }
  0xc0   :  { %p5418_p8 = scmp.ne.s32.totalorder %s6905_s11, %s5417_s2  ;;  %p5421_p9 = scmp.lt.u32.totalorder %s5417_s2, %s6905_s11 }
  0xc2   :  { %p5423_p10 = pnand %p5421_p9, %p5418_p8 }
  0xc4   :  { %5426 = shalt.err (!%p5423_p10)
}
  0xc5   :  { %s5427_s4 = scalar_lea.vmem %s53_s3, 128  ;;  %p5432_p12 = scmp.lt.s32.totalorder %s53_s3, %s53_s3 }
  0xc6   :  { %p5428_p11 = scmp.ne.s32.totalorder %s53_s3, %s5427_s4  ;;  %p5433_p13 = scmp.lt.s32.totalorder %s5427_s4, %s5427_s4 }
  0xc8   :  { %p5434_p0 = por %p5433_p13, %p5432_p12 }
  0xca   :  { %p5435_p1 = pnand %p5434_p0, %p5428_p11 }
  0xcc   :  { %5438 = shalt.err (!%p5435_p1)
}
  0xcd   :  { %55 = dma.hbm_to_vmem [thread:$0]  %s6905_s11, 128, %s53_s3, [#allocation3]  }
  0xce   :  { %s5644_s29 = smov [#allocation6]   ;;  %s5645_s15 = smov [#allocation9]  }
  0xcf   :  { %s72_s30 = sshll.u32 %s5644_s29, 4  ;;  %s91_s28 = sshll.u32 %s5645_s15, 4  ;;  %s73_s30 = int_to_ptr.vmem [resolvable:$true] %s72_s30  ;;  %s92_s28 = int_to_ptr.vmem [resolvable:$true] %s91_s28 }
  0xd0   :  { %s6906_s10 = sld [smem:[#allocation41_spill]] }
  0xd6   :  { %s5439_s2 = scalar_lea.hbm %s6906_s10, 32 }
  0xd7   :  { %p5440_p2 = scmp.ne.s32.totalorder %s6906_s10, %s5439_s2  ;;  %p5443_p3 = scmp.lt.u32.totalorder %s5439_s2, %s6906_s10 }
  0xd9   :  { %p5445_p4 = pnand %p5443_p3, %p5440_p2 }
  0xdb   :  { %5448 = shalt.err (!%p5445_p4)
}
  0xdc   :  { %s5449_s3 = scalar_lea.vmem %s73_s30, 32  ;;  %p5454_p6 = scmp.lt.s32.totalorder %s73_s30, %s73_s30 }
  0xdd   :  { %p5450_p5 = scmp.ne.s32.totalorder %s73_s30, %s5449_s3  ;;  %p5455_p7 = scmp.lt.s32.totalorder %s5449_s3, %s5449_s3 }
  0xdf   :  { %p5456_p8 = por %p5455_p7, %p5454_p6 }
  0xe1   :  { %p5457_p9 = pnand %p5456_p8, %p5450_p5 }
  0xe3   :  { %5460 = shalt.err (!%p5457_p9)
}
  0xe4   :  { %75 = dma.hbm_to_vmem [thread:$0]  %s6906_s10, 32, %s73_s30, [#allocation5]  }
  0xe5   :  { %s6907_s29 = sld [smem:[#allocation43_spill]] }
  0xeb   :  { %s5461_s15 = scalar_lea.hbm %s6907_s29, 512 }
  0xec   :  { %p5462_p10 = scmp.ne.s32.totalorder %s6907_s29, %s5461_s15  ;;  %p5465_p11 = scmp.lt.u32.totalorder %s5461_s15, %s6907_s29 }
  0xee   :  { %p5467_p12 = pnand %p5465_p11, %p5462_p10 }
  0xf0   :  { %5470 = shalt.err (!%p5467_p12)
}
  0xf1   :  { %s5471_s7 = scalar_lea.vmem %s92_s28, 512  ;;  %p5476_p0 = scmp.lt.s32.totalorder %s92_s28, %s92_s28 }
  0xf2   :  { %p5472_p13 = scmp.ne.s32.totalorder %s92_s28, %s5471_s7  ;;  %p5477_p1 = scmp.lt.s32.totalorder %s5471_s7, %s5471_s7 }
  0xf4   :  { %p5478_p2 = por %p5477_p1, %p5476_p0 }
  0xf6   :  { %p5479_p3 = pnand %p5478_p2, %p5472_p13 }
  0xf8   :  { %5482 = shalt.err (!%p5479_p3)
}
  0xf9   :  { %s5646_s30 = smov 64   ;;  %s5647_s10 = smov 4  }
  0xfa   :  { %97 = dma.hbm_to_vmem [thread:$0]  %s6907_s29, 512, %s92_s28, [#allocation8], %s5646_s30, %s5646_s30, %s5647_s10  }
  0xfb   :  { %s5648_s3 = smov [#allocation12]   ;;  %s6908_s0 = sld [smem:[#allocation45_spill]] }
  0xfc   :  { %s113_s11 = sshll.u32 %s5648_s3, 4  ;;  %s114_s11 = int_to_ptr.vmem [resolvable:$true] %s113_s11 }
 0x101   :  { %s5483_s15 = scalar_lea.hbm %s6908_s0, 2048 }
 0x102   :  { %p5484_p4 = scmp.ne.s32.totalorder %s6908_s0, %s5483_s15  ;;  %p5487_p5 = scmp.lt.u32.totalorder %s5483_s15, %s6908_s0 }
 0x104   :  { %p5489_p6 = pnand %p5487_p5, %p5484_p4 }
 0x106   :  { %5492 = shalt.err (!%p5489_p6)
}
 0x107   :  { %s5493_s7 = scalar_lea.vmem %s114_s11, 2048  ;;  %p5498_p8 = scmp.lt.s32.totalorder %s114_s11, %s114_s11 }
 0x108   :  { %p5494_p7 = scmp.ne.s32.totalorder %s114_s11, %s5493_s7  ;;  %p5499_p9 = scmp.lt.s32.totalorder %s5493_s7, %s5493_s7 }
 0x10a   :  { %p5500_p10 = por %p5499_p9, %p5498_p8 }
 0x10c   :  { %p5501_p11 = pnand %p5500_p10, %p5494_p7 }
 0x10e   :  { %5504 = shalt.err (!%p5501_p11)
}
 0x10f   :  { %s5649_s28 = smov 128   ;;  %s5650_s29 = smov 8  }
 0x110   :  { %119 = dma.hbm_to_vmem [thread:$0]  %s6908_s0, 2048, %s114_s11, [#allocation11], %s5649_s28, %s5649_s28, %s5650_s29  }
 0x111   :  { %s5651_s9 = smov [#allocation15]   ;;  %s5652_s3 = smov [#allocation18]  }
 0x112   :  { %s135_s8 = sshll.u32 %s5651_s9, 4  ;;  %s157_s4 = sshll.u32 %s5652_s3, 4  ;;  %s136_s8 = int_to_ptr.vmem [resolvable:$true] %s135_s8  ;;  %s5955_s4 = int_to_ptr.vmem [resolvable:$true] %s157_s4 }
 0x113   :  { %s6909_s1 = sld [smem:[#allocation47_spill]] }
 0x119   :  { %s5505_s13 = scalar_lea.hbm %s6909_s1, 4096 }
 0x11a   :  { %p5506_p12 = scmp.ne.s32.totalorder %s6909_s1, %s5505_s13  ;;  %p5509_p13 = scmp.lt.u32.totalorder %s5505_s13, %s6909_s1 }
 0x11c   :  { %p5511_p0 = pnand %p5509_p13, %p5506_p12 }
 0x11e   :  { %5514 = shalt.err (!%p5511_p0)
}
 0x11f   :  { %s5515_s11 = scalar_lea.vmem %s136_s8, 4096  ;;  %p5520_p2 = scmp.lt.s32.totalorder %s136_s8, %s136_s8 }
 0x120   :  { %p5516_p1 = scmp.ne.s32.totalorder %s136_s8, %s5515_s11  ;;  %p5521_p3 = scmp.lt.s32.totalorder %s5515_s11, %s5515_s11 }
 0x122   :  { %p5522_p4 = por %p5521_p3, %p5520_p2 }
 0x124   :  { %p5523_p5 = pnand %p5522_p4, %p5516_p1 }
 0x126   :  { %5526 = shalt.err (!%p5523_p5)
}
 0x127   :  { %141 = dma.hbm_to_vmem [thread:$0]  %s6909_s1, 4096, %s136_s8, [#allocation14], %s5649_s28, %s5649_s28, %s5650_s29  }
 0x128   :  { %s6910_s12 = sld [smem:[#allocation49_spill]] }
 0x12e   :  { %s5527_s3 = scalar_lea.hbm %s6910_s12, 2048 }
 0x12f   :  { %p5528_p6 = scmp.ne.s32.totalorder %s6910_s12, %s5527_s3  ;;  %p5531_p7 = scmp.lt.u32.totalorder %s5527_s3, %s6910_s12 }
 0x131   :  { %p5533_p8 = pnand %p5531_p7, %p5528_p6 }
 0x133   :  { %5536 = shalt.err (!%p5533_p8)
}
 0x134   :  { %s5537_s6 = scalar_lea.vmem %s5955_s4, 2048  ;;  %p5542_p10 = scmp.lt.s32.totalorder %s5955_s4, %s5955_s4 }
 0x135   :  { %p5538_p9 = scmp.ne.s32.totalorder %s5955_s4, %s5537_s6  ;;  %p5543_p11 = scmp.lt.s32.totalorder %s5537_s6, %s5537_s6 }
 0x137   :  { %p5544_p12 = por %p5543_p11, %p5542_p10 }
 0x139   :  { %p5545_p13 = pnand %p5544_p12, %p5538_p9 }
 0x13b   :  { %5548 = shalt.err (!%p5545_p13)
}
 0x13c   :  { %163 = dma.hbm_to_vmem [thread:$0]  %s6910_s12, 2048, %s5955_s4, [#allocation17], %s5649_s28, %s5649_s28, %s5650_s29  }
 0x13d   :  { %s5653_s7 = smov [#allocation21]   ;;  %s5654_s0 = smov [#allocation24]  }
 0x13e   :  { %s179_s11 = sshll.u32 %s5653_s7, 4  ;;  %s204_s30 = sshll.u32 %s5654_s0, 4  ;;  %s180_s11 = int_to_ptr.vmem [resolvable:$true] %s179_s11  ;;  %s205_s30 = int_to_ptr.vmem [resolvable:$true] %s204_s30 }
 0x13f   :  { %s5549_s3 = scalar_lea.hbm %s6859_s14, 8192 }
 0x140   :  { %p5550_p0 = scmp.ne.s32.totalorder %s6859_s14, %s5549_s3  ;;  %p5553_p1 = scmp.lt.u32.totalorder %s5549_s3, %s6859_s14 }
 0x142   :  { %p5555_p2 = pnand %p5553_p1, %p5550_p0 }
 0x144   :  { %5558 = shalt.err (!%p5555_p2)
}
 0x145   :  { %s5559_s28 = scalar_lea.vmem %s180_s11, 8192  ;;  %p5564_p4 = scmp.lt.s32.totalorder %s180_s11, %s180_s11 }
 0x146   :  { %p5560_p3 = scmp.ne.s32.totalorder %s180_s11, %s5559_s28  ;;  %p5565_p5 = scmp.lt.s32.totalorder %s5559_s28, %s5559_s28 }
 0x148   :  { %p5566_p6 = por %p5565_p5, %p5564_p4 }
 0x14a   :  { %p5567_p7 = pnand %p5566_p6, %p5560_p3 }
 0x14c   :  { %5570 = shalt.err (!%p5567_p7)
}
 0x14d   :  { %s6911_s29 = smov 256   ;;  %s5571_s1 = scalar_lea.hbm %s6862_s17, 64 }
 0x14e   :  { %185 = dma.hbm_to_vmem [thread:$0]  %s6859_s14, 8192, %s180_s11, [#allocation20], %s6911_s29, %s6911_s29, %s5643_s5  }
 0x14f   :  { %p5572_p8 = scmp.ne.s32.totalorder %s6862_s17, %s5571_s1  ;;  %p5575_p9 = scmp.lt.u32.totalorder %s5571_s1, %s6862_s17 }
 0x151   :  { %p5577_p10 = pnand %p5575_p9, %p5572_p8 }
 0x153   :  { %5580 = shalt.err (!%p5577_p10)
}
 0x154   :  { %s5581_s3 = scalar_lea.vmem %s205_s30, 64  ;;  %p5586_p12 = scmp.lt.s32.totalorder %s205_s30, %s205_s30 }
 0x155   :  { %p5582_p11 = scmp.ne.s32.totalorder %s205_s30, %s5581_s3  ;;  %p5587_p13 = scmp.lt.s32.totalorder %s5581_s3, %s5581_s3 }
 0x157   :  { %p5588_p0 = por %p5587_p13, %p5586_p12 }
 0x159   :  { %p5589_p1 = pnand %p5588_p0, %p5582_p11 }
 0x15b   :  { %5592 = shalt.err (!%p5589_p1)
}
 0x15c   :  { %207 = dma.hbm_to_vmem [thread:$0]  %s6862_s17, 64, %s205_s30, [#allocation23]  }
 0x15d   :  { %s5655_s11 = smov [#allocation27]   ;;  %s5593_s2 = scalar_lea.hbm %s6864_s19, 64 }
 0x15e   :  { %s226_s18 = sshll.u32 %s5655_s11, 4  ;;  %p5594_p2 = scmp.ne.s32.totalorder %s6864_s19, %s5593_s2  ;;  %s227_s18 = int_to_ptr.vmem [resolvable:$true] %s226_s18 }
 0x15f   :  { %p5597_p3 = scmp.lt.u32.totalorder %s5593_s2, %s6864_s19 }
 0x161   :  { %p5599_p4 = pnand %p5597_p3, %p5594_p2 }
 0x163   :  { %5602 = shalt.err (!%p5599_p4)
}
 0x164   :  { %s5603_s6 = scalar_lea.vmem %s227_s18, 64  ;;  %p5608_p6 = scmp.lt.s32.totalorder %s227_s18, %s227_s18 }
 0x165   :  { %p5604_p5 = scmp.ne.s32.totalorder %s227_s18, %s5603_s6  ;;  %p5609_p7 = scmp.lt.s32.totalorder %s5603_s6, %s5603_s6 }
 0x167   :  { %p5610_p8 = por %p5609_p7, %p5608_p6 }
 0x169   :  { %p5611_p9 = pnand %p5610_p8, %p5604_p5 }
 0x16b   :  { %5614 = shalt.err (!%p5611_p9)
}
 0x16c   :  { %229 = dma.hbm_to_vmem [thread:$0]  %s6864_s19, 64, %s227_s18, [#allocation26]  }
 0x16d   :  { %5615 = dma.done.wait [#allocation3], 128  }
 0x16e   :  { %5616 = vsyncadd [#allocation3], 4294967168 }
 0x16f   :  { %5617 = dma.done.wait [#allocation5], 96  }
 0x170   :  { %5618 = vsyncadd [#allocation5], 4294967200 }
 0x171   :  { %5619 = dma.done.wait [#allocation8], 528  }
 0x172   :  { %5620 = vsyncadd [#allocation8], 4294966768 }
 0x173   :  { %5621 = dma.done.wait [#allocation11], 2064  }
 0x174   :  { %5622 = vsyncadd [#allocation11], 4294965232 }
 0x175   :  { %5623 = dma.done.wait [#allocation14], 4128  }
 0x176   :  { %5624 = vsyncadd [#allocation14], 4294963168 }
 0x177   :  { %5625 = dma.done.wait [#allocation17], 2080  }
 0x178   :  { %5626 = vsyncadd [#allocation17], 4294965216 }
 0x179   :  { %5627 = dma.done.wait [#allocation20], 8224  }
 0x17a   :  { %5628 = vsyncadd [#allocation20], 4294959072 }
 0x17b   :  { %5629 = dma.done.wait [#allocation23], 128  }
 0x17c   :  { %5630 = vsyncadd [#allocation23], 4294967168 }
 0x17d   :  { %5631 = dma.done.wait [#allocation26], 8256  }
 0x17e   :  { %5632 = vsyncadd [#allocation26], 4294959040  ;;  %v783_v0 = vlaneseq  ;;  %v5656_v1 = vmov 1983009808   ;;  %v5657_v3 = vmov 0   ;;  %v300_v7 = vld [vmem:[#allocation2] sm:$0xff] }
 0x17f   :  { %v806_v2 = vunpack.c.l.s4 %v5656_v1  ;;  %870 = vmatprep.mubr.bf16.mxu0 %v5657_v3  ;;  %911 = vmatprep.mubr.bf16.mxu1 %v5657_v3  ;;  %vm825_vm0 = vcmask 1041408   ;;  %s6912_s1 = sld [smem:[#allocation38_spill]]  ;;  %v302_v10 = vld [vmem:[#allocation6] sm:$0x3]  ;;  %vm821_vm1 = vcmask 31744   ;;  %v5658_v14 = vmov 0.0  }
 0x180   :  { %v6033_v4 = vshrl.u32 %v783_v0, 7  ;;  %v931_v15 = vsel %vm825_vm0, %v302_v10, 0  ;;  %s6913_s10 = sld [smem:[#allocation37_spill]]  ;;  %vm5659_vm2 = vmmov 0   ;;  %v4105_v22 = vld [vmem:[#allocation7] ss:$0 sm:$0xff]  ;;  %v804_v31 = vcombine.high %v300_v7, %v300_v7 }
 0x181   :  { %v807_v5 = vunpack.c.0.s8 %v806_v2  ;;  %vm973_vm3 = vcmask 523264   ;;  %v4674_v35 = vld [vmem:[#allocation9] sm:$0xff]   ;;  %v4675_v36 = vld [vmem:[#allocation9 + $0x8] sm:$0xff]   ;;  %v4676_v37 = vld [vmem:[#allocation9 + $0x10] sm:$0xff]   ;;  %vm4035_vm15 = vcmask 130048   ;;  %s6914_s17 = sld [smem:[#allocation50_spill]] }
 0x182   :  { %v4677_v38 = vld [vmem:[#allocation9 + $0x18] sm:$0xff]   ;;  %v4678_v56 = vld [vmem:[#allocation12] ss:$8 sps:$4 sm:$0xff]   ;;  %v4680_v57 = vld [vmem:[#allocation12 + $0x4] ss:$8 sps:$4 sm:$0xff]  }
 0x183   :  { %v810_v6 = vsub.s32 %v807_v5, %v6033_v4  ;;  %v4683_v58 = vld [vmem:[#allocation12 + $0x14] ss:$8 sps:$4 sm:$0xff]   ;;  %v4681_v59 = vld [vmem:[#allocation12 + $0x10] ss:$8 sps:$4 sm:$0xff]   ;;  %v4686_v5 = vld [vmem:[#allocation12 + $0x24] ss:$8 sps:$4 sm:$0xff]  }
 0x184   :  { %v4107_v60 = vld [vmem:[#allocation10] ss:$0 sm:$0xff]  ;;  %v4690_v10 = vld [vmem:[#allocation12 + $0x40] ss:$8 sps:$4 sm:$0xff]  }
 0x185   :  { %v811_v8 = vrot.slane %v300_v7, %v810_v6  ;;  %v299_v9 = vld [vmem:[%s6912_s1] sm:$0xff]  ;;  %v818_v32 = vrot.slane %v804_v31, %v810_v6  ;;  %v4684_v6 = vld [vmem:[#allocation12 + $0x20] ss:$8 sps:$4 sm:$0xff]  }
 0x186   :  { %v781_v13 = vpack.c.bf16 %v299_v9, %v299_v9  ;;  %v298_v16 = vld [vmem:[%s6913_s10] sm:$0xff] }
 0x187   :  { %v819_v11 = vcombine.high %v811_v8, %v811_v8  ;;  %v827_v12 = vsel %vm825_vm0, %v811_v8, 0  ;;  %v920_v17 = vpack.c.bf16 %v298_v16, %v298_v16  ;;  %v820_v33 = vcombine.high %v818_v32, %v818_v32  ;;  %v4689_v7 = vld [vmem:[#allocation12 + $0x34] ss:$8 sps:$4 sm:$0xff]   ;;  %v4687_v8 = vld [vmem:[#allocation12 + $0x30] ss:$8 sps:$4 sm:$0xff]  }
 0x188   :  { %v833_v34 = vsel %vm825_vm0, %v818_v32, 0  ;;  %v4692_v9 = vld [vmem:[#allocation12 + $0x44] ss:$8 sps:$4 sm:$0xff]   ;;  %v4701_v16 = vld [vmem:[#allocation12 + $0x74] ss:$8 sps:$4 sm:$0xff]  }
 0x189   :  { %4101 = vmatprep.subr.msk.bf16.mxu0 %vm825_vm0, %v819_v11  ;;  %4103 = vmatprep.subr.msk.bf16.mxu1 %vm825_vm0, %v820_v33  ;;  %v4695_v11 = vld [vmem:[#allocation12 + $0x54] ss:$8 sps:$4 sm:$0xff]   ;;  %v4702_v32 = vld [vmem:[#allocation18] ss:$8 sps:$4 sm:$0xff]  }
 0x18a   :  { %839 = vmatpush1.bf16.msra.mxu0 %v827_v12  ;;  %880 = vmatpush1.bf16.msra.mxu1 %v833_v34  ;;  %v4693_v12 = vld [vmem:[#allocation12 + $0x50] ss:$8 sps:$4 sm:$0xff]  }
 0x18b   :  { %4610 = vmatprep.subr.bf16.mxu0 %v5658_v14  ;;  %4616 = vmatprep.subr.bf16.mxu1 %v5658_v14 }
 0x18d   :  { %4102 = vmatmul.mubr.msk.bf16.vlgmr.msra.gmra.mrb[0].mxu0 %vm821_vm1, %v781_v13  ;;  %4104 = vmatmul.mubr.msk.bf16.vlgmr.msra.gmra.mrb[0].mxu1 %vm821_vm1, %v781_v13  ;;  %v4698_v13 = vld [vmem:[#allocation12 + $0x64] ss:$8 sps:$4 sm:$0xff]  }
 0x18e   :  { %4611 = vmatpush3.bf16.msra.mxu0 %v931_v15  ;;  %4612 = vmatprep.mubr.msk.bf16.mxu0 %vm5659_vm2, %v5658_v14  ;;  %v4696_v15 = vld [vmem:[#allocation12 + $0x60] ss:$8 sps:$4 sm:$0xff]  }
 0x18f   :  { %4624 = vmatprep.mubr.msk.bf16.mxu1 %vm5659_vm2, %v5658_v14  ;;  %4617 = vmatpush3.bf16.msra.mxu1 %v4674_v35  ;;  %v4707_v35 = vld [vmem:[#allocation18 + $0x14] ss:$8 sps:$4 sm:$0xff]  }
 0x190   :  { %4618 = vmatprep.subr.bf16.mxu1 %v5658_v14  ;;  %1176 = vmatprep.subr.bf16.mxu0 %v4680_v57  ;;  %v4737_v57 = vld [vmem:[#allocation15 + $0x34] ss:$8 sps:$4 sm:$0xff]  }
 0x193   :  { %4619 = vmatpush3.bf16.msra.mxu1 %v4675_v36  ;;  %v4705_v36 = vld [vmem:[#allocation18 + $0x10] ss:$8 sps:$4 sm:$0xff]  }
 0x194   :  { %4620 = vmatprep.subr.bf16.mxu1 %v5658_v14 }
 0x195   :  { %4613 = vmatmul.mubr.msk.bf16.vlgmr.msra.gmra.mrb[4].mxu0 %vm821_vm1, %v920_v17  ;;  %v4699_v17 = vld [vmem:[#allocation12 + $0x70] ss:$8 sps:$4 sm:$0xff]  }
 0x196   :  { %1208 = vmatprep.mubr.bf16.mxu0 %v5657_v3  ;;  %1177 = vmatpush1.bf16.msra.mxu0 %v4678_v56  ;;  %v4732_v56 = vld [vmem:[#allocation15 + $0x20] ss:$8 sps:$4 sm:$0xff]  }
 0x197   :  { %4621 = vmatpush3.bf16.msra.mxu1 %v4676_v37  ;;  %1178 = vmatprep.subr.bf16.mxu0 %v4683_v58  ;;  %v4710_v37 = vld [vmem:[#allocation18 + $0x24] ss:$8 sps:$4 sm:$0xff]  }
 0x198   :  { %4622 = vmatprep.subr.bf16.mxu1 %v5658_v14  ;;  %v4735_v58 = vld [vmem:[#allocation15 + $0x30] ss:$8 sps:$4 sm:$0xff]  }
 0x19a   :  { %1179 = vmatpush1.bf16.msra.mxu0 %v4681_v59  ;;  %v4740_v59 = vld [vmem:[#allocation15 + $0x44] ss:$8 sps:$4 sm:$0xff]  }
 0x19b   :  { %4623 = vmatpush3.bf16.msra.mxu1 %v4677_v38  ;;  %1180 = vmatprep.subr.bf16.mxu0 %v4686_v5  ;;  %v4708_v38 = vld [vmem:[#allocation18 + $0x20] ss:$8 sps:$4 sm:$0xff]  }
 0x19c   :  { %v4752_v5 = vld [vmem:[#allocation15 + $0x84] ss:$8 sps:$4 sm:$0xff]  }
 0x19e   :  { %1181 = vmatpush1.bf16.msra.mxu0 %v4684_v6  ;;  %v4750_v6 = vld [vmem:[#allocation15 + $0x80] ss:$8 sps:$4 sm:$0xff]  }
 0x19f   :  { %1182 = vmatprep.subr.bf16.mxu0 %v4689_v7  ;;  %v4755_v7 = vld [vmem:[#allocation15 + $0x94] ss:$8 sps:$4 sm:$0xff]  }
 0x1a2   :  { %1183 = vmatpush1.bf16.msra.mxu0 %v4687_v8  ;;  %v4753_v8 = vld [vmem:[#allocation15 + $0x90] ss:$8 sps:$4 sm:$0xff]  }
 0x1a3   :  { %1184 = vmatprep.subr.bf16.mxu0 %v4692_v9  ;;  %v329_v9 = vld [vmem:[#allocation13] sm:$0x3] }
 0x1a6   :  { %1185 = vmatpush1.bf16.msra.mxu0 %v4690_v10  ;;  %v6081_v10 = vsub.s32 0, %v6033_v4 }
 0x1a7   :  { %1186 = vmatprep.subr.bf16.mxu0 %v4695_v11  ;;  %v6084_v11 = vsub.s32 1, %v6033_v4 }
 0x1aa   :  { %1187 = vmatpush1.bf16.msra.mxu0 %v4693_v12  ;;  %v1089_v12 = vrot.slane %v329_v9, %v6081_v10 }
 0x1ab   :  { %1188 = vmatprep.subr.bf16.mxu0 %v4698_v13  ;;  %v1093_v13 = vrot.slane %v329_v9, %v6084_v11  ;;  %v4774_v9 = vld [vmem:[#allocation21] ss:$16 sps:$4 sm:$0xff]  }
 0x1ae   :  { %1189 = vmatpush1.bf16.msra.mxu0 %v4696_v15 }
 0x1af   :  { %1190 = vmatprep.subr.bf16.mxu0 %v4701_v16 }
 0x1b2   :  { %1191 = vmatpush1.bf16.msra.mxu0 %v4699_v17 }
 0x260   :  { %v6051_v18 = vpop.f32.mrb[0].mxu0  ;;  %v6067_v52 = vpop.f32.mrb[0].mxu1 }
 0x261   :  { %v6053_v19 = vpop.f32.mrb[1].mxu0  ;;  %v6069_v53 = vpop.f32.mrb[1].mxu1 }
 0x262   :  { %v876_v20 = vpop.f32.mrb[2].mxu0  ;;  %v917_v54 = vpop.f32.mrb[2].mxu1 }
 0x263   :  { %v877_v21 = vpop.f32.mrb[3].mxu0  ;;  %v918_v55 = vpop.f32.mrb[3].mxu1  ;;  %v4704_v20 = vld [vmem:[#allocation18 + $0x4] ss:$8 sps:$4 sm:$0xff]  }
 0x264   :  { %1548 = vmatprep.subr.bf16.mxu0 %v4704_v20  ;;  %v4729_v54 = vld [vmem:[#allocation15 + $0x10] ss:$8 sps:$4 sm:$0xff]   ;;  %v4734_v55 = vld [vmem:[#allocation15 + $0x24] ss:$8 sps:$4 sm:$0xff]  }
 0x268   :  { %v967_v23 = vpop.f32.mrb[4].mxu0 }
 0x269   :  { %v968_v24 = vadd.f32 %v4105_v22, %v967_v23  ;;  %v4614_v25 = vpop.f32.mrb[5].mxu0 }
 0x26a   :  { %v970_v26 = vpop.f32.mrb[6].mxu0 }
 0x26b   :  { %v4615_v27 = vpop.f32.mrb[7].mxu0  ;;  %v974_v28 = vsel %vm973_vm3, %v968_v24, 0.0  ;;  %v979_v29 = vmul.f32 %v968_v24, %v968_v24 }
 0x26c   :  { %975 = vadd.xlane.f32.xlu0 %v974_v28 }
 0x26d   :  { %v980_v30 = vsel %vm973_vm3, %v979_v29, 0.0 }
 0x270   :  { %981 = vadd.xlane.f32.xlu0 %v980_v30 }
 0x2f9   :  { %v976_v39 = vpop.xlane.xlu0 %975 }
 0x2fa   :  { %v978_v40 = vmul.f32 0.015625, %v976_v39  ;;  %v4713_v39 = vld [vmem:[#allocation18 + $0x34] ss:$8 sps:$4 sm:$0xff]  }
 0x2fc   :  { %v985_v42 = vmul.f32 %v978_v40, %v978_v40  ;;  %v984_v46 = vsub.f32 %v968_v24, %v978_v40  ;;  %v4711_v40 = vld [vmem:[#allocation18 + $0x30] ss:$8 sps:$4 sm:$0xff]  }
 0x2fd   :  { %v982_v41 = vpop.xlane.xlu0 %981 }
 0x2fe   :  { %v983_v43 = vmul.f32 0.015625, %v982_v41  ;;  %v4716_v41 = vld [vmem:[#allocation18 + $0x44] ss:$8 sps:$4 sm:$0xff]  }
 0x300   :  { %v986_v44 = vsub.f32 %v983_v43, %v985_v42  ;;  %v4714_v42 = vld [vmem:[#allocation18 + $0x40] ss:$8 sps:$4 sm:$0xff]   ;;  %v4719_v43 = vld [vmem:[#allocation18 + $0x54] ss:$8 sps:$4 sm:$0xff]  }
 0x302   :  { %v987_v45 = vadd.f32 1e-05, %v986_v44  ;;  %v4717_v44 = vld [vmem:[#allocation18 + $0x50] ss:$8 sps:$4 sm:$0xff]  }
 0x304   :  { %5227 = vrsqrt.f32 %v987_v45  ;;  %v4722_v45 = vld [vmem:[#allocation18 + $0x64] ss:$8 sps:$4 sm:$0xff]  }
 0x30e   :  { %v5228_v47 = vpop.eup %5227 }
 0x30f   :  { %v989_v48 = vmul.f32 %v5228_v47, %v984_v46  ;;  %v4725_v46 = vld [vmem:[#allocation18 + $0x74] ss:$8 sps:$4 sm:$0xff]   ;;  %v4723_v47 = vld [vmem:[#allocation18 + $0x70] ss:$8 sps:$4 sm:$0xff]  }
 0x311   :  { %vm990_vm4 = vcmp.ge.f32.partialorder %v989_v48, 0.0  ;;  %v991_v49 = vmul.f32 0.01, %v989_v48 }
 0x313   :  { %v992_v50 = vsel %vm990_vm4, %v989_v48, %v991_v49  ;;  %v4726_v49 = vld [vmem:[#allocation15] ss:$8 sps:$4 sm:$0xff]  }
 0x314   :  { %v993_v51 = vpack.c.bf16 %v992_v50, %v992_v50  ;;  %v4728_v50 = vld [vmem:[#allocation15 + $0x4] ss:$8 sps:$4 sm:$0xff]  }
 0x315   :  { %1415 = vmatprep.subr.bf16.mxu1 %v4728_v50  ;;  %v4771_v50 = vld [vmem:[#allocation15 + $0xf0] ss:$8 sps:$4 sm:$0xff]  }
 0x316   :  { %4625 = vmatmul.mubr.msk.bf16.vlgmr.msra.gmra.mrb[4].mxu1 %vm973_vm3, %v993_v51  ;;  %v4731_v51 = vld [vmem:[#allocation15 + $0x14] ss:$8 sps:$4 sm:$0xff]  }
 0x317   :  { %1416 = vmatpush1.bf16.msra.mxu1 %v4726_v49  ;;  %v4773_v49 = vld [vmem:[#allocation15 + $0xf4] ss:$8 sps:$4 sm:$0xff]  }
 0x318   :  { %1417 = vmatprep.subr.bf16.mxu1 %v4731_v51 }
 0x31b   :  { %1418 = vmatpush1.bf16.msra.mxu1 %v4729_v54 }
 0x31c   :  { %1419 = vmatprep.subr.bf16.mxu1 %v4734_v55 }
 0x31f   :  { %1420 = vmatpush1.bf16.msra.mxu1 %v4732_v56 }
 0x320   :  { %1421 = vmatprep.subr.bf16.mxu1 %v4737_v57 }
 0x323   :  { %1422 = vmatpush1.bf16.msra.mxu1 %v4735_v58 }
 0x324   :  { %1423 = vmatprep.subr.bf16.mxu1 %v4740_v59 }
 0x3e9   :  { %v1061_v61 = vpop.f32.mrb[4].mxu1 }
 0x3ea   :  { %v6071_v62 = vadd.f32 %v4107_v60, %v1061_v61  ;;  %v4626_v63 = vpop.f32.mrb[5].mxu1  ;;  %v4738_v60 = vld [vmem:[#allocation15 + $0x40] ss:$8 sps:$4 sm:$0xff]   ;;  %v4743_v61 = vld [vmem:[#allocation15 + $0x54] ss:$8 sps:$4 sm:$0xff]  }
 0x3eb   :  { %v1064_v0 = vpop.f32.mrb[6].mxu1  ;;  %1424 = vmatpush1.bf16.msra.mxu1 %v4738_v60  ;;  %v4746_v63 = vld [vmem:[#allocation15 + $0x64] ss:$8 sps:$4 sm:$0xff]  }
 0x3ec   :  { %1067 = vadd.xlane.f32.xlu1 %v6071_v62  ;;  %v4627_v1 = vpop.f32.mrb[7].mxu1  ;;  %v1071_v2 = vmul.f32 %v6071_v62, %v6071_v62  ;;  %v1456_v48 = vpack.c.bf16 %v6071_v62, %v6071_v62  ;;  %1425 = vmatprep.subr.bf16.mxu1 %v4743_v61  ;;  %v4744_v0 = vld [vmem:[#allocation15 + $0x60] ss:$8 sps:$4 sm:$0xff]  }
 0x3ed   :  { %v4749_v1 = vld [vmem:[#allocation15 + $0x74] ss:$8 sps:$4 sm:$0xff]  }
 0x3f0   :  { %1072 = vadd.xlane.f32.xlu1 %v1071_v2  ;;  %v4747_v2 = vld [vmem:[#allocation15 + $0x70] ss:$8 sps:$4 sm:$0xff]  }
 0x479   :  { %v1068_v21 = vpop.xlane.xlu1 %1067 }
 0x47a   :  { %v1070_v22 = vmul.f32 0.0078125, %v1068_v21 }
 0x47c   :  { %v1076_v24 = vmul.f32 %v1070_v22, %v1070_v22  ;;  %v1075_v28 = vsub.f32 %v6071_v62, %v1070_v22  ;;  %v4741_v62 = vld [vmem:[#allocation15 + $0x50] ss:$8 sps:$4 sm:$0xff]  }
 0x47d   :  { %v1073_v23 = vpop.xlane.xlu1 %1072  ;;  %1426 = vmatpush1.bf16.msra.mxu1 %v4741_v62 }
 0x47e   :  { %v1074_v25 = vmul.f32 0.0078125, %v1073_v23  ;;  %1427 = vmatprep.subr.bf16.mxu1 %v4746_v63 }
 0x480   :  { %v1077_v26 = vsub.f32 %v1074_v25, %v1076_v24 }
 0x481   :  { %1428 = vmatpush1.bf16.msra.mxu1 %v4744_v0 }
 0x482   :  { %v1078_v27 = vadd.f32 1e-05, %v1077_v26  ;;  %1429 = vmatprep.subr.bf16.mxu1 %v4749_v1 }
 0x484   :  { %5229 = vrsqrt.f32 %v1078_v27  ;;  %v4758_v27 = vld [vmem:[#allocation15 + $0xa4] ss:$8 sps:$4 sm:$0xff]  }
 0x485   :  { %1430 = vmatpush1.bf16.msra.mxu1 %v4747_v2 }
 0x486   :  { %1431 = vmatprep.subr.bf16.mxu1 %v4752_v5 }
 0x489   :  { %1432 = vmatpush1.bf16.msra.mxu1 %v4750_v6 }
 0x48a   :  { %1433 = vmatprep.subr.bf16.mxu1 %v4755_v7 }
 0x48d   :  { %1434 = vmatpush1.bf16.msra.mxu1 %v4753_v8 }
 0x48e   :  { %v5230_v29 = vpop.eup %5229  ;;  %1435 = vmatprep.subr.bf16.mxu1 %v4758_v27  ;;  %v4797_v27 = vld [vmem:[#allocation21 + $0x6c] ss:$16 sps:$4 sm:$0xff]  }
 0x48f   :  { %v1080_v30 = vmul.f32 %v5230_v29, %v1075_v28  ;;  %v4756_v28 = vld [vmem:[#allocation15 + $0xa0] ss:$8 sps:$4 sm:$0xff]  }
 0x490   :  { %v379_v29 = vld [vmem:[#allocation19] sm:$0x3] }
 0x491   :  { %vm1081_vm5 = vcmp.ge.f32.partialorder %v1080_v30, 0.0  ;;  %v1082_v31 = vmul.f32 0.01, %v1080_v30  ;;  %1436 = vmatpush1.bf16.msra.mxu1 %v4756_v28  ;;  %v4792_v28 = vld [vmem:[#allocation21 + $0x60] ss:$16 sps:$4 sm:$0xff]  }
 0x493   :  { %v1083_v33 = vsel %vm1081_vm5, %v1080_v30, %v1082_v31  ;;  %v4761_v30 = vld [vmem:[#allocation15 + $0xb4] ss:$8 sps:$4 sm:$0xff]   ;;  %v4759_v31 = vld [vmem:[#allocation15 + $0xb0] ss:$8 sps:$4 sm:$0xff]  }
 0x494   :  { %v1084_v34 = vpack.c.bf16 %v1083_v33, %v1083_v33  ;;  %1437 = vmatprep.subr.bf16.mxu1 %v4761_v30  ;;  %v1461_v33 = vrot.slane %v379_v29, %v6081_v10  ;;  %v4800_v30 = vld [vmem:[#allocation21 + $0x84] ss:$16 sps:$4 sm:$0xff]  }
 0x495   :  { %1438 = vmatpush1.bf16.msra.mxu1 %v4759_v31  ;;  %v4803_v31 = vld [vmem:[#allocation21 + $0x8c] ss:$16 sps:$4 sm:$0xff]  }
 0x496   :  { %1209 = vmatmul.mubr.bf16.vlgmr.msra.gmra.mrb[8].mxu0 %v1084_v34  ;;  %v4762_v34 = vld [vmem:[#allocation15 + $0xc0] ss:$8 sps:$4 sm:$0xff]  }
 0x497   :  { %1549 = vmatpush1.bf16.msra.mxu0 %v4702_v32  ;;  %1580 = vmatprep.mubr.bf16.mxu0 %v5657_v3  ;;  %v4720_v3 = vld [vmem:[#allocation18 + $0x60] ss:$8 sps:$4 sm:$0xff]  }
 0x498   :  { %1550 = vmatprep.subr.bf16.mxu0 %v4707_v35  ;;  %v4764_v32 = vld [vmem:[#allocation15 + $0xc4] ss:$8 sps:$4 sm:$0xff]   ;;  %v1465_v35 = vrot.slane %v379_v29, %v6084_v11 }
 0x499   :  { %1439 = vmatprep.subr.bf16.mxu1 %v4764_v32  ;;  %v4795_v29 = vld [vmem:[#allocation21 + $0x68] ss:$16 sps:$4 sm:$0xff]   ;;  %v4798_v32 = vld [vmem:[#allocation21 + $0x80] ss:$16 sps:$4 sm:$0xff]  }
 0x49a   :  { %1440 = vmatpush1.bf16.msra.mxu1 %v4762_v34  ;;  %v4806_v34 = vld [vmem:[#allocation21 + $0xa4] ss:$16 sps:$4 sm:$0xff]  }
 0x49b   :  { %1551 = vmatpush1.bf16.msra.mxu0 %v4705_v36  ;;  %v4767_v36 = vld [vmem:[#allocation15 + $0xd4] ss:$8 sps:$4 sm:$0xff]  }
 0x49c   :  { %1552 = vmatprep.subr.bf16.mxu0 %v4710_v37  ;;  %1441 = vmatprep.subr.bf16.mxu1 %v4767_v36  ;;  %v4804_v36 = vld [vmem:[#allocation21 + $0xa0] ss:$16 sps:$4 sm:$0xff]  }
 0x49f   :  { %1553 = vmatpush1.bf16.msra.mxu0 %v4708_v38 }
 0x4a0   :  { %1554 = vmatprep.subr.bf16.mxu0 %v4713_v39 }
 0x4a3   :  { %1555 = vmatpush1.bf16.msra.mxu0 %v4711_v40  ;;  %v4765_v40 = vld [vmem:[#allocation15 + $0xd0] ss:$8 sps:$4 sm:$0xff]  }
 0x4a4   :  { %1556 = vmatprep.subr.bf16.mxu0 %v4716_v41  ;;  %1442 = vmatpush1.bf16.msra.mxu1 %v4765_v40  ;;  %v4815_v40 = vld [vmem:[#allocation21 + $0xcc] ss:$16 sps:$4 sm:$0xff]  }
 0x4a7   :  { %1557 = vmatpush1.bf16.msra.mxu0 %v4714_v42 }
 0x4a8   :  { %1558 = vmatprep.subr.bf16.mxu0 %v4719_v43  ;;  %v4770_v43 = vld [vmem:[#allocation15 + $0xe4] ss:$8 sps:$4 sm:$0xff]  }
 0x4a9   :  { %1443 = vmatprep.subr.bf16.mxu1 %v4770_v43  ;;  %v4813_v43 = vld [vmem:[#allocation21 + $0xc8] ss:$16 sps:$4 sm:$0xff]  }
 0x4ab   :  { %1559 = vmatpush1.bf16.msra.mxu0 %v4717_v44 }
 0x4ac   :  { %1560 = vmatprep.subr.bf16.mxu0 %v4722_v45 }
 0x4af   :  { %1561 = vmatpush1.bf16.msra.mxu0 %v4720_v3 }
 0x4b0   :  { %1562 = vmatprep.subr.bf16.mxu0 %v4725_v46 }
 0x4b3   :  { %1563 = vmatpush1.bf16.msra.mxu0 %v4723_v47  ;;  %v4768_v47 = vld [vmem:[#allocation15 + $0xe0] ss:$8 sps:$4 sm:$0xff]  }
 0x4b4   :  { %1444 = vmatpush1.bf16.msra.mxu1 %v4768_v47  ;;  %v4824_v47 = vld [vmem:[#allocation21 + $0x104] ss:$16 sps:$4 sm:$0xff]  }
 0x4b5   :  { %1445 = vmatprep.subr.bf16.mxu1 %v4773_v49  ;;  %v4822_v49 = vld [vmem:[#allocation21 + $0x100] ss:$16 sps:$4 sm:$0xff]  }
 0x4b6   :  { %1581 = vmatmul.mubr.bf16.vlgmr.msra.gmra.mrb[12].mxu0 %v1456_v48 }
 0x4b8   :  { %1446 = vmatpush1.bf16.msra.mxu1 %v4771_v50  ;;  %v4825_v50 = vld [vmem:[#allocation21 + $0x108] ss:$16 sps:$4 sm:$0xff]  }
 0x569   :  { %v1210_v15 = vpop.f32.mrb[8].mxu0 }
 0x56a   :  { %v6088_v16 = vadd.f32 %v1210_v15, %v1089_v12  ;;  %v1212_v17 = vpop.f32.mrb[9].mxu0  ;;  %v4776_v12 = vld [vmem:[#allocation21 + $0x4] ss:$16 sps:$4 sm:$0xff]   ;;  %v4779_v15 = vld [vmem:[#allocation21 + $0xc] ss:$16 sps:$4 sm:$0xff]  }
 0x56b   :  { %v1213_v20 = vadd.f32 %v1212_v17, %v1093_v13  ;;  %v1214_v21 = vpop.f32.mrb[10].mxu0  ;;  %v4777_v13 = vld [vmem:[#allocation21 + $0x8] ss:$16 sps:$4 sm:$0xff]   ;;  %v4782_v17 = vld [vmem:[#allocation21 + $0x24] ss:$16 sps:$4 sm:$0xff]   ;;  %1976 = vmatprep.subr.bf16.mxu0 %v4776_v12  ;;  %2017 = vmatprep.subr.bf16.mxu1 %v4779_v15 }
 0x56c   :  { %v1215_v22 = vpop.f32.mrb[11].mxu0  ;;  %v1222_v23 = vmul.f32 %v6088_v16, %v6088_v16  ;;  %1977 = vmatpush1.bf16.msra.mxu0 %v4774_v9  ;;  %v4783_v21 = vld [vmem:[#allocation21 + $0x28] ss:$16 sps:$4 sm:$0xff]  }
 0x56d   :  { %v1217_v24 = vadd.f32 %v1213_v20, %v6088_v16  ;;  %v1223_v25 = vmul.f32 %v1213_v20, %v1213_v20  ;;  %1978 = vmatprep.subr.bf16.mxu0 %v4782_v17  ;;  %v4788_v22 = vld [vmem:[#allocation21 + $0x44] ss:$16 sps:$4 sm:$0xff]  }
 0x56f   :  { %1218 = vadd.xlane.f32.xlu0 %v1217_v24  ;;  %v1224_v26 = vadd.f32 %v1223_v25, %v1222_v23  ;;  %v4791_v23 = vld [vmem:[#allocation21 + $0x4c] ss:$16 sps:$4 sm:$0xff]   ;;  %v4786_v24 = vld [vmem:[#allocation21 + $0x40] ss:$16 sps:$4 sm:$0xff]   ;;  %v4789_v25 = vld [vmem:[#allocation21 + $0x48] ss:$16 sps:$4 sm:$0xff]  }
 0x571   :  { %1225 = vadd.xlane.f32.xlu1 %v1224_v26  ;;  %v4794_v26 = vld [vmem:[#allocation21 + $0x64] ss:$16 sps:$4 sm:$0xff]  }
 0x589   :  { %v1582_v37 = vpop.f32.mrb[12].mxu0 }
 0x58a   :  { %v6095_v38 = vadd.f32 %v1582_v37, %v1461_v33  ;;  %v1584_v39 = vpop.f32.mrb[13].mxu0  ;;  %v4801_v33 = vld [vmem:[#allocation21 + $0x88] ss:$16 sps:$4 sm:$0xff]  }
 0x58b   :  { %v6097_v41 = vadd.f32 %v1584_v39, %v1465_v35  ;;  %v1586_v42 = vpop.f32.mrb[14].mxu0  ;;  %v4809_v35 = vld [vmem:[#allocation21 + $0xac] ss:$16 sps:$4 sm:$0xff]   ;;  %v4807_v37 = vld [vmem:[#allocation21 + $0xa8] ss:$16 sps:$4 sm:$0xff]  }
 0x58c   :  { %v1587_v44 = vpop.f32.mrb[15].mxu0  ;;  %v1593_v45 = vmul.f32 %v6095_v38, %v6095_v38  ;;  %v4812_v39 = vld [vmem:[#allocation21 + $0xc4] ss:$16 sps:$4 sm:$0xff]   ;;  %v4810_v42 = vld [vmem:[#allocation21 + $0xc0] ss:$16 sps:$4 sm:$0xff]  }
 0x58d   :  { %v1589_v3 = vadd.f32 %v6097_v41, %v6095_v38  ;;  %v1594_v46 = vmul.f32 %v6097_v41, %v6097_v41  ;;  %v4818_v44 = vld [vmem:[#allocation21 + $0xe4] ss:$16 sps:$4 sm:$0xff]  }
 0x58f   :  { %1590 = vadd.xlane.f32.xlu0 %v1589_v3  ;;  %v1595_v48 = vadd.f32 %v1594_v46, %v1593_v45  ;;  %v4821_v45 = vld [vmem:[#allocation21 + $0xec] ss:$16 sps:$4 sm:$0xff]   ;;  %v4816_v3 = vld [vmem:[#allocation21 + $0xe0] ss:$16 sps:$4 sm:$0xff]   ;;  %v4819_v46 = vld [vmem:[#allocation21 + $0xe8] ss:$16 sps:$4 sm:$0xff]  }
 0x591   :  { %1596 = vadd.xlane.f32.xlu1 %v1595_v48  ;;  %v4827_v48 = vld [vmem:[#allocation21 + $0x10c] ss:$16 sps:$4 sm:$0xff]  }
 0x5fc   :  { %v1219_v51 = vpop.xlane.xlu0 %1218 }
 0x5fd   :  { %v1221_v54 = vmul.f32 0.00390625, %v1219_v51  ;;  %v4830_v51 = vld [vmem:[#allocation21 + $0x124] ss:$16 sps:$4 sm:$0xff]  }
 0x5fe   :  { %v1226_v55 = vpop.xlane.xlu1 %1225 }
 0x5ff   :  { %v1227_v56 = vmul.f32 0.00390625, %v1226_v55  ;;  %v1230_v57 = vmul.f32 %v1221_v54, %v1221_v54  ;;  %v1228_v60 = vsub.f32 %v6088_v16, %v1221_v54  ;;  %v1229_v61 = vsub.f32 %v1213_v20, %v1221_v54  ;;  %v4785_v16 = vld [vmem:[#allocation21 + $0x2c] ss:$16 sps:$4 sm:$0xff]   ;;  %v4780_v20 = vld [vmem:[#allocation21 + $0x20] ss:$16 sps:$4 sm:$0xff]  }
 0x600   :  { %1979 = vmatpush1.bf16.msra.mxu0 %v4780_v20  ;;  %v4833_v54 = vld [vmem:[#allocation21 + $0x12c] ss:$16 sps:$4 sm:$0xff]   ;;  %v4828_v55 = vld [vmem:[#allocation21 + $0x120] ss:$16 sps:$4 sm:$0xff]  }
 0x601   :  { %v1231_v58 = vsub.f32 %v1227_v56, %v1230_v57  ;;  %1980 = vmatprep.subr.bf16.mxu0 %v4788_v22  ;;  %v4831_v56 = vld [vmem:[#allocation21 + $0x128] ss:$16 sps:$4 sm:$0xff]  }
 0x603   :  { %v1232_v59 = vadd.f32 1e-05, %v1231_v58 }
 0x604   :  { %1981 = vmatpush1.bf16.msra.mxu0 %v4786_v24 }
 0x605   :  { %5231 = vrsqrt.f32 %v1232_v59  ;;  %1982 = vmatprep.subr.bf16.mxu0 %v4794_v26  ;;  %v4839_v26 = vld [vmem:[#allocation21 + $0x14c] ss:$16 sps:$4 sm:$0xff]  }
 0x608   :  { %1983 = vmatpush1.bf16.msra.mxu0 %v4792_v28  ;;  %v4837_v28 = vld [vmem:[#allocation21 + $0x148] ss:$16 sps:$4 sm:$0xff]  }
 0x609   :  { %1984 = vmatprep.subr.bf16.mxu0 %v4800_v30  ;;  %v4845_v30 = vld [vmem:[#allocation21 + $0x16c] ss:$16 sps:$4 sm:$0xff]  }
 0x60c   :  { %1985 = vmatpush1.bf16.msra.mxu0 %v4798_v32  ;;  %v4843_v32 = vld [vmem:[#allocation21 + $0x168] ss:$16 sps:$4 sm:$0xff]  }
 0x60d   :  { %1986 = vmatprep.subr.bf16.mxu0 %v4806_v34  ;;  %v4846_v34 = vld [vmem:[#allocation21 + $0x180] ss:$16 sps:$4 sm:$0xff]  }
 0x60f   :  { %v5232_v62 = vpop.eup %5231 }
 0x610   :  { %v1235_v63 = vmul.f32 %v5232_v62, %v1229_v61  ;;  %v1234_v0 = vmul.f32 %v5232_v62, %v1228_v60  ;;  %1987 = vmatpush1.bf16.msra.mxu0 %v4804_v36  ;;  %v4851_v36 = vld [vmem:[#allocation21 + $0x18c] ss:$16 sps:$4 sm:$0xff]  }
 0x611   :  { %1988 = vmatprep.subr.bf16.mxu0 %v4812_v39  ;;  %v4857_v39 = vld [vmem:[#allocation21 + $0x1ac] ss:$16 sps:$4 sm:$0xff]  }
 0x612   :  { %vm1237_vm6 = vcmp.ge.f32.partialorder %v1235_v63, 0.0  ;;  %v1239_v1 = vmul.f32 0.01, %v1235_v63  ;;  %vm1236_vm7 = vcmp.ge.f32.partialorder %v1234_v0, 0.0  ;;  %v1238_v2 = vmul.f32 0.01, %v1234_v0 }
 0x614   :  { %v1241_v5 = vsel %vm1237_vm6, %v1235_v63, %v1239_v1  ;;  %v1240_v6 = vsel %vm1236_vm7, %v1234_v0, %v1238_v2  ;;  %1989 = vmatpush1.bf16.msra.mxu0 %v4810_v42  ;;  %v362_v0 = vld [vmem:[#allocation16] sm:$0x3]  ;;  %v4855_v42 = vld [vmem:[#allocation21 + $0x1a8] ss:$16 sps:$4 sm:$0xff]  }
 0x615   :  { %v1243_v7 = vpack.c.bf16 %v1241_v5, %v1241_v5  ;;  %v1242_v8 = vpack.c.bf16 %v1240_v6, %v1240_v6  ;;  %1990 = vmatprep.subr.bf16.mxu0 %v4818_v44  ;;  %v1248_v1 = vrot.slane %v362_v0, %v6081_v10  ;;  %v1252_v5 = vrot.slane %v362_v0, %v6084_v11  ;;  %v4863_v44 = vld [vmem:[#allocation21 + $0x1cc] ss:$16 sps:$4 sm:$0xff]  }
 0x617   :  { %1447 = vmatprep.mubr.bf16.mxu1 %v1243_v7 }
 0x618   :  { %1448 = vmatmul.mubr.bf16.vlgmr.msra.gmra.mrb[8].mxu1 %v1242_v8  ;;  %1991 = vmatpush1.bf16.msra.mxu0 %v4816_v3  ;;  %v4861_v3 = vld [vmem:[#allocation21 + $0x1c8] ss:$16 sps:$4 sm:$0xff]  }
 0x619   :  { %2018 = vmatpush1.bf16.msra.mxu1 %v4777_v13  ;;  %1992 = vmatprep.subr.bf16.mxu0 %v4824_v47  ;;  %v4869_v47 = vld [vmem:[#allocation21 + $0x1ec] ss:$16 sps:$4 sm:$0xff]  }
 0x61a   :  { %2019 = vmatprep.subr.bf16.mxu1 %v4785_v16 }
 0x61c   :  { %1993 = vmatpush1.bf16.msra.mxu0 %v4822_v49  ;;  %v1591_v57 = vpop.xlane.xlu0 %1590  ;;  %v4867_v49 = vld [vmem:[#allocation21 + $0x1e8] ss:$16 sps:$4 sm:$0xff]  }
 0x61d   :  { %2020 = vmatpush1.bf16.msra.mxu1 %v4783_v21  ;;  %1994 = vmatprep.subr.bf16.mxu0 %v4830_v51  ;;  %v1592_v58 = vmul.f32 0.00390625, %v1591_v57 }
 0x61e   :  { %2021 = vmatprep.subr.bf16.mxu1 %v4791_v23  ;;  %v1597_v59 = vpop.xlane.xlu1 %1596 }
 0x61f   :  { %v1598_v60 = vmul.f32 0.00390625, %v1597_v59  ;;  %v1601_v61 = vmul.f32 %v1592_v58, %v1592_v58  ;;  %v1599_v6 = vsub.f32 %v6095_v38, %v1592_v58  ;;  %v1600_v7 = vsub.f32 %v6097_v41, %v1592_v58 }
 0x620   :  { %1995 = vmatpush1.bf16.msra.mxu0 %v4828_v55 }
 0x621   :  { %2022 = vmatpush1.bf16.msra.mxu1 %v4789_v25  ;;  %v1602_v62 = vsub.f32 %v1598_v60, %v1601_v61  ;;  %v4836_v25 = vld [vmem:[#allocation21 + $0x144] ss:$16 sps:$4 sm:$0xff]  }
 0x622   :  { %2023 = vmatprep.subr.bf16.mxu1 %v4797_v27  ;;  %v4834_v27 = vld [vmem:[#allocation21 + $0x140] ss:$16 sps:$4 sm:$0xff]   ;;  %1996 = vmatprep.subr.bf16.mxu0 %v4836_v25  ;;  %v4890_v25 = vld [vmem:[%s6861_s16 + $0x64] ss:$16 sps:$4 sm:$0xff]  }
 0x623   :  { %v1603_v63 = vadd.f32 1e-05, %v1602_v62 }
 0x624   :  { %1997 = vmatpush1.bf16.msra.mxu0 %v4834_v27  ;;  %v4888_v27 = vld [vmem:[%s6861_s16 + $0x60] ss:$16 sps:$4 sm:$0xff]  }
 0x625   :  { %2024 = vmatpush1.bf16.msra.mxu1 %v4795_v29  ;;  %5233 = vrsqrt.f32 %v1603_v63  ;;  %v4842_v29 = vld [vmem:[#allocation21 + $0x164] ss:$16 sps:$4 sm:$0xff]  }
 0x626   :  { %2025 = vmatprep.subr.bf16.mxu1 %v4803_v31  ;;  %v4840_v31 = vld [vmem:[#allocation21 + $0x160] ss:$16 sps:$4 sm:$0xff]   ;;  %1998 = vmatprep.subr.bf16.mxu0 %v4842_v29  ;;  %v4896_v29 = vld [vmem:[%s6861_s16 + $0x84] ss:$16 sps:$4 sm:$0xff]  }
 0x628   :  { %1999 = vmatpush1.bf16.msra.mxu0 %v4840_v31  ;;  %v4894_v31 = vld [vmem:[%s6861_s16 + $0x80] ss:$16 sps:$4 sm:$0xff]  }
 0x629   :  { %2026 = vmatpush1.bf16.msra.mxu1 %v4801_v33  ;;  %v4848_v33 = vld [vmem:[#allocation21 + $0x184] ss:$16 sps:$4 sm:$0xff]  }
 0x62a   :  { %2027 = vmatprep.subr.bf16.mxu1 %v4809_v35  ;;  %v4849_v35 = vld [vmem:[#allocation21 + $0x188] ss:$16 sps:$4 sm:$0xff]   ;;  %2000 = vmatprep.subr.bf16.mxu0 %v4848_v33  ;;  %v4902_v33 = vld [vmem:[%s6861_s16 + $0xa4] ss:$16 sps:$4 sm:$0xff]  }
 0x62c   :  { %2001 = vmatpush1.bf16.msra.mxu0 %v4846_v34  ;;  %v4905_v34 = vld [vmem:[%s6861_s16 + $0x2a4] ss:$16 sps:$4 sm:$0xff]  }
 0x62d   :  { %2028 = vmatpush1.bf16.msra.mxu1 %v4807_v37  ;;  %v4854_v37 = vld [vmem:[#allocation21 + $0x1a4] ss:$16 sps:$4 sm:$0xff]  }
 0x62e   :  { %2029 = vmatprep.subr.bf16.mxu1 %v4815_v40  ;;  %v4852_v40 = vld [vmem:[#allocation21 + $0x1a0] ss:$16 sps:$4 sm:$0xff]   ;;  %2002 = vmatprep.subr.bf16.mxu0 %v4854_v37  ;;  %v4908_v37 = vld [vmem:[%s6861_s16 + $0xc4] ss:$16 sps:$4 sm:$0xff]  }
 0x62f   :  { %v5234_v2 = vpop.eup %5233 }
 0x630   :  { %v1605_v12 = vmul.f32 %v5234_v2, %v1599_v6  ;;  %v1606_v17 = vmul.f32 %v5234_v2, %v1600_v7  ;;  %2003 = vmatpush1.bf16.msra.mxu0 %v4852_v40  ;;  %v4906_v40 = vld [vmem:[%s6861_s16 + $0xc0] ss:$16 sps:$4 sm:$0xff]  }
 0x631   :  { %2030 = vmatpush1.bf16.msra.mxu1 %v4813_v43  ;;  %v4860_v43 = vld [vmem:[#allocation21 + $0x1c4] ss:$16 sps:$4 sm:$0xff]  }
 0x632   :  { %2031 = vmatprep.subr.bf16.mxu1 %v4821_v45  ;;  %v4858_v45 = vld [vmem:[#allocation21 + $0x1c0] ss:$16 sps:$4 sm:$0xff]   ;;  %2004 = vmatprep.subr.bf16.mxu0 %v4860_v43  ;;  %v4914_v43 = vld [vmem:[%s6861_s16 + $0xe4] ss:$16 sps:$4 sm:$0xff]  }
 0x634   :  { %2005 = vmatpush1.bf16.msra.mxu0 %v4858_v45  ;;  %v4912_v45 = vld [vmem:[%s6861_s16 + $0xe0] ss:$16 sps:$4 sm:$0xff]  }
 0x635   :  { %2032 = vmatpush1.bf16.msra.mxu1 %v4819_v46  ;;  %v4866_v46 = vld [vmem:[#allocation21 + $0x1e4] ss:$16 sps:$4 sm:$0xff]  }
 0x636   :  { %2033 = vmatprep.subr.bf16.mxu1 %v4827_v48  ;;  %v4864_v48 = vld [vmem:[#allocation21 + $0x1e0] ss:$16 sps:$4 sm:$0xff]   ;;  %2006 = vmatprep.subr.bf16.mxu0 %v4866_v46  ;;  %v4920_v46 = vld [vmem:[%s6861_s16 + $0x104] ss:$16 sps:$4 sm:$0xff]  }
 0x638   :  { %2007 = vmatpush1.bf16.msra.mxu0 %v4864_v48  ;;  %v4918_v48 = vld [vmem:[%s6861_s16 + $0x100] ss:$16 sps:$4 sm:$0xff]  }
 0x639   :  { %2034 = vmatpush1.bf16.msra.mxu1 %v4825_v50 }
 0x63a   :  { %2035 = vmatprep.subr.bf16.mxu1 %v4833_v54 }
 0x63d   :  { %2036 = vmatpush1.bf16.msra.mxu1 %v4831_v56 }
 0x63e   :  { %2037 = vmatprep.subr.bf16.mxu1 %v4839_v26  ;;  %v4893_v26 = vld [vmem:[%s6861_s16 + $0x264] ss:$16 sps:$4 sm:$0xff]  }
 0x641   :  { %2038 = vmatpush1.bf16.msra.mxu1 %v4837_v28  ;;  %v4891_v28 = vld [vmem:[%s6861_s16 + $0x260] ss:$16 sps:$4 sm:$0xff]  }
 0x642   :  { %2039 = vmatprep.subr.bf16.mxu1 %v4845_v30  ;;  %v4899_v30 = vld [vmem:[%s6861_s16 + $0x284] ss:$16 sps:$4 sm:$0xff]  }
 0x645   :  { %2040 = vmatpush1.bf16.msra.mxu1 %v4843_v32  ;;  %v4897_v32 = vld [vmem:[%s6861_s16 + $0x280] ss:$16 sps:$4 sm:$0xff]  }
 0x646   :  { %2041 = vmatprep.subr.bf16.mxu1 %v4851_v36  ;;  %v4903_v36 = vld [vmem:[%s6861_s16 + $0x2a0] ss:$16 sps:$4 sm:$0xff]  }
 0x649   :  { %2042 = vmatpush1.bf16.msra.mxu1 %v4849_v35  ;;  %v4900_v35 = vld [vmem:[%s6861_s16 + $0xa0] ss:$16 sps:$4 sm:$0xff]  }
 0x64a   :  { %2043 = vmatprep.subr.bf16.mxu1 %v4857_v39  ;;  %v4911_v39 = vld [vmem:[%s6861_s16 + $0x2c4] ss:$16 sps:$4 sm:$0xff]  }
 0x64d   :  { %2044 = vmatpush1.bf16.msra.mxu1 %v4855_v42  ;;  %v4909_v42 = vld [vmem:[%s6861_s16 + $0x2c0] ss:$16 sps:$4 sm:$0xff]  }
 0x64e   :  { %2045 = vmatprep.subr.bf16.mxu1 %v4863_v44  ;;  %v4917_v44 = vld [vmem:[%s6861_s16 + $0x2e4] ss:$16 sps:$4 sm:$0xff]  }
 0x651   :  { %2046 = vmatpush1.bf16.msra.mxu1 %v4861_v3  ;;  %v4915_v3 = vld [vmem:[%s6861_s16 + $0x2e0] ss:$16 sps:$4 sm:$0xff]  }
 0x652   :  { %2047 = vmatprep.subr.bf16.mxu1 %v4869_v47  ;;  %v4923_v47 = vld [vmem:[%s6861_s16 + $0x304] ss:$16 sps:$4 sm:$0xff]  }
 0x655   :  { %2048 = vmatpush1.bf16.msra.mxu1 %v4867_v49  ;;  %v4921_v49 = vld [vmem:[%s6861_s16 + $0x300] ss:$16 sps:$4 sm:$0xff]  }
 0x6eb   :  { %v1449_v8 = vpop.f32.mrb[8].mxu1 }
 0x6ec   :  { %v1450_v9 = vadd.f32 %v1449_v8, %v1248_v1  ;;  %v1451_v13 = vpop.f32.mrb[9].mxu1  ;;  %v4870_v8 = vld [vmem:[%s6861_s16] ss:$16 sps:$4 sm:$0xff]  }
 0x6ed   :  { %v1452_v15 = vadd.f32 %v1451_v13, %v1252_v5  ;;  %v1453_v16 = vpop.f32.mrb[10].mxu1  ;;  %v4875_v13 = vld [vmem:[%s6861_s16 + $0x204] ss:$16 sps:$4 sm:$0xff]  }
 0x6ee   :  { %v6110_v20 = vadd.f32 %v1605_v12, %v1450_v9  ;;  %v1454_v21 = vpop.f32.mrb[11].mxu1  ;;  %v4872_v9 = vld [vmem:[%s6861_s16 + $0x4] ss:$16 sps:$4 sm:$0xff]   ;;  %v4873_v12 = vld [vmem:[%s6861_s16 + $0x200] ss:$16 sps:$4 sm:$0xff]   ;;  %2805 = vmatprep.subr.bf16.mxu1 %v4875_v13 }
 0x6ef   :  { %v6112_v22 = vadd.f32 %v1606_v17, %v1452_v15  ;;  %v4878_v15 = vld [vmem:[%s6861_s16 + $0x24] ss:$16 sps:$4 sm:$0xff]   ;;  %2764 = vmatprep.subr.bf16.mxu0 %v4872_v9  ;;  %v4876_v16 = vld [vmem:[%s6861_s16 + $0x20] ss:$16 sps:$4 sm:$0xff]  }
 0x6f0   :  { %v1613_v23 = vmul.f32 %v6110_v20, %v6110_v20  ;;  %v4881_v17 = vld [vmem:[%s6861_s16 + $0x224] ss:$16 sps:$4 sm:$0xff]   ;;  %v4879_v21 = vld [vmem:[%s6861_s16 + $0x220] ss:$16 sps:$4 sm:$0xff]  }
 0x6f1   :  { %v1609_v38 = vadd.f32 %v6112_v22, %v6110_v20  ;;  %v1614_v41 = vmul.f32 %v6112_v22, %v6112_v22 }
 0x6f3   :  { %1610 = vadd.xlane.f32.xlu0 %v1609_v38  ;;  %v1615_v24 = vadd.f32 %v1614_v41, %v1613_v23  ;;  %v4884_v23 = vld [vmem:[%s6861_s16 + $0x44] ss:$16 sps:$4 sm:$0xff]   ;;  %v4882_v41 = vld [vmem:[%s6861_s16 + $0x40] ss:$16 sps:$4 sm:$0xff]  }
 0x6f4   :  { %v4887_v38 = vld [vmem:[%s6861_s16 + $0x244] ss:$16 sps:$4 sm:$0xff]  }
 0x6f5   :  { %1616 = vadd.xlane.f32.xlu1 %v1615_v24  ;;  %v4885_v24 = vld [vmem:[%s6861_s16 + $0x240] ss:$16 sps:$4 sm:$0xff]  }
 0x780   :  { %v1611_v50 = vpop.xlane.xlu0 %1610 }
 0x781   :  { %v1612_v51 = vmul.f32 0.00390625, %v1611_v50  ;;  %v4926_v50 = vld [vmem:[%s6861_s16 + $0x124] ss:$16 sps:$4 sm:$0xff]  }
 0x782   :  { %v1617_v54 = vpop.xlane.xlu1 %1616 }
 0x783   :  { %v1618_v55 = vmul.f32 0.00390625, %v1617_v54  ;;  %v1621_v56 = vmul.f32 %v1612_v51, %v1612_v51  ;;  %v1619_v59 = vsub.f32 %v6110_v20, %v1612_v51  ;;  %v1620_v60 = vsub.f32 %v6112_v22, %v1612_v51  ;;  %v4929_v51 = vld [vmem:[%s6861_s16 + $0x324] ss:$16 sps:$4 sm:$0xff]   ;;  %v4924_v54 = vld [vmem:[%s6861_s16 + $0x120] ss:$16 sps:$4 sm:$0xff]  }
 0x785   :  { %v1622_v57 = vsub.f32 %v1618_v55, %v1621_v56  ;;  %v4927_v55 = vld [vmem:[%s6861_s16 + $0x320] ss:$16 sps:$4 sm:$0xff]   ;;  %v444_v56 = vld [vmem:[#allocation22] sm:$0xf] }
 0x787   :  { %v1623_v58 = vadd.f32 1e-05, %v1622_v57  ;;  %v6243_v57 = vsub.s32 2, %v6033_v4 }
 0x789   :  { %5235 = vrsqrt.f32 %v1623_v58  ;;  %v1639_v58 = vrot.slane %v444_v56, %v6081_v10 }
 0x793   :  { %v5236_v61 = vpop.eup %5235 }
 0x794   :  { %v1626_v62 = vmul.f32 %v5236_v61, %v1620_v60  ;;  %v1625_v63 = vmul.f32 %v5236_v61, %v1619_v59  ;;  %v6247_v59 = vsub.s32 3, %v6033_v4  ;;  %v1647_v60 = vrot.slane %v444_v56, %v6243_v57 }
 0x795   :  { %v1643_v61 = vrot.slane %v444_v56, %v6084_v11 }
 0x796   :  { %vm1628_vm8 = vcmp.ge.f32.partialorder %v1626_v62, 0.0  ;;  %v1630_v0 = vmul.f32 0.01, %v1626_v62  ;;  %vm1627_vm9 = vcmp.ge.f32.partialorder %v1625_v63, 0.0  ;;  %v1629_v1 = vmul.f32 0.01, %v1625_v63 }
 0x798   :  { %v1632_v2 = vsel %vm1628_vm8, %v1626_v62, %v1630_v0  ;;  %v1631_v5 = vsel %vm1627_vm9, %v1625_v63, %v1629_v1  ;;  %v1651_v0 = vrot.slane %v444_v56, %v6247_v59 }
 0x799   :  { %v1634_v6 = vpack.c.bf16 %v1632_v2, %v1632_v2  ;;  %v1633_v7 = vpack.c.bf16 %v1631_v5, %v1631_v5 }
 0x79b   :  { %2008 = vmatprep.mubr.bf16.mxu0 %v1634_v6  ;;  %2049 = vmatprep.mubr.bf16.mxu1 %v1634_v6 }
 0x79c   :  { %2009 = vmatmul.mubr.bf16.vlgmr.msra.gmra.mrb[16].mxu0 %v1633_v7  ;;  %2050 = vmatmul.mubr.bf16.vlgmr.msra.gmra.mrb[12].mxu1 %v1633_v7 }
 0x79d   :  { %2765 = vmatpush1.bf16.msra.mxu0 %v4870_v8  ;;  %2806 = vmatpush1.bf16.msra.mxu1 %v4873_v12 }
 0x79e   :  { %2766 = vmatprep.subr.bf16.mxu0 %v4878_v15  ;;  %2807 = vmatprep.subr.bf16.mxu1 %v4881_v17 }
 0x7a1   :  { %2767 = vmatpush1.bf16.msra.mxu0 %v4876_v16  ;;  %2808 = vmatpush1.bf16.msra.mxu1 %v4879_v21 }
 0x7a2   :  { %2768 = vmatprep.subr.bf16.mxu0 %v4884_v23  ;;  %2809 = vmatprep.subr.bf16.mxu1 %v4887_v38 }
 0x7a5   :  { %2769 = vmatpush1.bf16.msra.mxu0 %v4882_v41  ;;  %2810 = vmatpush1.bf16.msra.mxu1 %v4885_v24 }
 0x7a6   :  { %2770 = vmatprep.subr.bf16.mxu0 %v4890_v25  ;;  %2811 = vmatprep.subr.bf16.mxu1 %v4893_v26 }
 0x7a9   :  { %2771 = vmatpush1.bf16.msra.mxu0 %v4888_v27  ;;  %2812 = vmatpush1.bf16.msra.mxu1 %v4891_v28  ;;  %v4932_v27 = vld [vmem:[%s6861_s16 + $0x144] ss:$16 sps:$4 sm:$0xff]  }
 0x7aa   :  { %2772 = vmatprep.subr.bf16.mxu0 %v4896_v29  ;;  %2813 = vmatprep.subr.bf16.mxu1 %v4899_v30  ;;  %v4935_v28 = vld [vmem:[%s6861_s16 + $0x344] ss:$16 sps:$4 sm:$0xff]   ;;  %v4930_v29 = vld [vmem:[%s6861_s16 + $0x140] ss:$16 sps:$4 sm:$0xff]  }
 0x7ab   :  { %v4933_v30 = vld [vmem:[%s6861_s16 + $0x340] ss:$16 sps:$4 sm:$0xff]  }
 0x7ad   :  { %2773 = vmatpush1.bf16.msra.mxu0 %v4894_v31  ;;  %2814 = vmatpush1.bf16.msra.mxu1 %v4897_v32  ;;  %v4938_v31 = vld [vmem:[%s6861_s16 + $0x164] ss:$16 sps:$4 sm:$0xff]  }
 0x7ae   :  { %2774 = vmatprep.subr.bf16.mxu0 %v4902_v33  ;;  %2815 = vmatprep.subr.bf16.mxu1 %v4905_v34  ;;  %v4941_v32 = vld [vmem:[%s6861_s16 + $0x364] ss:$16 sps:$4 sm:$0xff]   ;;  %v4936_v33 = vld [vmem:[%s6861_s16 + $0x160] ss:$16 sps:$4 sm:$0xff]  }
 0x7af   :  { %v4939_v34 = vld [vmem:[%s6861_s16 + $0x360] ss:$16 sps:$4 sm:$0xff]  }
 0x7b1   :  { %2775 = vmatpush1.bf16.msra.mxu0 %v4900_v35  ;;  %2816 = vmatpush1.bf16.msra.mxu1 %v4903_v36  ;;  %v4942_v35 = vld [vmem:[%s6861_s16 + $0x180] ss:$16 sps:$4 sm:$0xff]   ;;  %v4944_v36 = vld [vmem:[%s6861_s16 + $0x184] ss:$16 sps:$4 sm:$0xff]  }
 0x7b2   :  { %2776 = vmatprep.subr.bf16.mxu0 %v4908_v37  ;;  %2817 = vmatprep.subr.bf16.mxu1 %v4911_v39  ;;  %v4945_v37 = vld [vmem:[%s6861_s16 + $0x380] ss:$16 sps:$4 sm:$0xff]   ;;  %v4947_v39 = vld [vmem:[%s6861_s16 + $0x384] ss:$16 sps:$4 sm:$0xff]  }
 0x7b5   :  { %2777 = vmatpush1.bf16.msra.mxu0 %v4906_v40  ;;  %2818 = vmatpush1.bf16.msra.mxu1 %v4909_v42  ;;  %v4950_v40 = vld [vmem:[%s6861_s16 + $0x1a4] ss:$16 sps:$4 sm:$0xff]  }
 0x7b6   :  { %2778 = vmatprep.subr.bf16.mxu0 %v4914_v43  ;;  %2819 = vmatprep.subr.bf16.mxu1 %v4917_v44  ;;  %v4953_v42 = vld [vmem:[%s6861_s16 + $0x3a4] ss:$16 sps:$4 sm:$0xff]   ;;  %v4948_v43 = vld [vmem:[%s6861_s16 + $0x1a0] ss:$16 sps:$4 sm:$0xff]  }
 0x7b7   :  { %v4951_v44 = vld [vmem:[%s6861_s16 + $0x3a0] ss:$16 sps:$4 sm:$0xff]  }
 0x7b9   :  { %2779 = vmatpush1.bf16.msra.mxu0 %v4912_v45  ;;  %2820 = vmatpush1.bf16.msra.mxu1 %v4915_v3  ;;  %v4956_v45 = vld [vmem:[%s6861_s16 + $0x1c4] ss:$16 sps:$4 sm:$0xff]  }
 0x7ba   :  { %2780 = vmatprep.subr.bf16.mxu0 %v4920_v46  ;;  %2821 = vmatprep.subr.bf16.mxu1 %v4923_v47  ;;  %v4959_v3 = vld [vmem:[%s6861_s16 + $0x3c4] ss:$16 sps:$4 sm:$0xff]   ;;  %v4954_v46 = vld [vmem:[%s6861_s16 + $0x1c0] ss:$16 sps:$4 sm:$0xff]  }
 0x7bb   :  { %v4957_v47 = vld [vmem:[%s6861_s16 + $0x3c0] ss:$16 sps:$4 sm:$0xff]  }
 0x7bd   :  { %2781 = vmatpush1.bf16.msra.mxu0 %v4918_v48  ;;  %2822 = vmatpush1.bf16.msra.mxu1 %v4921_v49  ;;  %v4962_v48 = vld [vmem:[%s6861_s16 + $0x1e4] ss:$16 sps:$4 sm:$0xff]  }
 0x7be   :  { %2782 = vmatprep.subr.bf16.mxu0 %v4926_v50  ;;  %2823 = vmatprep.subr.bf16.mxu1 %v4929_v51  ;;  %v4965_v49 = vld [vmem:[%s6861_s16 + $0x3e4] ss:$16 sps:$4 sm:$0xff]   ;;  %v4960_v50 = vld [vmem:[%s6861_s16 + $0x1e0] ss:$16 sps:$4 sm:$0xff]  }
 0x7bf   :  { %v4963_v51 = vld [vmem:[%s6861_s16 + $0x3e0] ss:$16 sps:$4 sm:$0xff]  }
 0x7c1   :  { %2783 = vmatpush1.bf16.msra.mxu0 %v4924_v54  ;;  %2824 = vmatpush1.bf16.msra.mxu1 %v4927_v55  ;;  %v4968_v54 = vld [vmem:[%s6861_s16 + $0xc] ss:$16 sps:$4 sm:$0xff]  }
 0x7c2   :  { %2784 = vmatprep.subr.bf16.mxu0 %v4932_v27  ;;  %2825 = vmatprep.subr.bf16.mxu1 %v4935_v28  ;;  %v4971_v55 = vld [vmem:[%s6861_s16 + $0x20c] ss:$16 sps:$4 sm:$0xff]  }
 0x7c5   :  { %2785 = vmatpush1.bf16.msra.mxu0 %v4930_v29  ;;  %2826 = vmatpush1.bf16.msra.mxu1 %v4933_v30  ;;  %v4974_v30 = vld [vmem:[%s6861_s16 + $0x2c] ss:$16 sps:$4 sm:$0xff]  }
 0x7c6   :  { %2786 = vmatprep.subr.bf16.mxu0 %v4938_v31  ;;  %2827 = vmatprep.subr.bf16.mxu1 %v4941_v32  ;;  %v4977_v31 = vld [vmem:[%s6861_s16 + $0x22c] ss:$16 sps:$4 sm:$0xff]   ;;  %v4972_v32 = vld [vmem:[%s6861_s16 + $0x28] ss:$16 sps:$4 sm:$0xff]  }
 0x7c9   :  { %2787 = vmatpush1.bf16.msra.mxu0 %v4936_v33  ;;  %2828 = vmatpush1.bf16.msra.mxu1 %v4939_v34  ;;  %v4975_v33 = vld [vmem:[%s6861_s16 + $0x228] ss:$16 sps:$4 sm:$0xff]   ;;  %v4980_v34 = vld [vmem:[%s6861_s16 + $0x4c] ss:$16 sps:$4 sm:$0xff]  }
 0x7ca   :  { %2788 = vmatprep.subr.bf16.mxu0 %v4944_v36  ;;  %2829 = vmatprep.subr.bf16.mxu1 %v4947_v39  ;;  %v4978_v36 = vld [vmem:[%s6861_s16 + $0x48] ss:$16 sps:$4 sm:$0xff]   ;;  %v4986_v39 = vld [vmem:[%s6861_s16 + $0x6c] ss:$16 sps:$4 sm:$0xff]  }
 0x7cd   :  { %2789 = vmatpush1.bf16.msra.mxu0 %v4942_v35  ;;  %2830 = vmatpush1.bf16.msra.mxu1 %v4945_v37  ;;  %v4983_v35 = vld [vmem:[%s6861_s16 + $0x24c] ss:$16 sps:$4 sm:$0xff]   ;;  %v4981_v37 = vld [vmem:[%s6861_s16 + $0x248] ss:$16 sps:$4 sm:$0xff]  }
 0x7ce   :  { %2790 = vmatprep.subr.bf16.mxu0 %v4950_v40  ;;  %2831 = vmatprep.subr.bf16.mxu1 %v4953_v42  ;;  %v4989_v40 = vld [vmem:[%s6861_s16 + $0x26c] ss:$16 sps:$4 sm:$0xff]   ;;  %v4984_v42 = vld [vmem:[%s6861_s16 + $0x68] ss:$16 sps:$4 sm:$0xff]  }
 0x7d1   :  { %2791 = vmatpush1.bf16.msra.mxu0 %v4948_v43  ;;  %2832 = vmatpush1.bf16.msra.mxu1 %v4951_v44  ;;  %v4987_v43 = vld [vmem:[%s6861_s16 + $0x268] ss:$16 sps:$4 sm:$0xff]   ;;  %v4992_v44 = vld [vmem:[%s6861_s16 + $0x8c] ss:$16 sps:$4 sm:$0xff]  }
 0x7d2   :  { %2792 = vmatprep.subr.bf16.mxu0 %v4956_v45  ;;  %2833 = vmatprep.subr.bf16.mxu1 %v4959_v3  ;;  %v4995_v45 = vld [vmem:[%s6861_s16 + $0x28c] ss:$16 sps:$4 sm:$0xff]   ;;  %v4990_v3 = vld [vmem:[%s6861_s16 + $0x88] ss:$16 sps:$4 sm:$0xff]  }
 0x7d5   :  { %2793 = vmatpush1.bf16.msra.mxu0 %v4954_v46  ;;  %2834 = vmatpush1.bf16.msra.mxu1 %v4957_v47  ;;  %v4993_v46 = vld [vmem:[%s6861_s16 + $0x288] ss:$16 sps:$4 sm:$0xff]   ;;  %v4998_v47 = vld [vmem:[%s6861_s16 + $0xac] ss:$16 sps:$4 sm:$0xff]  }
 0x7d6   :  { %2794 = vmatprep.subr.bf16.mxu0 %v4962_v48  ;;  %2835 = vmatprep.subr.bf16.mxu1 %v4965_v49  ;;  %v5001_v48 = vld [vmem:[%s6861_s16 + $0x2ac] ss:$16 sps:$4 sm:$0xff]   ;;  %v4996_v49 = vld [vmem:[%s6861_s16 + $0xa8] ss:$16 sps:$4 sm:$0xff]  }
 0x7d9   :  { %2795 = vmatpush1.bf16.msra.mxu0 %v4960_v50  ;;  %2836 = vmatpush1.bf16.msra.mxu1 %v4963_v51  ;;  %v4999_v50 = vld [vmem:[%s6861_s16 + $0x2a8] ss:$16 sps:$4 sm:$0xff]   ;;  %v5004_v51 = vld [vmem:[%s6861_s16 + $0xcc] ss:$16 sps:$4 sm:$0xff]  }
 0x7da   :  { %2846 = vmatprep.subr.bf16.mxu0 %v4968_v54  ;;  %2887 = vmatprep.subr.bf16.mxu1 %v4971_v55  ;;  %v5007_v54 = vld [vmem:[%s6861_s16 + $0x2cc] ss:$16 sps:$4 sm:$0xff]   ;;  %v5002_v55 = vld [vmem:[%s6861_s16 + $0xc8] ss:$16 sps:$4 sm:$0xff]  }
 0x86f   :  { %v2010_v62 = vpop.f32.mrb[16].mxu0  ;;  %v2051_v63 = vpop.f32.mrb[12].mxu1 }
 0x870   :  { %v6252_v1 = vadd.f32 %v2010_v62, %v1639_v58  ;;  %v2012_v2 = vpop.f32.mrb[17].mxu0  ;;  %v2053_v5 = vpop.f32.mrb[13].mxu1  ;;  %v6254_v6 = vadd.f32 %v2051_v63, %v1647_v60 }
 0x871   :  { %v6256_v7 = vadd.f32 %v2012_v2, %v1643_v61  ;;  %v2014_v8 = vpop.f32.mrb[18].mxu0  ;;  %v2055_v9 = vpop.f32.mrb[14].mxu1  ;;  %v6264_v16 = vadd.f32 %v2053_v5, %v1651_v0 }
 0x872   :  { %v2065_v4 = vmul.f32 %v6252_v1, %v6252_v1  ;;  %v2015_v12 = vpop.f32.mrb[19].mxu0  ;;  %v2056_v13 = vpop.f32.mrb[15].mxu1  ;;  %v2067_v21 = vmul.f32 %v6254_v6, %v6254_v6 }
 0x873   :  { %v2058_v15 = vadd.f32 %v6256_v7, %v6252_v1  ;;  %v2066_v17 = vmul.f32 %v6256_v7, %v6256_v7  ;;  %v2068_v24 = vmul.f32 %v6264_v16, %v6264_v16 }
 0x875   :  { %v2059_v23 = vadd.f32 %v2058_v15, %v6254_v6  ;;  %v2069_v38 = vadd.f32 %v2066_v17, %v2065_v4 }
 0x877   :  { %v2060_v41 = vadd.f32 %v2059_v23, %v6264_v16  ;;  %v2070_v25 = vadd.f32 %v2069_v38, %v2067_v21 }
 0x879   :  { %2061 = vadd.xlane.f32.xlu0 %v2060_v41  ;;  %v2071_v26 = vadd.f32 %v2070_v25, %v2068_v24 }
 0x87b   :  { %2072 = vadd.xlane.f32.xlu1 %v2071_v26 }
 0x906   :  { %v2062_v56 = vpop.xlane.xlu0 %2061 }
 0x907   :  { %v2064_v58 = vmul.f32 0.001953125, %v2062_v56  ;;  %v5005_v56 = vld [vmem:[%s6861_s16 + $0x2c8] ss:$16 sps:$4 sm:$0xff]  }
 0x908   :  { %v2073_v60 = vpop.xlane.xlu1 %2072 }
 0x909   :  { %v2074_v61 = vmul.f32 0.001953125, %v2073_v60  ;;  %v2079_v62 = vmul.f32 %v2064_v58, %v2064_v58  ;;  %v2075_v2 = vsub.f32 %v6252_v1, %v2064_v58  ;;  %v2077_v5 = vsub.f32 %v6254_v6, %v2064_v58  ;;  %v5013_v60 = vld [vmem:[%s6861_s16 + $0x2ec] ss:$16 sps:$4 sm:$0xff]  }
 0x90a   :  { %v2076_v8 = vsub.f32 %v6256_v7, %v2064_v58  ;;  %v2078_v9 = vsub.f32 %v6264_v16, %v2064_v58  ;;  %v4966_v7 = vld [vmem:[%s6861_s16 + $0x8] ss:$16 sps:$4 sm:$0xff]   ;;  %v5010_v58 = vld [vmem:[%s6861_s16 + $0xec] ss:$16 sps:$4 sm:$0xff]  }
 0x90b   :  { %v2080_v63 = vsub.f32 %v2074_v61, %v2079_v62  ;;  %v4969_v16 = vld [vmem:[%s6861_s16 + $0x208] ss:$16 sps:$4 sm:$0xff]  }
 0x90c   :  { %v5008_v61 = vld [vmem:[%s6861_s16 + $0xe8] ss:$16 sps:$4 sm:$0xff]  }
 0x90d   :  { %v2081_v0 = vadd.f32 1e-05, %v2080_v63  ;;  %v5011_v62 = vld [vmem:[%s6861_s16 + $0x2e8] ss:$16 sps:$4 sm:$0xff]   ;;  %v5016_v63 = vld [vmem:[%s6861_s16 + $0x10c] ss:$16 sps:$4 sm:$0xff]  }
 0x90f   :  { %5237 = vrsqrt.f32 %v2081_v0  ;;  %v5019_v0 = vld [vmem:[%s6861_s16 + $0x30c] ss:$16 sps:$4 sm:$0xff]  }
 0x919   :  { %v5238_v4 = vpop.eup %5237 }
 0x91a   :  { %v2084_v12 = vmul.f32 %v5238_v4, %v2076_v8  ;;  %v2086_v13 = vmul.f32 %v5238_v4, %v2078_v9  ;;  %v2083_v15 = vmul.f32 %v5238_v4, %v2075_v2  ;;  %v2085_v17 = vmul.f32 %v5238_v4, %v2077_v5  ;;  %v5014_v2 = vld [vmem:[%s6861_s16 + $0x108] ss:$16 sps:$4 sm:$0xff]   ;;  %v5022_v8 = vld [vmem:[%s6861_s16 + $0x12c] ss:$16 sps:$4 sm:$0xff]  }
 0x91b   :  { %v5017_v5 = vld [vmem:[%s6861_s16 + $0x308] ss:$16 sps:$4 sm:$0xff]   ;;  %v5025_v9 = vld [vmem:[%s6861_s16 + $0x32c] ss:$16 sps:$4 sm:$0xff]  }
 0x91c   :  { %vm2088_vm10 = vcmp.ge.f32.partialorder %v2084_v12, 0.0  ;;  %v2092_v21 = vmul.f32 0.01, %v2084_v12  ;;  %vm2090_vm11 = vcmp.ge.f32.partialorder %v2086_v13, 0.0  ;;  %v2094_v23 = vmul.f32 0.01, %v2086_v13 }
 0x91d   :  { %vm2087_vm12 = vcmp.ge.f32.partialorder %v2083_v15, 0.0  ;;  %v2091_v38 = vmul.f32 0.01, %v2083_v15  ;;  %vm2089_vm13 = vcmp.ge.f32.partialorder %v2085_v17, 0.0  ;;  %v2093_v41 = vmul.f32 0.01, %v2085_v17 }
 0x91e   :  { %v2096_v1 = vsel %vm2088_vm10, %v2084_v12, %v2092_v21  ;;  %v2098_v24 = vsel %vm2090_vm11, %v2086_v13, %v2094_v23  ;;  %v5020_v4 = vld [vmem:[%s6861_s16 + $0x128] ss:$16 sps:$4 sm:$0xff]   ;;  %v5028_v13 = vld [vmem:[%s6861_s16 + $0x14c] ss:$16 sps:$4 sm:$0xff]  }
 0x91f   :  { %v2100_v6 = vpack.c.bf16 %v2096_v1, %v2096_v1  ;;  %v2102_v25 = vpack.c.bf16 %v2098_v24, %v2098_v24  ;;  %v2095_v26 = vsel %vm2087_vm12, %v2083_v15, %v2091_v38  ;;  %v2097_v27 = vsel %vm2089_vm13, %v2085_v17, %v2093_v41  ;;  %v5023_v12 = vld [vmem:[%s6861_s16 + $0x328] ss:$16 sps:$4 sm:$0xff]   ;;  %v5031_v15 = vld [vmem:[%s6861_s16 + $0x34c] ss:$16 sps:$4 sm:$0xff]  }
 0x920   :  { %v6360_v28 = vpack.c.bf16 %v2095_v26, %v2095_v26  ;;  %v6362_v29 = vpack.c.bf16 %v2097_v27, %v2097_v27  ;;  %v5026_v17 = vld [vmem:[%s6861_s16 + $0x148] ss:$16 sps:$4 sm:$0xff]   ;;  %v5034_v23 = vld [vmem:[%s6861_s16 + $0x16c] ss:$16 sps:$4 sm:$0xff]  }
 0x921   :  { %2796 = vmatprep.mubr.bf16.mxu0 %v2100_v6  ;;  %2837 = vmatprep.mubr.bf16.mxu1 %v2102_v25  ;;  %v5029_v21 = vld [vmem:[%s6861_s16 + $0x348] ss:$16 sps:$4 sm:$0xff]   ;;  %v5037_v38 = vld [vmem:[%s6861_s16 + $0x36c] ss:$16 sps:$4 sm:$0xff]  }
 0x922   :  { %2797 = vmatmul.mubr.bf16.vlgmr.msra.gmra.mrb[20].mxu0 %v6360_v28  ;;  %2838 = vmatmul.mubr.bf16.vlgmr.msra.gmra.mrb[16].mxu1 %v6362_v29  ;;  %v5032_v41 = vld [vmem:[%s6861_s16 + $0x168] ss:$16 sps:$4 sm:$0xff]   ;;  %v5040_v24 = vld [vmem:[%s6861_s16 + $0x18c] ss:$16 sps:$4 sm:$0xff]  }
 0x923   :  { %2847 = vmatpush1.bf16.msra.mxu0 %v4966_v7  ;;  %2888 = vmatpush1.bf16.msra.mxu1 %v4969_v16  ;;  %v5035_v1 = vld [vmem:[%s6861_s16 + $0x368] ss:$16 sps:$4 sm:$0xff]   ;;  %v5046_v16 = vld [vmem:[%s6861_s16 + $0x1ac] ss:$16 sps:$4 sm:$0xff]  }
 0x924   :  { %2878 = vmatprep.mubr.bf16.mxu0 %v2100_v6  ;;  %2919 = vmatprep.mubr.bf16.mxu1 %v2102_v25  ;;  %v5043_v6 = vld [vmem:[%s6861_s16 + $0x38c] ss:$16 sps:$4 sm:$0xff]   ;;  %v5038_v25 = vld [vmem:[%s6861_s16 + $0x188] ss:$16 sps:$4 sm:$0xff]  }
 0x925   :  { %2848 = vmatprep.subr.bf16.mxu0 %v4974_v30  ;;  %2889 = vmatprep.subr.bf16.mxu1 %v4977_v31  ;;  %v5041_v7 = vld [vmem:[%s6861_s16 + $0x388] ss:$16 sps:$4 sm:$0xff]   ;;  %v5049_v26 = vld [vmem:[%s6861_s16 + $0x3ac] ss:$16 sps:$4 sm:$0xff]  }
 0x926   :  { %v5044_v27 = vld [vmem:[%s6861_s16 + $0x1a8] ss:$16 sps:$4 sm:$0xff]   ;;  %v5052_v31 = vld [vmem:[%s6861_s16 + $0x1cc] ss:$16 sps:$4 sm:$0xff]  }
 0x927   :  { %2849 = vmatpush1.bf16.msra.mxu0 %v4972_v32  ;;  %2890 = vmatpush1.bf16.msra.mxu1 %v4975_v33  ;;  %v5047_v30 = vld [vmem:[%s6861_s16 + $0x3a8] ss:$16 sps:$4 sm:$0xff]   ;;  %v5055_v32 = vld [vmem:[%s6861_s16 + $0x3cc] ss:$16 sps:$4 sm:$0xff]  }
 0x928   :  { %2850 = vmatprep.subr.bf16.mxu0 %v4980_v34  ;;  %2891 = vmatprep.subr.bf16.mxu1 %v4983_v35  ;;  %v5050_v33 = vld [vmem:[%s6861_s16 + $0x1c8] ss:$16 sps:$4 sm:$0xff]   ;;  %v5058_v35 = vld [vmem:[%s6861_s16 + $0x1ec] ss:$16 sps:$4 sm:$0xff]  }
 0x929   :  { %v5053_v34 = vld [vmem:[%s6861_s16 + $0x3c8] ss:$16 sps:$4 sm:$0xff]  }
 0x92b   :  { %2851 = vmatpush1.bf16.msra.mxu0 %v4978_v36  ;;  %2892 = vmatpush1.bf16.msra.mxu1 %v4981_v37  ;;  %v5061_v36 = vld [vmem:[%s6861_s16 + $0x3ec] ss:$16 sps:$4 sm:$0xff]   ;;  %v5056_v37 = vld [vmem:[%s6861_s16 + $0x1e8] ss:$16 sps:$4 sm:$0xff]  }
 0x92c   :  { %2852 = vmatprep.subr.bf16.mxu0 %v4986_v39  ;;  %2893 = vmatprep.subr.bf16.mxu1 %v4989_v40  ;;  %v5059_v39 = vld [vmem:[%s6861_s16 + $0x3e8] ss:$16 sps:$4 sm:$0xff]   ;;  %v5064_v40 = vld [vmem:[#allocation25 + $0x4] ss:$16 sps:$4 sm:$0xff]  }
 0x92f   :  { %2853 = vmatpush1.bf16.msra.mxu0 %v4984_v42  ;;  %2894 = vmatpush1.bf16.msra.mxu1 %v4987_v43  ;;  %v5067_v42 = vld [vmem:[#allocation25 + $0xc] ss:$16 sps:$4 sm:$0xff]   ;;  %v5062_v43 = vld [vmem:[#allocation25] ss:$16 sps:$4 sm:$0xff]  }
 0x930   :  { %2854 = vmatprep.subr.bf16.mxu0 %v4992_v44  ;;  %2895 = vmatprep.subr.bf16.mxu1 %v4995_v45  ;;  %v5065_v44 = vld [vmem:[#allocation25 + $0x8] ss:$16 sps:$4 sm:$0xff]   ;;  %v2929_v45 = vpack.c.bf16 %v6112_v22, %v6112_v22 }
 0x931   :  { %v5077_v22 = vld [vmem:[#allocation25 + $0x48] ss:$16 sps:$4 sm:$0xff]  }
 0x933   :  { %2855 = vmatpush1.bf16.msra.mxu0 %v4990_v3  ;;  %2896 = vmatpush1.bf16.msra.mxu1 %v4993_v46  ;;  %v5070_v3 = vld [vmem:[#allocation25 + $0x24] ss:$16 sps:$4 sm:$0xff]   ;;  %v5073_v46 = vld [vmem:[#allocation25 + $0x2c] ss:$16 sps:$4 sm:$0xff]  }
 0x934   :  { %2856 = vmatprep.subr.bf16.mxu0 %v4998_v47  ;;  %2897 = vmatprep.subr.bf16.mxu1 %v5001_v48  ;;  %v5068_v47 = vld [vmem:[#allocation25 + $0x20] ss:$16 sps:$4 sm:$0xff]   ;;  %v5071_v48 = vld [vmem:[#allocation25 + $0x28] ss:$16 sps:$4 sm:$0xff]  }
 0x937   :  { %2857 = vmatpush1.bf16.msra.mxu0 %v4996_v49  ;;  %2898 = vmatpush1.bf16.msra.mxu1 %v4999_v50  ;;  %v5076_v49 = vld [vmem:[#allocation25 + $0x44] ss:$16 sps:$4 sm:$0xff]   ;;  %v5079_v50 = vld [vmem:[#allocation25 + $0x4c] ss:$16 sps:$4 sm:$0xff]  }
 0x938   :  { %2858 = vmatprep.subr.bf16.mxu0 %v5004_v51  ;;  %2899 = vmatprep.subr.bf16.mxu1 %v5007_v54  ;;  %v5074_v51 = vld [vmem:[#allocation25 + $0x40] ss:$16 sps:$4 sm:$0xff]   ;;  %v5082_v54 = vld [vmem:[#allocation25 + $0x64] ss:$16 sps:$4 sm:$0xff]  }
 0x93b   :  { %2859 = vmatpush1.bf16.msra.mxu0 %v5002_v55  ;;  %2900 = vmatpush1.bf16.msra.mxu1 %v5005_v56  ;;  %v5083_v55 = vld [vmem:[#allocation25 + $0x68] ss:$16 sps:$4 sm:$0xff]   ;;  %v5088_v56 = vld [vmem:[#allocation25 + $0x84] ss:$16 sps:$4 sm:$0xff]  }
 0x93c   :  { %2860 = vmatprep.subr.bf16.mxu0 %v5010_v58  ;;  %2901 = vmatprep.subr.bf16.mxu1 %v5013_v60  ;;  %v5091_v58 = vld [vmem:[#allocation25 + $0x8c] ss:$16 sps:$4 sm:$0xff]   ;;  %v5086_v60 = vld [vmem:[#allocation25 + $0x80] ss:$16 sps:$4 sm:$0xff]  }
 0x93f   :  { %2861 = vmatpush1.bf16.msra.mxu0 %v5008_v61  ;;  %2902 = vmatpush1.bf16.msra.mxu1 %v5011_v62  ;;  %v5089_v61 = vld [vmem:[#allocation25 + $0x88] ss:$16 sps:$4 sm:$0xff]   ;;  %v5094_v62 = vld [vmem:[#allocation25 + $0xa4] ss:$16 sps:$4 sm:$0xff]  }
 0x940   :  { %2862 = vmatprep.subr.bf16.mxu0 %v5016_v63  ;;  %2903 = vmatprep.subr.bf16.mxu1 %v5019_v0  ;;  %v5097_v63 = vld [vmem:[#allocation25 + $0xac] ss:$16 sps:$4 sm:$0xff]   ;;  %v5092_v0 = vld [vmem:[#allocation25 + $0xa0] ss:$16 sps:$4 sm:$0xff]  }
 0x943   :  { %2863 = vmatpush1.bf16.msra.mxu0 %v5014_v2  ;;  %2904 = vmatpush1.bf16.msra.mxu1 %v5017_v5  ;;  %v5095_v2 = vld [vmem:[#allocation25 + $0xa8] ss:$16 sps:$4 sm:$0xff]   ;;  %v5100_v5 = vld [vmem:[#allocation25 + $0xc4] ss:$16 sps:$4 sm:$0xff]  }
 0x944   :  { %2864 = vmatprep.subr.bf16.mxu0 %v5022_v8  ;;  %2905 = vmatprep.subr.bf16.mxu1 %v5025_v9  ;;  %v5103_v8 = vld [vmem:[#allocation25 + $0xcc] ss:$16 sps:$4 sm:$0xff]   ;;  %v5098_v9 = vld [vmem:[#allocation25 + $0xc0] ss:$16 sps:$4 sm:$0xff]  }
 0x947   :  { %2865 = vmatpush1.bf16.msra.mxu0 %v5020_v4  ;;  %2906 = vmatpush1.bf16.msra.mxu1 %v5023_v12  ;;  %v5101_v4 = vld [vmem:[#allocation25 + $0xc8] ss:$16 sps:$4 sm:$0xff]   ;;  %v5106_v12 = vld [vmem:[#allocation25 + $0xe4] ss:$16 sps:$4 sm:$0xff]  }
 0x948   :  { %2866 = vmatprep.subr.bf16.mxu0 %v5028_v13  ;;  %2907 = vmatprep.subr.bf16.mxu1 %v5031_v15  ;;  %v5109_v13 = vld [vmem:[#allocation25 + $0xec] ss:$16 sps:$4 sm:$0xff]   ;;  %v5104_v15 = vld [vmem:[#allocation25 + $0xe0] ss:$16 sps:$4 sm:$0xff]  }
 0x94b   :  { %2867 = vmatpush1.bf16.msra.mxu0 %v5026_v17  ;;  %2908 = vmatpush1.bf16.msra.mxu1 %v5029_v21  ;;  %v5107_v17 = vld [vmem:[#allocation25 + $0xe8] ss:$16 sps:$4 sm:$0xff]   ;;  %v5112_v21 = vld [vmem:[#allocation25 + $0x104] ss:$16 sps:$4 sm:$0xff]  }
 0x94c   :  { %2868 = vmatprep.subr.bf16.mxu0 %v5034_v23  ;;  %2909 = vmatprep.subr.bf16.mxu1 %v5037_v38  ;;  %v5115_v23 = vld [vmem:[#allocation25 + $0x10c] ss:$16 sps:$4 sm:$0xff]   ;;  %v5110_v38 = vld [vmem:[#allocation25 + $0x100] ss:$16 sps:$4 sm:$0xff]  }
 0x94f   :  { %2869 = vmatpush1.bf16.msra.mxu0 %v5032_v41  ;;  %2910 = vmatpush1.bf16.msra.mxu1 %v5035_v1  ;;  %v5113_v41 = vld [vmem:[#allocation25 + $0x108] ss:$16 sps:$4 sm:$0xff]   ;;  %v5118_v1 = vld [vmem:[#allocation25 + $0x124] ss:$16 sps:$4 sm:$0xff]  }
 0x950   :  { %2870 = vmatprep.subr.bf16.mxu0 %v5040_v24  ;;  %2911 = vmatprep.subr.bf16.mxu1 %v5043_v6  ;;  %v5121_v24 = vld [vmem:[#allocation25 + $0x12c] ss:$16 sps:$4 sm:$0xff]   ;;  %v5116_v6 = vld [vmem:[#allocation25 + $0x120] ss:$16 sps:$4 sm:$0xff]  }
 0x953   :  { %2871 = vmatpush1.bf16.msra.mxu0 %v5038_v25  ;;  %2912 = vmatpush1.bf16.msra.mxu1 %v5041_v7  ;;  %v5119_v25 = vld [vmem:[#allocation25 + $0x128] ss:$16 sps:$4 sm:$0xff]   ;;  %v5124_v7 = vld [vmem:[#allocation25 + $0x144] ss:$16 sps:$4 sm:$0xff]  }
 0x954   :  { %2872 = vmatprep.subr.bf16.mxu0 %v5046_v16  ;;  %2913 = vmatprep.subr.bf16.mxu1 %v5049_v26  ;;  %v5127_v16 = vld [vmem:[#allocation25 + $0x14c] ss:$16 sps:$4 sm:$0xff]   ;;  %v5122_v26 = vld [vmem:[#allocation25 + $0x140] ss:$16 sps:$4 sm:$0xff]  }
 0x957   :  { %2873 = vmatpush1.bf16.msra.mxu0 %v5044_v27  ;;  %2914 = vmatpush1.bf16.msra.mxu1 %v5047_v30  ;;  %v5125_v27 = vld [vmem:[#allocation25 + $0x148] ss:$16 sps:$4 sm:$0xff]   ;;  %v5130_v30 = vld [vmem:[#allocation25 + $0x164] ss:$16 sps:$4 sm:$0xff]  }
 0x958   :  { %2874 = vmatprep.subr.bf16.mxu0 %v5052_v31  ;;  %2915 = vmatprep.subr.bf16.mxu1 %v5055_v32  ;;  %v5133_v31 = vld [vmem:[#allocation25 + $0x16c] ss:$16 sps:$4 sm:$0xff]   ;;  %v5128_v32 = vld [vmem:[#allocation25 + $0x160] ss:$16 sps:$4 sm:$0xff]  }
 0x95b   :  { %2875 = vmatpush1.bf16.msra.mxu0 %v5050_v33  ;;  %2916 = vmatpush1.bf16.msra.mxu1 %v5053_v34  ;;  %v5131_v33 = vld [vmem:[#allocation25 + $0x168] ss:$16 sps:$4 sm:$0xff]   ;;  %v5136_v34 = vld [vmem:[#allocation25 + $0x184] ss:$16 sps:$4 sm:$0xff]  }
 0x95c   :  { %2876 = vmatprep.subr.bf16.mxu0 %v5058_v35  ;;  %2917 = vmatprep.subr.bf16.mxu1 %v5061_v36  ;;  %v5139_v35 = vld [vmem:[#allocation25 + $0x18c] ss:$16 sps:$4 sm:$0xff]   ;;  %v5134_v36 = vld [vmem:[#allocation25 + $0x180] ss:$16 sps:$4 sm:$0xff]  }
 0x95f   :  { %2877 = vmatpush1.bf16.msra.mxu0 %v5056_v37  ;;  %2918 = vmatpush1.bf16.msra.mxu1 %v5059_v39  ;;  %v5137_v37 = vld [vmem:[#allocation25 + $0x188] ss:$16 sps:$4 sm:$0xff]   ;;  %v5142_v39 = vld [vmem:[#allocation25 + $0x1a4] ss:$16 sps:$4 sm:$0xff]  }
 0x960   :  { %3271 = vmatprep.subr.bf16.mxu0 %v5064_v40  ;;  %3312 = vmatprep.subr.bf16.mxu1 %v5067_v42  ;;  %v5145_v40 = vld [vmem:[#allocation25 + $0x1ac] ss:$16 sps:$4 sm:$0xff]   ;;  %v5140_v42 = vld [vmem:[#allocation25 + $0x1a0] ss:$16 sps:$4 sm:$0xff]  }
 0x962   :  { %2879 = vmatmul.mubr.bf16.vlgmr.msra.gmra.mrb[24].mxu0 %v6360_v28  ;;  %2920 = vmatmul.mubr.bf16.vlgmr.msra.gmra.mrb[20].mxu1 %v6362_v29  ;;  %v5085_v28 = vld [vmem:[#allocation25 + $0x6c] ss:$16 sps:$4 sm:$0xff]   ;;  %v5080_v29 = vld [vmem:[#allocation25 + $0x60] ss:$16 sps:$4 sm:$0xff]  }
 0x963   :  { %3272 = vmatpush1.bf16.msra.mxu0 %v5062_v43  ;;  %3303 = vmatprep.mubr.bf16.mxu0 %v2929_v45  ;;  %v5143_v43 = vld [vmem:[#allocation25 + $0x1a8] ss:$16 sps:$4 sm:$0xff]  }
 0x964   :  { %3313 = vmatpush1.bf16.msra.mxu1 %v5065_v44  ;;  %3344 = vmatprep.mubr.bf16.mxu1 %v2929_v45  ;;  %v5148_v44 = vld [vmem:[#allocation25 + $0x1c4] ss:$16 sps:$4 sm:$0xff]   ;;  %v5151_v45 = vld [vmem:[#allocation25 + $0x1cc] ss:$16 sps:$4 sm:$0xff]  }
 0x965   :  { %3273 = vmatprep.subr.bf16.mxu0 %v5070_v3  ;;  %3314 = vmatprep.subr.bf16.mxu1 %v5073_v46  ;;  %v6550_v3 = vld [vmem:[#allocation4] sm:$0xf]  ;;  %v5146_v46 = vld [vmem:[#allocation25 + $0x1c0] ss:$16 sps:$4 sm:$0xff]  }
 0x967   :  { %3274 = vmatpush1.bf16.msra.mxu0 %v5068_v47  ;;  %v5149_v47 = vld [vmem:[#allocation25 + $0x1c8] ss:$16 sps:$4 sm:$0xff]  }
 0x968   :  { %3315 = vmatpush1.bf16.msra.mxu1 %v5071_v48  ;;  %3275 = vmatprep.subr.bf16.mxu0 %v5076_v49  ;;  %v5154_v48 = vld [vmem:[#allocation25 + $0x1e4] ss:$16 sps:$4 sm:$0xff]   ;;  %v5157_v49 = vld [vmem:[#allocation25 + $0x1ec] ss:$16 sps:$4 sm:$0xff]  }
 0x969   :  { %3316 = vmatprep.subr.bf16.mxu1 %v5079_v50  ;;  %v790_v50 = vrot.slane %v6550_v3, %v6084_v11 }
 0x96b   :  { %3276 = vmatpush1.bf16.msra.mxu0 %v5074_v51  ;;  %v798_v51 = vrot.slane %v6550_v3, %v6247_v59 }
 0x96c   :  { %3317 = vmatpush1.bf16.msra.mxu1 %v5077_v22  ;;  %3277 = vmatprep.subr.bf16.mxu0 %v5082_v54  ;;  %v5152_v22 = vld [vmem:[#allocation25 + $0x1e0] ss:$16 sps:$4 sm:$0xff]   ;;  %v5155_v54 = vld [vmem:[#allocation25 + $0x1e8] ss:$16 sps:$4 sm:$0xff]  }
 0x96d   :  { %3318 = vmatprep.subr.bf16.mxu1 %v5085_v28  ;;  %v5158_v28 = vld [vmem:[%s6866_s21 + $0x40] sm:$0xff]  }
 0x96f   :  { %3278 = vmatpush1.bf16.msra.mxu0 %v5080_v29  ;;  %v5159_v29 = vld [vmem:[%s6866_s21 + $0xc0] sm:$0xff]  }
 0x970   :  { %3319 = vmatpush1.bf16.msra.mxu1 %v5083_v55  ;;  %3279 = vmatprep.subr.bf16.mxu0 %v5088_v56  ;;  %v875_v55 = vadd.f32 %v6053_v19, %v790_v50  ;;  %v916_v56 = vadd.f32 %v6069_v53, %v798_v51  ;;  %v5162_v19 = vld [vmem:[%s6866_s21 + $0x48] sm:$0xff]  }
 0x971   :  { %3320 = vmatprep.subr.bf16.mxu1 %v5091_v58  ;;  %v5160_v58 = vld [vmem:[%s6866_s21] sm:$0xff]  }
 0x972   :  { %v3390_v53 = vpack.c.bf16 %v875_v55, %v875_v55  ;;  %v5193_v55 = vld [vmem:[%s6865_s20 + $0x80] sm:$0xff]  }
 0x973   :  { %3280 = vmatpush1.bf16.msra.mxu0 %v5086_v60  ;;  %v2928_v60 = vpack.c.bf16 %v6110_v20, %v6110_v20  ;;  %v5164_v20 = vld [vmem:[%s6866_s21 + $0x8] sm:$0xff]  }
 0x974   :  { %3321 = vmatpush1.bf16.msra.mxu1 %v5089_v61  ;;  %3281 = vmatprep.subr.bf16.mxu0 %v5094_v62  ;;  %v5161_v61 = vld [vmem:[%s6866_s21 + $0x80] sm:$0xff]   ;;  %v5163_v62 = vld [vmem:[%s6866_s21 + $0xc8] sm:$0xff]  }
 0x975   :  { %3322 = vmatprep.subr.bf16.mxu1 %v5097_v63  ;;  %v3392_v63 = vpack.c.bf16 %v916_v56, %v916_v56  ;;  %v5194_v56 = vld [vmem:[%s6865_s20 + $0x48] sm:$0xff]  }
 0x977   :  { %3282 = vmatpush1.bf16.msra.mxu0 %v5092_v0  ;;  %v5165_v0 = vld [vmem:[%s6866_s21 + $0x88] sm:$0xff]  }
 0x978   :  { %3323 = vmatpush1.bf16.msra.mxu1 %v5095_v2  ;;  %3283 = vmatprep.subr.bf16.mxu0 %v5100_v5  ;;  %v5166_v2 = vld [vmem:[%s6866_s21 + $0x50] sm:$0xff]  }
 0x979   :  { %3324 = vmatprep.subr.bf16.mxu1 %v5103_v8  ;;  %v5167_v5 = vld [vmem:[%s6866_s21 + $0xd0] sm:$0xff]  }
 0x97a   :  { %v5168_v8 = vld [vmem:[%s6866_s21 + $0x10] sm:$0xff]  }
 0x97b   :  { %3284 = vmatpush1.bf16.msra.mxu0 %v5098_v9  ;;  %v5169_v9 = vld [vmem:[%s6866_s21 + $0x90] sm:$0xff]  }
 0x97c   :  { %3325 = vmatpush1.bf16.msra.mxu1 %v5101_v4  ;;  %3285 = vmatprep.subr.bf16.mxu0 %v5106_v12  ;;  %v5170_v4 = vld [vmem:[%s6866_s21 + $0x58] sm:$0xff]  }
 0x97d   :  { %3326 = vmatprep.subr.bf16.mxu1 %v5109_v13  ;;  %v5171_v12 = vld [vmem:[%s6866_s21 + $0xd8] sm:$0xff]  }
 0x97e   :  { %v5172_v13 = vld [vmem:[%s6866_s21 + $0x18] sm:$0xff]  }
 0x97f   :  { %3286 = vmatpush1.bf16.msra.mxu0 %v5104_v15  ;;  %v5173_v15 = vld [vmem:[%s6866_s21 + $0x98] sm:$0xff]  }
 0x980   :  { %3327 = vmatpush1.bf16.msra.mxu1 %v5107_v17  ;;  %3287 = vmatprep.subr.bf16.mxu0 %v5112_v21  ;;  %v5174_v17 = vld [vmem:[%s6866_s21 + $0x60] sm:$0xff]  }
 0x981   :  { %3328 = vmatprep.subr.bf16.mxu1 %v5115_v23  ;;  %v5175_v21 = vld [vmem:[%s6866_s21 + $0xe0] sm:$0xff]  }
 0x982   :  { %v5176_v23 = vld [vmem:[%s6866_s21 + $0x20] sm:$0xff]  }
 0x983   :  { %3288 = vmatpush1.bf16.msra.mxu0 %v5110_v38  ;;  %v5177_v38 = vld [vmem:[%s6866_s21 + $0xa0] sm:$0xff]  }
 0x984   :  { %3329 = vmatpush1.bf16.msra.mxu1 %v5113_v41  ;;  %3289 = vmatprep.subr.bf16.mxu0 %v5118_v1  ;;  %v5178_v41 = vld [vmem:[%s6866_s21 + $0x68] sm:$0xff]  }
 0x985   :  { %3330 = vmatprep.subr.bf16.mxu1 %v5121_v24  ;;  %v5179_v1 = vld [vmem:[%s6866_s21 + $0xe8] sm:$0xff]  }
 0x986   :  { %v5180_v24 = vld [vmem:[%s6866_s21 + $0x28] sm:$0xff]  }
 0x987   :  { %3290 = vmatpush1.bf16.msra.mxu0 %v5116_v6  ;;  %v5181_v6 = vld [vmem:[%s6866_s21 + $0xa8] sm:$0xff]  }
 0x988   :  { %3331 = vmatpush1.bf16.msra.mxu1 %v5119_v25  ;;  %3291 = vmatprep.subr.bf16.mxu0 %v5124_v7  ;;  %v5182_v25 = vld [vmem:[%s6866_s21 + $0x70] sm:$0xff]  }
 0x989   :  { %3332 = vmatprep.subr.bf16.mxu1 %v5127_v16  ;;  %v5183_v7 = vld [vmem:[%s6866_s21 + $0xf0] sm:$0xff]  }
 0x98a   :  { %v5184_v16 = vld [vmem:[%s6866_s21 + $0x30] sm:$0xff]  }
 0x98b   :  { %3292 = vmatpush1.bf16.msra.mxu0 %v5122_v26  ;;  %v786_v26 = vrot.slane %v6550_v3, %v6081_v10 }
 0x98c   :  { %3333 = vmatpush1.bf16.msra.mxu1 %v5125_v27  ;;  %3293 = vmatprep.subr.bf16.mxu0 %v5130_v30  ;;  %v5185_v27 = vld [vmem:[%s6866_s21 + $0xb0] sm:$0xff]   ;;  %v5186_v30 = vld [vmem:[%s6866_s21 + $0x78] sm:$0xff]  }
 0x98d   :  { %3334 = vmatprep.subr.bf16.mxu1 %v5133_v31  ;;  %v794_v31 = vrot.slane %v6550_v3, %v6243_v57 }
 0x98f   :  { %3294 = vmatpush1.bf16.msra.mxu0 %v5128_v32  ;;  %v5187_v32 = vld [vmem:[%s6866_s21 + $0xf8] sm:$0xff]  }
 0x990   :  { %3335 = vmatpush1.bf16.msra.mxu1 %v5131_v33  ;;  %3295 = vmatprep.subr.bf16.mxu0 %v5136_v34  ;;  %v5188_v33 = vld [vmem:[%s6866_s21 + $0x38] sm:$0xff]   ;;  %v873_v34 = vadd.f32 %v6051_v18, %v786_v26 }
 0x991   :  { %3336 = vmatprep.subr.bf16.mxu1 %v5139_v35  ;;  %v5189_v35 = vld [vmem:[%s6866_s21 + $0xb8] sm:$0xff]  }
 0x993   :  { %3296 = vmatpush1.bf16.msra.mxu0 %v5134_v36  ;;  %v914_v36 = vadd.f32 %v6067_v52, %v794_v31 }
 0x994   :  { %3337 = vmatpush1.bf16.msra.mxu1 %v5137_v37  ;;  %3297 = vmatprep.subr.bf16.mxu0 %v5142_v39  ;;  %v3389_v37 = vpack.c.bf16 %v873_v34, %v873_v34 }
 0x995   :  { %3338 = vmatprep.subr.bf16.mxu1 %v5145_v40  ;;  %v3391_v39 = vpack.c.bf16 %v914_v36, %v914_v36  ;;  %v573_v40 = vld [vmem:[#allocation24] sm:$0xf] }
 0x996   :  { %v2111_v18 = vrot.slane %v573_v40, %v6084_v11 }
 0x997   :  { %3298 = vmatpush1.bf16.msra.mxu0 %v5140_v42  ;;  %v2107_v42 = vrot.slane %v573_v40, %v6081_v10 }
 0x998   :  { %3339 = vmatpush1.bf16.msra.mxu1 %v5143_v43  ;;  %3299 = vmatprep.subr.bf16.mxu0 %v5148_v44 }
 0x999   :  { %3340 = vmatprep.subr.bf16.mxu1 %v5151_v45 }
 0x99b   :  { %3300 = vmatpush1.bf16.msra.mxu0 %v5146_v46 }
 0x99c   :  { %3341 = vmatpush1.bf16.msra.mxu1 %v5149_v47  ;;  %3301 = vmatprep.subr.bf16.mxu0 %v5154_v48 }
 0x99d   :  { %3342 = vmatprep.subr.bf16.mxu1 %v5157_v49 }
 0x99f   :  { %3302 = vmatpush1.bf16.msra.mxu0 %v5152_v22 }
 0x9a0   :  { %3343 = vmatpush1.bf16.msra.mxu1 %v5155_v54  ;;  %4515 = vmatprep.subr.bf16.mxu0 %v5158_v28  ;;  %v5190_v54 = vld [vmem:[%s6865_s20 + $0x40] sm:$0xff]  }
 0x9a1   :  { %4537 = vmatprep.subr.bf16.mxu1 %v5159_v29  ;;  %v5191_v28 = vld [vmem:[%s6865_s20 + $0xc0] sm:$0xff]  }
 0x9a2   :  { %3304 = vmatmul.mubr.bf16.vlgmr.msra.gmra.mrb[28].mxu0 %v2928_v60  ;;  %v5192_v29 = vld [vmem:[%s6865_s20] sm:$0xff]  }
 0x9a3   :  { %3345 = vmatmul.mubr.bf16.vlgmr.msra.gmra.mrb[24].mxu1 %v2928_v60  ;;  %4516 = vmatpush3.bf16.msra.mxu0 %v5160_v58  ;;  %v5195_v58 = vld [vmem:[%s6865_s20 + $0xc8] sm:$0xff]  }
 0x9a4   :  { %3617 = vmatprep.mubr.bf16.mxu0 %v3390_v53  ;;  %4538 = vmatpush3.bf16.msra.mxu1 %v5161_v61  ;;  %v5196_v60 = vld [vmem:[%s6865_s20 + $0x8] sm:$0xff]   ;;  %v2119_v53 = vrot.slane %v573_v40, %v6247_v59 }
 0x9a5   :  { %3657 = vmatprep.mubr.bf16.mxu1 %v3392_v63  ;;  %4517 = vmatprep.subr.bf16.mxu0 %v5162_v19  ;;  %v5197_v61 = vld [vmem:[%s6865_s20 + $0x88] sm:$0xff]   ;;  %v2115_v19 = vrot.slane %v573_v40, %v6243_v57 }
 0x9a6   :  { %4539 = vmatprep.subr.bf16.mxu1 %v5163_v62 }
 0x9a7   :  { %4518 = vmatpush3.bf16.msra.mxu0 %v5164_v20 }
 0x9a8   :  { %4540 = vmatpush3.bf16.msra.mxu1 %v5165_v0  ;;  %4519 = vmatprep.subr.bf16.mxu0 %v5166_v2 }
 0x9a9   :  { %4541 = vmatprep.subr.bf16.mxu1 %v5167_v5 }
 0x9ab   :  { %4520 = vmatpush3.bf16.msra.mxu0 %v5168_v8 }
 0x9ac   :  { %4542 = vmatpush3.bf16.msra.mxu1 %v5169_v9  ;;  %4521 = vmatprep.subr.bf16.mxu0 %v5170_v4 }
 0x9ad   :  { %4543 = vmatprep.subr.bf16.mxu1 %v5171_v12 }
 0x9af   :  { %4522 = vmatpush3.bf16.msra.mxu0 %v5172_v13 }
 0x9b0   :  { %4544 = vmatpush3.bf16.msra.mxu1 %v5173_v15  ;;  %4523 = vmatprep.subr.bf16.mxu0 %v5174_v17  ;;  %v638_v17 = vld [vmem:[#allocation27] sm:$0xf] }
 0x9b1   :  { %4545 = vmatprep.subr.bf16.mxu1 %v5175_v21  ;;  %v2934_v21 = vrot.slane %v638_v17, %v6081_v10 }
 0x9b3   :  { %4524 = vmatpush3.bf16.msra.mxu0 %v5176_v23  ;;  %v2942_v23 = vrot.slane %v638_v17, %v6243_v57 }
 0x9b4   :  { %4546 = vmatpush3.bf16.msra.mxu1 %v5177_v38  ;;  %4525 = vmatprep.subr.bf16.mxu0 %v5178_v41  ;;  %v2938_v38 = vrot.slane %v638_v17, %v6084_v11 }
 0x9b5   :  { %4547 = vmatprep.subr.bf16.mxu1 %v5179_v1  ;;  %v2946_v1 = vrot.slane %v638_v17, %v6247_v59  ;;  %v5219_v17 = vld [vmem:[%s6865_s20 + $0xf8] sm:$0xff]  }
 0x9b7   :  { %4526 = vmatpush3.bf16.msra.mxu0 %v5180_v24 }
 0x9b8   :  { %4548 = vmatpush3.bf16.msra.mxu1 %v5181_v6  ;;  %4527 = vmatprep.subr.bf16.mxu0 %v5182_v25 }
 0x9b9   :  { %4549 = vmatprep.subr.bf16.mxu1 %v5183_v7 }
 0x9bb   :  { %4528 = vmatpush3.bf16.msra.mxu0 %v5184_v16 }
 0x9bc   :  { %4550 = vmatpush3.bf16.msra.mxu1 %v5185_v27  ;;  %4529 = vmatprep.subr.bf16.mxu0 %v5186_v30 }
 0x9bd   :  { %4551 = vmatprep.subr.bf16.mxu1 %v5187_v32 }
 0x9bf   :  { %4530 = vmatpush3.bf16.msra.mxu0 %v5188_v33 }
 0x9c0   :  { %4552 = vmatpush3.bf16.msra.mxu1 %v5189_v35  ;;  %4559 = vmatprep.subr.bf16.mxu0 %v5190_v54 }
 0x9c1   :  { %4581 = vmatprep.subr.bf16.mxu1 %v5191_v28  ;;  %v5208_v28 = vld [vmem:[%s6865_s20 + $0x20] sm:$0xff]  }
 0x9c2   :  { %3618 = vmatmul.mubr.bf16.vlgmr.msra.gmra.mrb[32].mxu0 %v3389_v37 }
 0x9c3   :  { %3658 = vmatmul.mubr.bf16.vlgmr.msra.gmra.mrb[28].mxu1 %v3391_v39  ;;  %4560 = vmatpush3.bf16.msra.mxu0 %v5192_v29  ;;  %v5209_v29 = vld [vmem:[%s6865_s20 + $0xa0] sm:$0xff]  }
 0x9c4   :  { %4582 = vmatpush3.bf16.msra.mxu1 %v5193_v55  ;;  %4561 = vmatprep.subr.bf16.mxu0 %v5194_v56 }
 0x9c5   :  { %4583 = vmatprep.subr.bf16.mxu1 %v5195_v58 }
 0x9c7   :  { %4562 = vmatpush3.bf16.msra.mxu0 %v5196_v60  ;;  %v5210_v60 = vld [vmem:[%s6865_s20 + $0x68] sm:$0xff]  }
 0x9c8   :  { %4584 = vmatpush3.bf16.msra.mxu1 %v5197_v61  ;;  %v5211_v61 = vld [vmem:[%s6865_s20 + $0xe8] sm:$0xff]  }
 0x9f5   :  { %v2798_v43 = vpop.f32.mrb[20].mxu0  ;;  %v2839_v44 = vpop.f32.mrb[16].mxu1 }
 0x9f6   :  { %v2799_v45 = vadd.f32 %v2798_v43, %v2107_v42  ;;  %v2800_v3 = vpop.f32.mrb[21].mxu0  ;;  %v2841_v46 = vpop.f32.mrb[17].mxu1  ;;  %v5198_v42 = vld [vmem:[%s6865_s20 + $0x50] sm:$0xff]  }
 0x9f7   :  { %v2801_v47 = vadd.f32 %v2800_v3, %v2111_v18  ;;  %v2802_v48 = vpop.f32.mrb[22].mxu0  ;;  %v2843_v52 = vpop.f32.mrb[18].mxu1  ;;  %v5199_v18 = vld [vmem:[%s6865_s20 + $0xd0] sm:$0xff]   ;;  %4563 = vmatprep.subr.bf16.mxu0 %v5198_v42  ;;  %v5203_v3 = vld [vmem:[%s6865_s20 + $0xd8] sm:$0xff]  }
 0x9f8   :  { %v6664_v49 = vadd.f32 %v2839_v44, %v2799_v45  ;;  %v2803_v50 = vpop.f32.mrb[23].mxu0  ;;  %v2844_v51 = vpop.f32.mrb[19].mxu1  ;;  %v5200_v43 = vld [vmem:[%s6865_s20 + $0x10] sm:$0xff]   ;;  %4585 = vmatprep.subr.bf16.mxu1 %v5199_v18  ;;  %v5202_v45 = vld [vmem:[%s6865_s20 + $0x58] sm:$0xff]   ;;  %v5206_v52 = vld [vmem:[%s6865_s20 + $0x60] sm:$0xff]  }
 0x9f9   :  { %v6666_v22 = vadd.f32 %v2841_v46, %v2801_v47  ;;  %v5201_v44 = vld [vmem:[%s6865_s20 + $0x90] sm:$0xff]   ;;  %4564 = vmatpush3.bf16.msra.mxu0 %v5200_v43  ;;  %v5204_v46 = vld [vmem:[%s6865_s20 + $0x18] sm:$0xff]   ;;  %v5207_v50 = vld [vmem:[%s6865_s20 + $0xe0] sm:$0xff]  }
 0x9fa   :  { %4586 = vmatpush3.bf16.msra.mxu1 %v5201_v44  ;;  %v5205_v47 = vld [vmem:[%s6865_s20 + $0x98] sm:$0xff]   ;;  %4565 = vmatprep.subr.bf16.mxu0 %v5202_v45 }
 0x9fb   :  { %4587 = vmatprep.subr.bf16.mxu1 %v5203_v3 }
 0x9fd   :  { %4566 = vmatpush3.bf16.msra.mxu0 %v5204_v46 }
 0x9fe   :  { %4588 = vmatpush3.bf16.msra.mxu1 %v5205_v47  ;;  %4567 = vmatprep.subr.bf16.mxu0 %v5206_v52 }
 0x9ff   :  { %4589 = vmatprep.subr.bf16.mxu1 %v5207_v50 }
 0xa01   :  { %4568 = vmatpush3.bf16.msra.mxu0 %v5208_v28 }
 0xa02   :  { %4590 = vmatpush3.bf16.msra.mxu1 %v5209_v29  ;;  %4569 = vmatprep.subr.bf16.mxu0 %v5210_v60  ;;  %v5226_v29 = vld [vmem:[%s6871_s26] sm:$0xff]  }
 0xa03   :  { %4591 = vmatprep.subr.bf16.mxu1 %v5211_v61 }
 0xa35   :  { %v2880_v62 = vpop.f32.mrb[24].mxu0  ;;  %v2921_v63 = vpop.f32.mrb[20].mxu1 }
 0xa36   :  { %v2881_v20 = vadd.f32 %v2880_v62, %v2115_v19  ;;  %v2882_v0 = vpop.f32.mrb[25].mxu0  ;;  %v2923_v2 = vpop.f32.mrb[21].mxu1 }
 0xa37   :  { %v2883_v5 = vadd.f32 %v2882_v0, %v2119_v53  ;;  %v2884_v8 = vpop.f32.mrb[26].mxu0  ;;  %v2925_v9 = vpop.f32.mrb[22].mxu1  ;;  %v5212_v0 = vld [vmem:[%s6865_s20 + $0x28] sm:$0xff]  }
 0xa38   :  { %v6694_v4 = vadd.f32 %v2921_v63, %v2881_v20  ;;  %v2885_v12 = vpop.f32.mrb[27].mxu0  ;;  %v2926_v13 = vpop.f32.mrb[23].mxu1  ;;  %v5215_v8 = vld [vmem:[%s6865_s20 + $0xf0] sm:$0xff]   ;;  %4570 = vmatpush3.bf16.msra.mxu0 %v5212_v0 }
 0xa39   :  { %v6696_v15 = vadd.f32 %v2923_v2, %v2883_v5  ;;  %v5213_v2 = vld [vmem:[%s6865_s20 + $0xa8] sm:$0xff]   ;;  %v5214_v5 = vld [vmem:[%s6865_s20 + $0x70] sm:$0xff]   ;;  %v5218_v13 = vld [vmem:[%s6865_s20 + $0x78] sm:$0xff]  }
 0xa3a   :  { %4592 = vmatpush3.bf16.msra.mxu1 %v5213_v2  ;;  %v5216_v9 = vld [vmem:[%s6865_s20 + $0x30] sm:$0xff]   ;;  %4571 = vmatprep.subr.bf16.mxu0 %v5214_v5  ;;  %v4507_v2 = vld [vmem:[%s6872_s27] ss:$0 sm:$0xff] }
 0xa3b   :  { %v5217_v12 = vld [vmem:[%s6865_s20 + $0xb0] sm:$0xff]   ;;  %4593 = vmatprep.subr.bf16.mxu1 %v5215_v8 }
 0xa3c   :  { %4572 = vmatpush3.bf16.msra.mxu0 %v5216_v9 }
 0xa3d   :  { %4573 = vmatprep.subr.bf16.mxu0 %v5218_v13 }
 0xa3e   :  { %4594 = vmatpush3.bf16.msra.mxu1 %v5217_v12 }
 0xa3f   :  { %4595 = vmatprep.subr.bf16.mxu1 %v5219_v17 }
 0xa75   :  { %v3305_v41 = vpop.f32.mrb[28].mxu0 }
 0xa76   :  { %v6702_v24 = vadd.f32 %v3305_v41, %v2934_v21  ;;  %v3346_v6 = vpop.f32.mrb[24].mxu1  ;;  %v3307_v25 = vpop.f32.mrb[29].mxu0  ;;  %v5220_v21 = vld [vmem:[%s6865_s20 + $0x38] sm:$0xff]  }
 0xa77   :  { %v6704_v7 = vadd.f32 %v3346_v6, %v2942_v23  ;;  %v6706_v16 = vadd.f32 %v3307_v25, %v2938_v38  ;;  %v3348_v26 = vpop.f32.mrb[25].mxu1  ;;  %v3309_v27 = vpop.f32.mrb[30].mxu0  ;;  %v5221_v23 = vld [vmem:[%s6865_s20 + $0xb8] sm:$0xff]   ;;  %4574 = vmatpush3.bf16.msra.mxu0 %v5220_v21 }
 0xa78   :  { %v3359_v10 = vmul.f32 %v6702_v24, %v6702_v24  ;;  %v3350_v30 = vpop.f32.mrb[26].mxu1  ;;  %v3310_v57 = vpop.f32.mrb[31].mxu0  ;;  %v6714_v31 = vadd.f32 %v3348_v26, %v2946_v1  ;;  %4596 = vmatpush3.bf16.msra.mxu1 %v5221_v23  ;;  %4628 = vmatprep.subr.bf16.mxu0 %v5658_v14 }
 0xa79   :  { %v3353_v11 = vadd.f32 %v6706_v16, %v6702_v24  ;;  %v3360_v59 = vmul.f32 %v6706_v16, %v6706_v16  ;;  %v3351_v32 = vpop.f32.mrb[27].mxu1  ;;  %v3361_v33 = vmul.f32 %v6704_v7, %v6704_v7  ;;  %4640 = vmatprep.subr.bf16.mxu1 %v5658_v14 }
 0xa7a   :  { %v3362_v37 = vmul.f32 %v6714_v31, %v6714_v31 }
 0xa7b   :  { %v3354_v34 = vadd.f32 %v3353_v11, %v6704_v7  ;;  %v3363_v35 = vadd.f32 %v3360_v59, %v3359_v10 }
 0xa7d   :  { %v3355_v36 = vadd.f32 %v3354_v34, %v6714_v31  ;;  %v3364_v39 = vadd.f32 %v3363_v35, %v3361_v33 }
 0xa7f   :  { %3356 = vadd.xlane.f32.xlu0 %v3355_v36  ;;  %v3365_v40 = vadd.f32 %v3364_v39, %v3362_v37 }
 0xa81   :  { %3366 = vadd.xlane.f32.xlu1 %v3365_v40 }
 0xa95   :  { %v4531_v48 = vpop.f32.mrb[32].mxu0 }
 0xa96   :  { %v4553_v51 = vpop.f32.mrb[28].mxu1  ;;  %v4532_v54 = vpop.f32.mrb[33].mxu0 }
 0xa97   :  { %v4533_v55 = vadd.f32 %v4532_v54, %v4531_v48  ;;  %v4554_v56 = vpop.f32.mrb[29].mxu1  ;;  %v4534_v58 = vpop.f32.mrb[34].mxu0 }
 0xa98   :  { %v4555_v19 = vadd.f32 %v4554_v56, %v4553_v51  ;;  %v4556_v53 = vpop.f32.mrb[30].mxu1  ;;  %v4535_v62 = vpop.f32.mrb[35].mxu0 }
 0xa99   :  { %v4557_v63 = vpop.f32.mrb[31].mxu1 }
 0xa9a   :  { %v6764_v20 = vadd.f32 %v4555_v19, %v4533_v55  ;;  %v4498_v55 = vld [vmem:[%s6869_s24] ss:$0 sm:$0xff] }
 0xb0c   :  { %v3357_v38 = vpop.xlane.xlu0 %3356 }
 0xb0d   :  { %v3358_v41 = vmul.f32 0.001953125, %v3357_v38 }
 0xb0e   :  { %v3367_v1 = vpop.xlane.xlu1 %3366 }
 0xb0f   :  { %v3368_v6 = vmul.f32 0.001953125, %v3367_v1  ;;  %v3373_v25 = vmul.f32 %v3358_v41, %v3358_v41  ;;  %v3370_v10 = vsub.f32 %v6706_v16, %v3358_v41  ;;  %v3372_v30 = vsub.f32 %v6714_v31, %v3358_v41 }
 0xb10   :  { %v3369_v57 = vsub.f32 %v6702_v24, %v3358_v41  ;;  %v3371_v11 = vsub.f32 %v6704_v7, %v3358_v41  ;;  %v5222_v24 = vld [vmem:[%s6868_s23] sm:$0xff]  }
 0xb11   :  { %v3374_v26 = vsub.f32 %v3368_v6, %v3373_v25 }
 0xb13   :  { %v3375_v27 = vadd.f32 1e-05, %v3374_v26 }
 0xb15   :  { %5239 = vrsqrt.f32 %v3375_v27 }
 0xb1f   :  { %v5240_v59 = vpop.eup %5239 }
 0xb20   :  { %v3378_v32 = vmul.f32 %v5240_v59, %v3370_v10  ;;  %v3380_v33 = vmul.f32 %v5240_v59, %v3372_v30  ;;  %v3377_v34 = vmul.f32 %v5240_v59, %v3369_v57  ;;  %v3379_v35 = vmul.f32 %v5240_v59, %v3371_v11 }
 0xb22   :  { %v3382_v36 = vadd.f32 %v3378_v32, %v6666_v22  ;;  %v3384_v37 = vadd.f32 %v3380_v33, %v6696_v15  ;;  %v3381_v39 = vadd.f32 %v3377_v34, %v6664_v49  ;;  %v3383_v40 = vadd.f32 %v3379_v35, %v6694_v4  ;;  %v5223_v49 = vld [vmem:[%s6868_s23 + $0x8] sm:$0xff]   ;;  %v5224_v22 = vld [vmem:[%s6868_s23 + $0x10] sm:$0xff]   ;;  %v5225_v4 = vld [vmem:[%s6868_s23 + $0x18] sm:$0xff]  }
 0xb24   :  { %v3386_v16 = vpack.c.bf16 %v3382_v36, %v3382_v36  ;;  %v3388_v42 = vpack.c.bf16 %v3384_v37, %v3384_v37  ;;  %v3385_v31 = vpack.c.bf16 %v3381_v39, %v3381_v39  ;;  %v3387_v18 = vpack.c.bf16 %v3383_v40, %v3383_v40 }
 0xb26   :  { %3889 = vmatprep.mubr.bf16.mxu0 %v3386_v16  ;;  %3929 = vmatprep.mubr.bf16.mxu1 %v3388_v42 }
 0xb27   :  { %3890 = vmatmul.mubr.bf16.vlgmr.msra.gmra.mrb[36].mxu0 %v3385_v31  ;;  %3930 = vmatmul.mubr.bf16.vlgmr.msra.gmra.mrb[32].mxu1 %v3387_v18 }
 0xb28   :  { %4629 = vmatpush3.bf16.msra.mxu0 %v5222_v24  ;;  %4636 = vmatprep.mubr.msk.bf16.mxu0 %vm5659_vm2, %v5658_v14 }
 0xb29   :  { %4630 = vmatprep.subr.bf16.mxu0 %v5658_v14  ;;  %4642 = vmatprep.mubr.msk.bf16.mxu1 %vm5659_vm2, %v5658_v14 }
 0xb2a   :  { %4641 = vmatpush3.bf16.msra.mxu1 %v5226_v29 }
 0xb2c   :  { %4631 = vmatpush3.bf16.msra.mxu0 %v5223_v49 }
 0xb2d   :  { %4632 = vmatprep.subr.bf16.mxu0 %v5658_v14 }
 0xb30   :  { %4633 = vmatpush3.bf16.msra.mxu0 %v5224_v22 }
 0xb31   :  { %4634 = vmatprep.subr.bf16.mxu0 %v5658_v14  ;;  %v4497_v14 = vld [vmem:[%s6867_s22] ss:$0 sm:$0xff] }
 0xb34   :  { %4635 = vmatpush3.bf16.msra.mxu0 %v5225_v4 }
 0xbfa   :  { %v4575_v15 = vpop.f32.mrb[36].mxu0  ;;  %v4597_v7 = vpop.f32.mrb[32].mxu1 }
 0xbfb   :  { %v4576_v43 = vpop.f32.mrb[37].mxu0  ;;  %v4598_v44 = vpop.f32.mrb[33].mxu1 }
 0xbfc   :  { %v4577_v45 = vadd.f32 %v4576_v43, %v4575_v15  ;;  %v4599_v3 = vadd.f32 %v4598_v44, %v4597_v7  ;;  %v4578_v46 = vpop.f32.mrb[38].mxu0  ;;  %v4600_v47 = vpop.f32.mrb[34].mxu1 }
 0xbfd   :  { %v4579_v48 = vpop.f32.mrb[39].mxu0  ;;  %v4601_v52 = vpop.f32.mrb[35].mxu1 }
 0xbfe   :  { %v3892_v50 = vadd.f32 %v4577_v45, %v6764_v20  ;;  %v4504_v20 = vld [vmem:[%s6870_s25] ss:$0 sm:$0xff] }
 0xc00   :  { %v3932_v51 = vadd.f32 %v4599_v3, %v3892_v50 }
 0xc02   :  { %v3943_v54 = vadd.f32 %v4497_v14, %v3932_v51 }
 0xc04   :  { %v3944_v28 = vpack.c.bf16 %v3943_v54, %v3943_v54 }
 0xc06   :  { %4637 = vmatmul.mubr.msk.bf16.vlgmr.msra.gmra.mrb[40].mxu0 %vm973_vm3, %v3944_v28 }
 0xcd9   :  { %v4012_v56 = vpop.f32.mrb[40].mxu0 }
 0xcda   :  { %v4013_v58 = vadd.f32 %v4498_v55, %v4012_v56  ;;  %v4638_v60 = vpop.f32.mrb[41].mxu0 }
 0xcdb   :  { %v4015_v61 = vpop.f32.mrb[42].mxu0 }
 0xcdc   :  { %vm4025_vm14 = vcmp.ge.f32.partialorder %v4013_v58, 0.0  ;;  %v4026_v19 = vmul.f32 0.01, %v4013_v58  ;;  %v4639_v53 = vpop.f32.mrb[43].mxu0  ;;  %v4024_v0 = vmul.f32 %v4504_v20, %v4013_v58 }
 0xcde   :  { %v4027_v62 = vsel %vm4025_vm14, %v4013_v58, %v4026_v19 }
 0xcdf   :  { %v4028_v63 = vpack.c.bf16 %v4027_v62, %v4027_v62 }
 0xce1   :  { %4643 = vmatmul.mubr.msk.bf16.vlgmr.msra.gmra.mrb[36].mxu1 %vm4035_vm15, %v4028_v63 }
 0xdb4   :  { %v4073_v5 = vpop.f32.mrb[36].mxu1 }
 0xdb5   :  { %v4079_v8 = vadd.f32 %v4073_v5, %v4024_v0  ;;  %v4644_v9 = vpop.f32.mrb[37].mxu1 }
 0xdb6   :  { %v4076_v12 = vpop.f32.mrb[38].mxu1 }
 0xdb7   :  { %v4086_v13 = vadd.f32 %v4507_v2, %v4079_v8  ;;  %v4645_v17 = vpop.f32.mrb[39].mxu1 }
 0xdb9   :  { %4087 = vst.msk [vmem:[%s6914_s17] sm:$0xff] %vm4035_vm15, %v4086_v13 }
 0xdba   :  { %4092 = vsyncpa [#allocation3], 1 }
 0xdbb   :  { %4093 = vsyncpa [#allocation5], 1 }
 0xdbc   :  { %4094 = vsyncpa [#allocation8], 1 }
 0xdbd   :  { %4095 = vsyncpa [#allocation11], 1 }
 0xdbe   :  { %4096 = vsyncpa [#allocation14], 1 }
 0xdbf   :  { %4097 = vsyncpa [#allocation17], 1 }
 0xdc0   :  { %4098 = vsyncpa [#allocation20], 1 }
 0xdc1   :  { %4099 = vsyncpa [#allocation23], 1 }
 0xdc2   :  { %4100 = vsyncpa [#allocation26], 1 }

</bundles_post_ra>
